<compile_context>
chip_gen: v6e
topology: v6e:2x2x1
jax: 0.10.0
libtpu: 0.0.40
codegen_flags: <defaults>
</compile_context>

<pallas_src>
import jax
import jax.numpy as jnp
from jax.experimental import pallas as pl
from jax.experimental.pallas import tpu as pltpu


# ----------------------------------------------------------------------------
# Generation-aware sizing
# ----------------------------------------------------------------------------
def _vmem_limit_bytes():
    try:
        info = pltpu.get_tpu_info()
        cap = int(getattr(info, "vmem_capacity_bytes", 64 * 1024 * 1024))
    except Exception:
        cap = 64 * 1024 * 1024          # conservative (v7x-sized) fallback
    # leave headroom for compiler-internal scratch / double buffers
    return min((cap * 5) // 8, 80 * 1024 * 1024)


_VMEM_LIMIT = _vmem_limit_bytes()


def _pad_to(c, m=8):
    return max(m, ((c + m - 1) // m) * m)


def _choose_tn(n, tn=None):
    if tn is not None:
        assert n % tn == 0, "bad point-tile size"
        return tn
    if _VMEM_LIMIT >= 64 * 1024 * 1024:      # v5e / v6e (128 MiB VMEM)
        cands = (2048, 1024, 512, 256, 128)
    else:                                    # v7x (64 MiB VMEM per TC)
        cands = (1024, 512, 256, 128)
    for c in cands:
        if n % c == 0:
            return c
    return n


# ----------------------------------------------------------------------------
# Kernel 1: T-Net-1 shared MLP (Cin -> 64 -> 128 -> 1024).  Emits per-tile raw
# maxima of the scale-folded conv3 output; BN shift + ReLU are applied after
# the reduction in XLA (exact: per-channel shift, monotone ReLU).
# ----------------------------------------------------------------------------
def _tnet_mlp_max_kernel(x_ref, wa_ref, sa_ref, wb_ref, sb_ref, wc_ref, g_ref):
    h = jnp.dot(x_ref[...], wa_ref[...], preferred_element_type=jnp.float32)
    h = jnp.maximum(h + sa_ref[...], 0.0).astype(jnp.bfloat16)
    h = jnp.dot(h, wb_ref[...], preferred_element_type=jnp.float32)
    h = jnp.maximum(h + sb_ref[...], 0.0).astype(jnp.bfloat16)
    h = jnp.dot(h, wc_ref[...], preferred_element_type=jnp.float32)   # (TN,1024) raw
    tile_max = jnp.max(h, axis=0, keepdims=True)                      # (1,1024)
    g_ref[...] = jnp.broadcast_to(tile_max, g_ref.shape)              # (8,1024)


def tnet1_mlp_max(x, wa, sa, wb, sb, wc, tn):
    B, N, Cin = x.shape
    nt = N // tn
    return pl.pallas_call(
        _tnet_mlp_max_kernel,
        out_shape=jax.ShapeDtypeStruct((B, nt, 8, 1024), jnp.float32),
        grid=(B, nt),
        in_specs=[
            pl.BlockSpec((None, tn, Cin), lambda b, n: (b, n, 0)),
            pl.BlockSpec((Cin, 64), lambda b, n: (0, 0)),
            pl.BlockSpec((1, 64), lambda b, n: (0, 0)),
            pl.BlockSpec((64, 128), lambda b, n: (0, 0)),
            pl.BlockSpec((1, 128), lambda b, n: (0, 0)),
            pl.BlockSpec((128, 1024), lambda b, n: (0, 0)),
        ],
        out_specs=pl.BlockSpec((None, None, 8, 1024), lambda b, n: (b, n, 0, 0)),
        compiler_params=pltpu.CompilerParams(
            dimension_semantics=("parallel", "parallel"),
            vmem_limit_bytes=_VMEM_LIMIT),
    )(x, wa, sa, wb, sb, wc)


# ----------------------------------------------------------------------------
# Kernel 2: trunk conv1 (per-batch, T1-folded) -> conv2 (output padded to 128
# lanes) fused with the feature-T-Net shared MLP + per-tile max.  `h` is
# written exactly once and never re-read from HBM.
# ----------------------------------------------------------------------------
def _trunk_head_tnet2_kernel(x_ref, w1_ref, s1_ref, w2_ref, s2_ref,
                             tw1_ref, ts1_ref, tw2_ref, ts2_ref, tw3_ref,
                             h_ref, g2_ref):
    h = jnp.dot(x_ref[...], w1_ref[...], preferred_element_type=jnp.float32)
    h = jnp.maximum(h + s1_ref[...], 0.0).astype(jnp.bfloat16)          # (TN,64)
    h = jnp.dot(h, w2_ref[...], preferred_element_type=jnp.float32)
    h = jnp.maximum(h + s2_ref[...], 0.0).astype(jnp.bfloat16)          # (TN,128) lane-dense
    h_ref[...] = h

    t = jnp.dot(h, tw1_ref[...], preferred_element_type=jnp.float32)
    t = jnp.maximum(t + ts1_ref[...], 0.0).astype(jnp.bfloat16)
    t = jnp.dot(t, tw2_ref[...], preferred_element_type=jnp.float32)
    t = jnp.maximum(t + ts2_ref[...], 0.0).astype(jnp.bfloat16)
    t = jnp.dot(t, tw3_ref[...], preferred_element_type=jnp.float32)    # (TN,1024) raw
    tile_max = jnp.max(t, axis=0, keepdims=True)
    g2_ref[...] = jnp.broadcast_to(tile_max, g2_ref.shape)


def trunk_head_tnet2(x, w1b, s1, w2, s2, tw1, ts1, tw2, ts2, tw3, tn):
    B, N, Cin = x.shape
    nt = N // tn
    return pl.pallas_call(
        _trunk_head_tnet2_kernel,
        out_shape=(jax.ShapeDtypeStruct((B, N, 128), jnp.bfloat16),
                   jax.ShapeDtypeStruct((B, nt, 8, 1024), jnp.float32)),
        grid=(B, nt),
        in_specs=[
            pl.BlockSpec((None, tn, Cin), lambda b, n: (b, n, 0)),
            pl.BlockSpec((None, Cin, 64), lambda b, n: (b, 0, 0)),
            pl.BlockSpec((1, 64), lambda b, n: (0, 0)),
            pl.BlockSpec((64, 128), lambda b, n: (0, 0)),
            pl.BlockSpec((1, 128), lambda b, n: (0, 0)),
            pl.BlockSpec((128, 64), lambda b, n: (0, 0)),
            pl.BlockSpec((1, 64), lambda b, n: (0, 0)),
            pl.BlockSpec((64, 128), lambda b, n: (0, 0)),
            pl.BlockSpec((1, 128), lambda b, n: (0, 0)),
            pl.BlockSpec((128, 1024), lambda b, n: (0, 0)),
        ],
        out_specs=(pl.BlockSpec((None, tn, 128), lambda b, n: (b, n, 0)),
                   pl.BlockSpec((None, None, 8, 1024), lambda b, n: (b, n, 0, 0))),
        compiler_params=pltpu.CompilerParams(
            dimension_semantics=("parallel", "parallel"),
            vmem_limit_bytes=_VMEM_LIMIT),
    )(x, w1b, s1, w2, s2, tw1, ts1, tw2, ts2, tw3)


# ----------------------------------------------------------------------------
# Kernel 3: trunk conv3 (per-batch, T2-folded) -> conv4 -> conv5.  conv5 is
# computed transposed so the (1024, TN) point_feature tile is stored directly
# (bf16, lane-dense).  Global max is a pure-VPU running elementwise max in a
# VMEM scratch; one lane-reduce per batch at the last N tile.
# ----------------------------------------------------------------------------
def _trunk_tail_kernel(x_ref, w3_ref, s3_ref, w4_ref, s4_ref, w5t_ref, s5_ref,
                       pf_ref, g_ref, acc_ref):
    h = jnp.dot(x_ref[...], w3_ref[...], preferred_element_type=jnp.float32)
    h = jnp.maximum(h + s3_ref[...], 0.0).astype(jnp.bfloat16)            # (TN,64)
    h = jnp.dot(h, w4_ref[...], preferred_element_type=jnp.float32)
    h = jnp.maximum(h + s4_ref[...], 0.0).astype(jnp.bfloat16)            # (TN,128)
    ht = jnp.transpose(h, (1, 0))                                         # (128,TN) bf16 (small)
    h5 = jnp.dot(w5t_ref[...], ht, preferred_element_type=jnp.float32)    # (1024,TN)
    h5 = jnp.maximum(h5 + s5_ref[...], 0.0)
    pf_ref[...] = h5.astype(pf_ref.dtype)

    @pl.when(pl.program_id(1) == 0)
    def _():
        acc_ref[...] = h5

    @pl.when(pl.program_id(1) != 0)
    def _():
        acc_ref[...] = jnp.maximum(acc_ref[...], h5)

    @pl.when(pl.program_id(1) == pl.num_programs(1) - 1)
    def _():
        g_ref[...] = jnp.max(acc_ref[...], axis=1, keepdims=True)         # (1024,1)


def trunk_tail(x, w3b, s3, w4, s4, w5t, s5, tn):
    B, N, _ = x.shape
    return pl.pallas_call(
        _trunk_tail_kernel,
        out_shape=(jax.ShapeDtypeStruct((B, 1024, N), jnp.bfloat16),
                   jax.ShapeDtypeStruct((B, 1024, 1), jnp.float32)),
        grid=(B, N // tn),
        in_specs=[
            pl.BlockSpec((None, tn, 128), lambda b, n: (b, n, 0)),
            pl.BlockSpec((None, 128, 64), lambda b, n: (b, 0, 0)),
            pl.BlockSpec((1, 64), lambda b, n: (0, 0)),
            pl.BlockSpec((64, 128), lambda b, n: (0, 0)),
            pl.BlockSpec((1, 128), lambda b, n: (0, 0)),
            pl.BlockSpec((1024, 128), lambda b, n: (0, 0)),
            pl.BlockSpec((1024, 1), lambda b, n: (0, 0)),
        ],
        out_specs=(pl.BlockSpec((None, 1024, tn), lambda b, n: (b, 0, n)),
                   pl.BlockSpec((None, 1024, 1), lambda b, n: (b, 0, 0))),
        scratch_shapes=[pltpu.VMEM((1024, tn), jnp.float32)],
        compiler_params=pltpu.CompilerParams(
            dimension_semantics=("parallel", "arbitrary"),
            vmem_limit_bytes=_VMEM_LIMIT),
    )(x, w3b, s3, w4, s4, w5t, s5)


# ----------------------------------------------------------------------------
# Deterministic parameter initialization (synthetic, eval-mode BN folded).
# ----------------------------------------------------------------------------
def _init_w(key, cin, cout):
    return (jax.random.normal(key, (cin, cout)) / jnp.sqrt(cin)).astype(jnp.float32)


def _bn_fold(key, c, eps=1e-5):
    k1, k2, k3, k4 = jax.random.split(key, 4)
    gamma = jax.random.uniform(k1, (c,), minval=0.5, maxval=1.5)
    beta = 0.1 * jax.random.normal(k2, (c,))
    mean = 0.1 * jax.random.normal(k3, (c,))
    var = jax.random.uniform(k4, (c,), minval=0.5, maxval=1.5)
    scale = gamma / jnp.sqrt(var + eps)
    shift = beta - mean * scale
    return scale.astype(jnp.float32), shift.astype(jnp.float32)


def _conv_bn(kw, kb, cin, cout):
    w = _init_w(kw, cin, cout)
    scale, shift = _bn_fold(kb, cout)
    return (w * scale[None, :]).astype(jnp.float32), shift.reshape(1, cout)


def _pad_rows(w, rows):
    return w if w.shape[0] == rows else jnp.pad(w, ((0, rows - w.shape[0]), (0, 0)))


def _pad_cols(w, cols):
    return w if w.shape[1] == cols else jnp.pad(w, ((0, 0), (0, cols - w.shape[1])))


def init_transformer_params(key, ch, in_pad):
    """Standard PointNet T-Net for `ch` channels; first conv sees `in_pad` padded inputs."""
    ks = jax.random.split(key, 11)
    p = {}
    p["w1"], p["s1"] = _conv_bn(ks[0], ks[1], ch, 64)
    p["w2"], p["s2"] = _conv_bn(ks[2], ks[3], 64, 128)
    p["w3"], p["s3"] = _conv_bn(ks[4], ks[5], 128, 1024)
    p["fw1"], p["fs1"] = _conv_bn(ks[6], ks[7], 1024, 512)
    p["fw2"], p["fs2"] = _conv_bn(ks[8], ks[9], 512, 256)
    p["fw3"] = 0.01 * _init_w(ks[10], 256, ch * ch)
    p["fb3"] = jnp.zeros((1, ch * ch), jnp.float32)
    # bf16 MXU copies; first-layer weight rows zero-padded to the padded input width.
    p["w1_k"] = _pad_rows(p["w1"], in_pad).astype(jnp.bfloat16)
    p["w2_k"] = p["w2"].astype(jnp.bfloat16)
    p["w3_k"] = p["w3"].astype(jnp.bfloat16)
    return p


def init_params(key, ch=3):
    chp = _pad_to(ch, 8)
    ks = jax.random.split(key, 12)
    p = {}
    p["t1"] = init_transformer_params(ks[0], ch, chp)
    p["w1"], p["s1"] = _conv_bn(ks[1], ks[2], ch, 64)      # trunk conv1 (T1 folded at fwd)
    p["w2"], p["s2"] = _conv_bn(ks[3], ks[4], 64, 64)      # trunk conv2
    p["t2"] = init_transformer_params(ks[5], 64, 128)
    p["w3"], p["s3"] = _conv_bn(ks[6], ks[7], 64, 64)      # trunk conv3 (T2 folded at fwd)
    p["w4"], p["s4"] = _conv_bn(ks[8], ks[9], 64, 128)
    p["w5"], p["s5"] = _conv_bn(ks[10], ks[11], 128, 1024)
    # Kernel-side (bf16 / padded / transposed) copies.
    p["w2_k"] = _pad_cols(p["w2"], 128).astype(jnp.bfloat16)   # (64,128), cols 64.. zero
    p["s2_k"] = _pad_cols(p["s2"], 128)                        # (1,128),  cols 64.. zero
    p["w4_k"] = p["w4"].astype(jnp.bfloat16)                   # (64,128)
    p["w5t_k"] = jnp.transpose(p["w5"]).astype(jnp.bfloat16)   # (1024,128)
    p["s5_k"] = jnp.transpose(p["s5"])                         # (1024,1)
    return p


# ----------------------------------------------------------------------------
# Forward passes
# ----------------------------------------------------------------------------
def _tnet_head(gpart, p, ch):
    """gpart: (B, NT, 8, 1024) per-tile raw conv3 maxima -> T: (B, ch, ch)."""
    g = jnp.max(gpart, axis=(1, 2))                      # (B, 1024)
    g = jnp.maximum(g + p["s3"], 0.0)                    # BN shift + ReLU after max (exact)
    g = jnp.maximum(g @ p["fw1"] + p["fs1"], 0.0)
    g = jnp.maximum(g @ p["fw2"] + p["fs2"], 0.0)
    t = g @ p["fw3"] + p["fb3"]
    t = t + jnp.eye(ch, dtype=jnp.float32).reshape(1, ch * ch)
    return t.reshape(-1, ch, ch)


def pointnet_base_forward(x, p, tn=None):
    """x: (B, ch, N) PyTorch layout. Returns (global_feature, point_feature, T2)."""
    B, ch, N = x.shape               # static ints under jit
    chp = _pad_to(ch, 8)
    tn = _choose_tn(N, tn)

    # (B, ch, N) -> (B, N, ch_pad) bf16 (zero-padded channels).
    xt = jnp.transpose(x, (0, 2, 1)).astype(jnp.float32)
    xt = jnp.pad(xt, ((0, 0), (0, 0), (0, chp - ch))).astype(jnp.bfloat16)

    # ---- Input T-Net (shared MLP + max in Pallas, tiny FC head in XLA).
    t1 = p["t1"]
    g1 = tnet1_mlp_max(xt, t1["w1_k"], t1["s1"], t1["w2_k"], t1["s2"], t1["w3_k"], tn)
    T1 = _tnet_head(g1, t1, ch)                          # (B, ch, ch) f32

    # Fold bmm(T1, x) into trunk conv1:  W1'_b = T1_b^T @ (w1 * bn_scale1).
    wf1 = jnp.einsum("bji,jo->bio", T1, p["w1"])         # (B, ch, 64)
    wf1 = jnp.pad(wf1, ((0, 0), (0, chp - ch), (0, 0))).astype(jnp.bfloat16)

    # ---- Trunk conv1+conv2 (lane-dense 128-ch h) fused with feature T-Net MLP+max.
    t2 = p["t2"]
    h, g2 = trunk_head_tnet2(xt, wf1, p["s1"], p["w2_k"], p["s2_k"],
                             t2["w1_k"], t2["s1"], t2["w2_k"], t2["s2"],
                             t2["w3_k"], tn)
    T2 = _tnet_head(g2, t2, 64)                          # (B, 64, 64) f32

    # Fold bmm(T2, x) into trunk conv3; rows zero-padded to match the 128-ch h.
    wf3 = jnp.einsum("bji,jo->bio", T2, p["w3"])         # (B, 64, 64)
    wf3 = jnp.pad(wf3, ((0, 0), (0, 64), (0, 0))).astype(jnp.bfloat16)   # (B,128,64)

    point_feature, g = trunk_tail(h, wf3, p["s3"], p["w4_k"], p["s4"],
                                  p["w5t_k"], p["s5_k"], tn)
    global_feature = g[:, :, 0]                          # (B, 1024) f32
    return global_feature, point_feature, T2


# ----------------------------------------------------------------------------
if __name__ == "__main__":
    B, ch, N = 2, 3, 256
    key = jax.random.PRNGKey(0)
    kx, kp = jax.random.split(key)
    x = jax.random.normal(kx, (B, ch, N), dtype=jnp.float32)
    params = init_params(kp, ch=ch)

    fwd = jax.jit(pointnet_base_forward)
    global_feature, point_feature, T2 = fwd(x, params)
    jax.block_until_ready((global_feature, point_feature, T2))

    assert global_feature.shape == (B, 1024)
    assert point_feature.shape == (B, 1024, N)
    assert T2.shape == (B, 64, 64)
    assert bool(jnp.all(jnp.isfinite(global_feature)))
    assert bool(jnp.all(jnp.isfinite(T2)))
    print("KERNEL_OK")
</pallas_src>

<mosaic_0001>
module attributes {stable_mosaic.version = 11 : i64} {
  func.func @_tnet_mlp_max_kernel(%arg0: i32, %arg1: i32, %arg2: memref<1x256x8xbf16, #tpu.memory_space<vmem>>, %arg3: memref<8x64xbf16, #tpu.memory_space<vmem>>, %arg4: memref<1x64xf32, #tpu.memory_space<vmem>>, %arg5: memref<64x128xbf16, #tpu.memory_space<vmem>>, %arg6: memref<1x128xf32, #tpu.memory_space<vmem>>, %arg7: memref<128x1024xbf16, #tpu.memory_space<vmem>>, %arg8: memref<1x1x8x1024xf32, #tpu.memory_space<vmem>>) attributes {dimension_semantics = [#tpu.dimension_semantics<parallel>, #tpu.dimension_semantics<parallel>], iteration_bounds = array<i64: 2, 1>, scalar_prefetch = 0 : i64, scratch_operands = 0 : i64, tpu.core_type = #tpu.core_type<tc>, window_params = [{transform_indices = @transform_0, window_bounds = array<i64: 1, 256, 8>}, {pipeline_mode = #tpu.pipeline_mode<synchronous>, transform_indices = @transform_1, window_bounds = array<i64: 8, 64>}, {pipeline_mode = #tpu.pipeline_mode<synchronous>, transform_indices = @transform_2, window_bounds = array<i64: 1, 64>}, {pipeline_mode = #tpu.pipeline_mode<synchronous>, transform_indices = @transform_3, window_bounds = array<i64: 64, 128>}, {pipeline_mode = #tpu.pipeline_mode<synchronous>, transform_indices = @transform_4, window_bounds = array<i64: 1, 128>}, {pipeline_mode = #tpu.pipeline_mode<synchronous>, transform_indices = @transform_5, window_bounds = array<i64: 128, 1024>}, {transform_indices = @transform_6, window_bounds = array<i64: 1, 1, 8, 1024>}]} {
    %c0 = arith.constant 0 : index
    %c0_0 = arith.constant 0 : index
    %c0_1 = arith.constant 0 : index
    %0 = vector.load %arg2[%c0, %c0_0, %c0_1] : memref<1x256x8xbf16, #tpu.memory_space<vmem>>, vector<1x256x8xbf16>
    %1 = vector.shape_cast %0 : vector<1x256x8xbf16> to vector<256x8xbf16>
    %c0_2 = arith.constant 0 : index
    %c0_3 = arith.constant 0 : index
    %2 = vector.load %arg3[%c0_2, %c0_3] : memref<8x64xbf16, #tpu.memory_space<vmem>>, vector<8x64xbf16>
    %cst = arith.constant dense<0.000000e+00> : vector<256x64xf32>
    %3 = tpu.matmul %1, %2, %cst {dimension_numbers = #tpu.dot_dimension_numbers<[1], [0], [0], [1], [0, 0, 1, 1], [], []>} : vector<256x8xbf16>, vector<8x64xbf16>, vector<256x64xf32> -> vector<256x64xf32>
    %c0_4 = arith.constant 0 : index
    %c0_5 = arith.constant 0 : index
    %4 = vector.load %arg4[%c0_4, %c0_5] : memref<1x64xf32, #tpu.memory_space<vmem>>, vector<1x64xf32>
    %5 = vector.broadcast %4 : vector<1x64xf32> to vector<256x64xf32>
    %6 = arith.addf %3, %5 : vector<256x64xf32>
    %cst_6 = arith.constant 0.000000e+00 : f32
    %7 = vector.broadcast %cst_6 : f32 to vector<256x64xf32>
    %8 = arith.maximumf %6, %7 : vector<256x64xf32>
    %9 = arith.truncf %8 : vector<256x64xf32> to vector<256x64xbf16>
    %c0_7 = arith.constant 0 : index
    %c0_8 = arith.constant 0 : index
    %10 = vector.load %arg5[%c0_7, %c0_8] : memref<64x128xbf16, #tpu.memory_space<vmem>>, vector<64x128xbf16>
    %cst_9 = arith.constant dense<0.000000e+00> : vector<256x128xf32>
    %11 = tpu.matmul %9, %10, %cst_9 {dimension_numbers = #tpu.dot_dimension_numbers<[1], [0], [0], [1], [0, 0, 1, 1], [], []>} : vector<256x64xbf16>, vector<64x128xbf16>, vector<256x128xf32> -> vector<256x128xf32>
    %c0_10 = arith.constant 0 : index
    %c0_11 = arith.constant 0 : index
    %12 = vector.load %arg6[%c0_10, %c0_11] : memref<1x128xf32, #tpu.memory_space<vmem>>, vector<1x128xf32>
    %13 = vector.broadcast %12 : vector<1x128xf32> to vector<256x128xf32>
    %14 = arith.addf %11, %13 : vector<256x128xf32>
    %cst_12 = arith.constant 0.000000e+00 : f32
    %15 = vector.broadcast %cst_12 : f32 to vector<256x128xf32>
    %16 = arith.maximumf %14, %15 : vector<256x128xf32>
    %17 = arith.truncf %16 : vector<256x128xf32> to vector<256x128xbf16>
    %c0_13 = arith.constant 0 : index
    %c0_14 = arith.constant 0 : index
    %18 = vector.load %arg7[%c0_13, %c0_14] : memref<128x1024xbf16, #tpu.memory_space<vmem>>, vector<128x1024xbf16>
    %cst_15 = arith.constant dense<0.000000e+00> : vector<256x1024xf32>
    %19 = tpu.matmul %17, %18, %cst_15 {dimension_numbers = #tpu.dot_dimension_numbers<[1], [0], [0], [1], [0, 0, 1, 1], [], []>} : vector<256x128xbf16>, vector<128x1024xbf16>, vector<256x1024xf32> -> vector<256x1024xf32>
    %cst_16 = arith.constant dense<0xFF800000> : vector<1024xf32>
    %20 = vector.multi_reduction <maximumf>, %19, %cst_16 [0] : vector<256x1024xf32> to vector<1024xf32>
    %21 = vector.shape_cast %20 : vector<1024xf32> to vector<1x1024xf32>
    %22 = vector.shape_cast %21 : vector<1x1024xf32> to vector<1x1024xf32>
    %23 = vector.broadcast %22 : vector<1x1024xf32> to vector<8x1024xf32>
    %c0_17 = arith.constant 0 : index
    %c0_18 = arith.constant 0 : index
    %c0_19 = arith.constant 0 : index
    %c0_20 = arith.constant 0 : index
    %24 = vector.load %arg8[%c0_17, %c0_18, %c0_19, %c0_20] : memref<1x1x8x1024xf32, #tpu.memory_space<vmem>>, vector<1x1x8x1024xf32>
    %25 = vector.shape_cast %24 : vector<1x1x8x1024xf32> to vector<8x1024xf32>
    %26 = vector.shape_cast %23 : vector<8x1024xf32> to vector<1x1x8x1024xf32>
    tpu.vector_store %arg8[%c0_17, %c0_18, %c0_19, %c0_20], %26 {strides = array<i32>} : memref<1x1x8x1024xf32, #tpu.memory_space<vmem>>, vector<1x1x8x1024xf32>,
    return
  }
  func.func @transform_0(%arg0: i32, %arg1: i32) -> (i32, i32, i32) {
    %c0_i32 = arith.constant 0 : i32
    %c0_i32_0 = arith.constant 0 : i32
    return %arg0, %arg1, %c0_i32 : i32, i32, i32
  }
  func.func @transform_1(%arg0: i32, %arg1: i32) -> (i32, i32) {
    %c0_i32 = arith.constant 0 : i32
    %c0_i32_0 = arith.constant 0 : i32
    %c0_i32_1 = arith.constant 0 : i32
    return %c0_i32, %c0_i32_0 : i32, i32
  }
  func.func @transform_2(%arg0: i32, %arg1: i32) -> (i32, i32) {
    %c0_i32 = arith.constant 0 : i32
    %c0_i32_0 = arith.constant 0 : i32
    %c0_i32_1 = arith.constant 0 : i32
    return %c0_i32, %c0_i32_0 : i32, i32
  }
  func.func @transform_3(%arg0: i32, %arg1: i32) -> (i32, i32) {
    %c0_i32 = arith.constant 0 : i32
    %c0_i32_0 = arith.constant 0 : i32
    %c0_i32_1 = arith.constant 0 : i32
    return %c0_i32, %c0_i32_0 : i32, i32
  }
  func.func @transform_4(%arg0: i32, %arg1: i32) -> (i32, i32) {
    %c0_i32 = arith.constant 0 : i32
    %c0_i32_0 = arith.constant 0 : i32
    %c0_i32_1 = arith.constant 0 : i32
    return %c0_i32, %c0_i32_0 : i32, i32
  }
  func.func @transform_5(%arg0: i32, %arg1: i32) -> (i32, i32) {
    %c0_i32 = arith.constant 0 : i32
    %c0_i32_0 = arith.constant 0 : i32
    %c0_i32_1 = arith.constant 0 : i32
    return %c0_i32, %c0_i32_0 : i32, i32
  }
  func.func @transform_6(%arg0: i32, %arg1: i32) -> (i32, i32, i32, i32) {
    %c0_i32 = arith.constant 0 : i32
    %c0_i32_0 = arith.constant 0 : i32
    %c0_i32_1 = arith.constant 0 : i32
    return %arg0, %arg1, %c0_i32, %c0_i32_0 : i32, i32, i32, i32
  }
}

module attributes {stable_mosaic.version = 11 : i64} {
  func.func @_trunk_head_tnet2_kernel(%arg0: i32, %arg1: i32, %arg2: memref<1x256x8xbf16, #tpu.memory_space<vmem>>, %arg3: memref<1x8x64xbf16, #tpu.memory_space<vmem>>, %arg4: memref<1x64xf32, #tpu.memory_space<vmem>>, %arg5: memref<64x128xbf16, #tpu.memory_space<vmem>>, %arg6: memref<1x128xf32, #tpu.memory_space<vmem>>, %arg7: memref<128x64xbf16, #tpu.memory_space<vmem>>, %arg8: memref<1x64xf32, #tpu.memory_space<vmem>>, %arg9: memref<64x128xbf16, #tpu.memory_space<vmem>>, %arg10: memref<1x128xf32, #tpu.memory_space<vmem>>, %arg11: memref<128x1024xbf16, #tpu.memory_space<vmem>>, %arg12: memref<1x256x128xbf16, #tpu.memory_space<vmem>>, %arg13: memref<1x1x8x1024xf32, #tpu.memory_space<vmem>>) attributes {dimension_semantics = [#tpu.dimension_semantics<parallel>, #tpu.dimension_semantics<parallel>], iteration_bounds = array<i64: 2, 1>, scalar_prefetch = 0 : i64, scratch_operands = 0 : i64, tpu.core_type = #tpu.core_type<tc>, window_params = [{transform_indices = @transform_0, window_bounds = array<i64: 1, 256, 8>}, {transform_indices = @transform_1, window_bounds = array<i64: 1, 8, 64>}, {pipeline_mode = #tpu.pipeline_mode<synchronous>, transform_indices = @transform_2, window_bounds = array<i64: 1, 64>}, {pipeline_mode = #tpu.pipeline_mode<synchronous>, transform_indices = @transform_3, window_bounds = array<i64: 64, 128>}, {pipeline_mode = #tpu.pipeline_mode<synchronous>, transform_indices = @transform_4, window_bounds = array<i64: 1, 128>}, {pipeline_mode = #tpu.pipeline_mode<synchronous>, transform_indices = @transform_5, window_bounds = array<i64: 128, 64>}, {pipeline_mode = #tpu.pipeline_mode<synchronous>, transform_indices = @transform_6, window_bounds = array<i64: 1, 64>}, {pipeline_mode = #tpu.pipeline_mode<synchronous>, transform_indices = @transform_7, window_bounds = array<i64: 64, 128>}, {pipeline_mode = #tpu.pipeline_mode<synchronous>, transform_indices = @transform_8, window_bounds = array<i64: 1, 128>}, {pipeline_mode = #tpu.pipeline_mode<synchronous>, transform_indices = @transform_9, window_bounds = array<i64: 128, 1024>}, {transform_indices = @transform_10, window_bounds = array<i64: 1, 256, 128>}, {transform_indices = @transform_11, window_bounds = array<i64: 1, 1, 8, 1024>}]} {
    %c0 = arith.constant 0 : index
    %c0_0 = arith.constant 0 : index
    %c0_1 = arith.constant 0 : index
    %0 = vector.load %arg2[%c0, %c0_0, %c0_1] : memref<1x256x8xbf16, #tpu.memory_space<vmem>>, vector<1x256x8xbf16>
    %1 = vector.shape_cast %0 : vector<1x256x8xbf16> to vector<256x8xbf16>
    %c0_2 = arith.constant 0 : index
    %c0_3 = arith.constant 0 : index
    %c0_4 = arith.constant 0 : index
    %2 = vector.load %arg3[%c0_2, %c0_3, %c0_4] : memref<1x8x64xbf16, #tpu.memory_space<vmem>>, vector<1x8x64xbf16>
    %3 = vector.shape_cast %2 : vector<1x8x64xbf16> to vector<8x64xbf16>
    %cst = arith.constant dense<0.000000e+00> : vector<256x64xf32>
    %4 = tpu.matmul %1, %3, %cst {dimension_numbers = #tpu.dot_dimension_numbers<[1], [0], [0], [1], [0, 0, 1, 1], [], []>} : vector<256x8xbf16>, vector<8x64xbf16>, vector<256x64xf32> -> vector<256x64xf32>
    %c0_5 = arith.constant 0 : index
    %c0_6 = arith.constant 0 : index
    %5 = vector.load %arg4[%c0_5, %c0_6] : memref<1x64xf32, #tpu.memory_space<vmem>>, vector<1x64xf32>
    %6 = vector.broadcast %5 : vector<1x64xf32> to vector<256x64xf32>
    %7 = arith.addf %4, %6 : vector<256x64xf32>
    %cst_7 = arith.constant 0.000000e+00 : f32
    %8 = vector.broadcast %cst_7 : f32 to vector<256x64xf32>
    %9 = arith.maximumf %7, %8 : vector<256x64xf32>
    %10 = arith.truncf %9 : vector<256x64xf32> to vector<256x64xbf16>
    %c0_8 = arith.constant 0 : index
    %c0_9 = arith.constant 0 : index
    %11 = vector.load %arg5[%c0_8, %c0_9] : memref<64x128xbf16, #tpu.memory_space<vmem>>, vector<64x128xbf16>
    %cst_10 = arith.constant dense<0.000000e+00> : vector<256x128xf32>
    %12 = tpu.matmul %10, %11, %cst_10 {dimension_numbers = #tpu.dot_dimension_numbers<[1], [0], [0], [1], [0, 0, 1, 1], [], []>} : vector<256x64xbf16>, vector<64x128xbf16>, vector<256x128xf32> -> vector<256x128xf32>
    %c0_11 = arith.constant 0 : index
    %c0_12 = arith.constant 0 : index
    %13 = vector.load %arg6[%c0_11, %c0_12] : memref<1x128xf32, #tpu.memory_space<vmem>>, vector<1x128xf32>
    %14 = vector.broadcast %13 : vector<1x128xf32> to vector<256x128xf32>
    %15 = arith.addf %12, %14 : vector<256x128xf32>
    %cst_13 = arith.constant 0.000000e+00 : f32
    %16 = vector.broadcast %cst_13 : f32 to vector<256x128xf32>
    %17 = arith.maximumf %15, %16 : vector<256x128xf32>
    %18 = arith.truncf %17 : vector<256x128xf32> to vector<256x128xbf16>
    %c0_14 = arith.constant 0 : index
    %c0_15 = arith.constant 0 : index
    %c0_16 = arith.constant 0 : index
    %19 = vector.load %arg12[%c0_14, %c0_15, %c0_16] : memref<1x256x128xbf16, #tpu.memory_space<vmem>>, vector<1x256x128xbf16>
    %20 = vector.shape_cast %19 : vector<1x256x128xbf16> to vector<256x128xbf16>
    %21 = vector.shape_cast %18 : vector<256x128xbf16> to vector<1x256x128xbf16>
    tpu.vector_store %arg12[%c0_14, %c0_15, %c0_16], %21 {strides = array<i32>} : memref<1x256x128xbf16, #tpu.memory_space<vmem>>, vector<1x256x128xbf16>,
    %c0_17 = arith.constant 0 : index
    %c0_18 = arith.constant 0 : index
    %22 = vector.load %arg7[%c0_17, %c0_18] : memref<128x64xbf16, #tpu.memory_space<vmem>>, vector<128x64xbf16>
    %cst_19 = arith.constant dense<0.000000e+00> : vector<256x64xf32>
    %23 = tpu.matmul %18, %22, %cst_19 {dimension_numbers = #tpu.dot_dimension_numbers<[1], [0], [0], [1], [0, 0, 1, 1], [], []>} : vector<256x128xbf16>, vector<128x64xbf16>, vector<256x64xf32> -> vector<256x64xf32>
    %c0_20 = arith.constant 0 : index
    %c0_21 = arith.constant 0 : index
    %24 = vector.load %arg8[%c0_20, %c0_21] : memref<1x64xf32, #tpu.memory_space<vmem>>, vector<1x64xf32>
    %25 = vector.broadcast %24 : vector<1x64xf32> to vector<256x64xf32>
    %26 = arith.addf %23, %25 : vector<256x64xf32>
    %cst_22 = arith.constant 0.000000e+00 : f32
    %27 = vector.broadcast %cst_22 : f32 to vector<256x64xf32>
    %28 = arith.maximumf %26, %27 : vector<256x64xf32>
    %29 = arith.truncf %28 : vector<256x64xf32> to vector<256x64xbf16>
    %c0_23 = arith.constant 0 : index
    %c0_24 = arith.constant 0 : index
    %30 = vector.load %arg9[%c0_23, %c0_24] : memref<64x128xbf16, #tpu.memory_space<vmem>>, vector<64x128xbf16>
    %cst_25 = arith.constant dense<0.000000e+00> : vector<256x128xf32>
    %31 = tpu.matmul %29, %30, %cst_25 {dimension_numbers = #tpu.dot_dimension_numbers<[1], [0], [0], [1], [0, 0, 1, 1], [], []>} : vector<256x64xbf16>, vector<64x128xbf16>, vector<256x128xf32> -> vector<256x128xf32>
    %c0_26 = arith.constant 0 : index
    %c0_27 = arith.constant 0 : index
    %32 = vector.load %arg10[%c0_26, %c0_27] : memref<1x128xf32, #tpu.memory_space<vmem>>, vector<1x128xf32>
    %33 = vector.broadcast %32 : vector<1x128xf32> to vector<256x128xf32>
    %34 = arith.addf %31, %33 : vector<256x128xf32>
    %cst_28 = arith.constant 0.000000e+00 : f32
    %35 = vector.broadcast %cst_28 : f32 to vector<256x128xf32>
    %36 = arith.maximumf %34, %35 : vector<256x128xf32>
    %37 = arith.truncf %36 : vector<256x128xf32> to vector<256x128xbf16>
    %c0_29 = arith.constant 0 : index
    %c0_30 = arith.constant 0 : index
    %38 = vector.load %arg11[%c0_29, %c0_30] : memref<128x1024xbf16, #tpu.memory_space<vmem>>, vector<128x1024xbf16>
    %cst_31 = arith.constant dense<0.000000e+00> : vector<256x1024xf32>
    %39 = tpu.matmul %37, %38, %cst_31 {dimension_numbers = #tpu.dot_dimension_numbers<[1], [0], [0], [1], [0, 0, 1, 1], [], []>} : vector<256x128xbf16>, vector<128x1024xbf16>, vector<256x1024xf32> -> vector<256x1024xf32>
    %cst_32 = arith.constant dense<0xFF800000> : vector<1024xf32>
    %40 = vector.multi_reduction <maximumf>, %39, %cst_32 [0] : vector<256x1024xf32> to vector<1024xf32>
    %41 = vector.shape_cast %40 : vector<1024xf32> to vector<1x1024xf32>
    %42 = vector.shape_cast %41 : vector<1x1024xf32> to vector<1x1024xf32>
    %43 = vector.broadcast %42 : vector<1x1024xf32> to vector<8x1024xf32>
    %c0_33 = arith.constant 0 : index
    %c0_34 = arith.constant 0 : index
    %c0_35 = arith.constant 0 : index
    %c0_36 = arith.constant 0 : index
    %44 = vector.load %arg13[%c0_33, %c0_34, %c0_35, %c0_36] : memref<1x1x8x1024xf32, #tpu.memory_space<vmem>>, vector<1x1x8x1024xf32>
    %45 = vector.shape_cast %44 : vector<1x1x8x1024xf32> to vector<8x1024xf32>
    %46 = vector.shape_cast %43 : vector<8x1024xf32> to vector<1x1x8x1024xf32>
    tpu.vector_store %arg13[%c0_33, %c0_34, %c0_35, %c0_36], %46 {strides = array<i32>} : memref<1x1x8x1024xf32, #tpu.memory_space<vmem>>, vector<1x1x8x1024xf32>,
    return
  }
  func.func @transform_0(%arg0: i32, %arg1: i32) -> (i32, i32, i32) {
    %c0_i32 = arith.constant 0 : i32
    %c0_i32_0 = arith.constant 0 : i32
    return %arg0, %arg1, %c0_i32 : i32, i32, i32
  }
  func.func @transform_1(%arg0: i32, %arg1: i32) -> (i32, i32, i32) {
    %c0_i32 = arith.constant 0 : i32
    %c0_i32_0 = arith.constant 0 : i32
    %c0_i32_1 = arith.constant 0 : i32
    return %arg0, %c0_i32, %c0_i32_0 : i32, i32, i32
  }
  func.func @transform_2(%arg0: i32, %arg1: i32) -> (i32, i32) {
    %c0_i32 = arith.constant 0 : i32
    %c0_i32_0 = arith.constant 0 : i32
    %c0_i32_1 = arith.constant 0 : i32
    return %c0_i32, %c0_i32_0 : i32, i32
  }
  func.func @transform_3(%arg0: i32, %arg1: i32) -> (i32, i32) {
    %c0_i32 = arith.constant 0 : i32
    %c0_i32_0 = arith.constant 0 : i32
    %c0_i32_1 = arith.constant 0 : i32
    return %c0_i32, %c0_i32_0 : i32, i32
  }
  func.func @transform_4(%arg0: i32, %arg1: i32) -> (i32, i32) {
    %c0_i32 = arith.constant 0 : i32
    %c0_i32_0 = arith.constant 0 : i32
    %c0_i32_1 = arith.constant 0 : i32
    return %c0_i32, %c0_i32_0 : i32, i32
  }
  func.func @transform_5(%arg0: i32, %arg1: i32) -> (i32, i32) {
    %c0_i32 = arith.constant 0 : i32
    %c0_i32_0 = arith.constant 0 : i32
    %c0_i32_1 = arith.constant 0 : i32
    return %c0_i32, %c0_i32_0 : i32, i32
  }
  func.func @transform_6(%arg0: i32, %arg1: i32) -> (i32, i32) {
    %c0_i32 = arith.constant 0 : i32
    %c0_i32_0 = arith.constant 0 : i32
    %c0_i32_1 = arith.constant 0 : i32
    return %c0_i32, %c0_i32_0 : i32, i32
  }
  func.func @transform_7(%arg0: i32, %arg1: i32) -> (i32, i32) {
    %c0_i32 = arith.constant 0 : i32
    %c0_i32_0 = arith.constant 0 : i32
    %c0_i32_1 = arith.constant 0 : i32
    return %c0_i32, %c0_i32_0 : i32, i32
  }
  func.func @transform_8(%arg0: i32, %arg1: i32) -> (i32, i32) {
    %c0_i32 = arith.constant 0 : i32
    %c0_i32_0 = arith.constant 0 : i32
    %c0_i32_1 = arith.constant 0 : i32
    return %c0_i32, %c0_i32_0 : i32, i32
  }
  func.func @transform_9(%arg0: i32, %arg1: i32) -> (i32, i32) {
    %c0_i32 = arith.constant 0 : i32
    %c0_i32_0 = arith.constant 0 : i32
    %c0_i32_1 = arith.constant 0 : i32
    return %c0_i32, %c0_i32_0 : i32, i32
  }
  func.func @transform_10(%arg0: i32, %arg1: i32) -> (i32, i32, i32) {
    %c0_i32 = arith.constant 0 : i32
    %c0_i32_0 = arith.constant 0 : i32
    return %arg0, %arg1, %c0_i32 : i32, i32, i32
  }
  func.func @transform_11(%arg0: i32, %arg1: i32) -> (i32, i32, i32, i32) {
    %c0_i32 = arith.constant 0 : i32
    %c0_i32_0 = arith.constant 0 : i32
    %c0_i32_1 = arith.constant 0 : i32
    return %arg0, %arg1, %c0_i32, %c0_i32_0 : i32, i32, i32, i32
  }
}

module attributes {stable_mosaic.version = 11 : i64} {
  func.func @_trunk_tail_kernel(%arg0: i32, %arg1: i32, %arg2: memref<1x256x128xbf16, #tpu.memory_space<vmem>>, %arg3: memref<1x128x64xbf16, #tpu.memory_space<vmem>>, %arg4: memref<1x64xf32, #tpu.memory_space<vmem>>, %arg5: memref<64x128xbf16, #tpu.memory_space<vmem>>, %arg6: memref<1x128xf32, #tpu.memory_space<vmem>>, %arg7: memref<1024x128xbf16, #tpu.memory_space<vmem>>, %arg8: memref<1024x1xf32, #tpu.memory_space<vmem>>, %arg9: memref<1x1024x256xbf16, #tpu.memory_space<vmem>>, %arg10: memref<1x1024x1xf32, #tpu.memory_space<vmem>>, %arg11: memref<1024x256xf32, #tpu.memory_space<vmem>>) attributes {dimension_semantics = [#tpu.dimension_semantics<parallel>, #tpu.dimension_semantics<arbitrary>], iteration_bounds = array<i64: 2, 1>, scalar_prefetch = 0 : i64, scratch_operands = 1 : i64, tpu.core_type = #tpu.core_type<tc>, window_params = [{transform_indices = @transform_0, window_bounds = array<i64: 1, 256, 128>}, {transform_indices = @transform_1, window_bounds = array<i64: 1, 128, 64>}, {pipeline_mode = #tpu.pipeline_mode<synchronous>, transform_indices = @transform_2, window_bounds = array<i64: 1, 64>}, {pipeline_mode = #tpu.pipeline_mode<synchronous>, transform_indices = @transform_3, window_bounds = array<i64: 64, 128>}, {pipeline_mode = #tpu.pipeline_mode<synchronous>, transform_indices = @transform_4, window_bounds = array<i64: 1, 128>}, {pipeline_mode = #tpu.pipeline_mode<synchronous>, transform_indices = @transform_5, window_bounds = array<i64: 1024, 128>}, {pipeline_mode = #tpu.pipeline_mode<synchronous>, transform_indices = @transform_6, window_bounds = array<i64: 1024, 1>}, {transform_indices = @transform_7, window_bounds = array<i64: 1, 1024, 256>}, {transform_indices = @transform_8, window_bounds = array<i64: 1, 1024, 1>}]} {
    %c0 = arith.constant 0 : index
    %c0_0 = arith.constant 0 : index
    %c0_1 = arith.constant 0 : index
    %0 = vector.load %arg2[%c0, %c0_0, %c0_1] : memref<1x256x128xbf16, #tpu.memory_space<vmem>>, vector<1x256x128xbf16>
    %1 = vector.shape_cast %0 : vector<1x256x128xbf16> to vector<256x128xbf16>
    %c0_2 = arith.constant 0 : index
    %c0_3 = arith.constant 0 : index
    %c0_4 = arith.constant 0 : index
    %2 = vector.load %arg3[%c0_2, %c0_3, %c0_4] : memref<1x128x64xbf16, #tpu.memory_space<vmem>>, vector<1x128x64xbf16>
    %3 = vector.shape_cast %2 : vector<1x128x64xbf16> to vector<128x64xbf16>
    %cst = arith.constant dense<0.000000e+00> : vector<256x64xf32>
    %4 = tpu.matmul %1, %3, %cst {dimension_numbers = #tpu.dot_dimension_numbers<[1], [0], [0], [1], [0, 0, 1, 1], [], []>} : vector<256x128xbf16>, vector<128x64xbf16>, vector<256x64xf32> -> vector<256x64xf32>
    %c0_5 = arith.constant 0 : index
    %c0_6 = arith.constant 0 : index
    %5 = vector.load %arg4[%c0_5, %c0_6] : memref<1x64xf32, #tpu.memory_space<vmem>>, vector<1x64xf32>
    %6 = vector.broadcast %5 : vector<1x64xf32> to vector<256x64xf32>
    %7 = arith.addf %4, %6 : vector<256x64xf32>
    %cst_7 = arith.constant 0.000000e+00 : f32
    %8 = vector.broadcast %cst_7 : f32 to vector<256x64xf32>
    %9 = arith.maximumf %7, %8 : vector<256x64xf32>
    %10 = arith.truncf %9 : vector<256x64xf32> to vector<256x64xbf16>
    %c0_8 = arith.constant 0 : index
    %c0_9 = arith.constant 0 : index
    %11 = vector.load %arg5[%c0_8, %c0_9] : memref<64x128xbf16, #tpu.memory_space<vmem>>, vector<64x128xbf16>
    %cst_10 = arith.constant dense<0.000000e+00> : vector<256x128xf32>
    %12 = tpu.matmul %10, %11, %cst_10 {dimension_numbers = #tpu.dot_dimension_numbers<[1], [0], [0], [1], [0, 0, 1, 1], [], []>} : vector<256x64xbf16>, vector<64x128xbf16>, vector<256x128xf32> -> vector<256x128xf32>
    %c0_11 = arith.constant 0 : index
    %c0_12 = arith.constant 0 : index
    %13 = vector.load %arg6[%c0_11, %c0_12] : memref<1x128xf32, #tpu.memory_space<vmem>>, vector<1x128xf32>
    %14 = vector.broadcast %13 : vector<1x128xf32> to vector<256x128xf32>
    %15 = arith.addf %12, %14 : vector<256x128xf32>
    %cst_13 = arith.constant 0.000000e+00 : f32
    %16 = vector.broadcast %cst_13 : f32 to vector<256x128xf32>
    %17 = arith.maximumf %15, %16 : vector<256x128xf32>
    %18 = arith.truncf %17 : vector<256x128xf32> to vector<256x128xbf16>
    %19 = tpu.transpose %18, [1, 0] : vector<256x128xbf16> -> vector<128x256xbf16>
    %c0_14 = arith.constant 0 : index
    %c0_15 = arith.constant 0 : index
    %20 = vector.load %arg7[%c0_14, %c0_15] : memref<1024x128xbf16, #tpu.memory_space<vmem>>, vector<1024x128xbf16>
    %cst_16 = arith.constant dense<0.000000e+00> : vector<1024x256xf32>
    %21 = tpu.matmul %20, %19, %cst_16 {dimension_numbers = #tpu.dot_dimension_numbers<[1], [0], [0], [1], [0, 0, 1, 1], [], []>} : vector<1024x128xbf16>, vector<128x256xbf16>, vector<1024x256xf32> -> vector<1024x256xf32>
    %c0_17 = arith.constant 0 : index
    %c0_18 = arith.constant 0 : index
    %22 = vector.load %arg8[%c0_17, %c0_18] : memref<1024x1xf32, #tpu.memory_space<vmem>>, vector<1024x1xf32>
    %23 = vector.broadcast %22 : vector<1024x1xf32> to vector<1024x256xf32>
    %24 = arith.addf %21, %23 : vector<1024x256xf32>
    %cst_19 = arith.constant 0.000000e+00 : f32
    %25 = vector.broadcast %cst_19 : f32 to vector<1024x256xf32>
    %26 = arith.maximumf %24, %25 : vector<1024x256xf32>
    %27 = arith.truncf %26 : vector<1024x256xf32> to vector<1024x256xbf16>
    %c0_20 = arith.constant 0 : index
    %c0_21 = arith.constant 0 : index
    %c0_22 = arith.constant 0 : index
    %28 = vector.load %arg9[%c0_20, %c0_21, %c0_22] : memref<1x1024x256xbf16, #tpu.memory_space<vmem>>, vector<1x1024x256xbf16>
    %29 = vector.shape_cast %28 : vector<1x1024x256xbf16> to vector<1024x256xbf16>
    %30 = vector.shape_cast %27 : vector<1024x256xbf16> to vector<1x1024x256xbf16>
    tpu.vector_store %arg9[%c0_20, %c0_21, %c0_22], %30 {strides = array<i32>} : memref<1x1024x256xbf16, #tpu.memory_space<vmem>>, vector<1x1024x256xbf16>,
    %c0_i32 = arith.constant 0 : i32
    %31 = arith.cmpi eq, %arg1, %c0_i32 : i32
    %32 = arith.extui %31 : i1 to i32
    %c0_i32_23 = arith.constant 0 : i32
    %33 = arith.cmpi ne, %32, %c0_i32_23 : i32
    scf.if %33 {
      %c0_28 = arith.constant 0 : index
      %c0_29 = arith.constant 0 : index
      %40 = vector.load %arg11[%c0_28, %c0_29] : memref<1024x256xf32, #tpu.memory_space<vmem>>, vector<1024x256xf32>
      tpu.vector_store %arg11[%c0_28, %c0_29], %26 {strides = array<i32>} : memref<1024x256xf32, #tpu.memory_space<vmem>>, vector<1024x256xf32>,
    } else {
    }
    %c0_i32_24 = arith.constant 0 : i32
    %34 = arith.cmpi ne, %arg1, %c0_i32_24 : i32
    %35 = arith.extui %34 : i1 to i32
    %c0_i32_25 = arith.constant 0 : i32
    %36 = arith.cmpi ne, %35, %c0_i32_25 : i32
    scf.if %36 {
      %c0_28 = arith.constant 0 : index
      %c0_29 = arith.constant 0 : index
      %40 = vector.load %arg11[%c0_28, %c0_29] : memref<1024x256xf32, #tpu.memory_space<vmem>>, vector<1024x256xf32>
      %41 = arith.maximumf %40, %26 : vector<1024x256xf32>
      %c0_30 = arith.constant 0 : index
      %c0_31 = arith.constant 0 : index
      %42 = vector.load %arg11[%c0_30, %c0_31] : memref<1024x256xf32, #tpu.memory_space<vmem>>, vector<1024x256xf32>
      tpu.vector_store %arg11[%c0_30, %c0_31], %41 {strides = array<i32>} : memref<1024x256xf32, #tpu.memory_space<vmem>>, vector<1024x256xf32>,
    } else {
    }
    %c0_i32_26 = arith.constant 0 : i32
    %37 = arith.cmpi eq, %arg1, %c0_i32_26 : i32
    %38 = arith.extui %37 : i1 to i32
    %c0_i32_27 = arith.constant 0 : i32
    %39 = arith.cmpi ne, %38, %c0_i32_27 : i32
    scf.if %39 {
      %c0_28 = arith.constant 0 : index
      %c0_29 = arith.constant 0 : index
      %40 = vector.load %arg11[%c0_28, %c0_29] : memref<1024x256xf32, #tpu.memory_space<vmem>>, vector<1024x256xf32>
      %cst_30 = arith.constant dense<0xFF800000> : vector<1024xf32>
      %41 = vector.multi_reduction <maximumf>, %40, %cst_30 [1] : vector<1024x256xf32> to vector<1024xf32>
      %42 = vector.shape_cast %41 : vector<1024xf32> to vector<1024x1xf32>
      %c0_31 = arith.constant 0 : index
      %c0_32 = arith.constant 0 : index
      %c0_33 = arith.constant 0 : index
      %43 = vector.load %arg10[%c0_31, %c0_32, %c0_33] : memref<1x1024x1xf32, #tpu.memory_space<vmem>>, vector<1x1024x1xf32>
      %44 = vector.shape_cast %43 : vector<1x1024x1xf32> to vector<1024x1xf32>
      %45 = vector.shape_cast %42 : vector<1024x1xf32> to vector<1x1024x1xf32>
      tpu.vector_store %arg10[%c0_31, %c0_32, %c0_33], %45 {strides = array<i32>} : memref<1x1024x1xf32, #tpu.memory_space<vmem>>, vector<1x1024x1xf32>,
    } else {
    }
    return
  }
  func.func @transform_0(%arg0: i32, %arg1: i32) -> (i32, i32, i32) {
    %c0_i32 = arith.constant 0 : i32
    %c0_i32_0 = arith.constant 0 : i32
    return %arg0, %arg1, %c0_i32 : i32, i32, i32
  }
  func.func @transform_1(%arg0: i32, %arg1: i32) -> (i32, i32, i32) {
    %c0_i32 = arith.constant 0 : i32
    %c0_i32_0 = arith.constant 0 : i32
    %c0_i32_1 = arith.constant 0 : i32
    return %arg0, %c0_i32, %c0_i32_0 : i32, i32, i32
  }
  func.func @transform_2(%arg0: i32, %arg1: i32) -> (i32, i32) {
    %c0_i32 = arith.constant 0 : i32
    %c0_i32_0 = arith.constant 0 : i32
    %c0_i32_1 = arith.constant 0 : i32
    return %c0_i32, %c0_i32_0 : i32, i32
  }
  func.func @transform_3(%arg0: i32, %arg1: i32) -> (i32, i32) {
    %c0_i32 = arith.constant 0 : i32
    %c0_i32_0 = arith.constant 0 : i32
    %c0_i32_1 = arith.constant 0 : i32
    return %c0_i32, %c0_i32_0 : i32, i32
  }
  func.func @transform_4(%arg0: i32, %arg1: i32) -> (i32, i32) {
    %c0_i32 = arith.constant 0 : i32
    %c0_i32_0 = arith.constant 0 : i32
    %c0_i32_1 = arith.constant 0 : i32
    return %c0_i32, %c0_i32_0 : i32, i32
  }
  func.func @transform_5(%arg0: i32, %arg1: i32) -> (i32, i32) {
    %c0_i32 = arith.constant 0 : i32
    %c0_i32_0 = arith.constant 0 : i32
    %c0_i32_1 = arith.constant 0 : i32
    return %c0_i32, %c0_i32_0 : i32, i32
  }
  func.func @transform_6(%arg0: i32, %arg1: i32) -> (i32, i32) {
    %c0_i32 = arith.constant 0 : i32
    %c0_i32_0 = arith.constant 0 : i32
    %c0_i32_1 = arith.constant 0 : i32
    return %c0_i32, %c0_i32_0 : i32, i32
  }
  func.func @transform_7(%arg0: i32, %arg1: i32) -> (i32, i32, i32) {
    %c0_i32 = arith.constant 0 : i32
    %c0_i32_0 = arith.constant 0 : i32
    return %arg0, %c0_i32, %arg1 : i32, i32, i32
  }
  func.func @transform_8(%arg0: i32, %arg1: i32) -> (i32, i32, i32) {
    %c0_i32 = arith.constant 0 : i32
    %c0_i32_0 = arith.constant 0 : i32
    %c0_i32_1 = arith.constant 0 : i32
    return %arg0, %c0_i32, %c0_i32_0 : i32, i32, i32
  }
}

</mosaic_0001>

<bundles_post_ra>
// kernel: pointnet_base_forward.3
= control target key start
LH: loop header
LB: loop body
LE: loop exit
PB: predicated region body
PF: predicated region fallthrough
CT: control target
= control target key end

     0   :  { %11 = vsyncpa [#allocation3], 0  ;;  %s4153_s0 = inlined_call_operand.vmem [shape: bf16[2,256,8], index: 0, kind: input, shape index: {}]   ;;  %s4154_s1 = inlined_call_operand.hbm [shape: bf16[8,64], index: 1, kind: input, shape index: {}]   ;;  %s4155_s2 = inlined_call_operand.hbm [shape: f32[1,64], index: 2, kind: input, shape index: {}]   ;;  %s4156_s3 = inlined_call_operand.hbm [shape: bf16[64,128], index: 3, kind: input, shape index: {}]   ;;  %s4157_s4 = inlined_call_operand.hbm [shape: f32[1,128], index: 4, kind: input, shape index: {}]   ;;  %s4158_s5 = inlined_call_operand.hbm [shape: bf16[128,1024], index: 5, kind: input, shape index: {}]   ;;  %s4159_s6 = inlined_call_operand.vmem [shape: f32[2,1,8,1024], index: 6, kind: output, shape index: {}]  }
   0x1   :  { %12 = vsyncpa [#allocation5], 0 }
   0x2   :  { %13 = vsyncpa [#allocation8], 0  ;;  %s3201_s21 = smov 0   ;;  %s3203_s22 = smov 0  }
   0x3   :  { %s3205_s23 = smov 0  }
   0x4 LB: > { %s3156_s24 = smov [#allocation4]   ;;  %s2637_s26 = sadd.s32 4294967295, %s3154_s23   ;;  %s3154_s23 = sphi %s3205_s23, %s19_s23   ;;  %s3150_s22 = sphi %s3203_s22, %s4220_s22   ;;  %s3146_s21 = sphi %s3201_s21, %s4219_s21  }
   0x5   : > { %s221_s25 = sshll.u32 %s3156_s24, 4  ;;  %p2639_p0 = scmp.ge.s32.totalorder %s3154_s23, 1  ;;  %s222_s25 = int_to_ptr.vmem [resolvable:$true] %s221_s25 }
   0x6   : > { %p197_p1 = scmp.lt.s32.totalorder %s3154_s23, 3  ;;  %p3219_p2 = scmp.eq.s32.totalorder %s2637_s26, 0 }
   0x7   : > { %s3157_s29 = smov [#allocation7]   ;;  %s31_s8 = sadd.s32 1, %s3150_s22 }
   0x8   : > { %s4163_s27 = scalar_select %p3219_p2, 1, 0 }
   0x9   : > { %p3223_p3 = pnand %p2639_p0, %p197_p1  ;;  %s245_s30 = sshll.u32 %s3157_s29, 4  ;;  %s246_s30 = int_to_ptr.vmem [resolvable:$true] %s245_s30 }
   0xa   : > { %p3236_p6 = scmp.ge.s32.totalorder %s31_s8, 2  ;;  %s3001_s11 = scalar_lea.vmem %s222_s25, 16 }
   0xb   : > { %s4164_s28 = scalar_select %p3223_p3, 1, 0 }
   0xc   : > { %p2910_p4 = pneg %p3223_p3  ;;  %p3002_p8 = scmp.ne.s32.totalorder %s222_s25, %s3001_s11 }
   0xd   : > { %s4166_s9 = scalar_select %p3236_p6, 1, 0 }
   0xe   : > { %p3231_p5 = pnand %p3219_p2, %p2910_p4  ;;  %s3008_s12 = scalar_lea.vmem %s222_s25, 32 }
   0xf   : > { %p3009_p11 = scmp.lt.s32.totalorder %s222_s25, %s222_s25  ;;  %p3010_p12 = scmp.lt.s32.totalorder %s3008_s12, %s3001_s11 }
  0x10   : > { %p3242_p7 = pneg %p3231_p5 }
  0x11   : > { %p3011_p13 = por %p3010_p12, %p3009_p11 }
  0x12   : > { %p3004_p9 = pnand %p3002_p8, %p3242_p7 }
  0x14   : > { %p3005_p10 = pneg %p3004_p9 }
  0x16   : > { %p3012_p0 = pnand %p3011_p13, %p3005_p10 }
  0x18   : > { %3015 = shalt.err (!%p3012_p0)
}
  0x19   : > { %2916 = dma.hbm_to_vmem [thread:$0]  (!%p3231_p5), %s4155_s2, 16, %s222_s25, [#allocation5]  }
  0x1a   : > { %s3027_s15 = scalar_lea.vmem %s246_s30, 16  ;;  %s3034_s16 = scalar_lea.vmem %s246_s30, 32 }
  0x1b   : > { %p3028_p1 = scmp.ne.s32.totalorder %s246_s30, %s3027_s15  ;;  %p3035_p8 = scmp.lt.s32.totalorder %s246_s30, %s246_s30 }
  0x1c   : > { %p3036_p9 = scmp.lt.s32.totalorder %s3034_s16, %s3027_s15 }
  0x1d   : > { %p3030_p4 = pnand %p3028_p1, %p3242_p7 }
  0x1e   : > { %p3037_p3 = por %p3036_p9, %p3035_p8 }
  0x1f   : > { %p3031_p2 = pneg %p3030_p4 }
  0x21   : > { %p3038_p6 = pnand %p3037_p3, %p3031_p2 }
  0x23   : > { %3041 = shalt.err (!%p3038_p6)
}
  0x24   : > { %2922 = dma.hbm_to_vmem [thread:$0]  (!%p3231_p5), %s4157_s4, 16, %s246_s30, [#allocation8]  }
  0x25   : > { %p4168_p10 = scmp.ne.s32.totalorder %s4166_s9, 0  ;;  %s3158_s19 = smov [#allocation2]  }
  0x26   : > { %s210_s20 = sshll.u32 %s3158_s19, 4  ;;  %s3159_s24 = smov [#allocation6]   ;;  %s211_s20 = int_to_ptr.vmem [resolvable:$true] %s210_s20 }
  0x27   : > { %s4222_s8 = smov (%p4168_p10, %s31_s8), 0  ;;  %s231_s25 = sshll.u32 %s3159_s24, 4  ;;  %s232_s25 = int_to_ptr.vmem [resolvable:$true] %s231_s25 }
  0x28   : > { %s3053_s26 = scalar_lea.vmem %s211_s20, 64  ;;  %p3061_p6 = scmp.lt.s32.totalorder %s211_s20, %s211_s20 }
  0x29   : > { %p3054_p11 = scmp.ne.s32.totalorder %s211_s20, %s3053_s26  ;;  %p3062_p12 = scmp.lt.s32.totalorder %s3053_s26, %s3053_s26 }
  0x2b   : > { %p3056_p2 = pnand %p3054_p11, %p3242_p7  ;;  %p3063_p13 = por %p3062_p12, %p3061_p6 }
  0x2d   : > { %p3057_p3 = pneg %p3056_p2 }
  0x2f   : > { %p3064_p0 = pnand %p3063_p13, %p3057_p3 }
  0x31   : > { %3067 = shalt.err (!%p3064_p0)
}
  0x32   : > { %2913 = dma.hbm_to_vmem [thread:$0]  (!%p3231_p5), %s4154_s1, 64, %s211_s20, [#allocation3]  }
  0x33   : > { %s3079_s9 = scalar_lea.vmem %s232_s25, 512  ;;  %p3087_p9 = scmp.lt.s32.totalorder %s232_s25, %s232_s25 }
  0x34   : > { %p3080_p1 = scmp.ne.s32.totalorder %s232_s25, %s3079_s9  ;;  %p3088_p10 = scmp.lt.s32.totalorder %s3079_s9, %s3079_s9 }
  0x36   : > { %p3082_p4 = pnand %p3080_p1, %p3242_p7  ;;  %p3089_p11 = por %p3088_p10, %p3087_p9 }
  0x38   : > { %p3083_p8 = pneg %p3082_p4 }
  0x3a   : > { %p3090_p2 = pnand %p3089_p11, %p3083_p8 }
  0x3c   : > { %3093 = shalt.err (!%p3090_p2)
}
  0x3d   : > { %s3160_s11 = smov 64   ;;  %s3161_s12 = smov 4  }
  0x3e   : > { %2919 = dma.hbm_to_vmem [thread:$0]  (!%p3231_p5), %s4156_s3, 512, %s232_s25, [#allocation5], %s3160_s11, %s3160_s11, %s3161_s12  }
  0x3f   : > { %s3162_s15 = smov [#allocation9]  }
  0x40   : > { %s255_s16 = sshll.u32 %s3162_s15, 4  ;;  %s256_s16 = int_to_ptr.vmem [resolvable:$true] %s255_s16 }
  0x41   : > { %s3105_s17 = scalar_lea.vmem %s256_s16, 8192  ;;  %p3113_p13 = scmp.lt.s32.totalorder %s256_s16, %s256_s16 }
  0x42   : > { %p3106_p3 = scmp.ne.s32.totalorder %s256_s16, %s3105_s17  ;;  %p3114_p0 = scmp.lt.s32.totalorder %s3105_s17, %s3105_s17 }
  0x44   : > { %p3108_p6 = pnand %p3106_p3, %p3242_p7  ;;  %p3115_p1 = por %p3114_p0, %p3113_p13 }
  0x46   : > { %p3109_p12 = pneg %p3108_p6 }
  0x48   : > { %p3116_p4 = pnand %p3115_p1, %p3109_p12 }
  0x4a   : > { %3119 = shalt.err (!%p3116_p4)
}
  0x4b   : > { %s3163_s18 = smov 512   ;;  %s3164_s19 = smov 32  }
  0x4c   : > { %2925 = dma.hbm_to_vmem [thread:$0]  (!%p3231_p5), %s4158_s5, 8192, %s256_s16, [#allocation8], %s3163_s18, %s3163_s18, %s3164_s19  }
  0x4d   : > { %p4169_p8 = scmp.ne.s32.totalorder %s4164_s28, 0 }
  0x4f   : > { %284 = sbr.rel (%p4169_p8) target bundleno = 971 (0x3cb), region = 44 }
  0x54   : > { %p4170_p9 = scmp.ne.s32.totalorder %s4163_s27, 0 }
  0x56   : > { %3133 = dma.done.wait (%p4170_p9), [#allocation3], 64  }
  0x57   : > { %3135 = vsyncadd (%p4170_p9), [#allocation3], 4294967232 }
  0x58   : > { %3137 = dma.done.wait (%p4170_p9), [#allocation5], 528  }
  0x59   : > { %3139 = vsyncadd (%p4170_p9), [#allocation5], 4294966768 }
  0x5a   : > { %3141 = dma.done.wait (%p4170_p9), [#allocation8], 8208  }
  0x5b   : > { %3143 = vsyncadd (%p4170_p9), [#allocation8], 4294959088  ;;  %p339_p5 = scmp.lt.s32.totalorder %s3146_s21, 1  ;;  %vm527_vm0 = vcmask 1043456   ;;  %vm478_vm1 = vcmask 64512   ;;  %v2986_v9 = vld [vmem:[#allocation6 + $0x18] sm:$0xff]  }
  0x5c   : > { %v390_v0 = vld [vmem:[#allocation2] sm:$0xf]  ;;  %2849 = vmatprep.subr.bf16.mxu1 %v2986_v9  ;;  %v2987_v19 = vld [vmem:[#allocation6 + $0x10] sm:$0xff]   ;;  %v2988_v20 = vld [vmem:[#allocation6 + $0x8] sm:$0xff]   ;;  %vm779_vm2 = vcmask 523264  }
  0x5d   : > { %s4224_s21 = smov (!%p339_p5, %s3146_s21), 1  ;;  %2889 = vmatprep.subr.msk.bf16.mxu0 %vm527_vm0, %v390_v0  ;;  %v529_v1 = vsel %vm527_vm0, %v390_v0, 0  ;;  %2850 = vmatpush3.bf16.msra.mxu1 %v2986_v9  ;;  %v2989_v21 = vld [vmem:[#allocation6] sm:$0xff]   ;;  %v3341_v24 = vld [vmem:[#allocation9 + $0x1c8] sm:$0xff]  ;;  %v3349_v56 = vld [vmem:[#allocation4] ss:$0 sm:$0xff] }
  0x5e   : > { %s2776_s28 = sshll.u32 %s4224_s21, 7  ;;  %2816 = vmatpush3.bf16.msra.mxu0 %v529_v1  ;;  %2851 = vmatprep.subr.bf16.mxu1 %v2987_v19  ;;  %v1093_v22 = vld [vmem:[#allocation9 + $0x1c0] sm:$0xff]  ;;  %v3343_v27 = vld [vmem:[#allocation9 + $0x1e8] sm:$0xff]  ;;  %s2777_s27 = sshll.u32 %s4224_s21, 6 }
  0x5f   : > { %s3307_s25 = scalar_lea.vmem %s4153_s0, %s2776_s28  ;;  %v1097_v23 = vld [vmem:[#allocation9 + $0x1e0] sm:$0xff]  ;;  %v2768_v30 = vcombine.low %v3341_v24, %v3343_v27  ;;  %v2769_v31 = vcombine.high %v3341_v24, %v3343_v27  ;;  %s3886_s30 = scalar_lea.vmem %s4159_s6, %s2777_s27 }
  0x60   : > { %v2970_v2 = vld [vmem:[%s3307_s25] sm:$0xff]   ;;  %v2971_v3 = vld [vmem:[%s3307_s25 + $0x8] sm:$0xff]   ;;  %v2972_v4 = vld [vmem:[%s3307_s25 + $0x10] sm:$0xff]   ;;  %v2766_v25 = vcombine.low %v1093_v22, %v1097_v23  ;;  %v2767_v26 = vcombine.high %v1093_v22, %v1097_v23 }
  0x61   : > { %2817 = vmatprep.mubr.msk.bf16.mxu0 %vm478_vm1, %v2970_v2  ;;  %v2973_v5 = vld [vmem:[%s3307_s25 + $0x18] sm:$0xff]   ;;  %v2974_v6 = vld [vmem:[%s3307_s25 + $0x20] sm:$0xff]   ;;  %v2975_v7 = vld [vmem:[%s3307_s25 + $0x28] sm:$0xff]   ;;  %2852 = vmatpush3.bf16.msra.mxu1 %v2987_v19 }
  0x62   : > { %2818 = vmatmul.mubr.msk.bf16.vlgmr.msra.gmra.mxu0 %vm478_vm1, %v2971_v3  ;;  %v2976_v8 = vld [vmem:[%s3307_s25 + $0x30] sm:$0xff]   ;;  %v2977_v10 = vld [vmem:[%s3307_s25 + $0x38] sm:$0xff]   ;;  %v2978_v11 = vld [vmem:[%s3307_s25 + $0x40] sm:$0xff]   ;;  %2853 = vmatprep.subr.bf16.mxu1 %v2988_v20 }
  0x63   : > { %2821 = vmatprep.mubr.msk.bf16.mxu0 %vm478_vm1, %v2972_v4  ;;  %v2979_v12 = vld [vmem:[%s3307_s25 + $0x48] sm:$0xff]   ;;  %v2980_v13 = vld [vmem:[%s3307_s25 + $0x50] sm:$0xff]   ;;  %v2981_v14 = vld [vmem:[%s3307_s25 + $0x58] sm:$0xff]   ;;  %1421 = vmatprep.subr.bf16.mxu0 %v2767_v26 }
  0x64   : > { %v2982_v15 = vld [vmem:[%s3307_s25 + $0x60] sm:$0xff]   ;;  %v2983_v16 = vld [vmem:[%s3307_s25 + $0x68] sm:$0xff]   ;;  %v2984_v17 = vld [vmem:[%s3307_s25 + $0x70] sm:$0xff]   ;;  %1422 = vmatpush1.bf16.msra.mxu0 %v2766_v25 }
  0x65   : > { %v2985_v18 = vld [vmem:[%s3307_s25 + $0x78] sm:$0xff]   ;;  %2854 = vmatpush3.bf16.msra.mxu1 %v2988_v20  ;;  %v1085_v28 = vld [vmem:[#allocation9 + $0x180] sm:$0xff]  ;;  %v1086_v3 = vld [vmem:[#allocation9 + $0x188] sm:$0xff] }
  0x66   : > { %2855 = vmatprep.subr.bf16.mxu1 %v2989_v21  ;;  %v1089_v29 = vld [vmem:[#allocation9 + $0x1a0] sm:$0xff]  ;;  %v1090_v4 = vld [vmem:[#allocation9 + $0x1a8] sm:$0xff] }
  0x67   : > { %v2759_v32 = vcombine.high %v1085_v28, %v1089_v29  ;;  %v1077_v33 = vld [vmem:[#allocation9 + $0x140] sm:$0xff]  ;;  %v2758_v35 = vcombine.low %v1085_v28, %v1089_v29  ;;  %v1070_v26 = vld [vmem:[#allocation9 + $0x108] sm:$0xff] }
  0x68   : > { %v1081_v34 = vld [vmem:[#allocation9 + $0x160] sm:$0xff]  ;;  %v1074_v28 = vld [vmem:[#allocation9 + $0x128] sm:$0xff] }
  0x69   : > { %2856 = vmatpush3.bf16.msra.mxu1 %v2989_v21  ;;  %1423 = vmatprep.subr.bf16.mxu0 %v2759_v32  ;;  %v2751_v36 = vcombine.high %v1077_v33, %v1081_v34  ;;  %v1069_v37 = vld [vmem:[#allocation9 + $0x100] sm:$0xff]  ;;  %v2750_v39 = vcombine.low %v1077_v33, %v1081_v34  ;;  %v2760_v21 = vcombine.low %v1086_v3, %v1090_v4 }
  0x6a   : > { %2822 = vmatmul.mubr.msk.bf16.gmra.mxu0 %vm478_vm1, %v2973_v5  ;;  %1614 = vmatprep.subr.bf16.mxu1 %v2769_v31  ;;  %v1073_v38 = vld [vmem:[#allocation9 + $0x120] sm:$0xff]  ;;  %v2745_v24 = vcombine.high %v1070_v26, %v1074_v28 }
  0x6b   : > { %2825 = vmatprep.mubr.msk.bf16.mxu0 %vm478_vm1, %v2974_v6  ;;  %1424 = vmatpush1.bf16.msra.mxu0 %v2758_v35  ;;  %v2743_v40 = vcombine.high %v1069_v37, %v1073_v38  ;;  %v1061_v41 = vld [vmem:[#allocation9 + $0xc0] sm:$0xff]  ;;  %v2742_v43 = vcombine.low %v1069_v37, %v1073_v38  ;;  %v1066_v37 = vld [vmem:[#allocation9 + $0xe8] sm:$0xff] }
  0x6c   : > { %1425 = vmatprep.subr.bf16.mxu0 %v2751_v36  ;;  %v1065_v42 = vld [vmem:[#allocation9 + $0xe0] sm:$0xff] }
  0x6d   : > { %v2735_v44 = vcombine.high %v1061_v41, %v1065_v42  ;;  %v1053_v45 = vld [vmem:[#allocation9 + $0x80] sm:$0xff]  ;;  %v2734_v47 = vcombine.low %v1061_v41, %v1065_v42 }
  0x6e   : > { %v1057_v46 = vld [vmem:[#allocation9 + $0xa0] sm:$0xff] }
  0x6f   : > { %1426 = vmatpush1.bf16.msra.mxu0 %v2750_v39  ;;  %v2727_v48 = vcombine.high %v1053_v45, %v1057_v46  ;;  %v1045_v49 = vld [vmem:[#allocation9 + $0x40] sm:$0xff]  ;;  %v2726_v51 = vcombine.low %v1053_v45, %v1057_v46 }
  0x70   : > { %1427 = vmatprep.subr.bf16.mxu0 %v2743_v40  ;;  %v1049_v50 = vld [vmem:[#allocation9 + $0x60] sm:$0xff] }
  0x71   : > { %v2719_v52 = vcombine.high %v1045_v49, %v1049_v50  ;;  %v2718_v53 = vcombine.low %v1045_v49, %v1049_v50 }
  0x72   : > { %2826 = vmatmul.mubr.msk.bf16.gmra.mxu0 %vm478_vm1, %v2975_v7 }
  0x73   : > { %2829 = vmatprep.mubr.msk.bf16.mxu0 %vm478_vm1, %v2976_v8  ;;  %1428 = vmatpush1.bf16.msra.mxu0 %v2742_v43  ;;  %v2744_v43 = vcombine.low %v1070_v26, %v1074_v28 }
  0x74   : > { %1429 = vmatprep.subr.bf16.mxu0 %v2735_v44 }
  0x77   : > { %1430 = vmatpush1.bf16.msra.mxu0 %v2734_v47  ;;  %v1054_v47 = vld [vmem:[#allocation9 + $0x88] sm:$0xff] }
  0x78   : > { %1431 = vmatprep.subr.bf16.mxu0 %v2727_v48  ;;  %v1058_v48 = vld [vmem:[#allocation9 + $0xa8] sm:$0xff] }
  0x7a   : > { %2830 = vmatmul.mubr.msk.bf16.gmra.mxu0 %vm478_vm1, %v2977_v10 }
  0x7b   : > { %2833 = vmatprep.mubr.msk.bf16.mxu0 %vm478_vm1, %v2978_v11  ;;  %1432 = vmatpush1.bf16.msra.mxu0 %v2726_v51 }
  0x7c   : > { %1433 = vmatprep.subr.bf16.mxu0 %v2719_v52 }
  0x7f   : > { %1434 = vmatpush1.bf16.msra.mxu0 %v2718_v53 }
  0x82   : > { %2834 = vmatmul.mubr.msk.bf16.gmra.mxu0 %vm478_vm1, %v2979_v12  ;;  %v2761_v12 = vcombine.high %v1086_v3, %v1090_v4 }
  0x83   : > { %2837 = vmatprep.mubr.msk.bf16.mxu0 %vm478_vm1, %v2980_v13 }
  0x8a   : > { %2838 = vmatmul.mubr.msk.bf16.gmra.mxu0 %vm478_vm1, %v2981_v14  ;;  %v1078_v14 = vld [vmem:[#allocation9 + $0x148] sm:$0xff] }
  0x8b   : > { %2841 = vmatprep.mubr.msk.bf16.mxu0 %vm478_vm1, %v2982_v15  ;;  %v1082_v15 = vld [vmem:[#allocation9 + $0x168] sm:$0xff] }
  0x8c   : > { %v2753_v23 = vcombine.high %v1078_v14, %v1082_v15  ;;  %v2752_v35 = vcombine.low %v1078_v14, %v1082_v15 }
  0x92   : > { %2842 = vmatmul.mubr.msk.bf16.gmra.mxu0 %vm478_vm1, %v2983_v16 }
  0x93   : > { %2845 = vmatprep.mubr.msk.bf16.mxu0 %vm478_vm1, %v2984_v17 }
  0x9a   : > { %2846 = vmatmul.mubr.msk.bf16.gmra.mxu0 %vm478_vm1, %v2985_v18 }
 0x122   : > { %v2819_v54 = vpop.f32.mrf.mxu0 }
 0x123   : > { %v574_v60 = vadd.f32 %v2819_v54, %v3349_v56 }
 0x124   : > { %v565_v55 = vpop.f32.mrf.mxu0 }
 0x125   : > { %v566_v58 = vadd.f32 %v3349_v56, %v565_v55  ;;  %v694_v5 = vmax.f32 %v574_v60, 0.0  ;;  %v1050_v60 = vld [vmem:[#allocation9 + $0x68] sm:$0xff] }
 0x126   : > { %v2820_v57 = vpop.f32.mrf.mxu0 }
 0x127   : > { %v577_v59 = vadd.f32 %v2820_v57, %v3349_v56  ;;  %v692_v1 = vmax.f32 %v566_v58, 0.0  ;;  %v2729_v57 = vcombine.high %v1054_v47, %v1058_v48 }
 0x128   : > { %v568_v61 = vpop.f32.mrf.mxu0 }
 0x129   : > { %v569_v62 = vadd.f32 %v3349_v56, %v568_v61  ;;  %v695_v63 = vmax.f32 %v577_v59, 0.0  ;;  %v1046_v59 = vld [vmem:[#allocation9 + $0x48] sm:$0xff] }
 0x12a   : > { %v2823_v0 = vpop.f32.mrf.mxu0  ;;  %v2721_v4 = vcombine.high %v1046_v59, %v1050_v60 }
 0x12b   : > { %v693_v2 = vmax.f32 %v569_v62, 0.0  ;;  %v590_v6 = vadd.f32 %v2823_v0, %v3349_v56  ;;  %v725_v10 = vpack.c.bf16 %v695_v63, %v694_v5 }
 0x12c   : > { %v581_v7 = vpop.f32.mrf.mxu0 }
 0x12d   : > { %v582_v8 = vadd.f32 %v3349_v56, %v581_v7  ;;  %v724_v9 = vpack.c.bf16 %v693_v2, %v692_v1  ;;  %v698_v16 = vmax.f32 %v590_v6, 0.0  ;;  %v2728_v2 = vcombine.low %v1054_v47, %v1058_v48 }
 0x12e   : > { %v2824_v11 = vpop.f32.mrf.mxu0 }
 0x12f   : > { %v593_v13 = vadd.f32 %v2824_v11, %v3349_v56  ;;  %2857 = vmatprep.mubr.msk.bf16.mxu1 %vm779_vm2, %v724_v9  ;;  %v696_v18 = vmax.f32 %v582_v8, 0.0  ;;  %v2720_v11 = vcombine.low %v1046_v59, %v1050_v60 }
 0x130   : > { %v584_v17 = vpop.f32.mrf.mxu0  ;;  %2858 = vmatmul.mubr.msk.bf16.vlgmr.msra.gmra.mxu1 %vm779_vm2, %v725_v10 }
 0x131   : > { %v699_v19 = vmax.f32 %v593_v13, 0.0  ;;  %v585_v20 = vadd.f32 %v3349_v56, %v584_v17  ;;  %1615 = vmatpush1.bf16.msra.mxu1 %v2768_v30  ;;  %v1062_v30 = vld [vmem:[#allocation9 + $0xc8] sm:$0xff] }
 0x132   : > { %v2827_v22 = vpop.f32.mrf.mxu0  ;;  %1616 = vmatprep.subr.bf16.mxu1 %v2761_v12  ;;  %v2737_v45 = vcombine.high %v1062_v30, %v1066_v37  ;;  %v2736_v54 = vcombine.low %v1062_v30, %v1066_v37 }
 0x133   : > { %v697_v25 = vmax.f32 %v585_v20, 0.0  ;;  %v727_v29 = vpack.c.bf16 %v699_v19, %v698_v16  ;;  %v606_v31 = vadd.f32 %v2827_v22, %v3349_v56 }
 0x134   : > { %v597_v32 = vpop.f32.mrf.mxu0 }
 0x135   : > { %v726_v33 = vpack.c.bf16 %v697_v25, %v696_v18  ;;  %v598_v34 = vadd.f32 %v3349_v56, %v597_v32  ;;  %1617 = vmatpush1.bf16.msra.mxu1 %v2760_v21  ;;  %v702_v38 = vmax.f32 %v606_v31, 0.0 }
 0x136   : > { %v2828_v36 = vpop.f32.mrf.mxu0  ;;  %1618 = vmatprep.subr.bf16.mxu1 %v2753_v23 }
 0x137   : > { %2861 = vmatprep.mubr.msk.bf16.mxu1 %vm779_vm2, %v726_v33  ;;  %v609_v27 = vadd.f32 %v2828_v36, %v3349_v56  ;;  %v700_v40 = vmax.f32 %v598_v34, 0.0 }
 0x138   : > { %2862 = vmatmul.mubr.msk.bf16.gmra.mxu1 %vm779_vm2, %v727_v29  ;;  %v600_v39 = vpop.f32.mrf.mxu0 }
 0x139   : > { %v703_v41 = vmax.f32 %v609_v27, 0.0  ;;  %v601_v42 = vadd.f32 %v3349_v56, %v600_v39  ;;  %1619 = vmatpush1.bf16.msra.mxu1 %v2752_v35 }
 0x13a   : > { %v2831_v44 = vpop.f32.mrf.mxu0  ;;  %1620 = vmatprep.subr.bf16.mxu1 %v2745_v24 }
 0x13b   : > { %v701_v46 = vmax.f32 %v601_v42, 0.0  ;;  %v729_v49 = vpack.c.bf16 %v703_v41, %v702_v38  ;;  %v622_v50 = vadd.f32 %v2831_v44, %v3349_v56 }
 0x13c   : > { %v613_v51 = vpop.f32.mrf.mxu0 }
 0x13d   : > { %v728_v52 = vpack.c.bf16 %v701_v46, %v700_v40  ;;  %v614_v53 = vadd.f32 %v3349_v56, %v613_v51  ;;  %1621 = vmatpush1.bf16.msra.mxu1 %v2744_v43  ;;  %v706_v61 = vmax.f32 %v622_v50, 0.0 }
 0x13e   : > { %v2832_v55 = vpop.f32.mrf.mxu0  ;;  %1622 = vmatprep.subr.bf16.mxu1 %v2737_v45 }
 0x13f   : > { %2865 = vmatprep.mubr.msk.bf16.mxu1 %vm779_vm2, %v728_v52  ;;  %v625_v58 = vadd.f32 %v2832_v55, %v3349_v56  ;;  %v704_v63 = vmax.f32 %v614_v53, 0.0 }
 0x140   : > { %2866 = vmatmul.mubr.msk.bf16.gmra.mxu1 %vm779_vm2, %v729_v49  ;;  %v616_v62 = vpop.f32.mrf.mxu0 }
 0x141   : > { %v707_v0 = vmax.f32 %v625_v58, 0.0  ;;  %v617_v1 = vadd.f32 %v3349_v56, %v616_v62  ;;  %1623 = vmatpush1.bf16.msra.mxu1 %v2736_v54 }
 0x142   : > { %v2835_v3 = vpop.f32.mrf.mxu0  ;;  %1624 = vmatprep.subr.bf16.mxu1 %v2729_v57 }
 0x143   : > { %v705_v5 = vmax.f32 %v617_v1, 0.0  ;;  %v731_v6 = vpack.c.bf16 %v707_v0, %v706_v61  ;;  %v638_v7 = vadd.f32 %v2835_v3, %v3349_v56  ;;  %v1037_v1 = vld [vmem:[#allocation9] sm:$0xff]  ;;  %v1038_v3 = vld [vmem:[#allocation9 + $0x8] sm:$0xff] }
 0x144   : > { %v629_v8 = vpop.f32.mrf.mxu0 }
 0x145   : > { %v730_v9 = vpack.c.bf16 %v705_v5, %v704_v63  ;;  %v630_v10 = vadd.f32 %v3349_v56, %v629_v8  ;;  %1625 = vmatpush1.bf16.msra.mxu1 %v2728_v2  ;;  %v710_v14 = vmax.f32 %v638_v7, 0.0  ;;  %v1041_v2 = vld [vmem:[#allocation9 + $0x20] sm:$0xff]  ;;  %v1042_v5 = vld [vmem:[#allocation9 + $0x28] sm:$0xff] }
 0x146   : > { %v2836_v12 = vpop.f32.mrf.mxu0  ;;  %1626 = vmatprep.subr.bf16.mxu1 %v2721_v4  ;;  %v2711_v4 = vcombine.high %v1037_v1, %v1041_v2  ;;  %v2712_v7 = vcombine.low %v1038_v3, %v1042_v5  ;;  %v2713_v8 = vcombine.high %v1038_v3, %v1042_v5 }
 0x147   : > { %2869 = vmatprep.mubr.msk.bf16.mxu1 %vm779_vm2, %v730_v9  ;;  %v641_v13 = vadd.f32 %v2836_v12, %v3349_v56  ;;  %v708_v16 = vmax.f32 %v630_v10, 0.0  ;;  %v1095_v9 = vld [vmem:[#allocation9 + $0x1d0] sm:$0xff] }
 0x148   : > { %2870 = vmatmul.mubr.msk.bf16.gmra.mxu1 %vm779_vm2, %v731_v6  ;;  %v632_v15 = vpop.f32.mrf.mxu0  ;;  %v2710_v6 = vcombine.low %v1037_v1, %v1041_v2  ;;  %1435 = vmatprep.subr.bf16.mxu0 %v2711_v4  ;;  %v1099_v10 = vld [vmem:[#allocation9 + $0x1f0] sm:$0xff]  ;;  %v1068_v1 = vld [vmem:[#allocation9 + $0xf8] sm:$0xff] }
 0x149   : > { %v711_v17 = vmax.f32 %v641_v13, 0.0  ;;  %v633_v18 = vadd.f32 %v3349_v56, %v632_v15  ;;  %1627 = vmatpush1.bf16.msra.mxu1 %v2720_v11  ;;  %v1096_v11 = vld [vmem:[#allocation9 + $0x1d8] sm:$0xff]  ;;  %v2770_v12 = vcombine.low %v1095_v9, %v1099_v10  ;;  %v2771_v13 = vcombine.high %v1095_v9, %v1099_v10  ;;  %v1059_v10 = vld [vmem:[#allocation9 + $0xb0] sm:$0xff] }
 0x14a   : > { %v2839_v19 = vpop.f32.mrf.mxu0  ;;  %1628 = vmatprep.subr.bf16.mxu1 %v2713_v8  ;;  %1436 = vmatpush1.bf16.msra.mxu0 %v2710_v6  ;;  %v1055_v8 = vld [vmem:[#allocation9 + $0x90] sm:$0xff] }
 0x14b   : > { %v709_v20 = vmax.f32 %v633_v18, 0.0  ;;  %v733_v21 = vpack.c.bf16 %v711_v17, %v710_v14  ;;  %v654_v22 = vadd.f32 %v2839_v19, %v3349_v56  ;;  %v1100_v14 = vld [vmem:[#allocation9 + $0x1f8] sm:$0xff]  ;;  %1807 = vmatprep.subr.bf16.mxu0 %v2771_v13 }
 0x14c   : > { %v645_v23 = vpop.f32.mrf.mxu0  ;;  %v2772_v15 = vcombine.low %v1096_v11, %v1100_v14  ;;  %v3404_v19 = vld [vmem:[#allocation7] ss:$0 sm:$0xff] }
 0x14d   : > { %v732_v25 = vpack.c.bf16 %v709_v20, %v708_v16  ;;  %v646_v26 = vadd.f32 %v3349_v56, %v645_v23  ;;  %v714_v31 = vmax.f32 %v654_v22, 0.0  ;;  %1629 = vmatpush1.bf16.msra.mxu1 %v2712_v7  ;;  %v2773_v16 = vcombine.high %v1096_v11, %v1100_v14  ;;  %v1056_v11 = vld [vmem:[#allocation9 + $0x98] sm:$0xff] }
 0x14e   : > { %v2840_v28 = vpop.f32.mrf.mxu0 }
 0x14f   : > { %2873 = vmatprep.mubr.msk.bf16.mxu1 %vm779_vm2, %v732_v25  ;;  %v657_v29 = vadd.f32 %v2840_v28, %v3349_v56  ;;  %v712_v33 = vmax.f32 %v646_v26, 0.0  ;;  %2000 = vmatprep.subr.bf16.mxu1 %v2773_v16  ;;  %v1087_v26 = vld [vmem:[#allocation9 + $0x190] sm:$0xff] }
 0x150   : > { %2874 = vmatmul.mubr.msk.bf16.gmra.mxu1 %vm779_vm2, %v733_v21  ;;  %v648_v32 = vpop.f32.mrf.mxu0 }
 0x151   : > { %v715_v34 = vmax.f32 %v657_v29, 0.0  ;;  %v649_v35 = vadd.f32 %v3349_v56, %v648_v32  ;;  %v1088_v32 = vld [vmem:[#allocation9 + $0x198] sm:$0xff] }
 0x152   : > { %v2843_v36 = vpop.f32.mrf.mxu0 }
 0x153   : > { %v713_v24 = vmax.f32 %v649_v35, 0.0  ;;  %v735_v27 = vpack.c.bf16 %v715_v34, %v714_v31  ;;  %v670_v30 = vadd.f32 %v2843_v36, %v3349_v56  ;;  %v1091_v31 = vld [vmem:[#allocation9 + $0x1b0] sm:$0xff] }
 0x154   : > { %v661_v37 = vpop.f32.mrf.mxu0 }
 0x155   : > { %v734_v38 = vpack.c.bf16 %v713_v24, %v712_v33  ;;  %v662_v39 = vadd.f32 %v3349_v56, %v661_v37  ;;  %v718_v42 = vmax.f32 %v670_v30, 0.0  ;;  %v1092_v33 = vld [vmem:[#allocation9 + $0x1b8] sm:$0xff]  ;;  %v1079_v24 = vld [vmem:[#allocation9 + $0x150] sm:$0xff]  ;;  %v2763_v30 = vcombine.high %v1087_v26, %v1091_v31 }
 0x156   : > { %v2844_v40 = vpop.f32.mrf.mxu0  ;;  %v2765_v37 = vcombine.high %v1088_v32, %v1092_v33 }
 0x157   : > { %2877 = vmatprep.mubr.msk.bf16.mxu1 %vm779_vm2, %v734_v38  ;;  %v673_v41 = vadd.f32 %v2844_v40, %v3349_v56  ;;  %v716_v44 = vmax.f32 %v662_v39, 0.0  ;;  %v1083_v38 = vld [vmem:[#allocation9 + $0x170] sm:$0xff]  ;;  %v1080_v39 = vld [vmem:[#allocation9 + $0x158] sm:$0xff] }
 0x158   : > { %2878 = vmatmul.mubr.msk.bf16.gmra.mxu1 %vm779_vm2, %v735_v27  ;;  %v664_v43 = vpop.f32.mrf.mxu0  ;;  %v1084_v40 = vld [vmem:[#allocation9 + $0x178] sm:$0xff] }
 0x159   : > { %v719_v45 = vmax.f32 %v673_v41, 0.0  ;;  %v665_v46 = vadd.f32 %v3349_v56, %v664_v43  ;;  %v2764_v43 = vcombine.low %v1088_v32, %v1092_v33 }
 0x15a   : > { %v2847_v47 = vpop.f32.mrf.mxu0 }
 0x15b   : > { %v717_v48 = vmax.f32 %v665_v46, 0.0  ;;  %v737_v49 = vpack.c.bf16 %v719_v45, %v718_v42  ;;  %v686_v50 = vadd.f32 %v2847_v47, %v3349_v56  ;;  %v2762_v42 = vcombine.low %v1087_v26, %v1091_v31  ;;  %v1048_v26 = vld [vmem:[#allocation9 + $0x58] sm:$0xff] }
 0x15c   : > { %v677_v51 = vpop.f32.mrf.mxu0  ;;  %v2755_v45 = vcombine.high %v1079_v24, %v1083_v38  ;;  %v2757_v46 = vcombine.high %v1080_v39, %v1084_v40  ;;  %v2730_v31 = vcombine.low %v1055_v8, %v1059_v10 }
 0x15d   : > { %v736_v52 = vpack.c.bf16 %v717_v48, %v716_v44  ;;  %v678_v53 = vadd.f32 %v3349_v56, %v677_v51  ;;  %v722_v57 = vmax.f32 %v686_v50, 0.0  ;;  %v1071_v48 = vld [vmem:[#allocation9 + $0x110] sm:$0xff]  ;;  %v1072_v51 = vld [vmem:[#allocation9 + $0x118] sm:$0xff] }
 0x15e   : > { %v2848_v54 = vpop.f32.mrf.mxu0  ;;  %v1075_v50 = vld [vmem:[#allocation9 + $0x130] sm:$0xff] }
 0x15f   : > { %2881 = vmatprep.mubr.msk.bf16.mxu1 %vm779_vm2, %v736_v52  ;;  %v689_v55 = vadd.f32 %v2848_v54, %v3349_v56  ;;  %v720_v59 = vmax.f32 %v678_v53, 0.0  ;;  %v1076_v52 = vld [vmem:[#allocation9 + $0x138] sm:$0xff]  ;;  %v2754_v53 = vcombine.low %v1079_v24, %v1083_v38  ;;  %v2746_v3 = vcombine.low %v1071_v48, %v1075_v50 }
 0x160   : > { %2882 = vmatmul.mubr.msk.bf16.gmra.mxu1 %vm779_vm2, %v737_v49  ;;  %v680_v58 = vpop.f32.mrf.mxu0  ;;  %v2748_v4 = vcombine.low %v1072_v51, %v1076_v52 }
 0x161   : > { %v723_v60 = vmax.f32 %v689_v55, 0.0  ;;  %v681_v61 = vadd.f32 %v3349_v56, %v680_v58  ;;  %v3165_v56 = vmov 0  }
 0x162   : > { %1453 = vmatprep.mubr.bf16.mxu0 %v3165_v56 }
 0x163   : > { %v721_v62 = vmax.f32 %v681_v61, 0.0  ;;  %v739_v63 = vpack.c.bf16 %v723_v60, %v722_v57  ;;  %v2756_v57 = vcombine.low %v1080_v39, %v1084_v40  ;;  %v2749_v60 = vcombine.high %v1072_v51, %v1076_v52  ;;  %v1063_v61 = vld [vmem:[#allocation9 + $0xd0] sm:$0xff] }
 0x165   : > { %v738_v0 = vpack.c.bf16 %v721_v62, %v720_v59  ;;  %v2747_v59 = vcombine.high %v1071_v48, %v1075_v50 }
 0x167   : > { %2885 = vmatprep.mubr.msk.bf16.mxu1 %vm779_vm2, %v738_v0  ;;  %v1064_v0 = vld [vmem:[#allocation9 + $0xd8] sm:$0xff] }
 0x168   : > { %2886 = vmatmul.mubr.msk.bf16.gmra.mxu1 %vm779_vm2, %v739_v63  ;;  %v1067_v63 = vld [vmem:[#allocation9 + $0xf0] sm:$0xff]  ;;  %v2741_v7 = vcombine.high %v1064_v0, %v1068_v1  ;;  %v2740_v16 = vcombine.low %v1064_v0, %v1068_v1 }
 0x169   : > { %1646 = vmatprep.mubr.bf16.mxu1 %v3165_v56  ;;  %v2739_v6 = vcombine.high %v1063_v61, %v1067_v63  ;;  %v2738_v13 = vcombine.low %v1063_v61, %v1067_v63 }
 0x1f0   : > { %v2859_v17 = vpop.f32.mrf.mxu1 }
 0x1f1   : > { %v871_v41 = vadd.f32 %v2859_v17, %v3404_v19 }
 0x1f2   : > { %v862_v18 = vpop.f32.mrf.mxu1 }
 0x1f3   : > { %v863_v21 = vadd.f32 %v3404_v19, %v862_v18  ;;  %v991_v49 = vmax.f32 %v871_v41, 0.0  ;;  %v2731_v18 = vcombine.high %v1055_v8, %v1059_v10 }
 0x1f4   : > { %v2860_v20 = vpop.f32.mrf.mxu1 }
 0x1f5   : > { %v989_v28 = vmax.f32 %v863_v21, 0.0  ;;  %v874_v35 = vadd.f32 %v2860_v20, %v3404_v19  ;;  %v1047_v21 = vld [vmem:[#allocation9 + $0x50] sm:$0xff] }
 0x1f6   : > { %v865_v22 = vpop.f32.mrf.mxu1 }
 0x1f7   : > { %v866_v23 = vadd.f32 %v3404_v19, %v865_v22  ;;  %v992_v44 = vmax.f32 %v874_v35, 0.0  ;;  %v1039_v35 = vld [vmem:[#allocation9 + $0x10] sm:$0xff] }
 0x1f8   : > { %v3408_v25 = vpop.f32.mrf.mxu1 }
 0x1f9   : > { %v990_v29 = vmax.f32 %v866_v23, 0.0  ;;  %v3418_v54 = vpack.c.bf16 %v992_v44, %v991_v49  ;;  %v887_v22 = vadd.f32 %v3408_v25, %v3404_v19  ;;  %v1051_v23 = vld [vmem:[#allocation9 + $0x70] sm:$0xff] }
 0x1fa   : > { %v878_v34 = vpop.f32.mrf.mxu1  ;;  %v2723_v25 = vcombine.high %v1047_v21, %v1051_v23  ;;  %v2722_v38 = vcombine.low %v1047_v21, %v1051_v23 }
 0x1fb   : > { %v3411_v36 = vpack.c.bf16 %v990_v29, %v989_v28  ;;  %v879_v62 = vadd.f32 %v3404_v19, %v878_v34  ;;  %v1052_v28 = vld [vmem:[#allocation9 + $0x78] sm:$0xff]  ;;  %v995_v24 = vmax.f32 %v887_v22, 0.0 }
 0x1fc   : > { %v2864_v27 = vpop.f32.mrf.mxu1  ;;  %v2725_v34 = vcombine.high %v1048_v26, %v1052_v28  ;;  %v2724_v39 = vcombine.low %v1048_v26, %v1052_v28 }
 0x1fd   : > { %1454 = vmatmul.mubr.bf16.vlgmr.msra.gmra.mxu0 %v3411_v36  ;;  %1647 = vmatmul.mubr.bf16.vlgmr.msra.gmra.mxu1 %v3411_v36  ;;  %v993_v9 = vmax.f32 %v879_v62, 0.0  ;;  %v890_v14 = vadd.f32 %v2864_v27, %v3404_v19  ;;  %v1043_v27 = vld [vmem:[#allocation9 + $0x30] sm:$0xff] }
 0x1fe   : > { %1808 = vmatpush1.bf16.msra.mxu0 %v2770_v12  ;;  %2001 = vmatpush1.bf16.msra.mxu1 %v2772_v15  ;;  %v881_v47 = vpop.f32.mrf.mxu1  ;;  %v1060_v12 = vld [vmem:[#allocation9 + $0xb8] sm:$0xff]  ;;  %v2715_v44 = vcombine.high %v1039_v35, %v1043_v27  ;;  %v2714_v48 = vcombine.low %v1039_v35, %v1043_v27 }
 0x1ff   : > { %1463 = vmatprep.mubr.bf16.mxu0 %v3165_v56  ;;  %1656 = vmatprep.mubr.bf16.mxu1 %v3165_v56  ;;  %v882_v55 = vadd.f32 %v3404_v19, %v881_v47  ;;  %v2733_v20 = vcombine.high %v1056_v11, %v1060_v12  ;;  %v996_v29 = vmax.f32 %v890_v14, 0.0  ;;  %v2732_v32 = vcombine.low %v1056_v11, %v1060_v12 }
 0x200   : > { %1809 = vmatprep.subr.bf16.mxu0 %v2763_v30  ;;  %2002 = vmatprep.subr.bf16.mxu1 %v2765_v37  ;;  %v3421_v58 = vpop.f32.mrf.mxu1  ;;  %v1040_v30 = vld [vmem:[#allocation9 + $0x18] sm:$0xff] }
 0x201   : > { %v994_v2 = vmax.f32 %v882_v55, 0.0  ;;  %v1044_v37 = vld [vmem:[#allocation9 + $0x38] sm:$0xff]  ;;  %v3437_v40 = vpack.c.bf16 %v996_v29, %v995_v24  ;;  %v903_v51 = vadd.f32 %v3421_v58, %v3404_v19 }
 0x202   : > { %1810 = vmatpush1.bf16.msra.mxu0 %v2762_v42  ;;  %2003 = vmatpush1.bf16.msra.mxu1 %v2764_v43  ;;  %v894_v5 = vpop.f32.mrf.mxu1  ;;  %v2716_v49 = vcombine.low %v1040_v30, %v1044_v37 }
 0x203   : > { %1811 = vmatprep.subr.bf16.mxu0 %v2755_v45  ;;  %2004 = vmatprep.subr.bf16.mxu1 %v2757_v46  ;;  %v3429_v15 = vpack.c.bf16 %v994_v2, %v993_v9  ;;  %v895_v41 = vadd.f32 %v3404_v19, %v894_v5  ;;  %v2717_v45 = vcombine.high %v1040_v30, %v1044_v37 }
 0x204   : > { %v2868_v17 = vpop.f32.mrf.mxu1 }
 0x205   : > { %1464 = vmatmul.mubr.bf16.gmra.mxu0 %v3418_v54  ;;  %1657 = vmatmul.mubr.bf16.gmra.mxu1 %v3418_v54  ;;  %v997_v46 = vmax.f32 %v895_v41, 0.0  ;;  %v906_v52 = vadd.f32 %v2868_v17, %v3404_v19 }
 0x206   : > { %1473 = vmatprep.mubr.bf16.mxu0 %v3165_v56  ;;  %1666 = vmatprep.mubr.bf16.mxu1 %v3165_v56  ;;  %v897_v33 = vpop.f32.mrf.mxu1 }
 0x207   : > { %1812 = vmatpush1.bf16.msra.mxu0 %v2754_v53  ;;  %2005 = vmatpush1.bf16.msra.mxu1 %v2756_v57  ;;  %v898_v42 = vadd.f32 %v3404_v19, %v897_v33  ;;  %v999_v57 = vmax.f32 %v903_v51, 0.0 }
 0x208   : > { %1813 = vmatprep.subr.bf16.mxu0 %v2747_v59  ;;  %2006 = vmatprep.subr.bf16.mxu1 %v2749_v60  ;;  %v2871_v43 = vpop.f32.mrf.mxu1  ;;  %v1000_v59 = vmax.f32 %v906_v52, 0.0 }
 0x209   : > { %v998_v47 = vmax.f32 %v898_v42, 0.0 }
 0x20a   : > { %v910_v50 = vpop.f32.mrf.mxu1  ;;  %v3454_v61 = vpack.c.bf16 %v1000_v59, %v999_v57 }
 0x20b   : > { %1814 = vmatpush1.bf16.msra.mxu0 %v2746_v3  ;;  %2007 = vmatpush1.bf16.msra.mxu1 %v2748_v4  ;;  %v3448_v53 = vpack.c.bf16 %v998_v47, %v997_v46  ;;  %v911_v58 = vadd.f32 %v3404_v19, %v910_v50  ;;  %v919_v3 = vadd.f32 %v2871_v43, %v3404_v19 }
 0x20c   : > { %1815 = vmatprep.subr.bf16.mxu0 %v2739_v6  ;;  %2008 = vmatprep.subr.bf16.mxu1 %v2741_v7  ;;  %v2872_v55 = vpop.f32.mrf.mxu1 }
 0x20d   : > { %1474 = vmatmul.mubr.bf16.gmra.mxu0 %v3429_v15  ;;  %1667 = vmatmul.mubr.bf16.gmra.mxu1 %v3429_v15  ;;  %v1001_v0 = vmax.f32 %v911_v58, 0.0  ;;  %v922_v4 = vadd.f32 %v2872_v55, %v3404_v19  ;;  %v1003_v7 = vmax.f32 %v919_v3, 0.0 }
 0x20e   : > { %1483 = vmatprep.mubr.bf16.mxu0 %v3165_v56  ;;  %1676 = vmatprep.mubr.bf16.mxu1 %v3165_v56  ;;  %v913_v60 = vpop.f32.mrf.mxu1 }
 0x20f   : > { %1816 = vmatpush1.bf16.msra.mxu0 %v2738_v13  ;;  %2009 = vmatpush1.bf16.msra.mxu1 %v2740_v16  ;;  %v914_v62 = vadd.f32 %v3404_v19, %v913_v60  ;;  %v1004_v8 = vmax.f32 %v922_v4, 0.0 }
 0x210   : > { %1817 = vmatprep.subr.bf16.mxu0 %v2731_v18  ;;  %2010 = vmatprep.subr.bf16.mxu1 %v2733_v20  ;;  %v2875_v63 = vpop.f32.mrf.mxu1 }
 0x211   : > { %v1002_v1 = vmax.f32 %v914_v62, 0.0  ;;  %v3470_v10 = vpack.c.bf16 %v1004_v8, %v1003_v7  ;;  %v935_v18 = vadd.f32 %v2875_v63, %v3404_v19 }
 0x212   : > { %v926_v2 = vpop.f32.mrf.mxu1 }
 0x213   : > { %1818 = vmatpush1.bf16.msra.mxu0 %v2730_v31  ;;  %2011 = vmatpush1.bf16.msra.mxu1 %v2732_v32  ;;  %v3464_v5 = vpack.c.bf16 %v1002_v1, %v1001_v0  ;;  %v927_v11 = vadd.f32 %v3404_v19, %v926_v2  ;;  %v1007_v23 = vmax.f32 %v935_v18, 0.0 }
 0x214   : > { %1819 = vmatprep.subr.bf16.mxu0 %v2723_v25  ;;  %2012 = vmatprep.subr.bf16.mxu1 %v2725_v34  ;;  %v2876_v6 = vpop.f32.mrf.mxu1 }
 0x215   : > { %1484 = vmatmul.mubr.bf16.gmra.mxu0 %v3437_v40  ;;  %1677 = vmatmul.mubr.bf16.gmra.mxu1 %v3437_v40  ;;  %v1005_v14 = vmax.f32 %v927_v11, 0.0  ;;  %v938_v20 = vadd.f32 %v2876_v6, %v3404_v19 }
 0x216   : > { %1493 = vmatprep.mubr.bf16.mxu0 %v3165_v56  ;;  %1686 = vmatprep.mubr.bf16.mxu1 %v3165_v56  ;;  %v929_v9 = vpop.f32.mrf.mxu1 }
 0x217   : > { %1820 = vmatpush1.bf16.msra.mxu0 %v2722_v38  ;;  %2013 = vmatpush1.bf16.msra.mxu1 %v2724_v39  ;;  %v930_v12 = vadd.f32 %v3404_v19, %v929_v9  ;;  %v1008_v26 = vmax.f32 %v938_v20, 0.0 }
 0x218   : > { %1821 = vmatprep.subr.bf16.mxu0 %v2715_v44  ;;  %2014 = vmatprep.subr.bf16.mxu1 %v2717_v45  ;;  %v2879_v13 = vpop.f32.mrf.mxu1 }
 0x219   : > { %v1006_v16 = vmax.f32 %v930_v12, 0.0  ;;  %v3486_v29 = vpack.c.bf16 %v1008_v26, %v1007_v23  ;;  %v951_v24 = vadd.f32 %v2879_v13, %v3404_v19 }
 0x21a   : > { %v942_v17 = vpop.f32.mrf.mxu1 }
 0x21b   : > { %1822 = vmatpush1.bf16.msra.mxu0 %v2714_v48  ;;  %2015 = vmatpush1.bf16.msra.mxu1 %v2716_v49  ;;  %v3480_v21 = vpack.c.bf16 %v1006_v16, %v1005_v14  ;;  %v943_v31 = vadd.f32 %v3404_v19, %v942_v17  ;;  %v1011_v38 = vmax.f32 %v951_v24, 0.0 }
 0x21c   : > { %v2880_v22 = vpop.f32.mrf.mxu1 }
 0x21d   : > { %1494 = vmatmul.mubr.bf16.gmra.mxu0 %v3448_v53  ;;  %1687 = vmatmul.mubr.bf16.gmra.mxu1 %v3448_v53  ;;  %v1009_v25 = vmax.f32 %v943_v31, 0.0  ;;  %v954_v27 = vadd.f32 %v2880_v22, %v3404_v19 }
 0x21e   : > { %1503 = vmatprep.mubr.bf16.mxu0 %v3165_v56  ;;  %1696 = vmatprep.mubr.bf16.mxu1 %v3165_v56  ;;  %v945_v28 = vpop.f32.mrf.mxu1 }
 0x21f   : > { %v946_v32 = vadd.f32 %v3404_v19, %v945_v28  ;;  %v1012_v39 = vmax.f32 %v954_v27, 0.0 }
 0x220   : > { %v2883_v33 = vpop.f32.mrf.mxu1 }
 0x221   : > { %v1010_v34 = vmax.f32 %v946_v32, 0.0  ;;  %v3502_v42 = vpack.c.bf16 %v1012_v39, %v1011_v38  ;;  %v967_v49 = vadd.f32 %v2883_v33, %v3404_v19 }
 0x222   : > { %v958_v35 = vpop.f32.mrf.mxu1 }
 0x223   : > { %v3496_v30 = vpack.c.bf16 %v1010_v34, %v1009_v25  ;;  %v959_v43 = vadd.f32 %v3404_v19, %v958_v35  ;;  %v1015_v55 = vmax.f32 %v967_v49, 0.0 }
 0x224   : > { %v2884_v37 = vpop.f32.mrf.mxu1 }
 0x225   : > { %1504 = vmatmul.mubr.bf16.gmra.mxu0 %v3454_v61  ;;  %1697 = vmatmul.mubr.bf16.gmra.mxu1 %v3454_v61  ;;  %v1013_v46 = vmax.f32 %v959_v43, 0.0  ;;  %v970_v50 = vadd.f32 %v2884_v37, %v3404_v19 }
 0x226   : > { %1513 = vmatprep.mubr.bf16.mxu0 %v3165_v56  ;;  %1706 = vmatprep.mubr.bf16.mxu1 %v3165_v56  ;;  %v961_v41 = vpop.f32.mrf.mxu1 }
 0x227   : > { %v962_v44 = vadd.f32 %v3404_v19, %v961_v41  ;;  %v1016_v57 = vmax.f32 %v970_v50, 0.0 }
 0x228   : > { %v2887_v45 = vpop.f32.mrf.mxu1 }
 0x229   : > { %v1014_v47 = vmax.f32 %v962_v44, 0.0  ;;  %v3518_v60 = vpack.c.bf16 %v1016_v57, %v1015_v55  ;;  %v983_v1 = vadd.f32 %v2887_v45, %v3404_v19 }
 0x22a   : > { %v974_v48 = vpop.f32.mrf.mxu1 }
 0x22b   : > { %v3512_v51 = vpack.c.bf16 %v1014_v47, %v1013_v46  ;;  %v975_v58 = vadd.f32 %v3404_v19, %v974_v48  ;;  %v1019_v4 = vmax.f32 %v983_v1, 0.0 }
 0x22c   : > { %v2888_v52 = vpop.f32.mrf.mxu1 }
 0x22d   : > { %1514 = vmatmul.mubr.bf16.gmra.mxu0 %v3464_v5  ;;  %1707 = vmatmul.mubr.bf16.gmra.mxu1 %v3464_v5  ;;  %v1017_v63 = vmax.f32 %v975_v58, 0.0  ;;  %v986_v2 = vadd.f32 %v2888_v52, %v3404_v19 }
 0x22e   : > { %1523 = vmatprep.mubr.bf16.mxu0 %v3165_v56  ;;  %1716 = vmatprep.mubr.bf16.mxu1 %v3165_v56  ;;  %v977_v59 = vpop.f32.mrf.mxu1 }
 0x22f   : > { %v978_v62 = vadd.f32 %v3404_v19, %v977_v59  ;;  %v1020_v6 = vmax.f32 %v986_v2, 0.0 }
 0x231   : > { %v1018_v0 = vmax.f32 %v978_v62, 0.0  ;;  %v3534_v7 = vpack.c.bf16 %v1020_v6, %v1019_v4 }
 0x233   : > { %v3528_v3 = vpack.c.bf16 %v1018_v0, %v1017_v63 }
 0x235   : > { %1524 = vmatmul.mubr.bf16.gmra.mxu0 %v3470_v10  ;;  %1717 = vmatmul.mubr.bf16.gmra.mxu1 %v3470_v10 }
 0x236   : > { %1533 = vmatprep.mubr.bf16.mxu0 %v3165_v56  ;;  %1726 = vmatprep.mubr.bf16.mxu1 %v3165_v56 }
 0x23d   : > { %1534 = vmatmul.mubr.bf16.gmra.mxu0 %v3480_v21  ;;  %1727 = vmatmul.mubr.bf16.gmra.mxu1 %v3480_v21 }
 0x23e   : > { %1543 = vmatprep.mubr.bf16.mxu0 %v3165_v56  ;;  %1736 = vmatprep.mubr.bf16.mxu1 %v3165_v56 }
 0x245   : > { %1544 = vmatmul.mubr.bf16.gmra.mxu0 %v3486_v29  ;;  %1737 = vmatmul.mubr.bf16.gmra.mxu1 %v3486_v29 }
 0x246   : > { %1553 = vmatprep.mubr.bf16.mxu0 %v3165_v56  ;;  %1746 = vmatprep.mubr.bf16.mxu1 %v3165_v56 }
 0x24d   : > { %1554 = vmatmul.mubr.bf16.gmra.mxu0 %v3496_v30  ;;  %1747 = vmatmul.mubr.bf16.gmra.mxu1 %v3496_v30 }
 0x24e   : > { %1563 = vmatprep.mubr.bf16.mxu0 %v3165_v56  ;;  %1756 = vmatprep.mubr.bf16.mxu1 %v3165_v56 }
 0x255   : > { %1564 = vmatmul.mubr.bf16.gmra.mxu0 %v3502_v42  ;;  %1757 = vmatmul.mubr.bf16.gmra.mxu1 %v3502_v42 }
 0x256   : > { %1573 = vmatprep.mubr.bf16.mxu0 %v3165_v56  ;;  %1766 = vmatprep.mubr.bf16.mxu1 %v3165_v56 }
 0x25d   : > { %1574 = vmatmul.mubr.bf16.gmra.mxu0 %v3512_v51  ;;  %1767 = vmatmul.mubr.bf16.gmra.mxu1 %v3512_v51 }
 0x25e   : > { %1583 = vmatprep.mubr.bf16.mxu0 %v3165_v56  ;;  %1776 = vmatprep.mubr.bf16.mxu1 %v3165_v56 }
 0x265   : > { %1584 = vmatmul.mubr.bf16.gmra.mxu0 %v3518_v60  ;;  %1777 = vmatmul.mubr.bf16.gmra.mxu1 %v3518_v60 }
 0x266   : > { %1593 = vmatprep.mubr.bf16.mxu0 %v3165_v56  ;;  %1786 = vmatprep.mubr.bf16.mxu1 %v3165_v56 }
 0x26d   : > { %1594 = vmatmul.mubr.bf16.gmra.mxu0 %v3528_v3  ;;  %1787 = vmatmul.mubr.bf16.gmra.mxu1 %v3528_v3 }
 0x26e   : > { %1603 = vmatprep.mubr.bf16.mxu0 %v3165_v56  ;;  %1796 = vmatprep.mubr.bf16.mxu1 %v3165_v56 }
 0x275   : > { %1604 = vmatmul.mubr.bf16.gmra.mxu0 %v3534_v7  ;;  %1797 = vmatmul.mubr.bf16.gmra.mxu1 %v3534_v7 }
 0x276   : > { %1839 = vmatprep.mubr.bf16.mxu0 %v3165_v56  ;;  %2032 = vmatprep.mubr.bf16.mxu1 %v3165_v56 }
 0x27d   : > { %1840 = vmatmul.mubr.bf16.vlgmr.msra.gmra.mxu0 %v3411_v36  ;;  %2033 = vmatmul.mubr.bf16.vlgmr.msra.gmra.mxu1 %v3411_v36 }
 0x27e   : > { %1849 = vmatprep.mubr.bf16.mxu0 %v3165_v56  ;;  %2042 = vmatprep.mubr.bf16.mxu1 %v3165_v56 }
 0x285   : > { %1850 = vmatmul.mubr.bf16.gmra.mxu0 %v3418_v54  ;;  %2043 = vmatmul.mubr.bf16.gmra.mxu1 %v3418_v54 }
 0x286   : > { %1859 = vmatprep.mubr.bf16.mxu0 %v3165_v56  ;;  %2052 = vmatprep.mubr.bf16.mxu1 %v3165_v56 }
 0x28d   : > { %1860 = vmatmul.mubr.bf16.gmra.mxu0 %v3429_v15  ;;  %2053 = vmatmul.mubr.bf16.gmra.mxu1 %v3429_v15 }
 0x28e   : > { %1869 = vmatprep.mubr.bf16.mxu0 %v3165_v56  ;;  %2062 = vmatprep.mubr.bf16.mxu1 %v3165_v56 }
 0x295   : > { %1870 = vmatmul.mubr.bf16.gmra.mxu0 %v3437_v40  ;;  %2063 = vmatmul.mubr.bf16.gmra.mxu1 %v3437_v40 }
 0x296   : > { %1879 = vmatprep.mubr.bf16.mxu0 %v3165_v56  ;;  %2072 = vmatprep.mubr.bf16.mxu1 %v3165_v56 }
 0x29d   : > { %1880 = vmatmul.mubr.bf16.gmra.mxu0 %v3448_v53  ;;  %2073 = vmatmul.mubr.bf16.gmra.mxu1 %v3448_v53 }
 0x29e   : > { %1889 = vmatprep.mubr.bf16.mxu0 %v3165_v56  ;;  %2082 = vmatprep.mubr.bf16.mxu1 %v3165_v56 }
 0x2a5   : > { %1890 = vmatmul.mubr.bf16.gmra.mxu0 %v3454_v61  ;;  %2083 = vmatmul.mubr.bf16.gmra.mxu1 %v3454_v61 }
 0x2a6   : > { %1899 = vmatprep.mubr.bf16.mxu0 %v3165_v56  ;;  %2092 = vmatprep.mubr.bf16.mxu1 %v3165_v56 }
 0x2ad   : > { %1900 = vmatmul.mubr.bf16.gmra.mxu0 %v3464_v5  ;;  %2093 = vmatmul.mubr.bf16.gmra.mxu1 %v3464_v5 }
 0x2ae   : > { %1909 = vmatprep.mubr.bf16.mxu0 %v3165_v56  ;;  %2102 = vmatprep.mubr.bf16.mxu1 %v3165_v56 }
 0x2b5   : > { %1910 = vmatmul.mubr.bf16.gmra.mxu0 %v3470_v10  ;;  %2103 = vmatmul.mubr.bf16.gmra.mxu1 %v3470_v10 }
 0x2b6   : > { %1919 = vmatprep.mubr.bf16.mxu0 %v3165_v56  ;;  %2112 = vmatprep.mubr.bf16.mxu1 %v3165_v56 }
 0x2bd   : > { %v3572_v19 = vpop.f32.mrf.mxu0  ;;  %v3574_v36 = vpop.f32.mrf.mxu1  ;;  %1920 = vmatmul.mubr.bf16.gmra.mxu0 %v3480_v21  ;;  %2113 = vmatmul.mubr.bf16.gmra.mxu1 %v3480_v21 }
 0x2be   : > { %1929 = vmatprep.mubr.bf16.mxu0 %v3165_v56  ;;  %2122 = vmatprep.mubr.bf16.mxu1 %v3165_v56 }
 0x2bf   : > { %v3580_v54 = vpop.f32.mrf.mxu0  ;;  %v3582_v15 = vpop.f32.mrf.mxu1 }
 0x2c1   : > { %v3584_v40 = vpop.f32.mrf.mxu0  ;;  %v3586_v53 = vpop.f32.mrf.mxu1 }
 0x2c3   : > { %v3588_v61 = vpop.f32.mrf.mxu0  ;;  %v3590_v5 = vpop.f32.mrf.mxu1 }
 0x2c5   : > { %v3592_v8 = vpop.f32.mrf.mxu0  ;;  %v3594_v9 = vpop.f32.mrf.mxu1  ;;  %1930 = vmatmul.mubr.bf16.gmra.mxu0 %v3486_v29  ;;  %2123 = vmatmul.mubr.bf16.gmra.mxu1 %v3486_v29 }
 0x2c6   : > { %1939 = vmatprep.mubr.bf16.mxu0 %v3165_v56  ;;  %2132 = vmatprep.mubr.bf16.mxu1 %v3165_v56 }
 0x2c7   : > { %v3600_v10 = vpop.f32.mrf.mxu0  ;;  %v3602_v11 = vpop.f32.mrf.mxu1 }
 0x2c9   : > { %v3604_v12 = vpop.f32.mrf.mxu0  ;;  %v3606_v13 = vpop.f32.mrf.mxu1 }
 0x2cb   : > { %v3608_v14 = vpop.f32.mrf.mxu0  ;;  %v3610_v16 = vpop.f32.mrf.mxu1 }
 0x2cd   : > { %v3612_v17 = vpop.f32.mrf.mxu0  ;;  %v3614_v18 = vpop.f32.mrf.mxu1  ;;  %1940 = vmatmul.mubr.bf16.gmra.mxu0 %v3496_v30  ;;  %2133 = vmatmul.mubr.bf16.gmra.mxu1 %v3496_v30 }
 0x2ce   : > { %1949 = vmatprep.mubr.bf16.mxu0 %v3165_v56  ;;  %2142 = vmatprep.mubr.bf16.mxu1 %v3165_v56 }
 0x2cf   : > { %v3620_v20 = vpop.f32.mrf.mxu0  ;;  %v3622_v21 = vpop.f32.mrf.mxu1 }
 0x2d1   : > { %v3624_v22 = vpop.f32.mrf.mxu0  ;;  %v3626_v23 = vpop.f32.mrf.mxu1 }
 0x2d3   : > { %v3628_v26 = vpop.f32.mrf.mxu0  ;;  %v3630_v28 = vpop.f32.mrf.mxu1 }
 0x2d5   : > { %v3632_v29 = vpop.f32.mrf.mxu0  ;;  %v3634_v31 = vpop.f32.mrf.mxu1  ;;  %1950 = vmatmul.mubr.bf16.gmra.mxu0 %v3502_v42  ;;  %2143 = vmatmul.mubr.bf16.gmra.mxu1 %v3502_v42 }
 0x2d6   : > { %1959 = vmatprep.mubr.bf16.mxu0 %v3165_v56  ;;  %2152 = vmatprep.mubr.bf16.mxu1 %v3165_v56 }
 0x2d7   : > { %v3640_v32 = vpop.f32.mrf.mxu0  ;;  %v3642_v33 = vpop.f32.mrf.mxu1 }
 0x2d9   : > { %v3644_v25 = vpop.f32.mrf.mxu0  ;;  %v3646_v34 = vpop.f32.mrf.mxu1 }
 0x2db   : > { %v3648_v35 = vpop.f32.mrf.mxu0  ;;  %v3650_v24 = vpop.f32.mrf.mxu1 }
 0x2dd   : > { %v3652_v27 = vpop.f32.mrf.mxu0  ;;  %v3654_v30 = vpop.f32.mrf.mxu1  ;;  %1960 = vmatmul.mubr.bf16.gmra.mxu0 %v3512_v51  ;;  %2153 = vmatmul.mubr.bf16.gmra.mxu1 %v3512_v51 }
 0x2de   : > { %1969 = vmatprep.mubr.bf16.mxu0 %v3165_v56  ;;  %2162 = vmatprep.mubr.bf16.mxu1 %v3165_v56 }
 0x2df   : > { %v3660_v37 = vpop.f32.mrf.mxu0  ;;  %v3662_v38 = vpop.f32.mrf.mxu1 }
 0x2e1   : > { %v3664_v39 = vpop.f32.mrf.mxu0  ;;  %v3666_v41 = vpop.f32.mrf.mxu1 }
 0x2e3   : > { %v3668_v42 = vpop.f32.mrf.mxu0  ;;  %v3670_v43 = vpop.f32.mrf.mxu1 }
 0x2e5   : > { %v3672_v44 = vpop.f32.mrf.mxu0  ;;  %v3674_v45 = vpop.f32.mrf.mxu1  ;;  %1970 = vmatmul.mubr.bf16.gmra.mxu0 %v3518_v60  ;;  %2163 = vmatmul.mubr.bf16.gmra.mxu1 %v3518_v60 }
 0x2e6   : > { %1979 = vmatprep.mubr.bf16.mxu0 %v3165_v56  ;;  %2172 = vmatprep.mubr.bf16.mxu1 %v3165_v56 }
 0x2e7   : > { %v3680_v46 = vpop.f32.mrf.mxu0  ;;  %v3682_v47 = vpop.f32.mrf.mxu1 }
 0x2e9   : > { %v3684_v48 = vpop.f32.mrf.mxu0  ;;  %v3686_v49 = vpop.f32.mrf.mxu1 }
 0x2eb   : > { %v3688_v50 = vpop.f32.mrf.mxu0  ;;  %v3690_v51 = vpop.f32.mrf.mxu1 }
 0x2ed   : > { %v3692_v52 = vpop.f32.mrf.mxu0  ;;  %v3694_v55 = vpop.f32.mrf.mxu1  ;;  %1980 = vmatmul.mubr.bf16.gmra.mxu0 %v3528_v3  ;;  %2173 = vmatmul.mubr.bf16.gmra.mxu1 %v3528_v3 }
 0x2ee   : > { %1989 = vmatprep.mubr.bf16.mxu0 %v3165_v56  ;;  %2182 = vmatprep.mubr.bf16.mxu1 %v3165_v56 }
 0x2ef   : > { %v3700_v57 = vpop.f32.mrf.mxu0  ;;  %v3702_v59 = vpop.f32.mrf.mxu1 }
 0x2f1   : > { %v3704_v60 = vpop.f32.mrf.mxu0  ;;  %v3706_v58 = vpop.f32.mrf.mxu1 }
 0x2f3   : > { %v3708_v62 = vpop.f32.mrf.mxu0  ;;  %v3710_v63 = vpop.f32.mrf.mxu1 }
 0x2f4   : > { %4171 = vst [vmem:[#allocation13_spill] sm:$0xff] %v3708_v62  ;;  %4172 = vst [vmem:[#allocation14_spill] sm:$0xff] %v3710_v63 }
 0x2f5   : > { %v3712_v0 = vpop.f32.mrf.mxu0  ;;  %v3714_v1 = vpop.f32.mrf.mxu1  ;;  %1990 = vmatmul.mubr.bf16.gmra.mxu0 %v3534_v7  ;;  %2183 = vmatmul.mubr.bf16.gmra.mxu1 %v3534_v7  ;;  %v2267_v7 = vmax.f32 %v3574_v36, %v3586_v53 }
 0x2f6   : > { %4173 = vst [vmem:[#allocation15_spill] sm:$0xff] %v3712_v0  ;;  %4174 = vst [vmem:[#allocation16_spill] sm:$0xff] %v3714_v1  ;;  %v2193_v1 = vmax.f32 %v3572_v19, %v3584_v40 }
 0x2f7   : > { %v3718_v56 = vpop.f32.mrf.mxu0  ;;  %v3720_v2 = vpop.f32.mrf.mxu1 }
 0x2f8   : > { %4175 = vst [vmem:[#allocation17_spill] sm:$0xff] %v3718_v56  ;;  %4176 = vst [vmem:[#allocation18_spill] sm:$0xff] %v3720_v2 }
 0x2f9   : > { %v3722_v3 = vpop.f32.mrf.mxu0  ;;  %v3724_v4 = vpop.f32.mrf.mxu1 }
 0x2fa   : > { %4177 = vst [vmem:[#allocation19_spill] sm:$0xff] %v3724_v4  ;;  %v2230_v4 = vmax.f32 %v3580_v54, %v3588_v61 }
 0x2fb   : > { %v3726_v6 = vpop.f32.mrf.mxu0  ;;  %v3728_v62 = vpop.f32.mrf.mxu1 }
 0x2fc   : > { %4178 = vst [vmem:[#allocation20_spill] sm:$0xff] %v3726_v6  ;;  %4179 = vst [vmem:[#allocation21_spill] sm:$0xff] %v3728_v62  ;;  %v2304_v62 = vmax.f32 %v3582_v15, %v3590_v5  ;;  %v2231_v36 = vmax.f32 %v2230_v4, %v3600_v10 }
 0x2fd   : > { %v3730_v63 = vpop.f32.mrf.mxu0  ;;  %v3732_v0 = vpop.f32.mrf.mxu1 }
 0x2fe   : > { %4180 = vst [vmem:[#allocation22_spill] sm:$0xff] %v3730_v63  ;;  %4181 = vst [vmem:[#allocation23_spill] sm:$0xff] %v3732_v0  ;;  %v2194_v63 = vmax.f32 %v2193_v1, %v3592_v8  ;;  %v2268_v0 = vmax.f32 %v2267_v7, %v3594_v9  ;;  %v2305_v40 = vmax.f32 %v2304_v62, %v3602_v11 }
 0x2ff   : > { %v3738_v56 = vpop.f32.mrf.mxu0  ;;  %v3740_v2 = vpop.f32.mrf.mxu1  ;;  %v2232_v15 = vmax.f32 %v2231_v36, %v3608_v14 }
 0x300   : > { %4182 = vst [vmem:[#allocation24_spill] sm:$0xff] %v3740_v2  ;;  %v2195_v53 = vmax.f32 %v2194_v63, %v3604_v12  ;;  %v2269_v2 = vmax.f32 %v2268_v0, %v3606_v13  ;;  %v2306_v5 = vmax.f32 %v2305_v40, %v3610_v16 }
 0x301   : > { %v3748_v6 = vpop.f32.mrf.mxu0  ;;  %v3750_v19 = vpop.f32.mrf.mxu1  ;;  %v2233_v11 = vmax.f32 %v2232_v15, %v3620_v20 }
 0x302   : > { %v2196_v8 = vmax.f32 %v2195_v53, %v3612_v17  ;;  %v2270_v9 = vmax.f32 %v2269_v2, %v3614_v18  ;;  %v2307_v12 = vmax.f32 %v2306_v5, %v3622_v21 }
 0x303   : > { %v3756_v54 = vpop.f32.mrf.mxu0  ;;  %v3758_v61 = vpop.f32.mrf.mxu1  ;;  %v2234_v16 = vmax.f32 %v2233_v11, %v3628_v26 }
 0x304   : > { %v2197_v13 = vmax.f32 %v2196_v8, %v3624_v22  ;;  %v2271_v62 = vmax.f32 %v2270_v9, %v3626_v23  ;;  %v2308_v17 = vmax.f32 %v2307_v12, %v3630_v28 }
 0x305   : > { %v3764_v1 = vpop.f32.mrf.mxu0  ;;  %v3766_v10 = vpop.f32.mrf.mxu1  ;;  %v2235_v21 = vmax.f32 %v2234_v16, %v3640_v32 }
 0x306   : > { %v2198_v18 = vmax.f32 %v2197_v13, %v3632_v29  ;;  %v2272_v0 = vmax.f32 %v2271_v62, %v3634_v31  ;;  %v2309_v22 = vmax.f32 %v2308_v17, %v3642_v33 }
 0x307   : > { %v3772_v63 = vpop.f32.mrf.mxu0  ;;  %v3774_v14 = vpop.f32.mrf.mxu1  ;;  %v2236_v28 = vmax.f32 %v2235_v21, %v3648_v35  ;;  %v4185_v21 = vld [vmem:[#allocation15_spill] sm:$0xff] }
 0x308   : > { %v2199_v23 = vmax.f32 %v2198_v18, %v3644_v25  ;;  %v2273_v4 = vmax.f32 %v2272_v0, %v3646_v34  ;;  %v2310_v29 = vmax.f32 %v2309_v22, %v3650_v24  ;;  %v4183_v18 = vld [vmem:[#allocation13_spill] sm:$0xff]  ;;  %v4184_v0 = vld [vmem:[#allocation14_spill] sm:$0xff]  ;;  %v4186_v22 = vld [vmem:[#allocation16_spill] sm:$0xff] }
 0x309   : > { %v3780_v2 = vpop.f32.mrf.mxu0  ;;  %v3782_v20 = vpop.f32.mrf.mxu1  ;;  %v2237_v33 = vmax.f32 %v2236_v28, %v3660_v37  ;;  %v4187_v28 = vld [vmem:[#allocation17_spill] sm:$0xff] }
 0x30a   : > { %v2200_v31 = vmax.f32 %v2199_v23, %v3652_v27  ;;  %v2274_v36 = vmax.f32 %v2273_v4, %v3654_v30  ;;  %v2311_v25 = vmax.f32 %v2310_v29, %v3662_v38  ;;  %v4188_v29 = vld [vmem:[#allocation18_spill] sm:$0xff] }
 0x30b   : > { %v3788_v7 = vpop.f32.mrf.mxu0  ;;  %v3790_v26 = vpop.f32.mrf.mxu1  ;;  %v2238_v24 = vmax.f32 %v2237_v33, %v3668_v42 }
 0x30c   : > { %v2201_v34 = vmax.f32 %v2200_v31, %v3664_v39  ;;  %v2275_v53 = vmax.f32 %v2274_v36, %v3666_v41  ;;  %v2312_v27 = vmax.f32 %v2311_v25, %v3670_v43  ;;  %v4189_v31 = vld [vmem:[#allocation19_spill] sm:$0xff]  ;;  %v4190_v25 = vld [vmem:[#allocation20_spill] sm:$0xff] }
 0x30d   : > { %v3796_v40 = vpop.f32.mrf.mxu0  ;;  %v3798_v32 = vpop.f32.mrf.mxu1  ;;  %v2239_v38 = vmax.f32 %v2238_v24, %v3680_v46 }
 0x30e   : > { %v2202_v30 = vmax.f32 %v2201_v34, %v3672_v44  ;;  %v2276_v5 = vmax.f32 %v2275_v53, %v3674_v45  ;;  %v2313_v39 = vmax.f32 %v2312_v27, %v3682_v47  ;;  %v4191_v53 = vld [vmem:[#allocation21_spill] sm:$0xff]  ;;  %v4192_v27 = vld [vmem:[#allocation22_spill] sm:$0xff] }
 0x30f   : > { %v3804_v15 = vpop.f32.mrf.mxu0  ;;  %v3806_v35 = vpop.f32.mrf.mxu1  ;;  %v2240_v43 = vmax.f32 %v2239_v38, %v3688_v50 }
 0x310   : > { %v2203_v41 = vmax.f32 %v2202_v30, %v3684_v48  ;;  %v2277_v9 = vmax.f32 %v2276_v5, %v3686_v49  ;;  %v2314_v44 = vmax.f32 %v2313_v39, %v3690_v51  ;;  %v4193_v5 = vld [vmem:[#allocation23_spill] sm:$0xff] }
 0x311   : > { %v3812_v8 = vpop.f32.mrf.mxu0  ;;  %v3814_v37 = vpop.f32.mrf.mxu1  ;;  %v2241_v47 = vmax.f32 %v2240_v43, %v3700_v57  ;;  %v4194_v43 = vld [vmem:[#allocation24_spill] sm:$0xff] }
 0x312   : > { %v2204_v45 = vmax.f32 %v2203_v41, %v3692_v52  ;;  %v2278_v12 = vmax.f32 %v2277_v9, %v3694_v55  ;;  %v2315_v48 = vmax.f32 %v2314_v44, %v3702_v59 }
 0x313   : > { %v3820_v11 = vpop.f32.mrf.mxu0  ;;  %v3822_v42 = vpop.f32.mrf.mxu1  ;;  %v2242_v50 = vmax.f32 %v2241_v47, %v4183_v18 }
 0x314   : > { %v2205_v49 = vmax.f32 %v2204_v45, %v3704_v60  ;;  %v2279_v62 = vmax.f32 %v2278_v12, %v3706_v58  ;;  %v2316_v51 = vmax.f32 %v2315_v48, %v4184_v0 }
 0x315   : > { %v1565_v13 = vpop.f32.mrf.mxu0  ;;  %v1758_v46 = vpop.f32.mrf.mxu1  ;;  %v2243_v57 = vmax.f32 %v2242_v50, %v4187_v28 }
 0x316   : > { %v2206_v52 = vmax.f32 %v2205_v49, %v4185_v21  ;;  %v2280_v55 = vmax.f32 %v2279_v62, %v4186_v22  ;;  %v2317_v59 = vmax.f32 %v2316_v51, %v4188_v29 }
 0x317   : > { %v1567_v16 = vpop.f32.mrf.mxu0  ;;  %v1760_v17 = vpop.f32.mrf.mxu1  ;;  %v2244_v34 = vmax.f32 %v2243_v57, %v4190_v25 }
 0x318   : > { %v2207_v60 = vmax.f32 %v2206_v52, %v3722_v3  ;;  %v2281_v58 = vmax.f32 %v2280_v55, %v4189_v31  ;;  %v2318_v24 = vmax.f32 %v2317_v59, %v4191_v53 }
 0x319   : > { %v1569_v23 = vpop.f32.mrf.mxu0  ;;  %v1762_v4 = vpop.f32.mrf.mxu1  ;;  %v2245_v9 = vmax.f32 %v2244_v34, %v3738_v56 }
 0x31a   : > { %v2208_v30 = vmax.f32 %v2207_v60, %v4192_v27  ;;  %v2282_v38 = vmax.f32 %v2281_v58, %v4193_v5  ;;  %v2319_v44 = vmax.f32 %v2318_v24, %v4194_v43 }
 0x31b   : > { %v1571_v36 = vpop.f32.mrf.mxu0  ;;  %v1764_v33 = vpop.f32.mrf.mxu1  ;;  %v2246_v48 = vmax.f32 %v2245_v9, %v3756_v54 }
 0x31c   : > { %v2209_v3 = vmax.f32 %v2208_v30, %v3748_v6  ;;  %v2283_v45 = vmax.f32 %v2282_v38, %v3750_v19  ;;  %v2320_v49 = vmax.f32 %v2319_v44, %v3758_v61 }
 0x31d   : > { %v1575_v39 = vpop.f32.mrf.mxu0  ;;  %v1768_v41 = vpop.f32.mrf.mxu1  ;;  %v2247_v56 = vmax.f32 %v2246_v48, %v3772_v63 }
 0x31e   : > { %v2210_v62 = vmax.f32 %v2209_v3, %v3764_v1  ;;  %v2284_v18 = vmax.f32 %v2283_v45, %v3766_v10  ;;  %v2321_v51 = vmax.f32 %v2320_v49, %v3774_v14 }
 0x31f   : > { %v1577_v12 = vpop.f32.mrf.mxu0  ;;  %v1770_v47 = vpop.f32.mrf.mxu1  ;;  %v2248_v54 = vmax.f32 %v2247_v56, %v3788_v7 }
 0x320   : > { %v2211_v6 = vmax.f32 %v2210_v62, %v3780_v2  ;;  %v2285_v19 = vmax.f32 %v2284_v18, %v3782_v20  ;;  %v2322_v61 = vmax.f32 %v2321_v51, %v3790_v26 }
 0x321   : > { %v1579_v50 = vpop.f32.mrf.mxu0  ;;  %v1772_v0 = vpop.f32.mrf.mxu1  ;;  %v2249_v63 = vmax.f32 %v2248_v54, %v3804_v15 }
 0x322   : > { %v2212_v1 = vmax.f32 %v2211_v6, %v3796_v40  ;;  %v2286_v10 = vmax.f32 %v2285_v19, %v3798_v32  ;;  %v2323_v14 = vmax.f32 %v2322_v61, %v3806_v35 }
 0x323   : > { %v1581_v21 = vpop.f32.mrf.mxu0  ;;  %v1774_v52 = vpop.f32.mrf.mxu1  ;;  %v2250_v7 = vmax.f32 %v2249_v63, %v3820_v11 }
 0x324   : > { %v2213_v2 = vmax.f32 %v2212_v1, %v3812_v8  ;;  %v2287_v20 = vmax.f32 %v2286_v10, %v3814_v37  ;;  %v2324_v26 = vmax.f32 %v2323_v14, %v3822_v42 }
 0x325   : > { %v1585_v22 = vpop.f32.mrf.mxu0  ;;  %v1778_v55 = vpop.f32.mrf.mxu1  ;;  %v2251_v60 = vmax.f32 %v2250_v7, %v1567_v16 }
 0x326   : > { %v2214_v29 = vmax.f32 %v2213_v2, %v1565_v13  ;;  %v2288_v40 = vmax.f32 %v2287_v20, %v1758_v46  ;;  %v2325_v31 = vmax.f32 %v2324_v26, %v1760_v17 }
 0x327   : > { %v1587_v28 = vpop.f32.mrf.mxu0  ;;  %v1780_v57 = vpop.f32.mrf.mxu1  ;;  %v2252_v34 = vmax.f32 %v2251_v60, %v1571_v36 }
 0x328   : > { %v2215_v58 = vmax.f32 %v2214_v29, %v1569_v23  ;;  %v2289_v15 = vmax.f32 %v2288_v40, %v1762_v4  ;;  %v2326_v8 = vmax.f32 %v2325_v31, %v1764_v33 }
 0x329   : > { %v1589_v59 = vpop.f32.mrf.mxu0  ;;  %v1782_v32 = vpop.f32.mrf.mxu1  ;;  %v2253_v30 = vmax.f32 %v2252_v34, %v1577_v12 }
 0x32a   : > { %v2216_v53 = vmax.f32 %v2215_v58, %v1575_v39  ;;  %v2290_v37 = vmax.f32 %v2289_v15, %v1768_v41  ;;  %v2327_v11 = vmax.f32 %v2326_v8, %v1770_v47 }
 0x32b   : > { %v1591_v25 = vpop.f32.mrf.mxu0  ;;  %v1784_v35 = vpop.f32.mrf.mxu1  ;;  %v2254_v38 = vmax.f32 %v2253_v30, %v1581_v21 }
 0x32c   : > { %v2217_v5 = vmax.f32 %v2216_v53, %v1579_v50  ;;  %v2291_v42 = vmax.f32 %v2290_v37, %v1772_v0  ;;  %v2328_v9 = vmax.f32 %v2327_v11, %v1774_v52 }
 0x32d   : > { %v1595_v24 = vpop.f32.mrf.mxu0  ;;  %v1788_v27 = vpop.f32.mrf.mxu1  ;;  %v2255_v43 = vmax.f32 %v2254_v38, %v1587_v28 }
 0x32e   : > { %v2218_v16 = vmax.f32 %v2217_v5, %v1585_v22  ;;  %v2292_v17 = vmax.f32 %v2291_v42, %v1778_v55  ;;  %v2329_v44 = vmax.f32 %v2328_v9, %v1780_v57 }
 0x32f   : > { %v1597_v13 = vpop.f32.mrf.mxu0  ;;  %v1790_v46 = vpop.f32.mrf.mxu1  ;;  %v2256_v3 = vmax.f32 %v2255_v43, %v1591_v25 }
 0x330   : > { %v2219_v36 = vmax.f32 %v2218_v16, %v1589_v59  ;;  %v2293_v33 = vmax.f32 %v2292_v17, %v1782_v32  ;;  %v2330_v45 = vmax.f32 %v2329_v44, %v1784_v35 }
 0x331   : > { %v1599_v23 = vpop.f32.mrf.mxu0  ;;  %v1792_v4 = vpop.f32.mrf.mxu1  ;;  %v2257_v62 = vmax.f32 %v2256_v3, %v1597_v13 }
 0x332   : > { %v2220_v12 = vmax.f32 %v2219_v36, %v1595_v24  ;;  %v2294_v47 = vmax.f32 %v2293_v33, %v1788_v27  ;;  %v2331_v18 = vmax.f32 %v2330_v45, %v1790_v46 }
 0x333   : > { %v1601_v39 = vpop.f32.mrf.mxu0  ;;  %v1794_v41 = vpop.f32.mrf.mxu1 }
 0x334   : > { %v2221_v50 = vmax.f32 %v2220_v12, %v1599_v23  ;;  %v2295_v0 = vmax.f32 %v2294_v47, %v1792_v4  ;;  %v2258_v6 = vmax.f32 %v2257_v62, %v1601_v39  ;;  %v2332_v19 = vmax.f32 %v2331_v18, %v1794_v41 }
 0x335   : > { %v1605_v48 = vpop.f32.mrf.mxu0  ;;  %v1798_v49 = vpop.f32.mrf.mxu1 }
 0x336   : > { %v2222_v21 = vmax.f32 %v2221_v50, %v1605_v48  ;;  %v2296_v52 = vmax.f32 %v2295_v0, %v1798_v49 }
 0x337   : > { %v1607_v56 = vpop.f32.mrf.mxu0  ;;  %v1800_v51 = vpop.f32.mrf.mxu1 }
 0x338   : > { %v2259_v1 = vmax.f32 %v2258_v6, %v1607_v56  ;;  %v2333_v10 = vmax.f32 %v2332_v19, %v1800_v51 }
 0x339   : > { %v1609_v54 = vpop.f32.mrf.mxu0  ;;  %v1802_v61 = vpop.f32.mrf.mxu1 }
 0x33a   : > { %v2223_v22 = vmax.f32 %v2222_v21, %v1609_v54  ;;  %v2297_v55 = vmax.f32 %v2296_v52, %v1802_v61 }
 0x33b   : > { %v1611_v63 = vpop.f32.mrf.mxu0  ;;  %v1804_v14 = vpop.f32.mrf.mxu1 }
 0x33c   : > { %v2224_v2 = vrot.slane %v2223_v22, 4  ;;  %v2298_v20 = vrot.slane %v2297_v55, 4  ;;  %v2260_v28 = vmax.f32 %v2259_v1, %v1611_v63  ;;  %v2334_v57 = vmax.f32 %v2333_v10, %v1804_v14 }
 0x33d   : > { %v3866_v7 = vpop.f32.mrf.mxu0  ;;  %v3868_v26 = vpop.f32.mrf.mxu1 }
 0x33e   : > { %v2225_v29 = vmax.f32 %v2223_v22, %v2224_v2  ;;  %v2299_v40 = vmax.f32 %v2297_v55, %v2298_v20  ;;  %v2261_v59 = vrot.slane %v2260_v28, 4  ;;  %v2335_v32 = vrot.slane %v2334_v57, 4 }
 0x33f   : > { %v3870_v60 = vpop.f32.mrf.mxu0  ;;  %v3872_v31 = vpop.f32.mrf.mxu1 }
 0x340   : > { %v2226_v58 = vrot.slane %v2225_v29, 2  ;;  %v2300_v15 = vrot.slane %v2299_v40, 2  ;;  %v2262_v25 = vmax.f32 %v2260_v28, %v2261_v59  ;;  %v2336_v35 = vmax.f32 %v2334_v57, %v2335_v32 }
 0x341   : > { %v3874_v34 = vpop.f32.mrf.mxu0  ;;  %v3876_v8 = vpop.f32.mrf.mxu1 }
 0x342   : > { %v2227_v53 = vmax.f32 %v2225_v29, %v2226_v58  ;;  %v2301_v37 = vmax.f32 %v2299_v40, %v2300_v15  ;;  %v2263_v24 = vrot.slane %v2262_v25, 2  ;;  %v2337_v27 = vrot.slane %v2336_v35, 2 }
 0x343   : > { %v3879_v30 = vpop.f32.mrf.mxu0  ;;  %v3881_v11 = vpop.f32.mrf.mxu1 }
 0x344   : > { %v2228_v5 = vrot.slane %v2227_v53, 1  ;;  %v2302_v42 = vrot.slane %v2301_v37, 1  ;;  %v2264_v13 = vmax.f32 %v2262_v25, %v2263_v24  ;;  %v2338_v46 = vmax.f32 %v2336_v35, %v2337_v27 }
 0x345   : > { %v3888_v38 = vpop.f32.mrf.mxu0  ;;  %v3890_v9 = vpop.f32.mrf.mxu1 }
 0x346   : > { %v2229_v16 = vmax.f32 %v2227_v53, %v2228_v5  ;;  %v2303_v17 = vmax.f32 %v2301_v37, %v2302_v42  ;;  %v2265_v23 = vrot.slane %v2264_v13, 1  ;;  %v2339_v4 = vrot.slane %v2338_v46, 1 }
 0x347   : > { %v3892_v43 = vpop.f32.mrf.mxu0  ;;  %v3894_v44 = vpop.f32.mrf.mxu1 }
 0x348   : > { %2489 = vst [vmem:[%s3886_s30] sm:$0xff] %v2229_v16  ;;  %2491 = vst [vmem:[%s3886_s30 + $0x10] sm:$0xff] %v2303_v17  ;;  %v2266_v36 = vmax.f32 %v2264_v13, %v2265_v23  ;;  %v2340_v33 = vmax.f32 %v2338_v46, %v2339_v4 }
 0x349   : > { %v3898_v39 = vpop.f32.mrf.mxu0  ;;  %v3900_v41 = vpop.f32.mrf.mxu1 }
 0x34a   : > { %2490 = vst [vmem:[%s3886_s30 + $0x8] sm:$0xff] %v2266_v36  ;;  %2492 = vst [vmem:[%s3886_s30 + $0x18] sm:$0xff] %v2340_v33 }
 0x34b   : > { %v3904_v3 = vpop.f32.mrf.mxu0  ;;  %v3906_v45 = vpop.f32.mrf.mxu1 }
 0x34d   : > { %v3908_v12 = vpop.f32.mrf.mxu0  ;;  %v3910_v47 = vpop.f32.mrf.mxu1 }
 0x34f   : > { %v3912_v48 = vpop.f32.mrf.mxu0  ;;  %v3914_v49 = vpop.f32.mrf.mxu1 }
 0x351   : > { %v3916_v62 = vpop.f32.mrf.mxu0  ;;  %v3918_v18 = vpop.f32.mrf.mxu1 }
 0x353   : > { %v3920_v50 = vpop.f32.mrf.mxu0  ;;  %v3922_v0 = vpop.f32.mrf.mxu1 }
 0x355   : > { %v3924_v56 = vpop.f32.mrf.mxu0  ;;  %v3926_v51 = vpop.f32.mrf.mxu1 }
 0x357   : > { %v3928_v6 = vpop.f32.mrf.mxu0  ;;  %v3930_v19 = vpop.f32.mrf.mxu1 }
 0x359   : > { %v3932_v21 = vpop.f32.mrf.mxu0  ;;  %v3934_v52 = vpop.f32.mrf.mxu1 }
 0x35b   : > { %v3936_v54 = vpop.f32.mrf.mxu0  ;;  %v3938_v61 = vpop.f32.mrf.mxu1 }
 0x35d   : > { %v3940_v1 = vpop.f32.mrf.mxu0  ;;  %v3942_v10 = vpop.f32.mrf.mxu1 }
 0x35f   : > { %v3944_v22 = vpop.f32.mrf.mxu0  ;;  %v3946_v55 = vpop.f32.mrf.mxu1 }
 0x361   : > { %v3948_v63 = vpop.f32.mrf.mxu0  ;;  %v3950_v14 = vpop.f32.mrf.mxu1 }
 0x363   : > { %v3952_v2 = vpop.f32.mrf.mxu0  ;;  %v3954_v20 = vpop.f32.mrf.mxu1 }
 0x365   : > { %v3956_v28 = vpop.f32.mrf.mxu0  ;;  %v3958_v57 = vpop.f32.mrf.mxu1 }
 0x367   : > { %v3960_v29 = vpop.f32.mrf.mxu0  ;;  %v3962_v40 = vpop.f32.mrf.mxu1 }
 0x369   : > { %v3964_v59 = vpop.f32.mrf.mxu0  ;;  %v3966_v32 = vpop.f32.mrf.mxu1 }
 0x36b   : > { %v3968_v58 = vpop.f32.mrf.mxu0  ;;  %v3970_v15 = vpop.f32.mrf.mxu1 }
 0x36d   : > { %v3972_v25 = vpop.f32.mrf.mxu0  ;;  %v3974_v35 = vpop.f32.mrf.mxu1 }
 0x36f   : > { %v3976_v53 = vpop.f32.mrf.mxu0  ;;  %v3978_v37 = vpop.f32.mrf.mxu1 }
 0x371   : > { %v3980_v24 = vpop.f32.mrf.mxu0  ;;  %v3982_v27 = vpop.f32.mrf.mxu1 }
 0x372   : > { %4195 = vst [vmem:[#allocation13_spill] sm:$0xff] %v3982_v27 }
 0x373   : > { %v3984_v5 = vpop.f32.mrf.mxu0  ;;  %v3986_v42 = vpop.f32.mrf.mxu1 }
 0x374   : > { %4196 = vst [vmem:[#allocation14_spill] sm:$0xff] %v3984_v5 }
 0x375   : > { %v3988_v13 = vpop.f32.mrf.mxu0  ;;  %v3990_v46 = vpop.f32.mrf.mxu1 }
 0x376   : > { %4197 = vst [vmem:[#allocation15_spill] sm:$0xff] %v3988_v13  ;;  %4198 = vst [vmem:[#allocation16_spill] sm:$0xff] %v3990_v46  ;;  %v2341_v13 = vmax.f32 %v3866_v7, %v3874_v34 }
 0x377   : > { %v3992_v16 = vpop.f32.mrf.mxu0  ;;  %v3994_v17 = vpop.f32.mrf.mxu1 }
 0x378   : > { %4199 = vst [vmem:[#allocation17_spill] sm:$0xff] %v3992_v16  ;;  %4200 = vst [vmem:[#allocation18_spill] sm:$0xff] %v3994_v17  ;;  %v2415_v16 = vmax.f32 %v3868_v26, %v3876_v8 }
 0x379   : > { %v3996_v23 = vpop.f32.mrf.mxu0  ;;  %v3998_v4 = vpop.f32.mrf.mxu1 }
 0x37a   : > { %4201 = vst [vmem:[#allocation19_spill] sm:$0xff] %v3998_v4  ;;  %v2378_v4 = vmax.f32 %v3870_v60, %v3879_v30 }
 0x37b   : > { %v4000_v36 = vpop.f32.mrf.mxu0  ;;  %v4002_v33 = vpop.f32.mrf.mxu1 }
 0x37c   : > { %4202 = vst [vmem:[#allocation20_spill] sm:$0xff] %v4000_v36  ;;  %4203 = vst [vmem:[#allocation21_spill] sm:$0xff] %v4002_v33  ;;  %v2452_v33 = vmax.f32 %v3872_v31, %v3881_v11  ;;  %v2379_v26 = vmax.f32 %v2378_v4, %v3892_v43 }
 0x37d   : > { %v4004_v27 = vpop.f32.mrf.mxu0  ;;  %v4006_v5 = vpop.f32.mrf.mxu1 }
 0x37e   : > { %4204 = vst [vmem:[#allocation22_spill] sm:$0xff] %v4004_v27  ;;  %4205 = vst [vmem:[#allocation23_spill] sm:$0xff] %v4006_v5  ;;  %v2342_v27 = vmax.f32 %v2341_v13, %v3888_v38  ;;  %v2416_v5 = vmax.f32 %v2415_v16, %v3890_v9  ;;  %v2453_v34 = vmax.f32 %v2452_v33, %v3894_v44 }
 0x37f   : > { %v4012_v46 = vpop.f32.mrf.mxu0  ;;  %v4014_v17 = vpop.f32.mrf.mxu1  ;;  %v2380_v31 = vmax.f32 %v2379_v26, %v3904_v3 }
 0x380   : > { %4206 = vst [vmem:[#allocation24_spill] sm:$0xff] %v4014_v17  ;;  %v2343_v8 = vmax.f32 %v2342_v27, %v3898_v39  ;;  %v2417_v17 = vmax.f32 %v2416_v5, %v3900_v41  ;;  %v2454_v11 = vmax.f32 %v2453_v34, %v3906_v45 }
 0x381   : > { %v4022_v36 = vpop.f32.mrf.mxu0  ;;  %v4024_v7 = vpop.f32.mrf.mxu1  ;;  %v2381_v44 = vmax.f32 %v2380_v31, %v3912_v48 }
 0x382   : > { %v2344_v38 = vmax.f32 %v2343_v8, %v3908_v12  ;;  %v2418_v9 = vmax.f32 %v2417_v17, %v3910_v47  ;;  %v2455_v39 = vmax.f32 %v2454_v11, %v3914_v49 }
 0x383   : > { %v4030_v60 = vpop.f32.mrf.mxu0  ;;  %v4032_v30 = vpop.f32.mrf.mxu1  ;;  %v2382_v45 = vmax.f32 %v2381_v44, %v3920_v50 }
 0x384   : > { %v2345_v41 = vmax.f32 %v2344_v38, %v3916_v62  ;;  %v2419_v27 = vmax.f32 %v2418_v9, %v3918_v18  ;;  %v2456_v12 = vmax.f32 %v2455_v39, %v3922_v0 }
 0x385   : > { %v4038_v13 = vpop.f32.mrf.mxu0  ;;  %v4040_v43 = vpop.f32.mrf.mxu1  ;;  %v2383_v49 = vmax.f32 %v2382_v45, %v3928_v6 }
 0x386   : > { %v2346_v47 = vmax.f32 %v2345_v41, %v3924_v56  ;;  %v2420_v16 = vmax.f32 %v2419_v27, %v3926_v51  ;;  %v2457_v62 = vmax.f32 %v2456_v12, %v3930_v19  ;;  %v4207_v27 = vld [vmem:[#allocation13_spill] sm:$0xff] }
 0x387   : > { %v4046_v5 = vpop.f32.mrf.mxu0  ;;  %v4048_v3 = vpop.f32.mrf.mxu1  ;;  %v2384_v0 = vmax.f32 %v2383_v49, %v3936_v54  ;;  %v4209_v49 = vld [vmem:[#allocation15_spill] sm:$0xff] }
 0x388   : > { %v2347_v18 = vmax.f32 %v2346_v47, %v3932_v21  ;;  %v2421_v4 = vmax.f32 %v2420_v16, %v3934_v52  ;;  %v2458_v56 = vmax.f32 %v2457_v62, %v3938_v61  ;;  %v4208_v16 = vld [vmem:[#allocation14_spill] sm:$0xff]  ;;  %v4210_v62 = vld [vmem:[#allocation16_spill] sm:$0xff] }
 0x389   : > { %v4054_v17 = vpop.f32.mrf.mxu0  ;;  %v4056_v48 = vpop.f32.mrf.mxu1  ;;  %v2385_v19 = vmax.f32 %v2384_v0, %v3944_v22  ;;  %v4211_v0 = vld [vmem:[#allocation17_spill] sm:$0xff] }
 0x38a   : > { %v2348_v51 = vmax.f32 %v2347_v18, %v3940_v1  ;;  %v2422_v26 = vmax.f32 %v2421_v4, %v3942_v10  ;;  %v2459_v21 = vmax.f32 %v2458_v56, %v3946_v55  ;;  %v4212_v56 = vld [vmem:[#allocation18_spill] sm:$0xff] }
 0x38b   : > { %v4062_v33 = vpop.f32.mrf.mxu0  ;;  %v4064_v50 = vpop.f32.mrf.mxu1  ;;  %v2386_v61 = vmax.f32 %v2385_v19, %v3952_v2 }
 0x38c   : > { %v2349_v52 = vmax.f32 %v2348_v51, %v3948_v63  ;;  %v2423_v8 = vmax.f32 %v2422_v26, %v3950_v14  ;;  %v2460_v1 = vmax.f32 %v2459_v21, %v3954_v20  ;;  %v4213_v51 = vld [vmem:[#allocation19_spill] sm:$0xff] }
 0x38d   : > { %v4070_v34 = vpop.f32.mrf.mxu0  ;;  %v4072_v6 = vpop.f32.mrf.mxu1  ;;  %v2387_v55 = vmax.f32 %v2386_v61, %v3960_v29  ;;  %v4215_v61 = vld [vmem:[#allocation21_spill] sm:$0xff] }
 0x38e   : > { %v2350_v10 = vmax.f32 %v2349_v52, %v3956_v28  ;;  %v2424_v11 = vmax.f32 %v2423_v8, %v3958_v57  ;;  %v2461_v63 = vmax.f32 %v2460_v1, %v3962_v40  ;;  %v4214_v52 = vld [vmem:[#allocation20_spill] sm:$0xff]  ;;  %v4216_v1 = vld [vmem:[#allocation22_spill] sm:$0xff] }
 0x38f   : > { %v4078_v31 = vpop.f32.mrf.mxu0  ;;  %v4080_v54 = vpop.f32.mrf.mxu1  ;;  %v2388_v20 = vmax.f32 %v2387_v55, %v3968_v58 }
 0x390   : > { %v2351_v14 = vmax.f32 %v2350_v10, %v3964_v59  ;;  %v2425_v9 = vmax.f32 %v2424_v11, %v3966_v32  ;;  %v2462_v28 = vmax.f32 %v2461_v63, %v3970_v15  ;;  %v4217_v11 = vld [vmem:[#allocation23_spill] sm:$0xff] }
 0x391   : > { %v4086_v38 = vpop.f32.mrf.mxu0  ;;  %v4088_v22 = vpop.f32.mrf.mxu1  ;;  %v2389_v40 = vmax.f32 %v2388_v20, %v3976_v53  ;;  %v4218_v20 = vld [vmem:[#allocation24_spill] sm:$0xff] }
 0x392   : > { %v2352_v57 = vmax.f32 %v2351_v14, %v3972_v25  ;;  %v2426_v39 = vmax.f32 %v2425_v9, %v3974_v35  ;;  %v2463_v59 = vmax.f32 %v2462_v28, %v3978_v37 }
 0x393   : > { %v4094_v44 = vpop.f32.mrf.mxu0  ;;  %v4096_v2 = vpop.f32.mrf.mxu1  ;;  %v2390_v58 = vmax.f32 %v2389_v40, %v4208_v16 }
 0x394   : > { %v2353_v32 = vmax.f32 %v2352_v57, %v3980_v24  ;;  %v2427_v45 = vmax.f32 %v2426_v39, %v4207_v27  ;;  %v2464_v15 = vmax.f32 %v2463_v59, %v3986_v42 }
 0x395   : > { %v1951_v41 = vpop.f32.mrf.mxu0  ;;  %v2144_v29 = vpop.f32.mrf.mxu1  ;;  %v2391_v53 = vmax.f32 %v2390_v58, %v4211_v0 }
 0x396   : > { %v2354_v25 = vmax.f32 %v2353_v32, %v4209_v49  ;;  %v2428_v35 = vmax.f32 %v2427_v45, %v4210_v62  ;;  %v2465_v37 = vmax.f32 %v2464_v15, %v4212_v56 }
 0x397   : > { %v1953_v12 = vpop.f32.mrf.mxu0  ;;  %v2146_v47 = vpop.f32.mrf.mxu1  ;;  %v2392_v8 = vmax.f32 %v2391_v53, %v4214_v52 }
 0x398   : > { %v2355_v24 = vmax.f32 %v2354_v25, %v3996_v23  ;;  %v2429_v26 = vmax.f32 %v2428_v35, %v4213_v51  ;;  %v2466_v42 = vmax.f32 %v2465_v37, %v4215_v61 }
 0x399   : > { %v1955_v18 = vpop.f32.mrf.mxu0  ;;  %v2148_v4 = vpop.f32.mrf.mxu1  ;;  %v2393_v9 = vmax.f32 %v2392_v8, %v4012_v46 }
 0x39a   : > { %v2356_v10 = vmax.f32 %v2355_v24, %v4216_v1  ;;  %v2430_v55 = vmax.f32 %v2429_v26, %v4217_v11  ;;  %v2467_v28 = vmax.f32 %v2466_v42, %v4218_v20 }
 0x39b   : > { %v1957_v19 = vpop.f32.mrf.mxu0  ;;  %v2150_v21 = vpop.f32.mrf.mxu1  ;;  %v2394_v59 = vmax.f32 %v2393_v9, %v4030_v60 }
 0x39c   : > { %v2357_v23 = vmax.f32 %v2356_v10, %v4022_v36  ;;  %v2431_v57 = vmax.f32 %v2430_v55, %v4024_v7  ;;  %v2468_v32 = vmax.f32 %v2467_v28, %v4032_v30 }
 0x39d   : > { %v1961_v63 = vpop.f32.mrf.mxu0  ;;  %v2154_v14 = vpop.f32.mrf.mxu1  ;;  %v2395_v46 = vmax.f32 %v2394_v59, %v4046_v5 }
 0x39e   : > { %v2358_v27 = vmax.f32 %v2357_v23, %v4038_v13  ;;  %v2432_v45 = vmax.f32 %v2431_v57, %v4040_v43  ;;  %v2469_v15 = vmax.f32 %v2468_v32, %v4048_v3 }
 0x39f   : > { %v1963_v39 = vpop.f32.mrf.mxu0  ;;  %v2156_v40 = vpop.f32.mrf.mxu1  ;;  %v2396_v60 = vmax.f32 %v2395_v46, %v4062_v33 }
 0x3a0   : > { %v2359_v36 = vmax.f32 %v2358_v27, %v4054_v17  ;;  %v2433_v7 = vmax.f32 %v2432_v45, %v4056_v48  ;;  %v2470_v30 = vmax.f32 %v2469_v15, %v4064_v50 }
 0x3a1   : > { %v1965_v16 = vpop.f32.mrf.mxu0  ;;  %v2158_v58 = vpop.f32.mrf.mxu1  ;;  %v2397_v5 = vmax.f32 %v2396_v60, %v4078_v31 }
 0x3a2   : > { %v2360_v13 = vmax.f32 %v2359_v36, %v4070_v34  ;;  %v2434_v43 = vmax.f32 %v2433_v7, %v4072_v6  ;;  %v2471_v3 = vmax.f32 %v2470_v30, %v4080_v54 }
 0x3a3   : > { %v1967_v49 = vpop.f32.mrf.mxu0  ;;  %v2160_v25 = vpop.f32.mrf.mxu1  ;;  %v2398_v33 = vmax.f32 %v2397_v5, %v4094_v44 }
 0x3a4   : > { %v2361_v17 = vmax.f32 %v2360_v13, %v4086_v38  ;;  %v2435_v48 = vmax.f32 %v2434_v43, %v4088_v22  ;;  %v2472_v50 = vmax.f32 %v2471_v3, %v4096_v2 }
 0x3a5   : > { %v1971_v62 = vpop.f32.mrf.mxu0  ;;  %v2164_v35 = vpop.f32.mrf.mxu1  ;;  %v2399_v24 = vmax.f32 %v2398_v33, %v1953_v12 }
 0x3a6   : > { %v2362_v56 = vmax.f32 %v2361_v17, %v1951_v41  ;;  %v2436_v34 = vmax.f32 %v2435_v48, %v2144_v29  ;;  %v2473_v51 = vmax.f32 %v2472_v50, %v2146_v47 }
 0x3a7   : > { %v1973_v0 = vpop.f32.mrf.mxu0  ;;  %v2166_v53 = vpop.f32.mrf.mxu1  ;;  %v2400_v8 = vmax.f32 %v2399_v24, %v1957_v19 }
 0x3a8   : > { %v2363_v26 = vmax.f32 %v2362_v56, %v1955_v18  ;;  %v2437_v31 = vmax.f32 %v2436_v34, %v2148_v4  ;;  %v2474_v38 = vmax.f32 %v2473_v51, %v2150_v21 }
 0x3a9   : > { %v1975_v37 = vpop.f32.mrf.mxu0  ;;  %v2168_v6 = vpop.f32.mrf.mxu1  ;;  %v2401_v10 = vmax.f32 %v2400_v8, %v1963_v39 }
 0x3aa   : > { %v2364_v61 = vmax.f32 %v2363_v26, %v1961_v63  ;;  %v2438_v22 = vmax.f32 %v2437_v31, %v2154_v14  ;;  %v2475_v44 = vmax.f32 %v2474_v38, %v2156_v40 }
 0x3ab   : > { %v1977_v52 = vpop.f32.mrf.mxu0  ;;  %v2170_v54 = vpop.f32.mrf.mxu1  ;;  %v2402_v55 = vmax.f32 %v2401_v10, %v1967_v49 }
 0x3ac   : > { %v2365_v11 = vmax.f32 %v2364_v61, %v1965_v16  ;;  %v2439_v2 = vmax.f32 %v2438_v22, %v2158_v58  ;;  %v2476_v9 = vmax.f32 %v2475_v44, %v2160_v25 }
 0x3ad   : > { %v1981_v42 = vpop.f32.mrf.mxu0  ;;  %v2174_v1 = vpop.f32.mrf.mxu1  ;;  %v2403_v20 = vmax.f32 %v2402_v55, %v1973_v0 }
 0x3ae   : > { %v2366_v12 = vmax.f32 %v2365_v11, %v1971_v62  ;;  %v2440_v47 = vmax.f32 %v2439_v2, %v2164_v35  ;;  %v2477_v28 = vmax.f32 %v2476_v9, %v2166_v53 }
 0x3af   : > { %v1983_v41 = vpop.f32.mrf.mxu0  ;;  %v2176_v29 = vpop.f32.mrf.mxu1  ;;  %v2404_v23 = vmax.f32 %v2403_v20, %v1977_v52 }
 0x3b0   : > { %v2367_v19 = vmax.f32 %v2366_v12, %v1975_v37  ;;  %v2441_v21 = vmax.f32 %v2440_v47, %v2168_v6  ;;  %v2478_v57 = vmax.f32 %v2477_v28, %v2170_v54 }
 0x3b1   : > { %v1985_v18 = vpop.f32.mrf.mxu0  ;;  %v2178_v4 = vpop.f32.mrf.mxu1  ;;  %v2405_v27 = vmax.f32 %v2404_v23, %v1983_v41 }
 0x3b2   : > { %v2368_v39 = vmax.f32 %v2367_v19, %v1981_v42  ;;  %v2442_v40 = vmax.f32 %v2441_v21, %v2174_v1  ;;  %v2479_v45 = vmax.f32 %v2478_v57, %v2176_v29 }
 0x3b3   : > { %v1987_v63 = vpop.f32.mrf.mxu0  ;;  %v2180_v14 = vpop.f32.mrf.mxu1 }
 0x3b4   : > { %v2369_v16 = vmax.f32 %v2368_v39, %v1985_v18  ;;  %v2443_v58 = vmax.f32 %v2442_v40, %v2178_v4  ;;  %v2406_v36 = vmax.f32 %v2405_v27, %v1987_v63  ;;  %v2480_v7 = vmax.f32 %v2479_v45, %v2180_v14 }
 0x3b5   : > { %v1991_v59 = vpop.f32.mrf.mxu0  ;;  %v2184_v32 = vpop.f32.mrf.mxu1 }
 0x3b6   : > { %v2370_v49 = vmax.f32 %v2369_v16, %v1991_v59  ;;  %v2444_v25 = vmax.f32 %v2443_v58, %v2184_v32 }
 0x3b7   : > { %v1993_v46 = vpop.f32.mrf.mxu0  ;;  %v2186_v15 = vpop.f32.mrf.mxu1 }
 0x3b8   : > { %v2407_v13 = vmax.f32 %v2406_v36, %v1993_v46  ;;  %v2481_v43 = vmax.f32 %v2480_v7, %v2186_v15 }
 0x3b9   : > { %v1995_v60 = vpop.f32.mrf.mxu0  ;;  %v2188_v30 = vpop.f32.mrf.mxu1 }
 0x3ba   : > { %v2371_v62 = vmax.f32 %v2370_v49, %v1995_v60  ;;  %v2445_v35 = vmax.f32 %v2444_v25, %v2188_v30 }
 0x3bb   : > { %v1997_v5 = vpop.f32.mrf.mxu0  ;;  %v2190_v3 = vpop.f32.mrf.mxu1 }
 0x3bc   : > { %v2372_v17 = vrot.slane %v2371_v62, 4  ;;  %v2446_v48 = vrot.slane %v2445_v35, 4  ;;  %v2408_v0 = vmax.f32 %v2407_v13, %v1997_v5  ;;  %v2482_v53 = vmax.f32 %v2481_v43, %v2190_v3 }
 0x3be   : > { %v2373_v33 = vmax.f32 %v2371_v62, %v2372_v17  ;;  %v2447_v50 = vmax.f32 %v2445_v35, %v2446_v48  ;;  %v2409_v56 = vrot.slane %v2408_v0, 4  ;;  %v2483_v34 = vrot.slane %v2482_v53, 4 }
 0x3c0   : > { %v2374_v37 = vrot.slane %v2373_v33, 2  ;;  %v2448_v6 = vrot.slane %v2447_v50, 2  ;;  %v2410_v24 = vmax.f32 %v2408_v0, %v2409_v56  ;;  %v2484_v51 = vmax.f32 %v2482_v53, %v2483_v34 }
 0x3c2   : > { %v2375_v26 = vmax.f32 %v2373_v33, %v2374_v37  ;;  %v2449_v31 = vmax.f32 %v2447_v50, %v2448_v6  ;;  %v2411_v52 = vrot.slane %v2410_v24, 2  ;;  %v2485_v54 = vrot.slane %v2484_v51, 2 }
 0x3c4   : > { %v2376_v8 = vrot.slane %v2375_v26, 1  ;;  %v2450_v38 = vrot.slane %v2449_v31, 1  ;;  %v2412_v61 = vmax.f32 %v2410_v24, %v2411_v52  ;;  %v2486_v22 = vmax.f32 %v2484_v51, %v2485_v54 }
 0x3c6   : > { %v2377_v42 = vmax.f32 %v2375_v26, %v2376_v8  ;;  %v2451_v1 = vmax.f32 %v2449_v31, %v2450_v38  ;;  %v2413_v10 = vrot.slane %v2412_v61, 1  ;;  %v2487_v44 = vrot.slane %v2486_v22, 1 }
 0x3c8   : > { %2493 = vst [vmem:[%s3886_s30 + $0x20] sm:$0xff] %v2377_v42  ;;  %2495 = vst [vmem:[%s3886_s30 + $0x30] sm:$0xff] %v2451_v1  ;;  %v2414_v11 = vmax.f32 %v2412_v61, %v2413_v10  ;;  %v2488_v2 = vmax.f32 %v2486_v22, %v2487_v44 }
 0x3ca   : > { %2494 = vst [vmem:[%s3886_s30 + $0x28] sm:$0xff] %v2414_v11  ;;  %2496 = vst [vmem:[%s3886_s30 + $0x38] sm:$0xff] %v2488_v2 }
 0x3cb PF: > { %s19_s23 = sadd.s32 1, %s3154_s23   ;;  %s4219_s21 = smov %s3150_s22 }
 0x3cc   : > { %p16_p7 = scmp.ge.s32.totalorder %s19_s23, 4   ;;  %s4220_s22 = smov %s4222_s8 }
 0x3ce   :  { %18 = sbr.rel (!%p16_p7) target bundleno = 4 (0x4), region = 95 }
 0x3d3   :  { %2526 = vsyncpa [#allocation3], 1 }
 0x3d4   :  { %2528 = vsyncpa [#allocation3 + $0x1], 1 }
 0x3d5   :  { %2529 = vsyncpa [#allocation5], 1 }
 0x3d6   :  { %2530 = vsyncpa [#allocation8], 1 }

// kernel: pointnet_base_forward.4
= control target key start
LH: loop header
LB: loop body
LE: loop exit
PB: predicated region body
PF: predicated region fallthrough
CT: control target
= control target key end

     0   :  { %s4188_s17 = smov 0   ;;  %s4190_s18 = smov 0   ;;  %s5423_s0 = inlined_call_operand.vmem [shape: bf16[2,256,8], index: 0, kind: input, shape index: {}]   ;;  %s5424_s1 = inlined_call_operand.vmem [shape: bf16[2,8,64], index: 1, kind: input, shape index: {}]   ;;  %s5425_s2 = inlined_call_operand.vmem [shape: f32[1,64], index: 2, kind: input, shape index: {}]   ;;  %s5426_s3 = inlined_call_operand.vmem [shape: bf16[64,128], index: 3, kind: input, shape index: {}]   ;;  %s5427_s4 = inlined_call_operand.vmem [shape: f32[1,128], index: 4, kind: input, shape index: {}]   ;;  %s5428_s5 = inlined_call_operand.vmem [shape: bf16[128,64], index: 5, kind: input, shape index: {}]   ;;  %s5429_s6 = inlined_call_operand.vmem [shape: f32[1,64], index: 6, kind: input, shape index: {}]   ;;  %s5430_s7 = inlined_call_operand.vmem [shape: bf16[64,128], index: 7, kind: input, shape index: {}]   ;;  %s5431_s8 = inlined_call_operand.vmem [shape: f32[1,128], index: 8, kind: input, shape index: {}]   ;;  %s5432_s9 = inlined_call_operand.vmem [shape: bf16[128,1024], index: 9, kind: input, shape index: {}]   ;;  %s5433_s10 = inlined_call_operand.vmem [shape: bf16[2,256,128], index: 10, kind: output, shape index: {0}]   ;;  %s5434_s11 = inlined_call_operand.vmem [shape: f32[2,1,8,1024], index: 11, kind: output, shape index: {1}]  }
   0x1   :  { %s4192_s19 = smov 0  }
   0x2 LB: > { %s34_s20 = sadd.s32 1, %s4121_s18  ;;  %p3482_p0 = scmp.ge.s32.totalorder %s4125_s19, 1  ;;  %s4125_s19 = sphi %s4192_s19, %s22_s19   ;;  %s4121_s18 = sphi %s4190_s18, %s5484_s18   ;;  %s4117_s17 = sphi %s4188_s17, %s5483_s17  }
   0x3   : > { %p36_p1 = scmp.ge.s32.totalorder %s34_s20, 2  ;;  %p372_p2 = scmp.lt.s32.totalorder %s4125_s19, 3 }
   0x5   : > { %s5486_s20 = smov (%p36_p1, %s34_s20), 0  ;;  %p373_p3 = pnand %p3482_p0, %p372_p2 }
   0x7   : > { %376 = sbr.rel (%p373_p3) target bundleno = 1307 (0x51b), region = 60 }
   0xc   : > { %p434_p4 = scmp.lt.s32.totalorder %s4117_s17, 1  ;;  %vm636_vm0 = vcmask 1043456   ;;  %v4087_v0 = vld [vmem:[%s5426_s3 + $0x18] sm:$0xff]   ;;  %vm587_vm1 = vcmask 64512   ;;  %v4088_v19 = vld [vmem:[%s5426_s3 + $0x10] sm:$0xff]   ;;  %v4089_v20 = vld [vmem:[%s5426_s3 + $0x8] sm:$0xff]  }
   0xd   : > { %3917 = vmatprep.subr.bf16.mxu1 %v4087_v0  ;;  %v4090_v21 = vld [vmem:[%s5426_s3] sm:$0xff]   ;;  %v4091_v22 = vld [vmem:[%s5428_s5 + $0x38] sm:$0xff]   ;;  %v4092_v23 = vld [vmem:[%s5428_s5 + $0x30] sm:$0xff]   ;;  %vm888_vm2 = vcmask 523264  }
   0xe   : > { %s5488_s17 = smov (!%p434_p4, %s4117_s17), 1  ;;  %3918 = vmatpush3.bf16.msra.mxu1 %v4087_v0  ;;  %v4093_v24 = vld [vmem:[%s5428_s5 + $0x28] sm:$0xff]   ;;  %v4094_v25 = vld [vmem:[%s5428_s5 + $0x20] sm:$0xff]   ;;  %v4095_v26 = vld [vmem:[%s5428_s5 + $0x18] sm:$0xff]  }
   0xf   : > { %s3672_s23 = sshll.u32 %s5488_s17, 7  ;;  %s3485_s24 = sshll.u32 %s5488_s17, 2  ;;  %3919 = vmatprep.subr.bf16.mxu1 %v4088_v19  ;;  %v4096_v27 = vld [vmem:[%s5428_s5 + $0x10] sm:$0xff]   ;;  %v4097_v28 = vld [vmem:[%s5428_s5 + $0x8] sm:$0xff]   ;;  %v4288_v31 = vld [vmem:[%s5425_s2] ss:$0 sm:$0xff] }
  0x10   : > { %s4218_s27 = scalar_lea.vmem %s5423_s0, %s3672_s23  ;;  %s446_s30 = scalar_lea.vmem %s5424_s1, %s3485_s24 }
  0x11   : > { %v499_v1 = vld [vmem:[%s446_s30] sm:$0xf]  ;;  %v4072_v4 = vld [vmem:[%s4218_s27 + $0x8] sm:$0xff]   ;;  %v4073_v5 = vld [vmem:[%s4218_s27 + $0x10] sm:$0xff]   ;;  %s4367_s25 = scalar_lea.vmem %s5433_s10, %s3672_s23  ;;  %s3674_s22 = sshll.u32 %s5488_s17, 6 }
  0x12   : > { %v4071_v2 = vld [vmem:[%s4218_s27] sm:$0xff]   ;;  %4045 = vmatprep.subr.msk.bf16.mxu0 %vm636_vm0, %v499_v1  ;;  %v638_v3 = vsel %vm636_vm0, %v499_v1, 0  ;;  %v4074_v6 = vld [vmem:[%s4218_s27 + $0x18] sm:$0xff]   ;;  %v4076_v8 = vld [vmem:[%s4218_s27 + $0x28] sm:$0xff]   ;;  %3920 = vmatpush3.bf16.msra.mxu1 %v4088_v19  ;;  %s5156_s23 = scalar_lea.vmem %s5434_s11, %s3674_s22 }
  0x13   : > { %3884 = vmatpush3.bf16.msra.mxu0 %v638_v3  ;;  %3885 = vmatprep.mubr.msk.bf16.mxu0 %vm587_vm1, %v4071_v2  ;;  %v4075_v7 = vld [vmem:[%s4218_s27 + $0x20] sm:$0xff]   ;;  %v4077_v9 = vld [vmem:[%s4218_s27 + $0x30] sm:$0xff]   ;;  %v4078_v10 = vld [vmem:[%s4218_s27 + $0x38] sm:$0xff]  }
  0x14   : > { %v4079_v11 = vld [vmem:[%s4218_s27 + $0x40] sm:$0xff]   ;;  %v4080_v12 = vld [vmem:[%s4218_s27 + $0x48] sm:$0xff]   ;;  %v4081_v13 = vld [vmem:[%s4218_s27 + $0x50] sm:$0xff]   ;;  %3921 = vmatprep.subr.bf16.mxu1 %v4089_v20  ;;  %3957 = vmatprep.subr.bf16.mxu0 %v4091_v22 }
  0x15   : > { %v4082_v14 = vld [vmem:[%s4218_s27 + $0x58] sm:$0xff]   ;;  %v4083_v15 = vld [vmem:[%s4218_s27 + $0x60] sm:$0xff]   ;;  %v4084_v16 = vld [vmem:[%s4218_s27 + $0x68] sm:$0xff]  }
  0x16   : > { %3886 = vmatmul.mubr.msk.bf16.vlgmr.msra.gmra.mxu0 %vm587_vm1, %v4072_v4  ;;  %v4085_v17 = vld [vmem:[%s4218_s27 + $0x70] sm:$0xff]   ;;  %v4086_v18 = vld [vmem:[%s4218_s27 + $0x78] sm:$0xff]   ;;  %3922 = vmatpush3.bf16.msra.mxu1 %v4089_v20 }
  0x17   : > { %3889 = vmatprep.mubr.msk.bf16.mxu0 %vm587_vm1, %v4073_v5  ;;  %3923 = vmatprep.subr.bf16.mxu1 %v4090_v21 }
  0x18   : > { %3958 = vmatpush3.bf16.msra.mxu0 %v4091_v22 }
  0x19   : > { %3959 = vmatprep.subr.bf16.mxu0 %v4092_v23 }
  0x1a   : > { %3924 = vmatpush3.bf16.msra.mxu1 %v4090_v21 }
  0x1c   : > { %3960 = vmatpush3.bf16.msra.mxu0 %v4092_v23 }
  0x1d   : > { %3961 = vmatprep.subr.bf16.mxu0 %v4093_v24 }
  0x1e   : > { %3890 = vmatmul.mubr.msk.bf16.gmra.mxu0 %vm587_vm1, %v4074_v6 }
  0x1f   : > { %3893 = vmatprep.mubr.msk.bf16.mxu0 %vm587_vm1, %v4075_v7 }
  0x20   : > { %3962 = vmatpush3.bf16.msra.mxu0 %v4093_v24 }
  0x21   : > { %3963 = vmatprep.subr.bf16.mxu0 %v4094_v25 }
  0x24   : > { %3964 = vmatpush3.bf16.msra.mxu0 %v4094_v25 }
  0x25   : > { %3965 = vmatprep.subr.bf16.mxu0 %v4095_v26 }
  0x26   : > { %3894 = vmatmul.mubr.msk.bf16.gmra.mxu0 %vm587_vm1, %v4076_v8 }
  0x27   : > { %3897 = vmatprep.mubr.msk.bf16.mxu0 %vm587_vm1, %v4077_v9 }
  0x28   : > { %3966 = vmatpush3.bf16.msra.mxu0 %v4095_v26 }
  0x29   : > { %3967 = vmatprep.subr.bf16.mxu0 %v4096_v27 }
  0x2c   : > { %3968 = vmatpush3.bf16.msra.mxu0 %v4096_v27 }
  0x2d   : > { %3969 = vmatprep.subr.bf16.mxu0 %v4097_v28 }
  0x2e   : > { %3898 = vmatmul.mubr.msk.bf16.gmra.mxu0 %vm587_vm1, %v4078_v10 }
  0x2f   : > { %3901 = vmatprep.mubr.msk.bf16.mxu0 %vm587_vm1, %v4079_v11 }
  0x30   : > { %3970 = vmatpush3.bf16.msra.mxu0 %v4097_v28 }
  0x36   : > { %3902 = vmatmul.mubr.msk.bf16.gmra.mxu0 %vm587_vm1, %v4080_v12 }
  0x37   : > { %3905 = vmatprep.mubr.msk.bf16.mxu0 %vm587_vm1, %v4081_v13 }
  0x3e   : > { %3906 = vmatmul.mubr.msk.bf16.gmra.mxu0 %vm587_vm1, %v4082_v14 }
  0x3f   : > { %3909 = vmatprep.mubr.msk.bf16.mxu0 %vm587_vm1, %v4083_v15 }
  0x46   : > { %3910 = vmatmul.mubr.msk.bf16.gmra.mxu0 %vm587_vm1, %v4084_v16 }
  0x47   : > { %3913 = vmatprep.mubr.msk.bf16.mxu0 %vm587_vm1, %v4085_v17 }
  0x4e   : > { %3914 = vmatmul.mubr.msk.bf16.gmra.mxu0 %vm587_vm1, %v4086_v18 }
  0xd6   : > { %v3887_v29 = vpop.f32.mrf.mxu0 }
  0xd7   : > { %v683_v35 = vadd.f32 %v3887_v29, %v4288_v31 }
  0xd8   : > { %v674_v30 = vpop.f32.mrf.mxu0 }
  0xd9   : > { %v675_v33 = vadd.f32 %v4288_v31, %v674_v30  ;;  %v803_v42 = vmax.f32 %v683_v35, 0.0 }
  0xda   : > { %v3888_v32 = vpop.f32.mrf.mxu0 }
  0xdb   : > { %v686_v34 = vadd.f32 %v3888_v32, %v4288_v31  ;;  %v801_v40 = vmax.f32 %v675_v33, 0.0 }
  0xdc   : > { %v677_v36 = vpop.f32.mrf.mxu0 }
  0xdd   : > { %v678_v37 = vadd.f32 %v4288_v31, %v677_v36  ;;  %v804_v38 = vmax.f32 %v686_v34, 0.0 }
  0xde   : > { %v3891_v39 = vpop.f32.mrf.mxu0 }
  0xdf   : > { %v802_v41 = vmax.f32 %v678_v37, 0.0  ;;  %v699_v43 = vadd.f32 %v3891_v39, %v4288_v31  ;;  %v834_v47 = vpack.c.bf16 %v804_v38, %v803_v42 }
  0xe0   : > { %v690_v44 = vpop.f32.mrf.mxu0 }
  0xe1   : > { %v691_v45 = vadd.f32 %v4288_v31, %v690_v44  ;;  %v833_v46 = vpack.c.bf16 %v802_v41, %v801_v40  ;;  %v807_v50 = vmax.f32 %v699_v43, 0.0 }
  0xe2   : > { %v3892_v48 = vpop.f32.mrf.mxu0 }
  0xe3   : > { %v702_v49 = vadd.f32 %v3892_v48, %v4288_v31  ;;  %3925 = vmatprep.mubr.msk.bf16.mxu1 %vm888_vm2, %v833_v46  ;;  %v805_v52 = vmax.f32 %v691_v45, 0.0 }
  0xe4   : > { %v693_v51 = vpop.f32.mrf.mxu0  ;;  %3926 = vmatmul.mubr.msk.bf16.vlgmr.msra.gmra.mxu1 %vm888_vm2, %v834_v47 }
  0xe5   : > { %v808_v53 = vmax.f32 %v702_v49, 0.0  ;;  %v694_v54 = vadd.f32 %v4288_v31, %v693_v51 }
  0xe6   : > { %v3895_v55 = vpop.f32.mrf.mxu0 }
  0xe7   : > { %v806_v56 = vmax.f32 %v694_v54, 0.0  ;;  %v836_v57 = vpack.c.bf16 %v808_v53, %v807_v50  ;;  %v715_v58 = vadd.f32 %v3895_v55, %v4288_v31 }
  0xe8   : > { %v706_v59 = vpop.f32.mrf.mxu0 }
  0xe9   : > { %v835_v60 = vpack.c.bf16 %v806_v56, %v805_v52  ;;  %v707_v61 = vadd.f32 %v4288_v31, %v706_v59  ;;  %v811_v0 = vmax.f32 %v715_v58, 0.0 }
  0xea   : > { %v3896_v62 = vpop.f32.mrf.mxu0 }
  0xeb   : > { %v718_v63 = vadd.f32 %v3896_v62, %v4288_v31  ;;  %3929 = vmatprep.mubr.msk.bf16.mxu1 %vm888_vm2, %v835_v60  ;;  %v809_v2 = vmax.f32 %v707_v61, 0.0 }
  0xec   : > { %v709_v1 = vpop.f32.mrf.mxu0  ;;  %3930 = vmatmul.mubr.msk.bf16.gmra.mxu1 %vm888_vm2, %v836_v57 }
  0xed   : > { %v812_v3 = vmax.f32 %v718_v63, 0.0  ;;  %v710_v4 = vadd.f32 %v4288_v31, %v709_v1 }
  0xee   : > { %v3899_v5 = vpop.f32.mrf.mxu0 }
  0xef   : > { %v810_v6 = vmax.f32 %v710_v4, 0.0  ;;  %v838_v7 = vpack.c.bf16 %v812_v3, %v811_v0  ;;  %v731_v8 = vadd.f32 %v3899_v5, %v4288_v31 }
  0xf0   : > { %v722_v9 = vpop.f32.mrf.mxu0 }
  0xf1   : > { %v837_v10 = vpack.c.bf16 %v810_v6, %v809_v2  ;;  %v723_v11 = vadd.f32 %v4288_v31, %v722_v9  ;;  %v815_v14 = vmax.f32 %v731_v8, 0.0 }
  0xf2   : > { %v3900_v12 = vpop.f32.mrf.mxu0 }
  0xf3   : > { %v734_v13 = vadd.f32 %v3900_v12, %v4288_v31  ;;  %3933 = vmatprep.mubr.msk.bf16.mxu1 %vm888_vm2, %v837_v10  ;;  %v813_v16 = vmax.f32 %v723_v11, 0.0 }
  0xf4   : > { %v725_v15 = vpop.f32.mrf.mxu0  ;;  %3934 = vmatmul.mubr.msk.bf16.gmra.mxu1 %vm888_vm2, %v838_v7 }
  0xf5   : > { %v816_v17 = vmax.f32 %v734_v13, 0.0  ;;  %v726_v18 = vadd.f32 %v4288_v31, %v725_v15  ;;  %v4098_v15 = vld [vmem:[%s5428_s5] sm:$0xff]  }
  0xf6   : > { %v3903_v19 = vpop.f32.mrf.mxu0  ;;  %3971 = vmatprep.subr.bf16.mxu0 %v4098_v15 }
  0xf7   : > { %v814_v20 = vmax.f32 %v726_v18, 0.0  ;;  %v840_v21 = vpack.c.bf16 %v816_v17, %v815_v14  ;;  %v747_v22 = vadd.f32 %v3903_v19, %v4288_v31  ;;  %3972 = vmatpush3.bf16.msra.mxu0 %v4098_v15  ;;  %v4101_v17 = vld [vmem:[%s5430_s7 + $0x8] sm:$0xff]   ;;  %v4102_v18 = vld [vmem:[%s5430_s7] sm:$0xff]  }
  0xf8   : > { %v738_v23 = vpop.f32.mrf.mxu0 }
  0xf9   : > { %v839_v24 = vpack.c.bf16 %v814_v20, %v813_v16  ;;  %v739_v25 = vadd.f32 %v4288_v31, %v738_v23  ;;  %v819_v28 = vmax.f32 %v747_v22, 0.0  ;;  %v4099_v16 = vld [vmem:[%s5430_s7 + $0x18] sm:$0xff]   ;;  %v4356_v20 = vld [vmem:[%s5427_s4] ss:$0 sm:$0xff] }
  0xfa   : > { %v3904_v26 = vpop.f32.mrf.mxu0  ;;  %4005 = vmatprep.subr.bf16.mxu1 %v4099_v16 }
  0xfb   : > { %3937 = vmatprep.mubr.msk.bf16.mxu1 %vm888_vm2, %v839_v24  ;;  %v750_v27 = vadd.f32 %v3904_v26, %v4288_v31  ;;  %v817_v30 = vmax.f32 %v739_v25, 0.0  ;;  %4006 = vmatpush3.bf16.msra.mxu1 %v4099_v16 }
  0xfc   : > { %3938 = vmatmul.mubr.msk.bf16.gmra.mxu1 %vm888_vm2, %v840_v21  ;;  %v741_v29 = vpop.f32.mrf.mxu0 }
  0xfd   : > { %v820_v32 = vmax.f32 %v750_v27, 0.0  ;;  %v742_v33 = vadd.f32 %v4288_v31, %v741_v29 }
  0xfe   : > { %v3907_v34 = vpop.f32.mrf.mxu0 }
  0xff   : > { %v818_v35 = vmax.f32 %v742_v33, 0.0  ;;  %v842_v36 = vpack.c.bf16 %v820_v32, %v819_v28  ;;  %v763_v37 = vadd.f32 %v3907_v34, %v4288_v31 }
 0x100   : > { %v754_v38 = vpop.f32.mrf.mxu0 }
 0x101   : > { %v841_v39 = vpack.c.bf16 %v818_v35, %v817_v30  ;;  %v755_v40 = vadd.f32 %v4288_v31, %v754_v38  ;;  %v823_v43 = vmax.f32 %v763_v37, 0.0 }
 0x102   : > { %v3908_v41 = vpop.f32.mrf.mxu0 }
 0x103   : > { %3941 = vmatprep.mubr.msk.bf16.mxu1 %vm888_vm2, %v841_v39  ;;  %v766_v42 = vadd.f32 %v3908_v41, %v4288_v31  ;;  %v821_v45 = vmax.f32 %v755_v40, 0.0 }
 0x104   : > { %3942 = vmatmul.mubr.msk.bf16.gmra.mxu1 %vm888_vm2, %v842_v36  ;;  %v757_v44 = vpop.f32.mrf.mxu0 }
 0x105   : > { %v824_v46 = vmax.f32 %v766_v42, 0.0  ;;  %v758_v47 = vadd.f32 %v4288_v31, %v757_v44 }
 0x106   : > { %v3911_v48 = vpop.f32.mrf.mxu0 }
 0x107   : > { %v822_v49 = vmax.f32 %v758_v47, 0.0  ;;  %v844_v50 = vpack.c.bf16 %v824_v46, %v823_v43  ;;  %v779_v51 = vadd.f32 %v3911_v48, %v4288_v31 }
 0x108   : > { %v770_v52 = vpop.f32.mrf.mxu0 }
 0x109   : > { %v843_v53 = vpack.c.bf16 %v822_v49, %v821_v45  ;;  %v771_v54 = vadd.f32 %v4288_v31, %v770_v52  ;;  %v827_v57 = vmax.f32 %v779_v51, 0.0 }
 0x10a   : > { %v3912_v55 = vpop.f32.mrf.mxu0 }
 0x10b   : > { %3945 = vmatprep.mubr.msk.bf16.mxu1 %vm888_vm2, %v843_v53  ;;  %v782_v56 = vadd.f32 %v3912_v55, %v4288_v31  ;;  %v825_v59 = vmax.f32 %v771_v54, 0.0 }
 0x10c   : > { %3946 = vmatmul.mubr.msk.bf16.gmra.mxu1 %vm888_vm2, %v844_v50  ;;  %v773_v58 = vpop.f32.mrf.mxu0 }
 0x10d   : > { %v828_v60 = vmax.f32 %v782_v56, 0.0  ;;  %v774_v61 = vadd.f32 %v4288_v31, %v773_v58 }
 0x10e   : > { %v3915_v62 = vpop.f32.mrf.mxu0 }
 0x10f   : > { %v826_v63 = vmax.f32 %v774_v61, 0.0  ;;  %v846_v0 = vpack.c.bf16 %v828_v60, %v827_v57  ;;  %v795_v1 = vadd.f32 %v3915_v62, %v4288_v31 }
 0x110   : > { %v786_v2 = vpop.f32.mrf.mxu0 }
 0x111   : > { %v845_v3 = vpack.c.bf16 %v826_v63, %v825_v59  ;;  %v787_v4 = vadd.f32 %v4288_v31, %v786_v2  ;;  %v831_v7 = vmax.f32 %v795_v1, 0.0 }
 0x112   : > { %v3916_v5 = vpop.f32.mrf.mxu0 }
 0x113   : > { %3949 = vmatprep.mubr.msk.bf16.mxu1 %vm888_vm2, %v845_v3  ;;  %v798_v6 = vadd.f32 %v3916_v5, %v4288_v31  ;;  %v829_v9 = vmax.f32 %v787_v4, 0.0 }
 0x114   : > { %3950 = vmatmul.mubr.msk.bf16.gmra.mxu1 %vm888_vm2, %v846_v0  ;;  %v789_v8 = vpop.f32.mrf.mxu0 }
 0x115   : > { %v832_v10 = vmax.f32 %v798_v6, 0.0  ;;  %v790_v11 = vadd.f32 %v4288_v31, %v789_v8  ;;  %v4100_v31 = vld [vmem:[%s5430_s7 + $0x10] sm:$0xff]  }
 0x116   : > { %4007 = vmatprep.subr.bf16.mxu1 %v4100_v31 }
 0x117   : > { %v830_v12 = vmax.f32 %v790_v11, 0.0  ;;  %v848_v13 = vpack.c.bf16 %v832_v10, %v831_v7  ;;  %4008 = vmatpush3.bf16.msra.mxu1 %v4100_v31 }
 0x118   : > { %4009 = vmatprep.subr.bf16.mxu1 %v4101_v17 }
 0x119   : > { %v847_v14 = vpack.c.bf16 %v830_v12, %v829_v9 }
 0x11b   : > { %3953 = vmatprep.mubr.msk.bf16.mxu1 %vm888_vm2, %v847_v14  ;;  %4010 = vmatpush3.bf16.msra.mxu1 %v4101_v17 }
 0x11c   : > { %3954 = vmatmul.mubr.msk.bf16.gmra.mxu1 %vm888_vm2, %v848_v13  ;;  %4011 = vmatprep.subr.bf16.mxu1 %v4102_v18 }
 0x11f   : > { %4012 = vmatpush3.bf16.msra.mxu1 %v4102_v18 }
 0x1a4   : > { %v3927_v19 = vpop.f32.mrf.mxu1 }
 0x1a5   : > { %v980_v22 = vadd.f32 %v3927_v19, %v4356_v20 }
 0x1a6   : > { %v971_v21 = vpop.f32.mrf.mxu1 }
 0x1a7   : > { %v972_v24 = vadd.f32 %v4356_v20, %v971_v21  ;;  %v1100_v27 = vmax.f32 %v980_v22, 0.0 }
 0x1a8   : > { %v3928_v23 = vpop.f32.mrf.mxu1 }
 0x1a9   : > { %v983_v25 = vadd.f32 %v3928_v23, %v4356_v20  ;;  %v1098_v32 = vmax.f32 %v972_v24, 0.0 }
 0x1aa   : > { %v974_v26 = vpop.f32.mrf.mxu1 }
 0x1ab   : > { %v1101_v28 = vmax.f32 %v983_v25, 0.0  ;;  %v975_v29 = vadd.f32 %v4356_v20, %v974_v26 }
 0x1ac   : > { %v3931_v30 = vpop.f32.mrf.mxu1 }
 0x1ad   : > { %v1131_v33 = vpack.c.bf16 %v1101_v28, %v1100_v27  ;;  %v1099_v34 = vmax.f32 %v975_v29, 0.0  ;;  %v996_v36 = vadd.f32 %v3931_v30, %v4356_v20 }
 0x1ae   : > { %v987_v35 = vpop.f32.mrf.mxu1 }
 0x1af   : > { %3787 = vst [vmem:[%s4367_s25 + $0x8] sm:$0xff] %v1131_v33   ;;  %v1130_v37 = vpack.c.bf16 %v1099_v34, %v1098_v32  ;;  %v988_v39 = vadd.f32 %v4356_v20, %v987_v35  ;;  %v1104_v42 = vmax.f32 %v996_v36, 0.0 }
 0x1b0   : > { %v3932_v38 = vpop.f32.mrf.mxu1 }
 0x1b1   : > { %v999_v40 = vadd.f32 %v3932_v38, %v4356_v20  ;;  %3711 = vst [vmem:[%s4367_s25] sm:$0xff] %v1130_v37   ;;  %3973 = vmatprep.mubr.bf16.mxu0 %v1130_v37  ;;  %v1102_v46 = vmax.f32 %v988_v39, 0.0 }
 0x1b2   : > { %v990_v41 = vpop.f32.mrf.mxu1  ;;  %3974 = vmatmul.mubr.bf16.vlgmr.msra.gmra.mxu0 %v1131_v33 }
 0x1b3   : > { %v1105_v43 = vmax.f32 %v999_v40, 0.0  ;;  %v991_v44 = vadd.f32 %v4356_v20, %v990_v41 }
 0x1b4   : > { %v3935_v45 = vpop.f32.mrf.mxu1 }
 0x1b5   : > { %v1133_v47 = vpack.c.bf16 %v1105_v43, %v1104_v42  ;;  %v1103_v48 = vmax.f32 %v991_v44, 0.0  ;;  %v1012_v49 = vadd.f32 %v3935_v45, %v4356_v20 }
 0x1b6   : > { %v1003_v50 = vpop.f32.mrf.mxu1 }
 0x1b7   : > { %3789 = vst [vmem:[%s4367_s25 + $0x18] sm:$0xff] %v1133_v47   ;;  %v1004_v51 = vadd.f32 %v4356_v20, %v1003_v50  ;;  %v1132_v52 = vpack.c.bf16 %v1103_v48, %v1102_v46  ;;  %v1108_v54 = vmax.f32 %v1012_v49, 0.0 }
 0x1b8   : > { %v3936_v53 = vpop.f32.mrf.mxu1 }
 0x1b9   : > { %v1015_v55 = vadd.f32 %v3936_v53, %v4356_v20  ;;  %3788 = vst [vmem:[%s4367_s25 + $0x10] sm:$0xff] %v1132_v52   ;;  %3977 = vmatprep.mubr.bf16.mxu0 %v1132_v52  ;;  %v1106_v57 = vmax.f32 %v1004_v51, 0.0 }
 0x1ba   : > { %v1006_v56 = vpop.f32.mrf.mxu1  ;;  %3978 = vmatmul.mubr.bf16.gmra.mxu0 %v1133_v47 }
 0x1bb   : > { %v1109_v58 = vmax.f32 %v1015_v55, 0.0  ;;  %v1007_v59 = vadd.f32 %v4356_v20, %v1006_v56 }
 0x1bc   : > { %v3939_v60 = vpop.f32.mrf.mxu1 }
 0x1bd   : > { %v1135_v61 = vpack.c.bf16 %v1109_v58, %v1108_v54  ;;  %v1107_v62 = vmax.f32 %v1007_v59, 0.0  ;;  %v1028_v63 = vadd.f32 %v3939_v60, %v4356_v20 }
 0x1be   : > { %v1019_v0 = vpop.f32.mrf.mxu1 }
 0x1bf   : > { %3791 = vst [vmem:[%s4367_s25 + $0x28] sm:$0xff] %v1135_v61   ;;  %v1020_v1 = vadd.f32 %v4356_v20, %v1019_v0  ;;  %v1134_v2 = vpack.c.bf16 %v1107_v62, %v1106_v57  ;;  %v1112_v4 = vmax.f32 %v1028_v63, 0.0 }
 0x1c0   : > { %v3940_v3 = vpop.f32.mrf.mxu1 }
 0x1c1   : > { %v1031_v5 = vadd.f32 %v3940_v3, %v4356_v20  ;;  %3790 = vst [vmem:[%s4367_s25 + $0x20] sm:$0xff] %v1134_v2   ;;  %3981 = vmatprep.mubr.bf16.mxu0 %v1134_v2  ;;  %v1110_v7 = vmax.f32 %v1020_v1, 0.0 }
 0x1c2   : > { %v1022_v6 = vpop.f32.mrf.mxu1  ;;  %3982 = vmatmul.mubr.bf16.gmra.mxu0 %v1135_v61 }
 0x1c3   : > { %v1113_v8 = vmax.f32 %v1031_v5, 0.0  ;;  %v1023_v9 = vadd.f32 %v4356_v20, %v1022_v6  ;;  %v1922_v6 = vld [vmem:[%s5432_s9 + $0x1c0] sm:$0xff] }
 0x1c4   : > { %v3943_v10 = vpop.f32.mrf.mxu1 }
 0x1c5   : > { %v1137_v11 = vpack.c.bf16 %v1113_v8, %v1112_v4  ;;  %v1111_v12 = vmax.f32 %v1023_v9, 0.0  ;;  %v1044_v13 = vadd.f32 %v3943_v10, %v4356_v20  ;;  %v4422_v8 = vld [vmem:[%s5432_s9 + $0x1c8] sm:$0xff] }
 0x1c6   : > { %v1035_v14 = vpop.f32.mrf.mxu1  ;;  %v4427_v10 = vld [vmem:[%s5432_s9 + $0x1e8] sm:$0xff] }
 0x1c7   : > { %3793 = vst [vmem:[%s4367_s25 + $0x38] sm:$0xff] %v1137_v11   ;;  %v1136_v15 = vpack.c.bf16 %v1111_v12, %v1110_v7  ;;  %v1036_v16 = vadd.f32 %v4356_v20, %v1035_v14  ;;  %v1116_v17 = vmax.f32 %v1044_v13, 0.0  ;;  %v1926_v7 = vld [vmem:[%s5432_s9 + $0x1e0] sm:$0xff]  ;;  %v3664_v13 = vcombine.low %v4422_v8, %v4427_v10 }
 0x1c8   : > { %v3944_v31 = vpop.f32.mrf.mxu1  ;;  %v3663_v9 = vcombine.high %v1922_v6, %v1926_v7  ;;  %v1918_v12 = vld [vmem:[%s5432_s9 + $0x1a0] sm:$0xff]  ;;  %v3665_v14 = vcombine.high %v4422_v8, %v4427_v10 }
 0x1c9   : > { %3792 = vst [vmem:[%s4367_s25 + $0x30] sm:$0xff] %v1136_v15   ;;  %3985 = vmatprep.mubr.bf16.mxu0 %v1136_v15  ;;  %v1047_v18 = vadd.f32 %v3944_v31, %v4356_v20  ;;  %v1114_v21 = vmax.f32 %v1036_v16, 0.0  ;;  %v1906_v16 = vld [vmem:[%s5432_s9 + $0x140] sm:$0xff] }
 0x1ca   : > { %3986 = vmatmul.mubr.bf16.gmra.mxu0 %v1137_v11  ;;  %v1038_v19 = vpop.f32.mrf.mxu1  ;;  %v1914_v11 = vld [vmem:[%s5432_s9 + $0x180] sm:$0xff]  ;;  %2250 = vmatprep.subr.bf16.mxu0 %v3663_v9  ;;  %v1903_v9 = vld [vmem:[%s5432_s9 + $0x128] sm:$0xff] }
 0x1cb   : > { %v1117_v22 = vmax.f32 %v1047_v18, 0.0  ;;  %v1039_v23 = vadd.f32 %v4356_v20, %v1038_v19  ;;  %v3655_v15 = vcombine.high %v1914_v11, %v1918_v12  ;;  %v1910_v31 = vld [vmem:[%s5432_s9 + $0x160] sm:$0xff]  ;;  %2443 = vmatprep.subr.bf16.mxu1 %v3665_v14 }
 0x1cc   : > { %v3947_v24 = vpop.f32.mrf.mxu1  ;;  %v3647_v18 = vcombine.high %v1906_v16, %v1910_v31  ;;  %v1898_v19 = vld [vmem:[%s5432_s9 + $0x100] sm:$0xff] }
 0x1cd   : > { %v1139_v25 = vpack.c.bf16 %v1117_v22, %v1116_v17  ;;  %v1115_v26 = vmax.f32 %v1039_v23, 0.0  ;;  %v1060_v27 = vadd.f32 %v3947_v24, %v4356_v20  ;;  %v3654_v17 = vcombine.low %v1914_v11, %v1918_v12  ;;  %v1890_v24 = vld [vmem:[%s5432_s9 + $0xc0] sm:$0xff] }
 0x1ce   : > { %v1051_v28 = vpop.f32.mrf.mxu1  ;;  %v3646_v22 = vcombine.low %v1906_v16, %v1910_v31 }
 0x1cf   : > { %3795 = vst [vmem:[%s4367_s25 + $0x48] sm:$0xff] %v1139_v25   ;;  %v1138_v29 = vpack.c.bf16 %v1115_v26, %v1114_v21  ;;  %v1052_v30 = vadd.f32 %v4356_v20, %v1051_v28  ;;  %v1120_v33 = vmax.f32 %v1060_v27, 0.0  ;;  %v1902_v21 = vld [vmem:[%s5432_s9 + $0x120] sm:$0xff] }
 0x1d0   : > { %v3948_v32 = vpop.f32.mrf.mxu1  ;;  %v3639_v23 = vcombine.high %v1898_v19, %v1902_v21  ;;  %v3638_v26 = vcombine.low %v1898_v19, %v1902_v21  ;;  %v1882_v28 = vld [vmem:[%s5432_s9 + $0x80] sm:$0xff] }
 0x1d1   : > { %3794 = vst [vmem:[%s4367_s25 + $0x40] sm:$0xff] %v1138_v29   ;;  %3989 = vmatprep.mubr.bf16.mxu0 %v1138_v29  ;;  %v1063_v34 = vadd.f32 %v3948_v32, %v4356_v20  ;;  %v1118_v36 = vmax.f32 %v1052_v30, 0.0  ;;  %v1886_v29 = vld [vmem:[%s5432_s9 + $0xa0] sm:$0xff] }
 0x1d2   : > { %3990 = vmatmul.mubr.bf16.gmra.mxu0 %v1139_v25  ;;  %v1054_v35 = vpop.f32.mrf.mxu1  ;;  %v1894_v25 = vld [vmem:[%s5432_s9 + $0xe0] sm:$0xff]  ;;  %v3623_v32 = vcombine.high %v1882_v28, %v1886_v29 }
 0x1d3   : > { %v1121_v37 = vmax.f32 %v1063_v34, 0.0  ;;  %v1055_v38 = vadd.f32 %v4356_v20, %v1054_v35  ;;  %v3631_v27 = vcombine.high %v1890_v24, %v1894_v25  ;;  %v3630_v30 = vcombine.low %v1890_v24, %v1894_v25  ;;  %v1878_v34 = vld [vmem:[%s5432_s9 + $0x60] sm:$0xff] }
 0x1d4   : > { %v3951_v39 = vpop.f32.mrf.mxu1  ;;  %v3622_v35 = vcombine.low %v1882_v28, %v1886_v29  ;;  %v1883_v29 = vld [vmem:[%s5432_s9 + $0x88] sm:$0xff] }
 0x1d5   : > { %v1141_v40 = vpack.c.bf16 %v1121_v37, %v1120_v33  ;;  %v1119_v41 = vmax.f32 %v1055_v38, 0.0  ;;  %v1076_v42 = vadd.f32 %v3951_v39, %v4356_v20  ;;  %v1874_v33 = vld [vmem:[%s5432_s9 + $0x40] sm:$0xff] }
 0x1d6   : > { %v1067_v43 = vpop.f32.mrf.mxu1  ;;  %v3614_v37 = vcombine.low %v1874_v33, %v1878_v34 }
 0x1d7   : > { %3797 = vst [vmem:[%s4367_s25 + $0x58] sm:$0xff] %v1141_v40   ;;  %v1140_v44 = vpack.c.bf16 %v1119_v41, %v1118_v36  ;;  %v1068_v45 = vadd.f32 %v4356_v20, %v1067_v43  ;;  %v1124_v47 = vmax.f32 %v1076_v42, 0.0  ;;  %v3615_v36 = vcombine.high %v1874_v33, %v1878_v34 }
 0x1d8   : > { %v3952_v46 = vpop.f32.mrf.mxu1 }
 0x1d9   : > { %3796 = vst [vmem:[%s4367_s25 + $0x50] sm:$0xff] %v1140_v44   ;;  %3993 = vmatprep.mubr.bf16.mxu0 %v1140_v44  ;;  %v1079_v48 = vadd.f32 %v3952_v46, %v4356_v20  ;;  %v1122_v50 = vmax.f32 %v1068_v45, 0.0 }
 0x1da   : > { %3994 = vmatmul.mubr.bf16.gmra.mxu0 %v1141_v40  ;;  %v1070_v49 = vpop.f32.mrf.mxu1  ;;  %v4472_v40 = vld [vmem:[%s5429_s6] ss:$0 sm:$0xff] }
 0x1db   : > { %v1125_v51 = vmax.f32 %v1079_v48, 0.0  ;;  %v1071_v52 = vadd.f32 %v4356_v20, %v1070_v49 }
 0x1dc   : > { %v3955_v53 = vpop.f32.mrf.mxu1 }
 0x1dd   : > { %v1143_v54 = vpack.c.bf16 %v1125_v51, %v1124_v47  ;;  %v1123_v55 = vmax.f32 %v1071_v52, 0.0  ;;  %v1092_v56 = vadd.f32 %v3955_v53, %v4356_v20  ;;  %v1915_v51 = vld [vmem:[%s5432_s9 + $0x188] sm:$0xff] }
 0x1de   : > { %v1083_v57 = vpop.f32.mrf.mxu1  ;;  %v1919_v52 = vld [vmem:[%s5432_s9 + $0x1a8] sm:$0xff] }
 0x1df   : > { %3799 = vst [vmem:[%s4367_s25 + $0x68] sm:$0xff] %v1143_v54   ;;  %v1142_v58 = vpack.c.bf16 %v1123_v55, %v1122_v50  ;;  %v1084_v59 = vadd.f32 %v4356_v20, %v1083_v57  ;;  %v1128_v61 = vmax.f32 %v1092_v56, 0.0 }
 0x1e0   : > { %v3956_v60 = vpop.f32.mrf.mxu1 }
 0x1e1   : > { %3798 = vst [vmem:[%s4367_s25 + $0x60] sm:$0xff] %v1142_v58   ;;  %3997 = vmatprep.mubr.bf16.mxu0 %v1142_v58  ;;  %v1095_v62 = vadd.f32 %v3956_v60, %v4356_v20  ;;  %v1126_v0 = vmax.f32 %v1084_v59, 0.0  ;;  %v3657_v58 = vcombine.high %v1915_v51, %v1919_v52 }
 0x1e2   : > { %3998 = vmatmul.mubr.bf16.gmra.mxu0 %v1143_v54  ;;  %v1086_v63 = vpop.f32.mrf.mxu1 }
 0x1e3   : > { %v1129_v1 = vmax.f32 %v1095_v62, 0.0  ;;  %v1087_v2 = vadd.f32 %v4356_v20, %v1086_v63  ;;  %v3662_v20 = vcombine.low %v1922_v6, %v1926_v7  ;;  %v1911_v62 = vld [vmem:[%s5432_s9 + $0x168] sm:$0xff] }
 0x1e5   : > { %v1145_v3 = vpack.c.bf16 %v1129_v1, %v1128_v61  ;;  %v1127_v4 = vmax.f32 %v1087_v2, 0.0  ;;  %2251 = vmatpush1.bf16.msra.mxu0 %v3662_v20  ;;  %v1907_v61 = vld [vmem:[%s5432_s9 + $0x148] sm:$0xff]  ;;  %v3656_v2 = vcombine.low %v1915_v51, %v1919_v52 }
 0x1e6   : > { %2252 = vmatprep.subr.bf16.mxu0 %v3655_v15  ;;  %v1899_v20 = vld [vmem:[%s5432_s9 + $0x108] sm:$0xff]  ;;  %v3648_v8 = vcombine.low %v1907_v61, %v1911_v62 }
 0x1e7   : > { %3801 = vst [vmem:[%s4367_s25 + $0x78] sm:$0xff] %v1145_v3   ;;  %v1144_v5 = vpack.c.bf16 %v1127_v4, %v1126_v0  ;;  %v3641_v15 = vcombine.high %v1899_v20, %v1903_v9 }
 0x1e9   : > { %3800 = vst [vmem:[%s4367_s25 + $0x70] sm:$0xff] %v1144_v5   ;;  %4001 = vmatprep.mubr.bf16.mxu0 %v1144_v5  ;;  %2253 = vmatpush1.bf16.msra.mxu0 %v3654_v17  ;;  %v3649_v5 = vcombine.high %v1907_v61, %v1911_v62  ;;  %v1891_v17 = vld [vmem:[%s5432_s9 + $0xc8] sm:$0xff] }
 0x1ea   : > { %4002 = vmatmul.mubr.bf16.gmra.mxu0 %v1145_v3  ;;  %2254 = vmatprep.subr.bf16.mxu0 %v3647_v18  ;;  %v1895_v18 = vld [vmem:[%s5432_s9 + $0xe8] sm:$0xff] }
 0x1ed   : > { %2255 = vmatpush1.bf16.msra.mxu0 %v3646_v22 }
 0x1ee   : > { %2256 = vmatprep.subr.bf16.mxu0 %v3639_v23  ;;  %v3640_v23 = vcombine.low %v1899_v20, %v1903_v9 }
 0x1f1   : > { %2257 = vmatpush1.bf16.msra.mxu0 %v3638_v26  ;;  %v3633_v26 = vcombine.high %v1891_v17, %v1895_v18 }
 0x1f2   : > { %2258 = vmatprep.subr.bf16.mxu0 %v3631_v27 }
 0x1f5   : > { %2259 = vmatpush1.bf16.msra.mxu0 %v3630_v30  ;;  %v1887_v30 = vld [vmem:[%s5432_s9 + $0xa8] sm:$0xff] }
 0x1f6   : > { %2260 = vmatprep.subr.bf16.mxu0 %v3623_v32 }
 0x1f9   : > { %2261 = vmatpush1.bf16.msra.mxu0 %v3622_v35 }
 0x1fa   : > { %2262 = vmatprep.subr.bf16.mxu0 %v3615_v36 }
 0x1fd   : > { %2263 = vmatpush1.bf16.msra.mxu0 %v3614_v37  ;;  %v3632_v37 = vcombine.low %v1891_v17, %v1895_v18 }
 0x272   : > { %v3975_v38 = vpop.f32.mrf.mxu0 }
 0x273   : > { %v1404_v44 = vadd.f32 %v3975_v38, %v4472_v40 }
 0x274   : > { %v1395_v39 = vpop.f32.mrf.mxu0 }
 0x275   : > { %v1396_v42 = vadd.f32 %v4472_v40, %v1395_v39  ;;  %v1524_v53 = vmax.f32 %v1404_v44, 0.0  ;;  %v1879_v44 = vld [vmem:[%s5432_s9 + $0x68] sm:$0xff] }
 0x276   : > { %v3976_v41 = vpop.f32.mrf.mxu0 }
 0x277   : > { %v1407_v43 = vadd.f32 %v3976_v41, %v4472_v40  ;;  %v1522_v49 = vmax.f32 %v1396_v42, 0.0  ;;  %v3625_v41 = vcombine.high %v1883_v29, %v1887_v30 }
 0x278   : > { %v1398_v45 = vpop.f32.mrf.mxu0 }
 0x279   : > { %v1399_v46 = vadd.f32 %v4472_v40, %v1398_v45  ;;  %v1525_v47 = vmax.f32 %v1407_v43, 0.0  ;;  %v1875_v43 = vld [vmem:[%s5432_s9 + $0x48] sm:$0xff] }
 0x27a   : > { %v3979_v48 = vpop.f32.mrf.mxu0  ;;  %v3617_v52 = vcombine.high %v1875_v43, %v1879_v44 }
 0x27b   : > { %v1523_v50 = vmax.f32 %v1399_v46, 0.0  ;;  %v1555_v56 = vpack.c.bf16 %v1525_v47, %v1524_v53  ;;  %v1420_v63 = vadd.f32 %v3979_v48, %v4472_v40 }
 0x27c   : > { %v1411_v54 = vpop.f32.mrf.mxu0 }
 0x27d   : > { %v1554_v55 = vpack.c.bf16 %v1523_v50, %v1522_v49  ;;  %v1412_v59 = vadd.f32 %v4472_v40, %v1411_v54  ;;  %v1528_v11 = vmax.f32 %v1420_v63, 0.0  ;;  %v3624_v50 = vcombine.low %v1883_v29, %v1887_v30 }
 0x27e   : > { %v3980_v57 = vpop.f32.mrf.mxu0 }
 0x27f   : > { %v1423_v60 = vadd.f32 %v3980_v57, %v4472_v40  ;;  %4013 = vmatprep.mubr.msk.bf16.mxu1 %vm888_vm2, %v1554_v55  ;;  %v1526_v6 = vmax.f32 %v1412_v59, 0.0  ;;  %v3616_v59 = vcombine.low %v1875_v43, %v1879_v44 }
 0x280   : > { %v1414_v0 = vpop.f32.mrf.mxu0  ;;  %4014 = vmatmul.mubr.msk.bf16.vlgmr.msra.gmra.mxu1 %vm888_vm2, %v1555_v56 }
 0x281   : > { %v1415_v1 = vadd.f32 %v4472_v40, %v1414_v0  ;;  %2444 = vmatpush1.bf16.msra.mxu1 %v3664_v13  ;;  %v1529_v3 = vmax.f32 %v1423_v60, 0.0 }
 0x282   : > { %v3983_v4 = vpop.f32.mrf.mxu0  ;;  %2445 = vmatprep.subr.bf16.mxu1 %v3657_v58 }
 0x283   : > { %v1527_v7 = vmax.f32 %v1415_v1, 0.0  ;;  %v1557_v10 = vpack.c.bf16 %v1529_v3, %v1528_v11  ;;  %v1436_v19 = vadd.f32 %v3983_v4, %v4472_v40 }
 0x284   : > { %v1427_v12 = vpop.f32.mrf.mxu0 }
 0x285   : > { %v1556_v14 = vpack.c.bf16 %v1527_v7, %v1526_v6  ;;  %2446 = vmatpush1.bf16.msra.mxu1 %v3656_v2  ;;  %v1428_v16 = vadd.f32 %v4472_v40, %v1427_v12  ;;  %v1532_v32 = vmax.f32 %v1436_v19, 0.0 }
 0x286   : > { %v3984_v13 = vpop.f32.mrf.mxu0  ;;  %2447 = vmatprep.subr.bf16.mxu1 %v3649_v5 }
 0x287   : > { %v1439_v31 = vadd.f32 %v3984_v13, %v4472_v40  ;;  %4017 = vmatprep.mubr.msk.bf16.mxu1 %vm888_vm2, %v1556_v14  ;;  %v1530_v27 = vmax.f32 %v1428_v16, 0.0 }
 0x288   : > { %v1430_v21 = vpop.f32.mrf.mxu0  ;;  %4018 = vmatmul.mubr.msk.bf16.gmra.mxu1 %vm888_vm2, %v1557_v10 }
 0x289   : > { %v1431_v22 = vadd.f32 %v4472_v40, %v1430_v21  ;;  %2448 = vmatpush1.bf16.msra.mxu1 %v3648_v8  ;;  %v1533_v24 = vmax.f32 %v1439_v31, 0.0 }
 0x28a   : > { %v3987_v25 = vpop.f32.mrf.mxu0  ;;  %2449 = vmatprep.subr.bf16.mxu1 %v3641_v15 }
 0x28b   : > { %v1531_v28 = vmax.f32 %v1431_v22, 0.0  ;;  %v1452_v33 = vadd.f32 %v3987_v25, %v4472_v40  ;;  %v1559_v38 = vpack.c.bf16 %v1533_v24, %v1532_v32 }
 0x28c   : > { %v1443_v34 = vpop.f32.mrf.mxu0 }
 0x28d   : > { %v1558_v35 = vpack.c.bf16 %v1531_v28, %v1530_v27  ;;  %v1444_v36 = vadd.f32 %v4472_v40, %v1443_v34  ;;  %2450 = vmatpush1.bf16.msra.mxu1 %v3640_v23  ;;  %v1536_v45 = vmax.f32 %v1452_v33, 0.0 }
 0x28e   : > { %v3988_v39 = vpop.f32.mrf.mxu0  ;;  %2451 = vmatprep.subr.bf16.mxu1 %v3633_v26 }
 0x28f   : > { %v1455_v42 = vadd.f32 %v3988_v39, %v4472_v40  ;;  %4021 = vmatprep.mubr.msk.bf16.mxu1 %vm888_vm2, %v1558_v35  ;;  %v1534_v47 = vmax.f32 %v1444_v36, 0.0 }
 0x290   : > { %v1446_v46 = vpop.f32.mrf.mxu0  ;;  %4022 = vmatmul.mubr.msk.bf16.gmra.mxu1 %vm888_vm2, %v1559_v38 }
 0x291   : > { %v1537_v48 = vmax.f32 %v1455_v42, 0.0  ;;  %v1447_v49 = vadd.f32 %v4472_v40, %v1446_v46  ;;  %2452 = vmatpush1.bf16.msra.mxu1 %v3632_v37 }
 0x292   : > { %v3991_v51 = vpop.f32.mrf.mxu0  ;;  %2453 = vmatprep.subr.bf16.mxu1 %v3625_v41 }
 0x293   : > { %v1535_v53 = vmax.f32 %v1447_v49, 0.0  ;;  %v1561_v54 = vpack.c.bf16 %v1537_v48, %v1536_v45  ;;  %v1468_v55 = vadd.f32 %v3991_v51, %v4472_v40  ;;  %v1866_v49 = vld [vmem:[%s5432_s9] sm:$0xff]  ;;  %v1867_v51 = vld [vmem:[%s5432_s9 + $0x8] sm:$0xff] }
 0x294   : > { %v1459_v56 = vpop.f32.mrf.mxu0 }
 0x295   : > { %v1560_v57 = vpack.c.bf16 %v1535_v53, %v1534_v47  ;;  %v1460_v58 = vadd.f32 %v4472_v40, %v1459_v56  ;;  %2454 = vmatpush1.bf16.msra.mxu1 %v3624_v50  ;;  %v1540_v62 = vmax.f32 %v1468_v55, 0.0  ;;  %v1870_v50 = vld [vmem:[%s5432_s9 + $0x20] sm:$0xff]  ;;  %v4127_v56 = vmov 0  }
 0x296   : > { %v3992_v60 = vpop.f32.mrf.mxu0  ;;  %2455 = vmatprep.subr.bf16.mxu1 %v3617_v52  ;;  %v1871_v52 = vld [vmem:[%s5432_s9 + $0x28] sm:$0xff]  ;;  %v3606_v53 = vcombine.low %v1866_v49, %v1870_v50  ;;  %2282 = vmatprep.mubr.bf16.mxu0 %v4127_v56 }
 0x297   : > { %4025 = vmatprep.mubr.msk.bf16.mxu1 %vm888_vm2, %v1560_v57  ;;  %v1471_v61 = vadd.f32 %v3992_v60, %v4472_v40  ;;  %v1538_v0 = vmax.f32 %v1460_v58, 0.0  ;;  %v3609_v55 = vcombine.high %v1867_v51, %v1871_v52  ;;  %v1924_v57 = vld [vmem:[%s5432_s9 + $0x1d0] sm:$0xff] }
 0x298   : > { %4026 = vmatmul.mubr.msk.bf16.gmra.mxu1 %vm888_vm2, %v1561_v54  ;;  %v1462_v63 = vpop.f32.mrf.mxu0  ;;  %v3608_v54 = vcombine.low %v1867_v51, %v1871_v52  ;;  %v1928_v58 = vld [vmem:[%s5432_s9 + $0x1f0] sm:$0xff] }
 0x299   : > { %v1541_v1 = vmax.f32 %v1471_v61, 0.0  ;;  %v1463_v2 = vadd.f32 %v4472_v40, %v1462_v63  ;;  %2456 = vmatpush1.bf16.msra.mxu1 %v3616_v59  ;;  %v1925_v59 = vld [vmem:[%s5432_s9 + $0x1d8] sm:$0xff]  ;;  %v3666_v60 = vcombine.low %v1924_v57, %v1928_v58  ;;  %v3667_v61 = vcombine.high %v1924_v57, %v1928_v58  ;;  %v1888_v58 = vld [vmem:[%s5432_s9 + $0xb0] sm:$0xff] }
 0x29a   : > { %v3995_v3 = vpop.f32.mrf.mxu0  ;;  %2457 = vmatprep.subr.bf16.mxu1 %v3609_v55  ;;  %v1884_v55 = vld [vmem:[%s5432_s9 + $0x90] sm:$0xff] }
 0x29b   : > { %v1539_v4 = vmax.f32 %v1463_v2, 0.0  ;;  %v1563_v5 = vpack.c.bf16 %v1541_v1, %v1540_v62  ;;  %v1484_v6 = vadd.f32 %v3995_v3, %v4472_v40  ;;  %v1929_v62 = vld [vmem:[%s5432_s9 + $0x1f8] sm:$0xff]  ;;  %v4590_v3 = vld [vmem:[%s5431_s8] ss:$0 sm:$0xff] }
 0x29c   : > { %v1475_v7 = vpop.f32.mrf.mxu0  ;;  %v3668_v63 = vcombine.low %v1925_v59, %v1929_v62 }
 0x29d   : > { %v1562_v20 = vpack.c.bf16 %v1539_v4, %v1538_v0  ;;  %v1476_v9 = vadd.f32 %v4472_v40, %v1475_v7  ;;  %v1544_v14 = vmax.f32 %v1484_v6, 0.0  ;;  %2458 = vmatpush1.bf16.msra.mxu1 %v3608_v54  ;;  %v3669_v0 = vcombine.high %v1925_v59, %v1929_v62  ;;  %v1885_v59 = vld [vmem:[%s5432_s9 + $0x98] sm:$0xff] }
 0x29e   : > { %v3996_v11 = vpop.f32.mrf.mxu0 }
 0x29f   : > { %4029 = vmatprep.mubr.msk.bf16.mxu1 %vm888_vm2, %v1562_v20  ;;  %v1487_v12 = vadd.f32 %v3996_v11, %v4472_v40  ;;  %v1542_v10 = vmax.f32 %v1476_v9, 0.0  ;;  %2829 = vmatprep.subr.bf16.mxu1 %v3669_v0  ;;  %v1916_v9 = vld [vmem:[%s5432_s9 + $0x190] sm:$0xff] }
 0x2a0   : > { %4030 = vmatmul.mubr.msk.bf16.gmra.mxu1 %vm888_vm2, %v1563_v5  ;;  %v1478_v8 = vpop.f32.mrf.mxu0 }
 0x2a1   : > { %v1545_v13 = vmax.f32 %v1487_v12, 0.0  ;;  %v1479_v15 = vadd.f32 %v4472_v40, %v1478_v8  ;;  %v1917_v8 = vld [vmem:[%s5432_s9 + $0x198] sm:$0xff] }
 0x2a2   : > { %v3999_v16 = vpop.f32.mrf.mxu0 }
 0x2a3   : > { %v1543_v31 = vmax.f32 %v1479_v15, 0.0  ;;  %v1565_v17 = vpack.c.bf16 %v1545_v13, %v1544_v14  ;;  %v1500_v18 = vadd.f32 %v3999_v16, %v4472_v40  ;;  %v1920_v14 = vld [vmem:[%s5432_s9 + $0x1b0] sm:$0xff] }
 0x2a4   : > { %v1491_v19 = vpop.f32.mrf.mxu0 }
 0x2a5   : > { %v1564_v21 = vpack.c.bf16 %v1543_v31, %v1542_v10  ;;  %v1492_v22 = vadd.f32 %v4472_v40, %v1491_v19  ;;  %v1548_v25 = vmax.f32 %v1500_v18, 0.0  ;;  %v1921_v10 = vld [vmem:[%s5432_s9 + $0x1b8] sm:$0xff]  ;;  %v1908_v31 = vld [vmem:[%s5432_s9 + $0x150] sm:$0xff]  ;;  %v3659_v18 = vcombine.high %v1916_v9, %v1920_v14 }
 0x2a6   : > { %v4000_v23 = vpop.f32.mrf.mxu0  ;;  %v3661_v19 = vcombine.high %v1917_v8, %v1921_v10 }
 0x2a7   : > { %4033 = vmatprep.mubr.msk.bf16.mxu1 %vm888_vm2, %v1564_v21  ;;  %v1503_v24 = vadd.f32 %v4000_v23, %v4472_v40  ;;  %v1546_v27 = vmax.f32 %v1492_v22, 0.0  ;;  %v1912_v21 = vld [vmem:[%s5432_s9 + $0x170] sm:$0xff]  ;;  %v1909_v22 = vld [vmem:[%s5432_s9 + $0x158] sm:$0xff] }
 0x2a8   : > { %4034 = vmatmul.mubr.msk.bf16.gmra.mxu1 %vm888_vm2, %v1565_v17  ;;  %v1494_v26 = vpop.f32.mrf.mxu0  ;;  %v1913_v23 = vld [vmem:[%s5432_s9 + $0x178] sm:$0xff] }
 0x2a9   : > { %v1549_v28 = vmax.f32 %v1503_v24, 0.0  ;;  %v1495_v29 = vadd.f32 %v4472_v40, %v1494_v26  ;;  %v3660_v26 = vcombine.low %v1917_v8, %v1921_v10 }
 0x2aa   : > { %v4003_v30 = vpop.f32.mrf.mxu0 }
 0x2ab   : > { %v1547_v32 = vmax.f32 %v1495_v29, 0.0  ;;  %v1567_v33 = vpack.c.bf16 %v1549_v28, %v1548_v25  ;;  %v1516_v34 = vadd.f32 %v4003_v30, %v4472_v40  ;;  %v3658_v25 = vcombine.low %v1916_v9, %v1920_v14  ;;  %v1877_v9 = vld [vmem:[%s5432_s9 + $0x58] sm:$0xff] }
 0x2ac   : > { %v1507_v35 = vpop.f32.mrf.mxu0  ;;  %v3651_v28 = vcombine.high %v1908_v31, %v1912_v21  ;;  %v3653_v29 = vcombine.high %v1909_v22, %v1913_v23 }
 0x2ad   : > { %v1566_v36 = vpack.c.bf16 %v1547_v32, %v1546_v27  ;;  %v1508_v37 = vadd.f32 %v4472_v40, %v1507_v35  ;;  %v1552_v41 = vmax.f32 %v1516_v34, 0.0  ;;  %v1900_v32 = vld [vmem:[%s5432_s9 + $0x110] sm:$0xff]  ;;  %v1901_v35 = vld [vmem:[%s5432_s9 + $0x118] sm:$0xff] }
 0x2ae   : > { %v4004_v38 = vpop.f32.mrf.mxu0  ;;  %v1904_v34 = vld [vmem:[%s5432_s9 + $0x130] sm:$0xff] }
 0x2af   : > { %4037 = vmatprep.mubr.msk.bf16.mxu1 %vm888_vm2, %v1566_v36  ;;  %v1519_v39 = vadd.f32 %v4004_v38, %v4472_v40  ;;  %v1550_v43 = vmax.f32 %v1508_v37, 0.0  ;;  %v1905_v36 = vld [vmem:[%s5432_s9 + $0x138] sm:$0xff]  ;;  %v3650_v37 = vcombine.low %v1908_v31, %v1912_v21  ;;  %v3642_v51 = vcombine.low %v1900_v32, %v1904_v34 }
 0x2b0   : > { %4038 = vmatmul.mubr.msk.bf16.gmra.mxu1 %vm888_vm2, %v1567_v33  ;;  %v1510_v42 = vpop.f32.mrf.mxu0 }
 0x2b1   : > { %v1553_v44 = vmax.f32 %v1519_v39, 0.0  ;;  %v1511_v45 = vadd.f32 %v4472_v40, %v1510_v42  ;;  %v3607_v40 = vcombine.high %v1866_v49, %v1870_v50  ;;  %v1897_v49 = vld [vmem:[%s5432_s9 + $0xf8] sm:$0xff] }
 0x2b3   : > { %v1551_v46 = vmax.f32 %v1511_v45, 0.0  ;;  %v1569_v47 = vpack.c.bf16 %v1553_v44, %v1552_v41  ;;  %2264 = vmatprep.subr.bf16.mxu0 %v3607_v40  ;;  %v3652_v41 = vcombine.low %v1909_v22, %v1913_v23  ;;  %v3645_v44 = vcombine.high %v1901_v35, %v1905_v36  ;;  %v1892_v45 = vld [vmem:[%s5432_s9 + $0xd0] sm:$0xff] }
 0x2b4   : > { %2265 = vmatpush1.bf16.msra.mxu0 %v3606_v53  ;;  %v3644_v40 = vcombine.low %v1901_v35, %v1905_v36 }
 0x2b5   : > { %v1568_v48 = vpack.c.bf16 %v1551_v46, %v1550_v43  ;;  %2636 = vmatprep.subr.bf16.mxu0 %v3667_v61  ;;  %v3643_v43 = vcombine.high %v1900_v32, %v1904_v34 }
 0x2b7   : > { %4041 = vmatprep.mubr.msk.bf16.mxu1 %vm888_vm2, %v1568_v48  ;;  %v1893_v48 = vld [vmem:[%s5432_s9 + $0xd8] sm:$0xff] }
 0x2b8   : > { %4042 = vmatmul.mubr.msk.bf16.gmra.mxu1 %vm888_vm2, %v1569_v47  ;;  %v1896_v47 = vld [vmem:[%s5432_s9 + $0xf0] sm:$0xff]  ;;  %v3637_v54 = vcombine.high %v1893_v48, %v1897_v49  ;;  %v3636_v0 = vcombine.low %v1893_v48, %v1897_v49 }
 0x2b9   : > { %2475 = vmatprep.mubr.bf16.mxu1 %v4127_v56  ;;  %v3635_v53 = vcombine.high %v1892_v45, %v1896_v47  ;;  %v3634_v61 = vcombine.low %v1892_v45, %v1896_v47 }
 0x340   : > { %v4015_v1 = vpop.f32.mrf.mxu1 }
 0x341   : > { %v1700_v24 = vadd.f32 %v4015_v1, %v4590_v3 }
 0x342   : > { %v1691_v2 = vpop.f32.mrf.mxu1 }
 0x343   : > { %v1692_v5 = vadd.f32 %v4590_v3, %v1691_v2  ;;  %v1820_v33 = vmax.f32 %v1700_v24, 0.0  ;;  %v3627_v2 = vcombine.high %v1884_v55, %v1888_v58 }
 0x344   : > { %v4016_v4 = vpop.f32.mrf.mxu1 }
 0x345   : > { %v1818_v11 = vmax.f32 %v1692_v5, 0.0  ;;  %v1703_v15 = vadd.f32 %v4016_v4, %v4590_v3  ;;  %v1876_v5 = vld [vmem:[%s5432_s9 + $0x50] sm:$0xff] }
 0x346   : > { %v1694_v6 = vpop.f32.mrf.mxu1 }
 0x347   : > { %v1695_v7 = vadd.f32 %v4590_v3, %v1694_v6  ;;  %v1821_v27 = vmax.f32 %v1703_v15, 0.0  ;;  %v1868_v15 = vld [vmem:[%s5432_s9 + $0x10] sm:$0xff] }
 0x348   : > { %v4594_v20 = vpop.f32.mrf.mxu1 }
 0x349   : > { %v1819_v12 = vmax.f32 %v1695_v7, 0.0  ;;  %v4640_v38 = vpack.c.bf16 %v1821_v27, %v1820_v33  ;;  %v1716_v6 = vadd.f32 %v4594_v20, %v4590_v3  ;;  %v1880_v7 = vld [vmem:[%s5432_s9 + $0x70] sm:$0xff] }
 0x34a   : > { %v1707_v13 = vpop.f32.mrf.mxu1  ;;  %v3619_v10 = vcombine.high %v1876_v5, %v1880_v7  ;;  %v3618_v21 = vcombine.low %v1876_v5, %v1880_v7 }
 0x34b   : > { %v4609_v16 = vpack.c.bf16 %v1819_v12, %v1818_v11  ;;  %v1708_v46 = vadd.f32 %v4590_v3, %v1707_v13  ;;  %v1881_v11 = vld [vmem:[%s5432_s9 + $0x78] sm:$0xff]  ;;  %v3626_v12 = vcombine.low %v1884_v55, %v1888_v58  ;;  %v1824_v31 = vmax.f32 %v1716_v6, 0.0 }
 0x34c   : > { %v4020_v17 = vpop.f32.mrf.mxu1  ;;  %v3621_v13 = vcombine.high %v1877_v9, %v1881_v11  ;;  %v3620_v24 = vcombine.low %v1877_v9, %v1881_v11 }
 0x34d   : > { %2283 = vmatmul.mubr.bf16.vlgmr.msra.gmra.mxu0 %v4609_v16  ;;  %2476 = vmatmul.mubr.bf16.vlgmr.msra.gmra.mxu1 %v4609_v16  ;;  %v1822_v57 = vmax.f32 %v1708_v46, 0.0  ;;  %v1719_v62 = vadd.f32 %v4020_v17, %v4590_v3  ;;  %v1872_v17 = vld [vmem:[%s5432_s9 + $0x30] sm:$0xff] }
 0x34e   : > { %2637 = vmatpush1.bf16.msra.mxu0 %v3666_v60  ;;  %2830 = vmatpush1.bf16.msra.mxu1 %v3668_v63  ;;  %v1710_v30 = vpop.f32.mrf.mxu1  ;;  %v1889_v60 = vld [vmem:[%s5432_s9 + $0xb8] sm:$0xff] }
 0x34f   : > { %2292 = vmatprep.mubr.bf16.mxu0 %v4127_v56  ;;  %2485 = vmatprep.mubr.bf16.mxu1 %v4127_v56  ;;  %v1711_v39 = vadd.f32 %v4590_v3, %v1710_v30  ;;  %v3629_v4 = vcombine.high %v1885_v59, %v1889_v60  ;;  %v1825_v20 = vmax.f32 %v1719_v62, 0.0  ;;  %v3628_v14 = vcombine.low %v1885_v59, %v1889_v60 }
 0x350   : > { %2638 = vmatprep.subr.bf16.mxu0 %v3659_v18  ;;  %2831 = vmatprep.subr.bf16.mxu1 %v3661_v19  ;;  %v4643_v42 = vpop.f32.mrf.mxu1  ;;  %v1869_v18 = vld [vmem:[%s5432_s9 + $0x18] sm:$0xff]  ;;  %v3610_v30 = vcombine.low %v1868_v15, %v1872_v17 }
 0x351   : > { %v1823_v50 = vmax.f32 %v1711_v39, 0.0  ;;  %v1873_v19 = vld [vmem:[%s5432_s9 + $0x38] sm:$0xff]  ;;  %v4707_v22 = vpack.c.bf16 %v1825_v20, %v1824_v31  ;;  %v1732_v39 = vadd.f32 %v4643_v42, %v4590_v3 }
 0x352   : > { %2639 = vmatpush1.bf16.msra.mxu0 %v3658_v25  ;;  %2832 = vmatpush1.bf16.msra.mxu1 %v3660_v26  ;;  %v1723_v52 = vpop.f32.mrf.mxu1  ;;  %v3611_v26 = vcombine.high %v1868_v15, %v1872_v17  ;;  %v3613_v27 = vcombine.high %v1869_v18, %v1873_v19  ;;  %v3612_v32 = vcombine.low %v1869_v18, %v1873_v19 }
 0x353   : > { %2640 = vmatprep.subr.bf16.mxu0 %v3651_v28  ;;  %2833 = vmatprep.subr.bf16.mxu1 %v3653_v29  ;;  %v4675_v63 = vpack.c.bf16 %v1823_v50, %v1822_v57  ;;  %v1724_v28 = vadd.f32 %v4590_v3, %v1723_v52 }
 0x354   : > { %v4024_v1 = vpop.f32.mrf.mxu1 }
 0x355   : > { %2293 = vmatmul.mubr.bf16.gmra.mxu0 %v4640_v38  ;;  %2486 = vmatmul.mubr.bf16.gmra.mxu1 %v4640_v38  ;;  %v1826_v34 = vmax.f32 %v1724_v28, 0.0  ;;  %v1735_v35 = vadd.f32 %v4024_v1, %v4590_v3 }
 0x356   : > { %2302 = vmatprep.mubr.bf16.mxu0 %v4127_v56  ;;  %2495 = vmatprep.mubr.bf16.mxu1 %v4127_v56  ;;  %v1726_v8 = vpop.f32.mrf.mxu1 }
 0x357   : > { %2641 = vmatpush1.bf16.msra.mxu0 %v3650_v37  ;;  %2834 = vmatpush1.bf16.msra.mxu1 %v3652_v41  ;;  %v1727_v23 = vadd.f32 %v4590_v3, %v1726_v8  ;;  %v1829_v41 = vmax.f32 %v1735_v35, 0.0 }
 0x358   : > { %2642 = vmatprep.subr.bf16.mxu0 %v3643_v43  ;;  %2835 = vmatprep.subr.bf16.mxu1 %v3645_v44  ;;  %v4027_v25 = vpop.f32.mrf.mxu1  ;;  %v1828_v44 = vmax.f32 %v1732_v39, 0.0 }
 0x359   : > { %v1827_v29 = vmax.f32 %v1727_v23, 0.0 }
 0x35a   : > { %v1739_v33 = vpop.f32.mrf.mxu1  ;;  %v4724_v45 = vpack.c.bf16 %v1829_v41, %v1828_v44 }
 0x35b   : > { %2643 = vmatpush1.bf16.msra.mxu0 %v3642_v51  ;;  %2836 = vmatpush1.bf16.msra.mxu1 %v3644_v40  ;;  %v4716_v36 = vpack.c.bf16 %v1827_v29, %v1826_v34  ;;  %v1740_v48 = vadd.f32 %v4590_v3, %v1739_v33  ;;  %v1748_v51 = vadd.f32 %v4027_v25, %v4590_v3 }
 0x35c   : > { %2644 = vmatprep.subr.bf16.mxu0 %v3635_v53  ;;  %2837 = vmatprep.subr.bf16.mxu1 %v3637_v54  ;;  %v4028_v37 = vpop.f32.mrf.mxu1 }
 0x35d   : > { %2303 = vmatmul.mubr.bf16.gmra.mxu0 %v4675_v63  ;;  %2496 = vmatmul.mubr.bf16.gmra.mxu1 %v4675_v63  ;;  %v1830_v50 = vmax.f32 %v1740_v48, 0.0  ;;  %v1751_v40 = vadd.f32 %v4028_v37, %v4590_v3  ;;  %v1832_v54 = vmax.f32 %v1748_v51, 0.0 }
 0x35e   : > { %2312 = vmatprep.mubr.bf16.mxu0 %v4127_v56  ;;  %2505 = vmatprep.mubr.bf16.mxu1 %v4127_v56  ;;  %v1742_v43 = vpop.f32.mrf.mxu1 }
 0x35f   : > { %2645 = vmatpush1.bf16.msra.mxu0 %v3634_v61  ;;  %2838 = vmatpush1.bf16.msra.mxu1 %v3636_v0  ;;  %v1743_v46 = vadd.f32 %v4590_v3, %v1742_v43  ;;  %v1833_v55 = vmax.f32 %v1751_v40, 0.0 }
 0x360   : > { %2646 = vmatprep.subr.bf16.mxu0 %v3627_v2  ;;  %2839 = vmatprep.subr.bf16.mxu1 %v3629_v4  ;;  %v4031_v47 = vpop.f32.mrf.mxu1 }
 0x361   : > { %v1831_v42 = vmax.f32 %v1743_v46, 0.0  ;;  %v4740_v58 = vpack.c.bf16 %v1833_v55, %v1832_v54  ;;  %v1764_v2 = vadd.f32 %v4031_v47, %v4590_v3 }
 0x362   : > { %v1755_v49 = vpop.f32.mrf.mxu1 }
 0x363   : > { %2647 = vmatpush1.bf16.msra.mxu0 %v3626_v12  ;;  %2840 = vmatpush1.bf16.msra.mxu1 %v3628_v14  ;;  %v4734_v52 = vpack.c.bf16 %v1831_v42, %v1830_v50  ;;  %v1756_v59 = vadd.f32 %v4590_v3, %v1755_v49  ;;  %v1836_v7 = vmax.f32 %v1764_v2, 0.0 }
 0x364   : > { %2648 = vmatprep.subr.bf16.mxu0 %v3619_v10  ;;  %2841 = vmatprep.subr.bf16.mxu1 %v3621_v13  ;;  %v4032_v53 = vpop.f32.mrf.mxu1 }
 0x365   : > { %2313 = vmatmul.mubr.bf16.gmra.mxu0 %v4707_v22  ;;  %2506 = vmatmul.mubr.bf16.gmra.mxu1 %v4707_v22  ;;  %v1834_v62 = vmax.f32 %v1756_v59, 0.0  ;;  %v1767_v4 = vadd.f32 %v4032_v53, %v4590_v3 }
 0x366   : > { %2322 = vmatprep.mubr.bf16.mxu0 %v4127_v56  ;;  %2515 = vmatprep.mubr.bf16.mxu1 %v4127_v56  ;;  %v1758_v57 = vpop.f32.mrf.mxu1 }
 0x367   : > { %2649 = vmatpush1.bf16.msra.mxu0 %v3618_v21  ;;  %2842 = vmatpush1.bf16.msra.mxu1 %v3620_v24  ;;  %v1759_v60 = vadd.f32 %v4590_v3, %v1758_v57  ;;  %v1837_v9 = vmax.f32 %v1767_v4, 0.0 }
 0x368   : > { %2650 = vmatprep.subr.bf16.mxu0 %v3611_v26  ;;  %2843 = vmatprep.subr.bf16.mxu1 %v3613_v27  ;;  %v4035_v61 = vpop.f32.mrf.mxu1 }
 0x369   : > { %v1835_v0 = vmax.f32 %v1759_v60, 0.0  ;;  %v4756_v20 = vpack.c.bf16 %v1837_v9, %v1836_v7  ;;  %v1780_v31 = vadd.f32 %v4035_v61, %v4590_v3 }
 0x36a   : > { %v1771_v1 = vpop.f32.mrf.mxu1 }
 0x36b   : > { %2651 = vmatpush1.bf16.msra.mxu0 %v3610_v30  ;;  %2844 = vmatpush1.bf16.msra.mxu1 %v3612_v32  ;;  %v4750_v5 = vpack.c.bf16 %v1835_v0, %v1834_v62  ;;  %v1772_v12 = vadd.f32 %v4590_v3, %v1771_v1  ;;  %v1840_v21 = vmax.f32 %v1780_v31, 0.0 }
 0x36c   : > { %v4036_v6 = vpop.f32.mrf.mxu1 }
 0x36d   : > { %2323 = vmatmul.mubr.bf16.gmra.mxu0 %v4716_v36  ;;  %2516 = vmatmul.mubr.bf16.gmra.mxu1 %v4716_v36  ;;  %v1838_v10 = vmax.f32 %v1772_v12, 0.0  ;;  %v1783_v17 = vadd.f32 %v4036_v6, %v4590_v3 }
 0x36e   : > { %2332 = vmatprep.mubr.bf16.mxu0 %v4127_v56  ;;  %2525 = vmatprep.mubr.bf16.mxu1 %v4127_v56  ;;  %v1774_v11 = vpop.f32.mrf.mxu1 }
 0x36f   : > { %v1775_v14 = vadd.f32 %v4590_v3, %v1774_v11  ;;  %v1841_v23 = vmax.f32 %v1783_v17, 0.0 }
 0x370   : > { %v4039_v8 = vpop.f32.mrf.mxu1 }
 0x371   : > { %v1839_v13 = vmax.f32 %v1775_v14, 0.0  ;;  %v4772_v25 = vpack.c.bf16 %v1841_v23, %v1840_v21  ;;  %v1796_v33 = vadd.f32 %v4039_v8, %v4590_v3 }
 0x372   : > { %v1787_v15 = vpop.f32.mrf.mxu1 }
 0x373   : > { %v4766_v18 = vpack.c.bf16 %v1839_v13, %v1838_v10  ;;  %v1788_v26 = vadd.f32 %v4590_v3, %v1787_v15  ;;  %v1844_v39 = vmax.f32 %v1796_v33, 0.0 }
 0x374   : > { %v4040_v19 = vpop.f32.mrf.mxu1 }
 0x375   : > { %2333 = vmatmul.mubr.bf16.gmra.mxu0 %v4724_v45  ;;  %2526 = vmatmul.mubr.bf16.gmra.mxu1 %v4724_v45  ;;  %v1842_v29 = vmax.f32 %v1788_v26, 0.0  ;;  %v1799_v34 = vadd.f32 %v4040_v19, %v4590_v3 }
 0x376   : > { %2342 = vmatprep.mubr.bf16.mxu0 %v4127_v56  ;;  %2535 = vmatprep.mubr.bf16.mxu1 %v4127_v56  ;;  %v1790_v24 = vpop.f32.mrf.mxu1 }
 0x377   : > { %v1791_v27 = vadd.f32 %v4590_v3, %v1790_v24  ;;  %v1845_v41 = vmax.f32 %v1799_v34, 0.0 }
 0x378   : > { %v4043_v28 = vpop.f32.mrf.mxu1 }
 0x379   : > { %v1843_v30 = vmax.f32 %v1791_v27, 0.0  ;;  %v4788_v44 = vpack.c.bf16 %v1845_v41, %v1844_v39  ;;  %v1812_v49 = vadd.f32 %v4043_v28, %v4590_v3 }
 0x37a   : > { %v1803_v32 = vpop.f32.mrf.mxu1 }
 0x37b   : > { %v4782_v35 = vpack.c.bf16 %v1843_v30, %v1842_v29  ;;  %v1804_v46 = vadd.f32 %v4590_v3, %v1803_v32  ;;  %v1848_v40 = vmax.f32 %v1812_v49, 0.0 }
 0x37c   : > { %v4044_v37 = vpop.f32.mrf.mxu1 }
 0x37d   : > { %2343 = vmatmul.mubr.bf16.gmra.mxu0 %v4734_v52  ;;  %2536 = vmatmul.mubr.bf16.gmra.mxu1 %v4734_v52  ;;  %v1846_v48 = vmax.f32 %v1804_v46, 0.0  ;;  %v1815_v50 = vadd.f32 %v4044_v37, %v4590_v3 }
 0x37e   : > { %2352 = vmatprep.mubr.bf16.mxu0 %v4127_v56  ;;  %2545 = vmatprep.mubr.bf16.mxu1 %v4127_v56  ;;  %v1806_v43 = vpop.f32.mrf.mxu1 }
 0x37f   : > { %v1807_v47 = vadd.f32 %v4590_v3, %v1806_v43  ;;  %v1849_v53 = vmax.f32 %v1815_v50, 0.0 }
 0x381   : > { %v1847_v42 = vmax.f32 %v1807_v47, 0.0  ;;  %v4804_v54 = vpack.c.bf16 %v1849_v53, %v1848_v40 }
 0x383   : > { %v4798_v51 = vpack.c.bf16 %v1847_v42, %v1846_v48 }
 0x385   : > { %2353 = vmatmul.mubr.bf16.gmra.mxu0 %v4740_v58  ;;  %2546 = vmatmul.mubr.bf16.gmra.mxu1 %v4740_v58 }
 0x386   : > { %2362 = vmatprep.mubr.bf16.mxu0 %v4127_v56  ;;  %2555 = vmatprep.mubr.bf16.mxu1 %v4127_v56 }
 0x38d   : > { %2363 = vmatmul.mubr.bf16.gmra.mxu0 %v4750_v5  ;;  %2556 = vmatmul.mubr.bf16.gmra.mxu1 %v4750_v5 }
 0x38e   : > { %2372 = vmatprep.mubr.bf16.mxu0 %v4127_v56  ;;  %2565 = vmatprep.mubr.bf16.mxu1 %v4127_v56 }
 0x395   : > { %2373 = vmatmul.mubr.bf16.gmra.mxu0 %v4756_v20  ;;  %2566 = vmatmul.mubr.bf16.gmra.mxu1 %v4756_v20 }
 0x396   : > { %2382 = vmatprep.mubr.bf16.mxu0 %v4127_v56  ;;  %2575 = vmatprep.mubr.bf16.mxu1 %v4127_v56 }
 0x39d   : > { %2383 = vmatmul.mubr.bf16.gmra.mxu0 %v4766_v18  ;;  %2576 = vmatmul.mubr.bf16.gmra.mxu1 %v4766_v18 }
 0x39e   : > { %2392 = vmatprep.mubr.bf16.mxu0 %v4127_v56  ;;  %2585 = vmatprep.mubr.bf16.mxu1 %v4127_v56 }
 0x3a5   : > { %2393 = vmatmul.mubr.bf16.gmra.mxu0 %v4772_v25  ;;  %2586 = vmatmul.mubr.bf16.gmra.mxu1 %v4772_v25 }
 0x3a6   : > { %2402 = vmatprep.mubr.bf16.mxu0 %v4127_v56  ;;  %2595 = vmatprep.mubr.bf16.mxu1 %v4127_v56 }
 0x3ad   : > { %2403 = vmatmul.mubr.bf16.gmra.mxu0 %v4782_v35  ;;  %2596 = vmatmul.mubr.bf16.gmra.mxu1 %v4782_v35 }
 0x3ae   : > { %2412 = vmatprep.mubr.bf16.mxu0 %v4127_v56  ;;  %2605 = vmatprep.mubr.bf16.mxu1 %v4127_v56 }
 0x3b5   : > { %2413 = vmatmul.mubr.bf16.gmra.mxu0 %v4788_v44  ;;  %2606 = vmatmul.mubr.bf16.gmra.mxu1 %v4788_v44 }
 0x3b6   : > { %2422 = vmatprep.mubr.bf16.mxu0 %v4127_v56  ;;  %2615 = vmatprep.mubr.bf16.mxu1 %v4127_v56 }
 0x3bd   : > { %2423 = vmatmul.mubr.bf16.gmra.mxu0 %v4798_v51  ;;  %2616 = vmatmul.mubr.bf16.gmra.mxu1 %v4798_v51 }
 0x3be   : > { %2432 = vmatprep.mubr.bf16.mxu0 %v4127_v56  ;;  %2625 = vmatprep.mubr.bf16.mxu1 %v4127_v56 }
 0x3c5   : > { %2433 = vmatmul.mubr.bf16.gmra.mxu0 %v4804_v54  ;;  %2626 = vmatmul.mubr.bf16.gmra.mxu1 %v4804_v54 }
 0x3c6   : > { %2668 = vmatprep.mubr.bf16.mxu0 %v4127_v56  ;;  %2861 = vmatprep.mubr.bf16.mxu1 %v4127_v56 }
 0x3cd   : > { %2669 = vmatmul.mubr.bf16.vlgmr.msra.gmra.mxu0 %v4609_v16  ;;  %2862 = vmatmul.mubr.bf16.vlgmr.msra.gmra.mxu1 %v4609_v16 }
 0x3ce   : > { %2678 = vmatprep.mubr.bf16.mxu0 %v4127_v56  ;;  %2871 = vmatprep.mubr.bf16.mxu1 %v4127_v56 }
 0x3d5   : > { %2679 = vmatmul.mubr.bf16.gmra.mxu0 %v4640_v38  ;;  %2872 = vmatmul.mubr.bf16.gmra.mxu1 %v4640_v38 }
 0x3d6   : > { %2688 = vmatprep.mubr.bf16.mxu0 %v4127_v56  ;;  %2881 = vmatprep.mubr.bf16.mxu1 %v4127_v56 }
 0x3dd   : > { %2689 = vmatmul.mubr.bf16.gmra.mxu0 %v4675_v63  ;;  %2882 = vmatmul.mubr.bf16.gmra.mxu1 %v4675_v63 }
 0x3de   : > { %2698 = vmatprep.mubr.bf16.mxu0 %v4127_v56  ;;  %2891 = vmatprep.mubr.bf16.mxu1 %v4127_v56 }
 0x3e5   : > { %2699 = vmatmul.mubr.bf16.gmra.mxu0 %v4707_v22  ;;  %2892 = vmatmul.mubr.bf16.gmra.mxu1 %v4707_v22 }
 0x3e6   : > { %2708 = vmatprep.mubr.bf16.mxu0 %v4127_v56  ;;  %2901 = vmatprep.mubr.bf16.mxu1 %v4127_v56 }
 0x3ed   : > { %2709 = vmatmul.mubr.bf16.gmra.mxu0 %v4716_v36  ;;  %2902 = vmatmul.mubr.bf16.gmra.mxu1 %v4716_v36 }
 0x3ee   : > { %2718 = vmatprep.mubr.bf16.mxu0 %v4127_v56  ;;  %2911 = vmatprep.mubr.bf16.mxu1 %v4127_v56 }
 0x3f5   : > { %2719 = vmatmul.mubr.bf16.gmra.mxu0 %v4724_v45  ;;  %2912 = vmatmul.mubr.bf16.gmra.mxu1 %v4724_v45 }
 0x3f6   : > { %2728 = vmatprep.mubr.bf16.mxu0 %v4127_v56  ;;  %2921 = vmatprep.mubr.bf16.mxu1 %v4127_v56 }
 0x3fd   : > { %2729 = vmatmul.mubr.bf16.gmra.mxu0 %v4734_v52  ;;  %2922 = vmatmul.mubr.bf16.gmra.mxu1 %v4734_v52 }
 0x3fe   : > { %2738 = vmatprep.mubr.bf16.mxu0 %v4127_v56  ;;  %2931 = vmatprep.mubr.bf16.mxu1 %v4127_v56 }
 0x405   : > { %2739 = vmatmul.mubr.bf16.gmra.mxu0 %v4740_v58  ;;  %2932 = vmatmul.mubr.bf16.gmra.mxu1 %v4740_v58 }
 0x406   : > { %2748 = vmatprep.mubr.bf16.mxu0 %v4127_v56  ;;  %2941 = vmatprep.mubr.bf16.mxu1 %v4127_v56 }
 0x40d   : > { %v4842_v3 = vpop.f32.mrf.mxu0  ;;  %v4844_v16 = vpop.f32.mrf.mxu1  ;;  %2749 = vmatmul.mubr.bf16.gmra.mxu0 %v4750_v5  ;;  %2942 = vmatmul.mubr.bf16.gmra.mxu1 %v4750_v5 }
 0x40e   : > { %2758 = vmatprep.mubr.bf16.mxu0 %v4127_v56  ;;  %2951 = vmatprep.mubr.bf16.mxu1 %v4127_v56 }
 0x40f   : > { %v4850_v38 = vpop.f32.mrf.mxu0  ;;  %v4852_v63 = vpop.f32.mrf.mxu1 }
 0x411   : > { %v4854_v22 = vpop.f32.mrf.mxu0  ;;  %v4856_v36 = vpop.f32.mrf.mxu1 }
 0x413   : > { %v4858_v45 = vpop.f32.mrf.mxu0  ;;  %v4860_v52 = vpop.f32.mrf.mxu1 }
 0x415   : > { %v4862_v55 = vpop.f32.mrf.mxu0  ;;  %v4864_v57 = vpop.f32.mrf.mxu1  ;;  %2759 = vmatmul.mubr.bf16.gmra.mxu0 %v4756_v20  ;;  %2952 = vmatmul.mubr.bf16.gmra.mxu1 %v4756_v20 }
 0x416   : > { %2768 = vmatprep.mubr.bf16.mxu0 %v4127_v56  ;;  %2961 = vmatprep.mubr.bf16.mxu1 %v4127_v56 }
 0x417   : > { %v4870_v58 = vpop.f32.mrf.mxu0  ;;  %v4872_v59 = vpop.f32.mrf.mxu1 }
 0x419   : > { %v4874_v60 = vpop.f32.mrf.mxu0  ;;  %v4876_v61 = vpop.f32.mrf.mxu1 }
 0x41b   : > { %v4878_v62 = vpop.f32.mrf.mxu0  ;;  %v4880_v0 = vpop.f32.mrf.mxu1 }
 0x41d   : > { %v4882_v1 = vpop.f32.mrf.mxu0  ;;  %v4884_v2 = vpop.f32.mrf.mxu1  ;;  %2769 = vmatmul.mubr.bf16.gmra.mxu0 %v4766_v18  ;;  %2962 = vmatmul.mubr.bf16.gmra.mxu1 %v4766_v18 }
 0x41e   : > { %2778 = vmatprep.mubr.bf16.mxu0 %v4127_v56  ;;  %2971 = vmatprep.mubr.bf16.mxu1 %v4127_v56 }
 0x41f   : > { %v4890_v4 = vpop.f32.mrf.mxu0  ;;  %v4892_v5 = vpop.f32.mrf.mxu1 }
 0x421   : > { %v4894_v6 = vpop.f32.mrf.mxu0  ;;  %v4896_v7 = vpop.f32.mrf.mxu1 }
 0x423   : > { %v4898_v9 = vpop.f32.mrf.mxu0  ;;  %v4900_v11 = vpop.f32.mrf.mxu1 }
 0x425   : > { %v4902_v20 = vpop.f32.mrf.mxu0  ;;  %v4904_v12 = vpop.f32.mrf.mxu1  ;;  %2779 = vmatmul.mubr.bf16.gmra.mxu0 %v4772_v25  ;;  %2972 = vmatmul.mubr.bf16.gmra.mxu1 %v4772_v25 }
 0x426   : > { %2788 = vmatprep.mubr.bf16.mxu0 %v4127_v56  ;;  %2981 = vmatprep.mubr.bf16.mxu1 %v4127_v56 }
 0x427   : > { %v4910_v14 = vpop.f32.mrf.mxu0  ;;  %v4912_v8 = vpop.f32.mrf.mxu1 }
 0x429   : > { %v4914_v10 = vpop.f32.mrf.mxu0  ;;  %v4916_v13 = vpop.f32.mrf.mxu1 }
 0x42b   : > { %v4918_v15 = vpop.f32.mrf.mxu0  ;;  %v4920_v31 = vpop.f32.mrf.mxu1 }
 0x42d   : > { %v4922_v17 = vpop.f32.mrf.mxu0  ;;  %v4924_v18 = vpop.f32.mrf.mxu1  ;;  %2789 = vmatmul.mubr.bf16.gmra.mxu0 %v4782_v35  ;;  %2982 = vmatmul.mubr.bf16.gmra.mxu1 %v4782_v35 }
 0x42e   : > { %2798 = vmatprep.mubr.bf16.mxu0 %v4127_v56  ;;  %2991 = vmatprep.mubr.bf16.mxu1 %v4127_v56 }
 0x42f   : > { %v4930_v19 = vpop.f32.mrf.mxu0  ;;  %v4932_v21 = vpop.f32.mrf.mxu1 }
 0x431   : > { %v4934_v23 = vpop.f32.mrf.mxu0  ;;  %v4936_v24 = vpop.f32.mrf.mxu1 }
 0x433   : > { %v4938_v25 = vpop.f32.mrf.mxu0  ;;  %v4940_v26 = vpop.f32.mrf.mxu1 }
 0x435   : > { %v4942_v27 = vpop.f32.mrf.mxu0  ;;  %v4944_v28 = vpop.f32.mrf.mxu1  ;;  %2799 = vmatmul.mubr.bf16.gmra.mxu0 %v4788_v44  ;;  %2992 = vmatmul.mubr.bf16.gmra.mxu1 %v4788_v44 }
 0x436   : > { %2808 = vmatprep.mubr.bf16.mxu0 %v4127_v56  ;;  %3001 = vmatprep.mubr.bf16.mxu1 %v4127_v56 }
 0x437   : > { %v4950_v29 = vpop.f32.mrf.mxu0  ;;  %v4952_v30 = vpop.f32.mrf.mxu1 }
 0x439   : > { %v4954_v32 = vpop.f32.mrf.mxu0  ;;  %v4956_v33 = vpop.f32.mrf.mxu1 }
 0x43b   : > { %v4958_v34 = vpop.f32.mrf.mxu0  ;;  %v4960_v35 = vpop.f32.mrf.mxu1 }
 0x43d   : > { %v4962_v37 = vpop.f32.mrf.mxu0  ;;  %v4964_v39 = vpop.f32.mrf.mxu1  ;;  %2809 = vmatmul.mubr.bf16.gmra.mxu0 %v4798_v51  ;;  %3002 = vmatmul.mubr.bf16.gmra.mxu1 %v4798_v51 }
 0x43e   : > { %2818 = vmatprep.mubr.bf16.mxu0 %v4127_v56  ;;  %3011 = vmatprep.mubr.bf16.mxu1 %v4127_v56 }
 0x43f   : > { %v4970_v41 = vpop.f32.mrf.mxu0  ;;  %v4972_v43 = vpop.f32.mrf.mxu1 }
 0x441   : > { %v4974_v44 = vpop.f32.mrf.mxu0  ;;  %v4976_v46 = vpop.f32.mrf.mxu1 }
 0x443   : > { %v4978_v47 = vpop.f32.mrf.mxu0  ;;  %v4980_v48 = vpop.f32.mrf.mxu1 }
 0x444   : > { %5435 = vst [vmem:[#allocation2_spill] sm:$0xff] %v4978_v47  ;;  %5436 = vst [vmem:[#allocation3_spill] sm:$0xff] %v4980_v48 }
 0x445   : > { %v4982_v42 = vpop.f32.mrf.mxu0  ;;  %v4984_v49 = vpop.f32.mrf.mxu1  ;;  %2819 = vmatmul.mubr.bf16.gmra.mxu0 %v4804_v54  ;;  %3012 = vmatmul.mubr.bf16.gmra.mxu1 %v4804_v54  ;;  %v3096_v54 = vmax.f32 %v4844_v16, %v4856_v36 }
 0x446   : > { %5437 = vst [vmem:[#allocation4_spill] sm:$0xff] %v4982_v42  ;;  %5438 = vst [vmem:[#allocation5_spill] sm:$0xff] %v4984_v49  ;;  %v3022_v49 = vmax.f32 %v4842_v3, %v4854_v22 }
 0x447   : > { %v4988_v56 = vpop.f32.mrf.mxu0  ;;  %v4990_v50 = vpop.f32.mrf.mxu1 }
 0x448   : > { %5439 = vst [vmem:[#allocation6_spill] sm:$0xff] %v4988_v56  ;;  %5440 = vst [vmem:[#allocation7_spill] sm:$0xff] %v4990_v50 }
 0x449   : > { %v4992_v51 = vpop.f32.mrf.mxu0  ;;  %v4994_v40 = vpop.f32.mrf.mxu1 }
 0x44a   : > { %5441 = vst [vmem:[#allocation8_spill] sm:$0xff] %v4994_v40  ;;  %v3059_v40 = vmax.f32 %v4850_v38, %v4858_v45 }
 0x44b   : > { %v4996_v53 = vpop.f32.mrf.mxu0  ;;  %v4998_v47 = vpop.f32.mrf.mxu1 }
 0x44c   : > { %5442 = vst [vmem:[#allocation9_spill] sm:$0xff] %v4996_v53  ;;  %5443 = vst [vmem:[#allocation10_spill] sm:$0xff] %v4998_v47  ;;  %v3133_v47 = vmax.f32 %v4852_v63, %v4860_v52  ;;  %v3060_v16 = vmax.f32 %v3059_v40, %v4870_v58 }
 0x44d   : > { %v5000_v48 = vpop.f32.mrf.mxu0  ;;  %v5002_v42 = vpop.f32.mrf.mxu1 }
 0x44e   : > { %5444 = vst [vmem:[#allocation11_spill] sm:$0xff] %v5000_v48  ;;  %5445 = vst [vmem:[#allocation12_spill] sm:$0xff] %v5002_v42  ;;  %v3023_v48 = vmax.f32 %v3022_v49, %v4862_v55  ;;  %v3097_v42 = vmax.f32 %v3096_v54, %v4864_v57  ;;  %v3134_v22 = vmax.f32 %v3133_v47, %v4872_v59 }
 0x44f   : > { %v5008_v56 = vpop.f32.mrf.mxu0  ;;  %v5010_v50 = vpop.f32.mrf.mxu1  ;;  %v3061_v63 = vmax.f32 %v3060_v16, %v4878_v62 }
 0x450   : > { %5446 = vst [vmem:[#allocation13_spill] sm:$0xff] %v5010_v50  ;;  %v3024_v36 = vmax.f32 %v3023_v48, %v4874_v60  ;;  %v3098_v50 = vmax.f32 %v3097_v42, %v4876_v61  ;;  %v3135_v52 = vmax.f32 %v3134_v22, %v4880_v0 }
 0x451   : > { %v5018_v53 = vpop.f32.mrf.mxu0  ;;  %v5020_v3 = vpop.f32.mrf.mxu1  ;;  %v3062_v59 = vmax.f32 %v3061_v63, %v4890_v4 }
 0x452   : > { %v3025_v55 = vmax.f32 %v3024_v36, %v4882_v1  ;;  %v3099_v57 = vmax.f32 %v3098_v50, %v4884_v2  ;;  %v3136_v60 = vmax.f32 %v3135_v52, %v4892_v5 }
 0x453   : > { %v5026_v38 = vpop.f32.mrf.mxu0  ;;  %v5028_v45 = vpop.f32.mrf.mxu1  ;;  %v3063_v0 = vmax.f32 %v3062_v59, %v4898_v9 }
 0x454   : > { %v3026_v61 = vmax.f32 %v3025_v55, %v4894_v6  ;;  %v3100_v47 = vmax.f32 %v3099_v57, %v4896_v7  ;;  %v3137_v1 = vmax.f32 %v3136_v60, %v4900_v11 }
 0x455   : > { %v5034_v49 = vpop.f32.mrf.mxu0  ;;  %v5036_v58 = vpop.f32.mrf.mxu1  ;;  %v3064_v5 = vmax.f32 %v3063_v0, %v4910_v14 }
 0x456   : > { %v3027_v2 = vmax.f32 %v3026_v61, %v4902_v20  ;;  %v3101_v42 = vmax.f32 %v3100_v47, %v4904_v12  ;;  %v3138_v6 = vmax.f32 %v3137_v1, %v4912_v8 }
 0x457   : > { %v5042_v48 = vpop.f32.mrf.mxu0  ;;  %v5044_v62 = vpop.f32.mrf.mxu1  ;;  %v3065_v11 = vmax.f32 %v3064_v5, %v4918_v15  ;;  %v5449_v5 = vld [vmem:[#allocation4_spill] sm:$0xff] }
 0x458   : > { %v3028_v7 = vmax.f32 %v3027_v2, %v4914_v10  ;;  %v3102_v40 = vmax.f32 %v3101_v42, %v4916_v13  ;;  %v3139_v20 = vmax.f32 %v3138_v6, %v4920_v31  ;;  %v5447_v2 = vld [vmem:[#allocation2_spill] sm:$0xff]  ;;  %v5448_v42 = vld [vmem:[#allocation3_spill] sm:$0xff]  ;;  %v5450_v6 = vld [vmem:[#allocation5_spill] sm:$0xff] }
 0x459   : > { %v5050_v50 = vpop.f32.mrf.mxu0  ;;  %v5052_v4 = vpop.f32.mrf.mxu1  ;;  %v3066_v8 = vmax.f32 %v3065_v11, %v4930_v19  ;;  %v5451_v11 = vld [vmem:[#allocation6_spill] sm:$0xff] }
 0x45a   : > { %v3029_v12 = vmax.f32 %v3028_v7, %v4922_v17  ;;  %v3103_v16 = vmax.f32 %v3102_v40, %v4924_v18  ;;  %v3140_v10 = vmax.f32 %v3139_v20, %v4932_v21  ;;  %v5452_v20 = vld [vmem:[#allocation7_spill] sm:$0xff] }
 0x45b   : > { %v5058_v54 = vpop.f32.mrf.mxu0  ;;  %v5060_v9 = vpop.f32.mrf.mxu1  ;;  %v3067_v31 = vmax.f32 %v3066_v8, %v4938_v25 }
 0x45c   : > { %v3030_v13 = vmax.f32 %v3029_v12, %v4934_v23  ;;  %v3104_v36 = vmax.f32 %v3103_v16, %v4936_v24  ;;  %v3141_v17 = vmax.f32 %v3140_v10, %v4940_v26  ;;  %v5453_v12 = vld [vmem:[#allocation8_spill] sm:$0xff]  ;;  %v5454_v10 = vld [vmem:[#allocation9_spill] sm:$0xff] }
 0x45d   : > { %v5066_v22 = vpop.f32.mrf.mxu0  ;;  %v5068_v14 = vpop.f32.mrf.mxu1  ;;  %v3068_v21 = vmax.f32 %v3067_v31, %v4950_v29 }
 0x45e   : > { %v3031_v18 = vmax.f32 %v3030_v13, %v4942_v27  ;;  %v3105_v52 = vmax.f32 %v3104_v36, %v4944_v28  ;;  %v3142_v23 = vmax.f32 %v3141_v17, %v4952_v30  ;;  %v5455_v36 = vld [vmem:[#allocation10_spill] sm:$0xff]  ;;  %v5456_v17 = vld [vmem:[#allocation11_spill] sm:$0xff] }
 0x45f   : > { %v5074_v63 = vpop.f32.mrf.mxu0  ;;  %v5076_v15 = vpop.f32.mrf.mxu1  ;;  %v3069_v26 = vmax.f32 %v3068_v21, %v4958_v34 }
 0x460   : > { %v3032_v24 = vmax.f32 %v3031_v18, %v4954_v32  ;;  %v3106_v57 = vmax.f32 %v3105_v52, %v4956_v33  ;;  %v3143_v27 = vmax.f32 %v3142_v23, %v4960_v35  ;;  %v5457_v52 = vld [vmem:[#allocation12_spill] sm:$0xff] }
 0x461   : > { %v5082_v55 = vpop.f32.mrf.mxu0  ;;  %v5084_v19 = vpop.f32.mrf.mxu1  ;;  %v3070_v30 = vmax.f32 %v3069_v26, %v4970_v41  ;;  %v5458_v26 = vld [vmem:[#allocation13_spill] sm:$0xff] }
 0x462   : > { %v3033_v28 = vmax.f32 %v3032_v24, %v4962_v37  ;;  %v3107_v60 = vmax.f32 %v3106_v57, %v4964_v39  ;;  %v3144_v32 = vmax.f32 %v3143_v27, %v4972_v43 }
 0x463   : > { %v5090_v59 = vpop.f32.mrf.mxu0  ;;  %v5092_v25 = vpop.f32.mrf.mxu1  ;;  %v3071_v34 = vmax.f32 %v3070_v30, %v5447_v2 }
 0x464   : > { %v3034_v33 = vmax.f32 %v3033_v28, %v4974_v44  ;;  %v3108_v47 = vmax.f32 %v3107_v60, %v4976_v46  ;;  %v3145_v35 = vmax.f32 %v3144_v32, %v5448_v42 }
 0x465   : > { %v2394_v61 = vpop.f32.mrf.mxu0  ;;  %v2587_v29 = vpop.f32.mrf.mxu1  ;;  %v3072_v41 = vmax.f32 %v3071_v34, %v5451_v11 }
 0x466   : > { %v3035_v37 = vmax.f32 %v3034_v33, %v5449_v5  ;;  %v3109_v39 = vmax.f32 %v3108_v47, %v5450_v6  ;;  %v3146_v43 = vmax.f32 %v3145_v35, %v5452_v20 }
 0x467   : > { %v2396_v0 = vpop.f32.mrf.mxu0  ;;  %v2589_v1 = vpop.f32.mrf.mxu1  ;;  %v3073_v13 = vmax.f32 %v3072_v41, %v5454_v10 }
 0x468   : > { %v3036_v44 = vmax.f32 %v3035_v37, %v4992_v51  ;;  %v3110_v46 = vmax.f32 %v3109_v39, %v5453_v12  ;;  %v3147_v31 = vmax.f32 %v3146_v43, %v5455_v36 }
 0x469   : > { %v2398_v7 = vpop.f32.mrf.mxu0  ;;  %v2591_v40 = vpop.f32.mrf.mxu1  ;;  %v3074_v57 = vmax.f32 %v3073_v13, %v5008_v56 }
 0x46a   : > { %v3037_v18 = vmax.f32 %v3036_v44, %v5456_v17  ;;  %v3111_v21 = vmax.f32 %v3110_v46, %v5457_v52  ;;  %v3148_v27 = vmax.f32 %v3147_v31, %v5458_v26 }
 0x46b   : > { %v2400_v16 = vpop.f32.mrf.mxu0  ;;  %v2593_v8 = vpop.f32.mrf.mxu1  ;;  %v3075_v32 = vmax.f32 %v3074_v57, %v5026_v38 }
 0x46c   : > { %v3038_v51 = vmax.f32 %v3037_v18, %v5018_v53  ;;  %v3112_v28 = vmax.f32 %v3111_v21, %v5020_v3  ;;  %v3149_v33 = vmax.f32 %v3148_v27, %v5028_v45 }
 0x46d   : > { %v2404_v23 = vpop.f32.mrf.mxu0  ;;  %v2597_v24 = vpop.f32.mrf.mxu1  ;;  %v3076_v56 = vmax.f32 %v3075_v32, %v5042_v48 }
 0x46e   : > { %v3039_v47 = vmax.f32 %v3038_v51, %v5034_v49  ;;  %v3113_v2 = vmax.f32 %v3112_v28, %v5036_v58  ;;  %v3150_v35 = vmax.f32 %v3149_v33, %v5044_v62 }
 0x46f   : > { %v2406_v60 = vpop.f32.mrf.mxu0  ;;  %v2599_v30 = vpop.f32.mrf.mxu1  ;;  %v3077_v38 = vmax.f32 %v3076_v56, %v5058_v54 }
 0x470   : > { %v3040_v53 = vmax.f32 %v3039_v47, %v5050_v50  ;;  %v3114_v3 = vmax.f32 %v3113_v2, %v5052_v4  ;;  %v3151_v45 = vmax.f32 %v3150_v35, %v5060_v9 }
 0x471   : > { %v2408_v34 = vpop.f32.mrf.mxu0  ;;  %v2601_v42 = vpop.f32.mrf.mxu1  ;;  %v3078_v48 = vmax.f32 %v3077_v38, %v5074_v63 }
 0x472   : > { %v3041_v49 = vmax.f32 %v3040_v53, %v5066_v22  ;;  %v3115_v58 = vmax.f32 %v3114_v3, %v5068_v14  ;;  %v3152_v62 = vmax.f32 %v3151_v45, %v5076_v15 }
 0x473   : > { %v2410_v5 = vpop.f32.mrf.mxu0  ;;  %v2603_v37 = vpop.f32.mrf.mxu1  ;;  %v3079_v54 = vmax.f32 %v3078_v48, %v5090_v59 }
 0x474   : > { %v3042_v50 = vmax.f32 %v3041_v49, %v5082_v55  ;;  %v3116_v4 = vmax.f32 %v3115_v58, %v5084_v19  ;;  %v3153_v9 = vmax.f32 %v3152_v62, %v5092_v25 }
 0x475   : > { %v2414_v6 = vpop.f32.mrf.mxu0  ;;  %v2607_v39 = vpop.f32.mrf.mxu1  ;;  %v3080_v44 = vmax.f32 %v3079_v54, %v2396_v0 }
 0x476   : > { %v3043_v20 = vmax.f32 %v3042_v50, %v2394_v61  ;;  %v3117_v22 = vmax.f32 %v3116_v4, %v2587_v29  ;;  %v3154_v12 = vmax.f32 %v3153_v9, %v2589_v1 }
 0x477   : > { %v2416_v11 = vpop.f32.mrf.mxu0  ;;  %v2609_v41 = vpop.f32.mrf.mxu1  ;;  %v3081_v13 = vmax.f32 %v3080_v44, %v2400_v16 }
 0x478   : > { %v3044_v46 = vmax.f32 %v3043_v20, %v2398_v7  ;;  %v3118_v63 = vmax.f32 %v3117_v22, %v2591_v40  ;;  %v3155_v55 = vmax.f32 %v3154_v12, %v2593_v8 }
 0x479   : > { %v2418_v43 = vpop.f32.mrf.mxu0  ;;  %v2611_v14 = vpop.f32.mrf.mxu1  ;;  %v3082_v18 = vmax.f32 %v3081_v13, %v2406_v60 }
 0x47a   : > { %v3045_v36 = vmax.f32 %v3044_v46, %v2404_v23  ;;  %v3119_v19 = vmax.f32 %v3118_v63, %v2597_v24  ;;  %v3156_v59 = vmax.f32 %v3155_v55, %v2599_v30 }
 0x47b   : > { %v2420_v10 = vpop.f32.mrf.mxu0  ;;  %v2613_v15 = vpop.f32.mrf.mxu1  ;;  %v3083_v21 = vmax.f32 %v3082_v18, %v2410_v5 }
 0x47c   : > { %v3046_v52 = vmax.f32 %v3045_v36, %v2408_v34  ;;  %v3120_v25 = vmax.f32 %v3119_v19, %v2601_v42  ;;  %v3157_v57 = vmax.f32 %v3156_v59, %v2603_v37 }
 0x47d   : > { %v2424_v31 = vpop.f32.mrf.mxu0  ;;  %v2617_v17 = vpop.f32.mrf.mxu1  ;;  %v3084_v26 = vmax.f32 %v3083_v21, %v2416_v11 }
 0x47e   : > { %v3047_v0 = vmax.f32 %v3046_v52, %v2414_v6  ;;  %v3121_v1 = vmax.f32 %v3120_v25, %v2607_v39  ;;  %v3158_v27 = vmax.f32 %v3157_v57, %v2609_v41 }
 0x47f   : > { %v2426_v61 = vpop.f32.mrf.mxu0  ;;  %v2619_v29 = vpop.f32.mrf.mxu1  ;;  %v3085_v51 = vmax.f32 %v3084_v26, %v2420_v10 }
 0x480   : > { %v3048_v16 = vmax.f32 %v3047_v0, %v2418_v43  ;;  %v3122_v8 = vmax.f32 %v3121_v1, %v2611_v14  ;;  %v3159_v28 = vmax.f32 %v3158_v27, %v2613_v15 }
 0x481   : > { %v2428_v7 = vpop.f32.mrf.mxu0  ;;  %v2621_v40 = vpop.f32.mrf.mxu1  ;;  %v3086_v47 = vmax.f32 %v3085_v51, %v2426_v61 }
 0x482   : > { %v3049_v60 = vmax.f32 %v3048_v16, %v2424_v31  ;;  %v3123_v30 = vmax.f32 %v3122_v8, %v2617_v17  ;;  %v3160_v2 = vmax.f32 %v3159_v28, %v2619_v29 }
 0x483   : > { %v2430_v23 = vpop.f32.mrf.mxu0  ;;  %v2623_v24 = vpop.f32.mrf.mxu1 }
 0x484   : > { %v3050_v34 = vmax.f32 %v3049_v60, %v2428_v7  ;;  %v3124_v42 = vmax.f32 %v3123_v30, %v2621_v40  ;;  %v3087_v53 = vmax.f32 %v3086_v47, %v2430_v23  ;;  %v3161_v3 = vmax.f32 %v3160_v2, %v2623_v24 }
 0x485   : > { %v2434_v32 = vpop.f32.mrf.mxu0  ;;  %v2627_v33 = vpop.f32.mrf.mxu1 }
 0x486   : > { %v3051_v5 = vmax.f32 %v3050_v34, %v2434_v32  ;;  %v3125_v37 = vmax.f32 %v3124_v42, %v2627_v33 }
 0x487   : > { %v2436_v56 = vpop.f32.mrf.mxu0  ;;  %v2629_v35 = vpop.f32.mrf.mxu1 }
 0x488   : > { %v3088_v49 = vmax.f32 %v3087_v53, %v2436_v56  ;;  %v3162_v58 = vmax.f32 %v3161_v3, %v2629_v35 }
 0x489   : > { %v2438_v38 = vpop.f32.mrf.mxu0  ;;  %v2631_v45 = vpop.f32.mrf.mxu1 }
 0x48a   : > { %v3052_v6 = vmax.f32 %v3051_v5, %v2438_v38  ;;  %v3126_v39 = vmax.f32 %v3125_v37, %v2631_v45 }
 0x48b   : > { %v2440_v48 = vpop.f32.mrf.mxu0  ;;  %v2633_v62 = vpop.f32.mrf.mxu1 }
 0x48c   : > { %v3053_v50 = vrot.slane %v3052_v6, 4  ;;  %v3127_v4 = vrot.slane %v3126_v39, 4  ;;  %v3089_v11 = vmax.f32 %v3088_v49, %v2440_v48  ;;  %v3163_v41 = vmax.f32 %v3162_v58, %v2633_v62 }
 0x48d   : > { %v5136_v54 = vpop.f32.mrf.mxu0  ;;  %v5138_v9 = vpop.f32.mrf.mxu1 }
 0x48e   : > { %v3054_v20 = vmax.f32 %v3052_v6, %v3053_v50  ;;  %v3128_v22 = vmax.f32 %v3126_v39, %v3127_v4  ;;  %v3090_v43 = vrot.slane %v3089_v11, 4  ;;  %v3164_v14 = vrot.slane %v3163_v41, 4 }
 0x48f   : > { %v5140_v44 = vpop.f32.mrf.mxu0  ;;  %v5142_v12 = vpop.f32.mrf.mxu1 }
 0x490   : > { %v3055_v46 = vrot.slane %v3054_v20, 2  ;;  %v3129_v63 = vrot.slane %v3128_v22, 2  ;;  %v3091_v10 = vmax.f32 %v3089_v11, %v3090_v43  ;;  %v3165_v15 = vmax.f32 %v3163_v41, %v3164_v14 }
 0x491   : > { %v5144_v13 = vpop.f32.mrf.mxu0  ;;  %v5146_v55 = vpop.f32.mrf.mxu1 }
 0x492   : > { %v3056_v36 = vmax.f32 %v3054_v20, %v3055_v46  ;;  %v3130_v19 = vmax.f32 %v3128_v22, %v3129_v63  ;;  %v3092_v31 = vrot.slane %v3091_v10, 2  ;;  %v3166_v17 = vrot.slane %v3165_v15, 2 }
 0x493   : > { %v5149_v18 = vpop.f32.mrf.mxu0  ;;  %v5151_v59 = vpop.f32.mrf.mxu1 }
 0x494   : > { %v3057_v52 = vrot.slane %v3056_v36, 1  ;;  %v3131_v25 = vrot.slane %v3130_v19, 1  ;;  %v3093_v61 = vmax.f32 %v3091_v10, %v3092_v31  ;;  %v3167_v29 = vmax.f32 %v3165_v15, %v3166_v17 }
 0x495   : > { %v5158_v21 = vpop.f32.mrf.mxu0  ;;  %v5160_v57 = vpop.f32.mrf.mxu1 }
 0x496   : > { %v3058_v0 = vmax.f32 %v3056_v36, %v3057_v52  ;;  %v3132_v1 = vmax.f32 %v3130_v19, %v3131_v25  ;;  %v3094_v7 = vrot.slane %v3093_v61, 1  ;;  %v3168_v40 = vrot.slane %v3167_v29, 1 }
 0x497   : > { %v5162_v26 = vpop.f32.mrf.mxu0  ;;  %v5164_v27 = vpop.f32.mrf.mxu1 }
 0x498   : > { %3318 = vst [vmem:[%s5156_s23] sm:$0xff] %v3058_v0  ;;  %3320 = vst [vmem:[%s5156_s23 + $0x10] sm:$0xff] %v3132_v1  ;;  %v3095_v16 = vmax.f32 %v3093_v61, %v3094_v7  ;;  %v3169_v8 = vmax.f32 %v3167_v29, %v3168_v40 }
 0x499   : > { %v5168_v23 = vpop.f32.mrf.mxu0  ;;  %v5170_v24 = vpop.f32.mrf.mxu1 }
 0x49a   : > { %3319 = vst [vmem:[%s5156_s23 + $0x8] sm:$0xff] %v3095_v16  ;;  %3321 = vst [vmem:[%s5156_s23 + $0x18] sm:$0xff] %v3169_v8 }
 0x49b   : > { %v5174_v51 = vpop.f32.mrf.mxu0  ;;  %v5176_v28 = vpop.f32.mrf.mxu1 }
 0x49d   : > { %v5178_v60 = vpop.f32.mrf.mxu0  ;;  %v5180_v30 = vpop.f32.mrf.mxu1 }
 0x49f   : > { %v5182_v32 = vpop.f32.mrf.mxu0  ;;  %v5184_v33 = vpop.f32.mrf.mxu1 }
 0x4a1   : > { %v5186_v47 = vpop.f32.mrf.mxu0  ;;  %v5188_v2 = vpop.f32.mrf.mxu1 }
 0x4a3   : > { %v5190_v34 = vpop.f32.mrf.mxu0  ;;  %v5192_v42 = vpop.f32.mrf.mxu1 }
 0x4a5   : > { %v5194_v56 = vpop.f32.mrf.mxu0  ;;  %v5196_v35 = vpop.f32.mrf.mxu1 }
 0x4a7   : > { %v5198_v53 = vpop.f32.mrf.mxu0  ;;  %v5200_v3 = vpop.f32.mrf.mxu1 }
 0x4a9   : > { %v5202_v5 = vpop.f32.mrf.mxu0  ;;  %v5204_v37 = vpop.f32.mrf.mxu1 }
 0x4ab   : > { %v5206_v38 = vpop.f32.mrf.mxu0  ;;  %v5208_v45 = vpop.f32.mrf.mxu1 }
 0x4ad   : > { %v5210_v49 = vpop.f32.mrf.mxu0  ;;  %v5212_v58 = vpop.f32.mrf.mxu1 }
 0x4af   : > { %v5214_v6 = vpop.f32.mrf.mxu0  ;;  %v5216_v39 = vpop.f32.mrf.mxu1 }
 0x4b1   : > { %v5218_v48 = vpop.f32.mrf.mxu0  ;;  %v5220_v62 = vpop.f32.mrf.mxu1 }
 0x4b3   : > { %v5222_v50 = vpop.f32.mrf.mxu0  ;;  %v5224_v4 = vpop.f32.mrf.mxu1 }
 0x4b5   : > { %v5226_v11 = vpop.f32.mrf.mxu0  ;;  %v5228_v41 = vpop.f32.mrf.mxu1 }
 0x4b7   : > { %v5230_v20 = vpop.f32.mrf.mxu0  ;;  %v5232_v22 = vpop.f32.mrf.mxu1 }
 0x4b9   : > { %v5234_v43 = vpop.f32.mrf.mxu0  ;;  %v5236_v14 = vpop.f32.mrf.mxu1 }
 0x4bb   : > { %v5238_v46 = vpop.f32.mrf.mxu0  ;;  %v5240_v63 = vpop.f32.mrf.mxu1 }
 0x4bd   : > { %v5242_v10 = vpop.f32.mrf.mxu0  ;;  %v5244_v15 = vpop.f32.mrf.mxu1 }
 0x4bf   : > { %v5246_v36 = vpop.f32.mrf.mxu0  ;;  %v5248_v19 = vpop.f32.mrf.mxu1 }
 0x4c1   : > { %v5250_v31 = vpop.f32.mrf.mxu0  ;;  %v5252_v17 = vpop.f32.mrf.mxu1 }
 0x4c2   : > { %5459 = vst [vmem:[#allocation2_spill] sm:$0xff] %v5252_v17 }
 0x4c3   : > { %v5254_v52 = vpop.f32.mrf.mxu0  ;;  %v5256_v25 = vpop.f32.mrf.mxu1 }
 0x4c4   : > { %5460 = vst [vmem:[#allocation3_spill] sm:$0xff] %v5254_v52 }
 0x4c5   : > { %v5258_v61 = vpop.f32.mrf.mxu0  ;;  %v5260_v29 = vpop.f32.mrf.mxu1 }
 0x4c6   : > { %5461 = vst [vmem:[#allocation4_spill] sm:$0xff] %v5258_v61  ;;  %5462 = vst [vmem:[#allocation5_spill] sm:$0xff] %v5260_v29  ;;  %v3170_v61 = vmax.f32 %v5136_v54, %v5144_v13 }
 0x4c7   : > { %v5262_v0 = vpop.f32.mrf.mxu0  ;;  %v5264_v1 = vpop.f32.mrf.mxu1 }
 0x4c8   : > { %5463 = vst [vmem:[#allocation6_spill] sm:$0xff] %v5262_v0  ;;  %5464 = vst [vmem:[#allocation7_spill] sm:$0xff] %v5264_v1  ;;  %v3244_v0 = vmax.f32 %v5138_v9, %v5146_v55 }
 0x4c9   : > { %v5266_v7 = vpop.f32.mrf.mxu0  ;;  %v5268_v40 = vpop.f32.mrf.mxu1 }
 0x4ca   : > { %5465 = vst [vmem:[#allocation8_spill] sm:$0xff] %v5268_v40  ;;  %v3207_v40 = vmax.f32 %v5140_v44, %v5149_v18 }
 0x4cb   : > { %v5270_v16 = vpop.f32.mrf.mxu0  ;;  %v5272_v8 = vpop.f32.mrf.mxu1 }
 0x4cc   : > { %5466 = vst [vmem:[#allocation9_spill] sm:$0xff] %v5270_v16  ;;  %5467 = vst [vmem:[#allocation10_spill] sm:$0xff] %v5272_v8  ;;  %v3281_v8 = vmax.f32 %v5142_v12, %v5151_v59  ;;  %v3208_v9 = vmax.f32 %v3207_v40, %v5162_v26 }
 0x4cd   : > { %v5274_v17 = vpop.f32.mrf.mxu0  ;;  %v5276_v52 = vpop.f32.mrf.mxu1 }
 0x4ce   : > { %5468 = vst [vmem:[#allocation11_spill] sm:$0xff] %v5274_v17  ;;  %5469 = vst [vmem:[#allocation12_spill] sm:$0xff] %v5276_v52  ;;  %v3171_v17 = vmax.f32 %v3170_v61, %v5158_v21  ;;  %v3245_v52 = vmax.f32 %v3244_v0, %v5160_v57  ;;  %v3282_v13 = vmax.f32 %v3281_v8, %v5164_v27 }
 0x4cf   : > { %v5282_v29 = vpop.f32.mrf.mxu0  ;;  %v5284_v1 = vpop.f32.mrf.mxu1  ;;  %v3209_v12 = vmax.f32 %v3208_v9, %v5174_v51 }
 0x4d0   : > { %5470 = vst [vmem:[#allocation13_spill] sm:$0xff] %v5284_v1  ;;  %v3172_v55 = vmax.f32 %v3171_v17, %v5168_v23  ;;  %v3246_v1 = vmax.f32 %v3245_v52, %v5170_v24  ;;  %v3283_v59 = vmax.f32 %v3282_v13, %v5176_v28 }
 0x4d1   : > { %v5292_v16 = vpop.f32.mrf.mxu0  ;;  %v5294_v54 = vpop.f32.mrf.mxu1  ;;  %v3210_v27 = vmax.f32 %v3209_v12, %v5182_v32 }
 0x4d2   : > { %v3173_v21 = vmax.f32 %v3172_v55, %v5178_v60  ;;  %v3247_v57 = vmax.f32 %v3246_v1, %v5180_v30  ;;  %v3284_v23 = vmax.f32 %v3283_v59, %v5184_v33 }
 0x4d3   : > { %v5300_v44 = vpop.f32.mrf.mxu0  ;;  %v5302_v18 = vpop.f32.mrf.mxu1  ;;  %v3211_v28 = vmax.f32 %v3210_v27, %v5190_v34 }
 0x4d4   : > { %v3174_v24 = vmax.f32 %v3173_v21, %v5186_v47  ;;  %v3248_v17 = vmax.f32 %v3247_v57, %v5188_v2  ;;  %v3285_v60 = vmax.f32 %v3284_v23, %v5192_v42 }
 0x4d5   : > { %v5308_v61 = vpop.f32.mrf.mxu0  ;;  %v5310_v26 = vpop.f32.mrf.mxu1  ;;  %v3212_v33 = vmax.f32 %v3211_v28, %v5198_v53 }
 0x4d6   : > { %v3175_v30 = vmax.f32 %v3174_v24, %v5194_v56  ;;  %v3249_v0 = vmax.f32 %v3248_v17, %v5196_v35  ;;  %v3286_v47 = vmax.f32 %v3285_v60, %v5200_v3  ;;  %v5471_v17 = vld [vmem:[#allocation2_spill] sm:$0xff] }
 0x4d7   : > { %v5316_v52 = vpop.f32.mrf.mxu0  ;;  %v5318_v51 = vpop.f32.mrf.mxu1  ;;  %v3213_v42 = vmax.f32 %v3212_v33, %v5206_v38  ;;  %v5473_v33 = vld [vmem:[#allocation4_spill] sm:$0xff] }
 0x4d8   : > { %v3176_v2 = vmax.f32 %v3175_v30, %v5202_v5  ;;  %v3250_v40 = vmax.f32 %v3249_v0, %v5204_v37  ;;  %v3287_v56 = vmax.f32 %v3286_v47, %v5208_v45  ;;  %v5472_v0 = vld [vmem:[#allocation3_spill] sm:$0xff]  ;;  %v5474_v47 = vld [vmem:[#allocation5_spill] sm:$0xff] }
 0x4d9   : > { %v5324_v1 = vpop.f32.mrf.mxu0  ;;  %v5326_v32 = vpop.f32.mrf.mxu1  ;;  %v3214_v3 = vmax.f32 %v3213_v42, %v5214_v6  ;;  %v5475_v42 = vld [vmem:[#allocation6_spill] sm:$0xff] }
 0x4da   : > { %v3177_v35 = vmax.f32 %v3176_v2, %v5210_v49  ;;  %v3251_v9 = vmax.f32 %v3250_v40, %v5212_v58  ;;  %v3288_v5 = vmax.f32 %v3287_v56, %v5216_v39  ;;  %v5476_v56 = vld [vmem:[#allocation7_spill] sm:$0xff] }
 0x4db   : > { %v5332_v8 = vpop.f32.mrf.mxu0  ;;  %v5334_v34 = vpop.f32.mrf.mxu1  ;;  %v3215_v45 = vmax.f32 %v3214_v3, %v5222_v50 }
 0x4dc   : > { %v3178_v37 = vmax.f32 %v3177_v35, %v5218_v48  ;;  %v3252_v55 = vmax.f32 %v3251_v9, %v5220_v62  ;;  %v3289_v49 = vmax.f32 %v3288_v5, %v5224_v4  ;;  %v5477_v35 = vld [vmem:[#allocation8_spill] sm:$0xff] }
 0x4dd   : > { %v5340_v13 = vpop.f32.mrf.mxu0  ;;  %v5342_v53 = vpop.f32.mrf.mxu1  ;;  %v3216_v39 = vmax.f32 %v3215_v45, %v5230_v20  ;;  %v5479_v45 = vld [vmem:[#allocation10_spill] sm:$0xff] }
 0x4de   : > { %v3179_v58 = vmax.f32 %v3178_v37, %v5226_v11  ;;  %v3253_v59 = vmax.f32 %v3252_v55, %v5228_v41  ;;  %v3290_v48 = vmax.f32 %v3289_v49, %v5232_v22  ;;  %v5478_v37 = vld [vmem:[#allocation9_spill] sm:$0xff]  ;;  %v5480_v49 = vld [vmem:[#allocation11_spill] sm:$0xff] }
 0x4df   : > { %v5348_v12 = vpop.f32.mrf.mxu0  ;;  %v5350_v38 = vpop.f32.mrf.mxu1  ;;  %v3217_v4 = vmax.f32 %v3216_v39, %v5238_v46 }
 0x4e0   : > { %v3180_v62 = vmax.f32 %v3179_v58, %v5234_v43  ;;  %v3254_v57 = vmax.f32 %v3253_v59, %v5236_v14  ;;  %v3291_v11 = vmax.f32 %v3290_v48, %v5240_v63  ;;  %v5481_v59 = vld [vmem:[#allocation12_spill] sm:$0xff] }
 0x4e1   : > { %v5356_v21 = vpop.f32.mrf.mxu0  ;;  %v5358_v6 = vpop.f32.mrf.mxu1  ;;  %v3218_v22 = vmax.f32 %v3217_v4, %v5246_v36  ;;  %v5482_v4 = vld [vmem:[#allocation13_spill] sm:$0xff] }
 0x4e2   : > { %v3181_v41 = vmax.f32 %v3180_v62, %v5242_v10  ;;  %v3255_v23 = vmax.f32 %v3254_v57, %v5244_v15  ;;  %v3292_v43 = vmax.f32 %v3291_v11, %v5248_v19 }
 0x4e3   : > { %v5364_v27 = vpop.f32.mrf.mxu0  ;;  %v5366_v50 = vpop.f32.mrf.mxu1  ;;  %v3219_v46 = vmax.f32 %v3218_v22, %v5472_v0 }
 0x4e4   : > { %v3182_v14 = vmax.f32 %v3181_v41, %v5250_v31  ;;  %v3256_v28 = vmax.f32 %v3255_v23, %v5471_v17  ;;  %v3293_v63 = vmax.f32 %v3292_v43, %v5256_v25 }
 0x4e5   : > { %v2780_v24 = vpop.f32.mrf.mxu0  ;;  %v2973_v20 = vpop.f32.mrf.mxu1  ;;  %v3220_v36 = vmax.f32 %v3219_v46, %v5475_v42 }
 0x4e6   : > { %v3183_v10 = vmax.f32 %v3182_v14, %v5473_v33  ;;  %v3257_v15 = vmax.f32 %v3256_v28, %v5474_v47  ;;  %v3294_v19 = vmax.f32 %v3293_v63, %v5476_v56 }
 0x4e7   : > { %v2782_v60 = vpop.f32.mrf.mxu0  ;;  %v2975_v30 = vpop.f32.mrf.mxu1  ;;  %v3221_v55 = vmax.f32 %v3220_v36, %v5478_v37 }
 0x4e8   : > { %v3184_v31 = vmax.f32 %v3183_v10, %v5266_v7  ;;  %v3258_v9 = vmax.f32 %v3257_v15, %v5477_v35  ;;  %v3295_v25 = vmax.f32 %v3294_v19, %v5479_v45 }
 0x4e9   : > { %v2784_v2 = vpop.f32.mrf.mxu0  ;;  %v2977_v40 = vpop.f32.mrf.mxu1  ;;  %v3222_v57 = vmax.f32 %v3221_v55, %v5282_v29 }
 0x4ea   : > { %v3185_v58 = vmax.f32 %v3184_v31, %v5480_v49  ;;  %v3259_v39 = vmax.f32 %v3258_v9, %v5481_v59  ;;  %v3296_v11 = vmax.f32 %v3295_v25, %v5482_v4 }
 0x4eb   : > { %v2786_v3 = vpop.f32.mrf.mxu0  ;;  %v2979_v5 = vpop.f32.mrf.mxu1  ;;  %v3223_v43 = vmax.f32 %v3222_v57, %v5300_v44 }
 0x4ec   : > { %v3186_v7 = vmax.f32 %v3185_v58, %v5292_v16  ;;  %v3260_v41 = vmax.f32 %v3259_v39, %v5294_v54  ;;  %v3297_v14 = vmax.f32 %v3296_v11, %v5302_v18 }
 0x4ed   : > { %v2790_v48 = vpop.f32.mrf.mxu0  ;;  %v2983_v62 = vpop.f32.mrf.mxu1  ;;  %v3224_v29 = vmax.f32 %v3223_v43, %v5316_v52 }
 0x4ee   : > { %v3187_v17 = vmax.f32 %v3186_v7, %v5308_v61  ;;  %v3261_v28 = vmax.f32 %v3260_v41, %v5310_v26  ;;  %v3298_v63 = vmax.f32 %v3297_v14, %v5318_v51 }
 0x4ef   : > { %v2792_v23 = vpop.f32.mrf.mxu0  ;;  %v2985_v22 = vpop.f32.mrf.mxu1  ;;  %v3225_v44 = vmax.f32 %v3224_v29, %v5332_v8 }
 0x4f0   : > { %v3188_v16 = vmax.f32 %v3187_v17, %v5324_v1  ;;  %v3262_v54 = vmax.f32 %v3261_v28, %v5326_v32  ;;  %v3299_v18 = vmax.f32 %v3298_v63, %v5334_v34 }
 0x4f1   : > { %v2794_v0 = vpop.f32.mrf.mxu0  ;;  %v2987_v46 = vpop.f32.mrf.mxu1  ;;  %v3226_v52 = vmax.f32 %v3225_v44, %v5348_v12 }
 0x4f2   : > { %v3189_v61 = vmax.f32 %v3188_v16, %v5340_v13  ;;  %v3263_v26 = vmax.f32 %v3262_v54, %v5342_v53  ;;  %v3300_v51 = vmax.f32 %v3299_v18, %v5350_v38 }
 0x4f3   : > { %v2796_v33 = vpop.f32.mrf.mxu0  ;;  %v2989_v10 = vpop.f32.mrf.mxu1  ;;  %v3227_v8 = vmax.f32 %v3226_v52, %v5364_v27 }
 0x4f4   : > { %v3190_v1 = vmax.f32 %v3189_v61, %v5356_v21  ;;  %v3264_v32 = vmax.f32 %v3263_v26, %v5358_v6  ;;  %v3301_v34 = vmax.f32 %v3300_v51, %v5366_v50 }
 0x4f5   : > { %v2800_v47 = vpop.f32.mrf.mxu0  ;;  %v2993_v15 = vpop.f32.mrf.mxu1  ;;  %v3228_v31 = vmax.f32 %v3227_v8, %v2782_v60 }
 0x4f6   : > { %v3191_v56 = vmax.f32 %v3190_v1, %v2780_v24  ;;  %v3265_v13 = vmax.f32 %v3264_v32, %v2973_v20  ;;  %v3302_v35 = vmax.f32 %v3301_v34, %v2975_v30 }
 0x4f7   : > { %v2802_v42 = vpop.f32.mrf.mxu0  ;;  %v2995_v36 = vpop.f32.mrf.mxu1  ;;  %v3229_v55 = vmax.f32 %v3228_v31, %v2786_v3 }
 0x4f8   : > { %v3192_v9 = vmax.f32 %v3191_v56, %v2784_v2  ;;  %v3266_v12 = vmax.f32 %v3265_v13, %v2977_v40  ;;  %v3303_v21 = vmax.f32 %v3302_v35, %v2979_v5 }
 0x4f9   : > { %v2804_v19 = vpop.f32.mrf.mxu0  ;;  %v2997_v53 = vpop.f32.mrf.mxu1  ;;  %v3230_v58 = vmax.f32 %v3229_v55, %v2792_v23 }
 0x4fa   : > { %v3193_v45 = vmax.f32 %v3192_v9, %v2790_v48  ;;  %v3267_v6 = vmax.f32 %v3266_v12, %v2983_v62  ;;  %v3304_v27 = vmax.f32 %v3303_v21, %v2985_v22 }
 0x4fb   : > { %v2806_v37 = vpop.f32.mrf.mxu0  ;;  %v2999_v38 = vpop.f32.mrf.mxu1  ;;  %v3231_v39 = vmax.f32 %v3230_v58, %v2796_v33 }
 0x4fc   : > { %v3194_v59 = vmax.f32 %v3193_v45, %v2794_v0  ;;  %v3268_v50 = vmax.f32 %v3267_v6, %v2987_v46  ;;  %v3305_v57 = vmax.f32 %v3304_v27, %v2989_v10 }
 0x4fd   : > { %v2810_v25 = vpop.f32.mrf.mxu0  ;;  %v3003_v49 = vpop.f32.mrf.mxu1  ;;  %v3232_v4 = vmax.f32 %v3231_v39, %v2802_v42 }
 0x4fe   : > { %v3195_v60 = vmax.f32 %v3194_v59, %v2800_v47  ;;  %v3269_v30 = vmax.f32 %v3268_v50, %v2993_v15  ;;  %v3306_v11 = vmax.f32 %v3305_v57, %v2995_v36 }
 0x4ff   : > { %v2812_v24 = vpop.f32.mrf.mxu0  ;;  %v3005_v20 = vpop.f32.mrf.mxu1  ;;  %v3233_v7 = vmax.f32 %v3232_v4, %v2806_v37 }
 0x500   : > { %v3196_v3 = vmax.f32 %v3195_v60, %v2804_v19  ;;  %v3270_v5 = vmax.f32 %v3269_v30, %v2997_v53  ;;  %v3307_v41 = vmax.f32 %v3306_v11, %v2999_v38 }
 0x501   : > { %v2814_v2 = vpop.f32.mrf.mxu0  ;;  %v3007_v40 = vpop.f32.mrf.mxu1  ;;  %v3234_v17 = vmax.f32 %v3233_v7, %v2812_v24 }
 0x502   : > { %v3197_v23 = vmax.f32 %v3196_v3, %v2810_v25  ;;  %v3271_v22 = vmax.f32 %v3270_v5, %v3003_v49  ;;  %v3308_v28 = vmax.f32 %v3307_v41, %v3005_v20 }
 0x503   : > { %v2816_v48 = vpop.f32.mrf.mxu0  ;;  %v3009_v62 = vpop.f32.mrf.mxu1 }
 0x504   : > { %v3198_v0 = vmax.f32 %v3197_v23, %v2814_v2  ;;  %v3272_v46 = vmax.f32 %v3271_v22, %v3007_v40  ;;  %v3235_v16 = vmax.f32 %v3234_v17, %v2816_v48  ;;  %v3309_v54 = vmax.f32 %v3308_v28, %v3009_v62 }
 0x505   : > { %v2820_v43 = vpop.f32.mrf.mxu0  ;;  %v3013_v14 = vpop.f32.mrf.mxu1 }
 0x506   : > { %v3199_v33 = vmax.f32 %v3198_v0, %v2820_v43  ;;  %v3273_v10 = vmax.f32 %v3272_v46, %v3013_v14 }
 0x507   : > { %v2822_v29 = vpop.f32.mrf.mxu0  ;;  %v3015_v63 = vpop.f32.mrf.mxu1 }
 0x508   : > { %v3236_v61 = vmax.f32 %v3235_v16, %v2822_v29  ;;  %v3310_v26 = vmax.f32 %v3309_v54, %v3015_v63 }
 0x509   : > { %v2824_v44 = vpop.f32.mrf.mxu0  ;;  %v3017_v18 = vpop.f32.mrf.mxu1 }
 0x50a   : > { %v3200_v47 = vmax.f32 %v3199_v33, %v2824_v44  ;;  %v3274_v15 = vmax.f32 %v3273_v10, %v3017_v18 }
 0x50b   : > { %v2826_v52 = vpop.f32.mrf.mxu0  ;;  %v3019_v51 = vpop.f32.mrf.mxu1 }
 0x50c   : > { %v3201_v1 = vrot.slane %v3200_v47, 4  ;;  %v3275_v32 = vrot.slane %v3274_v15, 4  ;;  %v3237_v42 = vmax.f32 %v3236_v61, %v2826_v52  ;;  %v3311_v36 = vmax.f32 %v3310_v26, %v3019_v51 }
 0x50e   : > { %v3202_v8 = vmax.f32 %v3200_v47, %v3201_v1  ;;  %v3276_v34 = vmax.f32 %v3274_v15, %v3275_v32  ;;  %v3238_v56 = vrot.slane %v3237_v42, 4  ;;  %v3312_v13 = vrot.slane %v3311_v36, 4 }
 0x510   : > { %v3203_v19 = vrot.slane %v3202_v8, 2  ;;  %v3277_v53 = vrot.slane %v3276_v34, 2  ;;  %v3239_v31 = vmax.f32 %v3237_v42, %v3238_v56  ;;  %v3313_v35 = vmax.f32 %v3311_v36, %v3312_v13 }
 0x512   : > { %v3204_v9 = vmax.f32 %v3202_v8, %v3203_v19  ;;  %v3278_v12 = vmax.f32 %v3276_v34, %v3277_v53  ;;  %v3240_v37 = vrot.slane %v3239_v31, 2  ;;  %v3314_v38 = vrot.slane %v3313_v35, 2 }
 0x514   : > { %v3205_v55 = vrot.slane %v3204_v9, 1  ;;  %v3279_v21 = vrot.slane %v3278_v12, 1  ;;  %v3241_v45 = vmax.f32 %v3239_v31, %v3240_v37  ;;  %v3315_v6 = vmax.f32 %v3313_v35, %v3314_v38 }
 0x516   : > { %v3206_v25 = vmax.f32 %v3204_v9, %v3205_v55  ;;  %v3280_v49 = vmax.f32 %v3278_v12, %v3279_v21  ;;  %v3242_v58 = vrot.slane %v3241_v45, 1  ;;  %v3316_v27 = vrot.slane %v3315_v6, 1 }
 0x518   : > { %3322 = vst [vmem:[%s5156_s23 + $0x20] sm:$0xff] %v3206_v25  ;;  %3324 = vst [vmem:[%s5156_s23 + $0x30] sm:$0xff] %v3280_v49  ;;  %v3243_v59 = vmax.f32 %v3241_v45, %v3242_v58  ;;  %v3317_v50 = vmax.f32 %v3315_v6, %v3316_v27 }
 0x51a   : > { %3323 = vst [vmem:[%s5156_s23 + $0x28] sm:$0xff] %v3243_v59  ;;  %3325 = vst [vmem:[%s5156_s23 + $0x38] sm:$0xff] %v3317_v50 }
 0x51b PF: > { %s22_s19 = sadd.s32 1, %s4125_s19   ;;  %s5483_s17 = smov %s4121_s18 }
 0x51c   : > { %p19_p5 = scmp.ge.s32.totalorder %s22_s19, 4   ;;  %s5484_s18 = smov %s5486_s20 }
 0x51e   :  { %21 = sbr.rel (!%p19_p5) target bundleno = 2 (0x2), region = 105 }

// kernel: pointnet_base_forward.5
= control target key start
LH: loop header
LB: loop body
LE: loop exit
PB: predicated region body
PF: predicated region fallthrough
CT: control target
= control target key end

     0   :  { %14 = vsyncpa [#allocation4], 0  ;;  %s8934_s0 = inlined_call_operand.vmem [shape: bf16[2,256,128], index: 0, kind: input, shape index: {}]   ;;  %s8935_s1 = inlined_call_operand.vmem [shape: bf16[2,128,64], index: 1, kind: input, shape index: {}]   ;;  %s8936_s2 = inlined_call_operand.vmem [shape: f32[1,64], index: 2, kind: input, shape index: {}]   ;;  %s8937_s3 = inlined_call_operand.vmem [shape: bf16[64,128], index: 3, kind: input, shape index: {}]   ;;  %s8938_s4 = inlined_call_operand.vmem [shape: f32[1,128], index: 4, kind: input, shape index: {}]   ;;  %s8939_s5 = inlined_call_operand.vmem [shape: bf16[1024,128], index: 5, kind: input, shape index: {}]   ;;  %s8940_s6 = inlined_call_operand.vmem [shape: f32[1024,1], index: 6, kind: input, shape index: {}]   ;;  %s8941_s7 = inlined_call_operand.hbm [shape: bf16[2,1024,256], index: 7, kind: output, shape index: {0}]   ;;  %s8942_s8 = inlined_call_operand.vmem [shape: f32[2,1024,1], index: 8, kind: output, shape index: {1}]  }
   0x1   :  { %16 = vsyncpa [#allocation4 + $0x1], 0  ;;  %s7081_s27 = smov 0   ;;  %s7083_s28 = smov 0  }
   0x2   :  { %s7085_s29 = smov 0   ;;  %s7087_s30 = smov 0  }
   0x3   :  { %s7089_s9 = smov 0   ;;  %s7091_s10 = smov 0  }
   0x4 LB: > { %s6123_s11 = sadd.s32 4294967295, %s7030_s10   ;;  %s6124_s12 = sadd.s32 4294967294, %s7030_s10   ;;  %s7030_s10 = sphi %s7091_s10, %s22_s10   ;;  %s7026_s9 = sphi %s7089_s9, %s9066_s9   ;;  %s7022_s30 = sphi %s7087_s30, %s9065_s30   ;;  %s7018_s29 = sphi %s7085_s29, %s9064_s29   ;;  %s7014_s28 = sphi %s7083_s28, %s9063_s28   ;;  %s7010_s27 = sphi %s7081_s27, %s9062_s27  }
   0x5   : > { %s34_s13 = sadd.s32 1, %s7026_s9  ;;  %s202_s14 = sadd.s32 1, %s7018_s29 }
   0x6   : > { %p36_p0 = scmp.ge.s32.totalorder %s34_s13, 2  ;;  %p212_p1 = scmp.ne.s32.totalorder %s7018_s29, %s7014_s28 }
   0x7   : > { %p213_p2 = scmp.eq.s32.totalorder %s6123_s11, 1  ;;  %p218_p3 = scmp.ne.s32.totalorder %s7014_s28, %s7010_s27 }
   0x8   : > { %s9068_s13 = smov (%p36_p0, %s34_s13), 0  ;;  %p219_p5 = scmp.eq.s32.totalorder %s6124_s12, 1 }
   0x9   : > { %p7121_p4 = por %p213_p2, %p212_p1  ;;  %s197_s16 = ssub.s32 %s7026_s9, %s9068_s13 }
   0xa   : > { %p6127_p6 = scmp.ge.s32.totalorder %s7030_s10, 1  ;;  %p200_p7 = scmp.eq.s32.totalorder %s197_s16, 0 }
   0xb   : > { %p7128_p8 = por %p219_p5, %p218_p3  ;;  %p299_p9 = scmp.lt.s32.totalorder %s7030_s10, 3 }
   0xc   : > { %s7134_s18 = scalar_select %p200_p7, %s7018_s29, %s202_s14  }
   0xd   : > { %p300_p10 = pnand %p6127_p6, %p299_p9 }
   0xf   : > { %303 = sbr.rel (%p300_p10) target bundleno = 1197 (0x4ad), region = 48 }
  0x14   : > { %p348_p11 = scmp.lt.s32.totalorder %s7022_s30, 1  ;;  %v6886_v0 = vld [vmem:[%s8937_s3 + $0x18] sm:$0xff]   ;;  %v6887_v25 = vld [vmem:[%s8937_s3 + $0x10] sm:$0xff]   ;;  %v6888_v26 = vld [vmem:[%s8937_s3 + $0x8] sm:$0xff]   ;;  %v7032_v27 = vmov 0   ;;  %vm816_vm0 = vcmask 523264  }
  0x15   : > { %6746 = vmatprep.subr.bf16.mxu1 %v6886_v0  ;;  %6860 = vset.pattern.permute.xlu0 %v7032_v27  ;;  %v1202_v28 = vld [vmem:[%s8940_s6] sm:$0xff]  ;;  %v1204_v30 = vld [vmem:[%s8940_s6 + $0x10] sm:$0xff]  ;;  %v1203_v31 = vld [vmem:[%s8940_s6 + $0x8] sm:$0xff]  ;;  %vm5854_vm1 = vcmask 7168   ;;  %s6509_s12 = sshll.u32 %s7022_s30, 14 }
  0x16   : > { %s7141_s21 = scalar_select %p348_p11, %s7022_s30, 1  ;;  %6747 = vmatpush3.bf16.msra.mxu1 %v6886_v0  ;;  %1332 = vperm.xlu0 %6860, %v1202_v28   ;;  %v6889_v29 = vld [vmem:[%s8937_s3] sm:$0xff]   ;;  %v1205_v32 = vld [vmem:[%s8940_s6 + $0x18] sm:$0xff]  ;;  %v1207_v34 = vld [vmem:[%s8940_s6 + $0x28] sm:$0xff] }
  0x17   : > { %6748 = vmatprep.subr.bf16.mxu1 %v6887_v25  ;;  %6861 = vset.pattern.permute.xlu1 %v7032_v27  ;;  %v1206_v33 = vld [vmem:[%s8940_s6 + $0x20] sm:$0xff]  ;;  %v1208_v35 = vld [vmem:[%s8940_s6 + $0x30] sm:$0xff]  ;;  %v1209_v36 = vld [vmem:[%s8940_s6 + $0x38] sm:$0xff]  ;;  %s8758_s19 = scalar_lea.hbm %s8941_s7, %s6509_s12 }
  0x18   : > { %s6379_s22 = sshll.u32 %s7141_s21, 6  ;;  %s6378_s26 = sshll.u32 %s7141_s21, 7  ;;  %1342 = vperm.xlu1 %6861, %v1204_v30   ;;  %v1210_v37 = vld [vmem:[%s8940_s6 + $0x40] sm:$0xff]  ;;  %v1211_v38 = vld [vmem:[%s8940_s6 + $0x48] sm:$0xff]  ;;  %v1212_v39 = vld [vmem:[%s8940_s6 + $0x50] sm:$0xff] }
  0x19   : > { %s361_s25 = scalar_lea.vmem %s8935_s1, %s6379_s22  ;;  %s7151_s14 = scalar_lea.vmem %s8934_s0, %s6378_s26  ;;  %v1213_v40 = vld [vmem:[%s8940_s6 + $0x58] sm:$0xff]  ;;  %v1214_v41 = vld [vmem:[%s8940_s6 + $0x60] sm:$0xff]  ;;  %v1215_v42 = vld [vmem:[%s8940_s6 + $0x68] sm:$0xff] }
  0x1a   : > { %v6862_v1 = vld [vmem:[%s361_s25 + $0x38] sm:$0xff]   ;;  %v6863_v2 = vld [vmem:[%s361_s25 + $0x30] sm:$0xff]   ;;  %v6864_v3 = vld [vmem:[%s361_s25 + $0x28] sm:$0xff]   ;;  %6749 = vmatpush3.bf16.msra.mxu1 %v6887_v25  ;;  %1337 = vperm.xlu0 %6860, %v1203_v31   ;;  %s337_s26 = sand.u32 1, %s7014_s28   ;;  %s6380_s24 = sshll.u32 %s7141_s21, 10 }
  0x1b   : > { %6698 = vmatprep.subr.bf16.mxu0 %v6862_v1  ;;  %v6865_v4 = vld [vmem:[%s361_s25 + $0x20] sm:$0xff]   ;;  %v6866_v6 = vld [vmem:[%s361_s25 + $0x18] sm:$0xff]   ;;  %v6867_v7 = vld [vmem:[%s361_s25 + $0x10] sm:$0xff]   ;;  %6750 = vmatprep.subr.bf16.mxu1 %v6888_v26  ;;  %s6128_s11 = sshll.u32 %s337_s26, 10  ;;  %s8769_s23 = scalar_lea.sflag [#allocation4], %s337_s26 }
  0x1c   : > { %6699 = vmatpush3.bf16.msra.mxu0 %v6862_v1  ;;  %v6870_v5 = vld [vmem:[%s7151_s14] sm:$0xff]   ;;  %v6868_v8 = vld [vmem:[%s361_s25 + $0x8] sm:$0xff]   ;;  %v6872_v11 = vld [vmem:[%s7151_s14 + $0x10] sm:$0xff]   ;;  %1347 = vperm.xlu1 %6861, %v1205_v32   ;;  %s8047_s20 = scalar_lea.vmem [#allocation3], %s6128_s11  ;;  %s8409_s11 = scalar_lea.vmem %s8942_s8, %s6380_s24 }
  0x1d   : > { %6700 = vmatprep.subr.bf16.mxu0 %v6863_v2  ;;  %6714 = vmatprep.mubr.bf16.mxu0 %v6870_v5  ;;  %v6869_v9 = vld [vmem:[%s361_s25] sm:$0xff]   ;;  %v6871_v10 = vld [vmem:[%s7151_s14 + $0x8] sm:$0xff]   ;;  %v6873_v12 = vld [vmem:[%s7151_s14 + $0x18] sm:$0xff]   ;;  %s6004_s22 = sshll.u32 %s8047_s20, 4  ;;  %s7033_s24 = smov [#allocation3]   ;;  %s8763_s22 = int_to_ptr.vmem [resolvable:$true] %s6004_s22 }
  0x1e   : > { %v6874_v13 = vld [vmem:[%s7151_s14 + $0x20] sm:$0xff]   ;;  %v6875_v14 = vld [vmem:[%s7151_s14 + $0x28] sm:$0xff]   ;;  %v6876_v15 = vld [vmem:[%s7151_s14 + $0x30] sm:$0xff]   ;;  %6751 = vmatpush3.bf16.msra.mxu1 %v6888_v26  ;;  %1352 = vperm.xlu0 %6860, %v1206_v33   ;;  %s6954_s30 = scalar_lea.vmem %s8763_s22, 16384 }
  0x1f   : > { %v6877_v16 = vld [vmem:[%s7151_s14 + $0x38] sm:$0xff]   ;;  %v6878_v17 = vld [vmem:[%s7151_s14 + $0x40] sm:$0xff]   ;;  %v6879_v18 = vld [vmem:[%s7151_s14 + $0x48] sm:$0xff]   ;;  %6752 = vmatprep.subr.bf16.mxu1 %v6889_v29  ;;  %p6955_p12 = scmp.ne.s32.totalorder %s8763_s22, %s6954_s30 }
  0x20   : > { %6701 = vmatpush3.bf16.msra.mxu0 %v6863_v2  ;;  %v6880_v19 = vld [vmem:[%s7151_s14 + $0x50] sm:$0xff]   ;;  %v6881_v20 = vld [vmem:[%s7151_s14 + $0x58] sm:$0xff]   ;;  %v6882_v21 = vld [vmem:[%s7151_s14 + $0x60] sm:$0xff]   ;;  %1357 = vperm.xlu1 %6861, %v1207_v34  }
  0x21   : > { %6702 = vmatprep.subr.bf16.mxu0 %v6864_v3  ;;  %v6883_v22 = vld [vmem:[%s7151_s14 + $0x68] sm:$0xff]   ;;  %v6884_v23 = vld [vmem:[%s7151_s14 + $0x70] sm:$0xff]   ;;  %v6885_v24 = vld [vmem:[%s7151_s14 + $0x78] sm:$0xff]   ;;  %p6956_p13 = pnand %p6955_p12, %p7121_p4 }
  0x22   : > { %6753 = vmatpush3.bf16.msra.mxu1 %v6889_v29  ;;  %1362 = vperm.xlu0 %6860, %v1208_v35   ;;  %v1216_v43 = vld [vmem:[%s8940_s6 + $0x70] sm:$0xff]  ;;  %v1217_v44 = vld [vmem:[%s8940_s6 + $0x78] sm:$0xff]  ;;  %v1218_v45 = vld [vmem:[%s8940_s6 + $0x80] sm:$0xff] }
  0x23   : > { %v1219_v46 = vld [vmem:[%s8940_s6 + $0x88] sm:$0xff]  ;;  %v1220_v47 = vld [vmem:[%s8940_s6 + $0x90] sm:$0xff]  ;;  %v1221_v48 = vld [vmem:[%s8940_s6 + $0x98] sm:$0xff]  ;;  %p6957_p0 = pneg %p6956_p13 }
  0x24   : > { %6703 = vmatpush3.bf16.msra.mxu0 %v6864_v3  ;;  %1367 = vperm.xlu1 %6861, %v1209_v36   ;;  %v1222_v49 = vld [vmem:[%s8940_s6 + $0xa0] sm:$0xff]  ;;  %v1223_v50 = vld [vmem:[%s8940_s6 + $0xa8] sm:$0xff]  ;;  %v1224_v51 = vld [vmem:[%s8940_s6 + $0xb0] sm:$0xff] }
  0x25   : > { %6704 = vmatprep.subr.bf16.mxu0 %v6865_v4  ;;  %v1225_v52 = vld [vmem:[%s8940_s6 + $0xb8] sm:$0xff]  ;;  %v1226_v53 = vld [vmem:[%s8940_s6 + $0xc0] sm:$0xff]  ;;  %v1227_v54 = vld [vmem:[%s8940_s6 + $0xc8] sm:$0xff] }
  0x26   : > { %1372 = vperm.xlu0 %6860, %v1210_v37   ;;  %v1228_v55 = vld [vmem:[%s8940_s6 + $0xd0] sm:$0xff]  ;;  %v1229_v56 = vld [vmem:[%s8940_s6 + $0xd8] sm:$0xff]  ;;  %v1230_v57 = vld [vmem:[%s8940_s6 + $0xe0] sm:$0xff] }
  0x27   : > { %v1231_v58 = vld [vmem:[%s8940_s6 + $0xe8] sm:$0xff]  ;;  %v1232_v59 = vld [vmem:[%s8940_s6 + $0xf0] sm:$0xff]  ;;  %v1233_v60 = vld [vmem:[%s8940_s6 + $0xf8] sm:$0xff] }
  0x28   : > { %6705 = vmatpush3.bf16.msra.mxu0 %v6865_v4  ;;  %1377 = vperm.xlu1 %6861, %v1211_v38   ;;  %v1234_v61 = vld [vmem:[%s8940_s6 + $0x100] sm:$0xff]  ;;  %v1235_v62 = vld [vmem:[%s8940_s6 + $0x108] sm:$0xff]  ;;  %v1236_v63 = vld [vmem:[%s8940_s6 + $0x110] sm:$0xff] }
  0x29   : > { %6706 = vmatprep.subr.bf16.mxu0 %v6866_v6  ;;  %v1237_v0 = vld [vmem:[%s8940_s6 + $0x118] sm:$0xff]  ;;  %v1238_v1 = vld [vmem:[%s8940_s6 + $0x120] sm:$0xff]  ;;  %v1239_v2 = vld [vmem:[%s8940_s6 + $0x128] sm:$0xff] }
  0x2a   : > { %1382 = vperm.xlu0 %6860, %v1212_v39   ;;  %v1240_v3 = vld [vmem:[%s8940_s6 + $0x130] sm:$0xff]  ;;  %v1241_v4 = vld [vmem:[%s8940_s6 + $0x138] sm:$0xff]  ;;  %v1242_v5 = vld [vmem:[%s8940_s6 + $0x140] sm:$0xff] }
  0x2b   : > { %v1262_v25 = vld [vmem:[%s8940_s6 + $0x1e0] sm:$0xff]  ;;  %v1263_v26 = vld [vmem:[%s8940_s6 + $0x1e8] sm:$0xff]  ;;  %v1264_v28 = vld [vmem:[%s8940_s6 + $0x1f0] sm:$0xff] }
  0x2c   : > { %6707 = vmatpush3.bf16.msra.mxu0 %v6866_v6  ;;  %1387 = vperm.xlu1 %6861, %v1213_v40   ;;  %v1243_v6 = vld [vmem:[%s8940_s6 + $0x148] sm:$0xff]  ;;  %v7370_v30 = vld [vmem:[%s8936_s2] ss:$0 sm:$0xff]  ;;  %v1265_v31 = vld [vmem:[%s8940_s6 + $0x1f8] sm:$0xff] }
  0x2d   : > { %6708 = vmatprep.subr.bf16.mxu0 %v6867_v7  ;;  %v1266_v33 = vld [vmem:[%s8940_s6 + $0x200] sm:$0xff]  ;;  %v1267_v39 = vld [vmem:[%s8940_s6 + $0x208] sm:$0xff] }
  0x2e   : > { %1392 = vperm.xlu0 %6860, %v1214_v41  }
  0x30   : > { %6709 = vmatpush3.bf16.msra.mxu0 %v6867_v7  ;;  %1397 = vperm.xlu1 %6861, %v1215_v42   ;;  %v1244_v7 = vld [vmem:[%s8940_s6 + $0x150] sm:$0xff] }
  0x31   : > { %6710 = vmatprep.subr.bf16.mxu0 %v6868_v8  ;;  %v1268_v42 = vld [vmem:[%s8940_s6 + $0x210] sm:$0xff] }
  0x32   : > { %1402 = vperm.xlu0 %6860, %v1216_v43  }
  0x34   : > { %6711 = vmatpush3.bf16.msra.mxu0 %v6868_v8  ;;  %1407 = vperm.xlu1 %6861, %v1217_v44   ;;  %v1245_v8 = vld [vmem:[%s8940_s6 + $0x158] sm:$0xff] }
  0x35   : > { %6712 = vmatprep.subr.bf16.mxu0 %v6869_v9 }
  0x36   : > { %1412 = vperm.xlu0 %6860, %v1218_v45  }
  0x38   : > { %6713 = vmatpush3.bf16.msra.mxu0 %v6869_v9  ;;  %1417 = vperm.xlu1 %6861, %v1219_v46   ;;  %v1246_v9 = vld [vmem:[%s8940_s6 + $0x160] sm:$0xff] }
  0x3a   : > { %1422 = vperm.xlu0 %6860, %v1220_v47  }
  0x3b   : > { %6715 = vmatmul.mubr.bf16.vlgmr.msra.gmra.mxu0 %v6871_v10  ;;  %v1247_v10 = vld [vmem:[%s8940_s6 + $0x168] sm:$0xff] }
  0x3c   : > { %6718 = vmatprep.mubr.bf16.mxu0 %v6872_v11  ;;  %1427 = vperm.xlu1 %6861, %v1221_v48   ;;  %v1248_v11 = vld [vmem:[%s8940_s6 + $0x170] sm:$0xff]  ;;  %v1269_v48 = vld [vmem:[%s8940_s6 + $0x218] sm:$0xff] }
  0x3e   : > { %1432 = vperm.xlu0 %6860, %v1222_v49  }
  0x40   : > { %1437 = vperm.xlu1 %6861, %v1223_v50  }
  0x42   : > { %1442 = vperm.xlu0 %6860, %v1224_v51   ;;  %v1270_v51 = vld [vmem:[%s8940_s6 + $0x220] sm:$0xff] }
  0x43   : > { %6719 = vmatmul.mubr.bf16.gmra.mxu0 %v6873_v12  ;;  %v1249_v12 = vld [vmem:[%s8940_s6 + $0x178] sm:$0xff] }
  0x44   : > { %6722 = vmatprep.mubr.bf16.mxu0 %v6874_v13  ;;  %1447 = vperm.xlu1 %6861, %v1225_v52   ;;  %v1250_v13 = vld [vmem:[%s8940_s6 + $0x180] sm:$0xff] }
  0x46   : > { %1452 = vperm.xlu0 %6860, %v1226_v53  }
  0x48   : > { %1457 = vperm.xlu1 %6861, %v1227_v54  }
  0x4a   : > { %1462 = vperm.xlu0 %6860, %v1228_v55  }
  0x4b   : > { %6723 = vmatmul.mubr.bf16.gmra.mxu0 %v6875_v14  ;;  %v1251_v14 = vld [vmem:[%s8940_s6 + $0x188] sm:$0xff] }
  0x4c   : > { %6726 = vmatprep.mubr.bf16.mxu0 %v6876_v15  ;;  %1467 = vperm.xlu1 %6861, %v1229_v56   ;;  %v1252_v15 = vld [vmem:[%s8940_s6 + $0x190] sm:$0xff] }
  0x4e   : > { %1472 = vperm.xlu0 %6860, %v1230_v57   ;;  %v1271_v57 = vld [vmem:[%s8940_s6 + $0x228] sm:$0xff] }
  0x50   : > { %1477 = vperm.xlu1 %6861, %v1231_v58  }
  0x52   : > { %1482 = vperm.xlu0 %6860, %v1232_v59  }
  0x53   : > { %6727 = vmatmul.mubr.bf16.gmra.mxu0 %v6877_v16  ;;  %v1253_v16 = vld [vmem:[%s8940_s6 + $0x198] sm:$0xff] }
  0x54   : > { %6730 = vmatprep.mubr.bf16.mxu0 %v6878_v17  ;;  %1487 = vperm.xlu1 %6861, %v1233_v60   ;;  %v1254_v17 = vld [vmem:[%s8940_s6 + $0x1a0] sm:$0xff]  ;;  %v1272_v60 = vld [vmem:[%s8940_s6 + $0x230] sm:$0xff] }
  0x56   : > { %1492 = vperm.xlu0 %6860, %v1234_v61  }
  0x58   : > { %1497 = vperm.xlu1 %6861, %v1235_v62  }
  0x5a   : > { %1502 = vperm.xlu0 %6860, %v1236_v63  }
  0x5b   : > { %6731 = vmatmul.mubr.bf16.gmra.mxu0 %v6879_v18  ;;  %v1255_v18 = vld [vmem:[%s8940_s6 + $0x1a8] sm:$0xff] }
  0x5c   : > { %6734 = vmatprep.mubr.bf16.mxu0 %v6880_v19  ;;  %1507 = vperm.xlu1 %6861, %v1237_v0   ;;  %v1256_v19 = vld [vmem:[%s8940_s6 + $0x1b0] sm:$0xff] }
  0x5e   : > { %1512 = vperm.xlu0 %6860, %v1238_v1  }
  0x60   : > { %1517 = vperm.xlu1 %6861, %v1239_v2   ;;  %v1273_v2 = vld [vmem:[%s8940_s6 + $0x238] sm:$0xff] }
  0x62   : > { %1522 = vperm.xlu0 %6860, %v1240_v3  }
  0x63   : > { %6735 = vmatmul.mubr.bf16.gmra.mxu0 %v6881_v20  ;;  %v1257_v20 = vld [vmem:[%s8940_s6 + $0x1b8] sm:$0xff] }
  0x64   : > { %6738 = vmatprep.mubr.bf16.mxu0 %v6882_v21  ;;  %1527 = vperm.xlu1 %6861, %v1241_v4   ;;  %v1258_v21 = vld [vmem:[%s8940_s6 + $0x1c0] sm:$0xff] }
  0x66   : > { %1532 = vperm.xlu0 %6860, %v1242_v5   ;;  %v1274_v5 = vld [vmem:[%s8940_s6 + $0x240] sm:$0xff] }
  0x68   : > { %1537 = vperm.xlu1 %6861, %v1243_v6  }
  0x6a   : > { %1542 = vperm.xlu0 %6860, %v1244_v7  }
  0x6b   : > { %6739 = vmatmul.mubr.bf16.gmra.mxu0 %v6883_v22  ;;  %v1259_v22 = vld [vmem:[%s8940_s6 + $0x1c8] sm:$0xff] }
  0x6c   : > { %6742 = vmatprep.mubr.bf16.mxu0 %v6884_v23  ;;  %1547 = vperm.xlu1 %6861, %v1245_v8   ;;  %v1260_v23 = vld [vmem:[%s8940_s6 + $0x1d0] sm:$0xff] }
  0x6e   : > { %1552 = vperm.xlu0 %6860, %v1246_v9  }
  0x70   : > { %1557 = vperm.xlu1 %6861, %v1247_v10  }
  0x72   : > { %1562 = vperm.xlu0 %6860, %v1248_v11   ;;  %v1275_v11 = vld [vmem:[%s8940_s6 + $0x248] sm:$0xff] }
  0x73   : > { %6743 = vmatmul.mubr.bf16.gmra.mxu0 %v6885_v24  ;;  %v1261_v24 = vld [vmem:[%s8940_s6 + $0x1d8] sm:$0xff] }
  0x74   : > { %1567 = vperm.xlu1 %6861, %v1249_v12  }
  0x76   : > { %1572 = vperm.xlu0 %6860, %v1250_v13  }
  0x78   : > { %1577 = vperm.xlu1 %6861, %v1251_v14   ;;  %v1276_v14 = vld [vmem:[%s8940_s6 + $0x250] sm:$0xff] }
  0x7a   : > { %1582 = vperm.xlu0 %6860, %v1252_v15  }
  0x7c   : > { %1587 = vperm.xlu1 %6861, %v1253_v16  }
  0x7e   : > { %1592 = vperm.xlu0 %6860, %v1254_v17  }
  0x80   : > { %1597 = vperm.xlu1 %6861, %v1255_v18  }
  0x82   : > { %1602 = vperm.xlu0 %6860, %v1256_v19  }
  0x84   : > { %1607 = vperm.xlu1 %6861, %v1257_v20   ;;  %v1277_v20 = vld [vmem:[%s8940_s6 + $0x258] sm:$0xff] }
  0x86   : > { %1612 = vperm.xlu0 %6860, %v1258_v21  }
  0x88   : > { %1617 = vperm.xlu1 %6861, %v1259_v22  }
  0x8a   : > { %1622 = vperm.xlu0 %6860, %v1260_v23   ;;  %v1278_v23 = vld [vmem:[%s8940_s6 + $0x260] sm:$0xff] }
  0x8c   : > { %1627 = vperm.xlu1 %6861, %v1261_v24  }
  0x8e   : > { %1632 = vperm.xlu0 %6860, %v1262_v25  }
  0x90   : > { %1637 = vperm.xlu1 %6861, %v1263_v26  }
  0x92   : > { %1642 = vperm.xlu0 %6860, %v1264_v28  }
  0x94   : > { %1647 = vperm.xlu1 %6861, %v1265_v31  }
  0x96   : > { %1652 = vperm.xlu0 %6860, %v1266_v33   ;;  %v1280_v33 = vld [vmem:[%s8940_s6 + $0x270] sm:$0xff] }
  0x98   : > { %1657 = vperm.xlu1 %6861, %v1267_v39   ;;  %v1281_v39 = vld [vmem:[%s8940_s6 + $0x278] sm:$0xff] }
  0x9a   : > { %1662 = vperm.xlu0 %6860, %v1268_v42   ;;  %v1282_v42 = vld [vmem:[%s8940_s6 + $0x280] sm:$0xff] }
  0x9c   : > { %1667 = vperm.xlu1 %6861, %v1269_v48   ;;  %v1283_v48 = vld [vmem:[%s8940_s6 + $0x288] sm:$0xff] }
  0x9e   : > { %1672 = vperm.xlu0 %6860, %v1270_v51   ;;  %v1284_v51 = vld [vmem:[%s8940_s6 + $0x290] sm:$0xff] }
  0xa0   : > { %1677 = vperm.xlu1 %6861, %v1271_v57   ;;  %v1285_v57 = vld [vmem:[%s8940_s6 + $0x298] sm:$0xff] }
  0xa2   : > { %1682 = vperm.xlu0 %6860, %v1272_v60   ;;  %v1286_v60 = vld [vmem:[%s8940_s6 + $0x2a0] sm:$0xff] }
  0xa4   : > { %1687 = vperm.xlu1 %6861, %v1273_v2   ;;  %v7472_v2 = vpop.permute.xlu0 %1332 }
  0xa6   : > { %1692 = vperm.xlu0 %6860, %v1274_v5  }
  0xa8   : > { %1697 = vperm.xlu1 %6861, %v1275_v11   ;;  %v7480_v11 = vpop.permute.xlu1 %1342 }
  0xaa   : > { %1702 = vperm.xlu0 %6860, %v1276_v14  }
  0xac   : > { %1707 = vperm.xlu1 %6861, %v1277_v20  }
  0xae   : > { %1712 = vperm.xlu0 %6860, %v1278_v23   ;;  %v1291_v23 = vld [vmem:[%s8940_s6 + $0x2c8] sm:$0xff] }
  0xb2   : > { %1722 = vperm.xlu0 %6860, %v1280_v33  }
  0xb6   : > { %1732 = vperm.xlu0 %6860, %v1282_v42  }
  0xba   : > { %1742 = vperm.xlu0 %6860, %v1284_v51  }
  0xbe   : > { %1752 = vperm.xlu0 %6860, %v1286_v60  }
  0xfb   : > { %v6716_v27 = vpop.f32.mrf.mxu0 }
  0xfc   : > { %v611_v36 = vadd.f32 %v6716_v27, %v7370_v30 }
  0xfd   : > { %v602_v29 = vpop.f32.mrf.mxu0 }
  0xfe   : > { %v603_v34 = vadd.f32 %v7370_v30, %v602_v29  ;;  %v731_v45 = vmax.f32 %v611_v36, 0.0  ;;  %v1279_v29 = vld [vmem:[%s8940_s6 + $0x268] sm:$0xff] }
  0xff   : > { %v6717_v32 = vpop.f32.mrf.mxu0  ;;  %1717 = vperm.xlu1 %6861, %v1279_v29  }
 0x100   : > { %v614_v35 = vadd.f32 %v6717_v32, %v7370_v30  ;;  %v729_v43 = vmax.f32 %v603_v34, 0.0 }
 0x101   : > { %v605_v37 = vpop.f32.mrf.mxu0 }
 0x102   : > { %v606_v38 = vadd.f32 %v7370_v30, %v605_v37  ;;  %v732_v40 = vmax.f32 %v614_v35, 0.0 }
 0x103   : > { %v6720_v41 = vpop.f32.mrf.mxu0  ;;  %1727 = vperm.xlu1 %6861, %v1281_v39  }
 0x104   : > { %v730_v44 = vmax.f32 %v606_v38, 0.0  ;;  %v762_v49 = vpack.c.bf16 %v732_v40, %v731_v45  ;;  %v627_v54 = vadd.f32 %v6720_v41, %v7370_v30 }
 0x105   : > { %v618_v46 = vpop.f32.mrf.mxu0 }
 0x106   : > { %v761_v47 = vpack.c.bf16 %v730_v44, %v729_v43  ;;  %v619_v52 = vadd.f32 %v7370_v30, %v618_v46  ;;  %v735_v63 = vmax.f32 %v627_v54, 0.0 }
 0x107   : > { %v6721_v50 = vpop.f32.mrf.mxu0  ;;  %1737 = vperm.xlu1 %6861, %v1283_v48  }
 0x108   : > { %v630_v53 = vadd.f32 %v6721_v50, %v7370_v30  ;;  %6754 = vmatprep.mubr.msk.bf16.mxu1 %vm816_vm0, %v761_v47  ;;  %v733_v61 = vmax.f32 %v619_v52, 0.0 }
 0x109   : > { %v621_v55 = vpop.f32.mrf.mxu0  ;;  %6755 = vmatmul.mubr.msk.bf16.vlgmr.msra.gmra.mxu1 %vm816_vm0, %v762_v49 }
 0x10a   : > { %v622_v56 = vadd.f32 %v7370_v30, %v621_v55  ;;  %v736_v58 = vmax.f32 %v630_v53, 0.0 }
 0x10b   : > { %v6724_v59 = vpop.f32.mrf.mxu0  ;;  %1747 = vperm.xlu1 %6861, %v1285_v57   ;;  %v1299_v57 = vld [vmem:[%s8940_s6 + $0x308] sm:$0xff] }
 0x10c   : > { %v734_v62 = vmax.f32 %v622_v56, 0.0  ;;  %v764_v3 = vpack.c.bf16 %v736_v58, %v735_v63  ;;  %v643_v8 = vadd.f32 %v6724_v59, %v7370_v30 }
 0x10d   : > { %v634_v0 = vpop.f32.mrf.mxu0 }
 0x10e   : > { %v763_v1 = vpack.c.bf16 %v734_v62, %v733_v61  ;;  %v635_v6 = vadd.f32 %v7370_v30, %v634_v0  ;;  %v739_v17 = vmax.f32 %v643_v8, 0.0 }
 0x10f   : > { %v6725_v4 = vpop.f32.mrf.mxu0 }
 0x110   : > { %v646_v7 = vadd.f32 %v6725_v4, %v7370_v30  ;;  %6758 = vmatprep.mubr.msk.bf16.mxu1 %vm816_vm0, %v763_v1  ;;  %v737_v15 = vmax.f32 %v635_v6, 0.0  ;;  %v1288_v6 = vld [vmem:[%s8940_s6 + $0x2b0] sm:$0xff] }
 0x111   : > { %v637_v9 = vpop.f32.mrf.mxu0  ;;  %6759 = vmatmul.mubr.msk.bf16.gmra.mxu1 %vm816_vm0, %v764_v3  ;;  %v1287_v3 = vld [vmem:[%s8940_s6 + $0x2a8] sm:$0xff]  ;;  %1762 = vperm.xlu0 %6860, %v1288_v6   ;;  %v1306_v6 = vld [vmem:[%s8940_s6 + $0x340] sm:$0xff] }
 0x112   : > { %v638_v10 = vadd.f32 %v7370_v30, %v637_v9  ;;  %v740_v12 = vmax.f32 %v646_v7, 0.0  ;;  %1757 = vperm.xlu1 %6861, %v1287_v3  }
 0x113   : > { %v6728_v13 = vpop.f32.mrf.mxu0 }
 0x114   : > { %v738_v16 = vmax.f32 %v638_v10, 0.0  ;;  %v766_v21 = vpack.c.bf16 %v740_v12, %v739_v17  ;;  %v659_v26 = vadd.f32 %v6728_v13, %v7370_v30  ;;  %v1289_v13 = vld [vmem:[%s8940_s6 + $0x2b8] sm:$0xff] }
 0x115   : > { %v650_v18 = vpop.f32.mrf.mxu0 }
 0x116   : > { %v765_v19 = vpack.c.bf16 %v738_v16, %v737_v15  ;;  %v651_v24 = vadd.f32 %v7370_v30, %v650_v18  ;;  %v743_v36 = vmax.f32 %v659_v26, 0.0  ;;  %v1290_v16 = vld [vmem:[%s8940_s6 + $0x2c0] sm:$0xff]  ;;  %1767 = vperm.xlu1 %6861, %v1289_v13   ;;  %v7499_v26 = vpop.permute.xlu1 %1347 }
 0x117   : > { %v6729_v22 = vpop.f32.mrf.mxu0  ;;  %1772 = vperm.xlu0 %6860, %v1290_v16   ;;  %v1310_v13 = vld [vmem:[%s8940_s6 + $0x360] sm:$0xff] }
 0x118   : > { %v662_v25 = vadd.f32 %v6729_v22, %v7370_v30  ;;  %6762 = vmatprep.mubr.msk.bf16.mxu1 %vm816_vm0, %v765_v19  ;;  %v741_v34 = vmax.f32 %v651_v24, 0.0  ;;  %v7491_v19 = vpop.permute.xlu0 %1337 }
 0x119   : > { %v653_v27 = vpop.f32.mrf.mxu0  ;;  %6763 = vmatmul.mubr.msk.bf16.gmra.mxu1 %vm816_vm0, %v766_v21 }
 0x11a   : > { %v654_v28 = vadd.f32 %v7370_v30, %v653_v27  ;;  %v744_v31 = vmax.f32 %v662_v25, 0.0  ;;  %v1292_v27 = vld [vmem:[%s8940_s6 + $0x2d0] sm:$0xff]  ;;  %1777 = vperm.xlu1 %6861, %v1291_v23   ;;  %v1315_v23 = vld [vmem:[%s8940_s6 + $0x388] sm:$0xff] }
 0x11b   : > { %v6732_v32 = vpop.f32.mrf.mxu0  ;;  %1782 = vperm.xlu0 %6860, %v1292_v27   ;;  %v1317_v27 = vld [vmem:[%s8940_s6 + $0x398] sm:$0xff] }
 0x11c   : > { %v742_v35 = vmax.f32 %v654_v28, 0.0  ;;  %v768_v40 = vpack.c.bf16 %v744_v31, %v743_v36  ;;  %v675_v45 = vadd.f32 %v6732_v32, %v7370_v30 }
 0x11d   : > { %v666_v37 = vpop.f32.mrf.mxu0 }
 0x11e   : > { %v767_v38 = vpack.c.bf16 %v742_v35, %v741_v34  ;;  %v667_v43 = vadd.f32 %v7370_v30, %v666_v37  ;;  %v747_v54 = vmax.f32 %v675_v45, 0.0  ;;  %v7504_v34 = vpop.permute.xlu0 %1352  ;;  %v1293_v35 = vld [vmem:[%s8940_s6 + $0x2d8] sm:$0xff]  ;;  %v1295_v45 = vld [vmem:[%s8940_s6 + $0x2e8] sm:$0xff] }
 0x11f   : > { %v6733_v41 = vpop.f32.mrf.mxu0  ;;  %1787 = vperm.xlu1 %6861, %v1293_v35  }
 0x120   : > { %v678_v44 = vadd.f32 %v6733_v41, %v7370_v30  ;;  %6766 = vmatprep.mubr.msk.bf16.mxu1 %vm816_vm0, %v767_v38  ;;  %v745_v52 = vmax.f32 %v667_v43, 0.0  ;;  %v1294_v38 = vld [vmem:[%s8940_s6 + $0x2e0] sm:$0xff]  ;;  %v7517_v43 = vpop.permute.xlu1 %1357 }
 0x121   : > { %v669_v46 = vpop.f32.mrf.mxu0  ;;  %6767 = vmatmul.mubr.msk.bf16.gmra.mxu1 %vm816_vm0, %v768_v40  ;;  %1792 = vperm.xlu0 %6860, %v1294_v38  }
 0x122   : > { %v670_v47 = vadd.f32 %v7370_v30, %v669_v46  ;;  %v748_v49 = vmax.f32 %v678_v44, 0.0 }
 0x123   : > { %v6736_v50 = vpop.f32.mrf.mxu0  ;;  %1797 = vperm.xlu1 %6861, %v1295_v45   ;;  %v1326_v45 = vld [vmem:[%s8940_s6 + $0x3e0] sm:$0xff] }
 0x124   : > { %v746_v53 = vmax.f32 %v670_v47, 0.0  ;;  %v770_v58 = vpack.c.bf16 %v748_v49, %v747_v54  ;;  %v691_v63 = vadd.f32 %v6736_v50, %v7370_v30  ;;  %v1296_v47 = vld [vmem:[%s8940_s6 + $0x2f0] sm:$0xff]  ;;  %v7526_v50 = vpop.permute.xlu0 %1362  ;;  %v7531_v54 = vpop.permute.xlu1 %1367 }
 0x125   : > { %v682_v55 = vpop.f32.mrf.mxu0  ;;  %1802 = vperm.xlu0 %6860, %v1296_v47   ;;  %v1327_v47 = vld [vmem:[%s8940_s6 + $0x3e8] sm:$0xff] }
 0x126   : > { %v769_v56 = vpack.c.bf16 %v746_v53, %v745_v52  ;;  %v683_v61 = vadd.f32 %v7370_v30, %v682_v55  ;;  %v751_v9 = vmax.f32 %v691_v63, 0.0  ;;  %v1298_v55 = vld [vmem:[%s8940_s6 + $0x300] sm:$0xff] }
 0x127   : > { %v6737_v59 = vpop.f32.mrf.mxu0 }
 0x128   : > { %v694_v62 = vadd.f32 %v6737_v59, %v7370_v30  ;;  %6770 = vmatprep.mubr.msk.bf16.mxu1 %vm816_vm0, %v769_v56  ;;  %v749_v7 = vmax.f32 %v683_v61, 0.0  ;;  %v7538_v56 = vpop.permute.xlu0 %1372  ;;  %v7546_v59 = vpop.permute.xlu1 %1377  ;;  %v1301_v61 = vld [vmem:[%s8940_s6 + $0x318] sm:$0xff] }
 0x129   : > { %v685_v0 = vpop.f32.mrf.mxu0  ;;  %6771 = vmatmul.mubr.msk.bf16.gmra.mxu1 %vm816_vm0, %v770_v58  ;;  %1812 = vperm.xlu0 %6860, %v1298_v55   ;;  %v1300_v58 = vld [vmem:[%s8940_s6 + $0x310] sm:$0xff] }
 0x12a   : > { %v686_v1 = vadd.f32 %v7370_v30, %v685_v0  ;;  %v752_v4 = vmax.f32 %v694_v62, 0.0  ;;  %v1302_v62 = vld [vmem:[%s8940_s6 + $0x320] sm:$0xff]  ;;  %v1303_v0 = vld [vmem:[%s8940_s6 + $0x328] sm:$0xff] }
 0x12b   : > { %v6740_v5 = vpop.f32.mrf.mxu0 }
 0x12c   : > { %v750_v8 = vmax.f32 %v686_v1, 0.0  ;;  %v772_v14 = vpack.c.bf16 %v752_v4, %v751_v9  ;;  %v707_v20 = vadd.f32 %v6740_v5, %v7370_v30  ;;  %v7548_v60 = vpop.permute.xlu0 %1382  ;;  %v7556_v63 = vpop.permute.xlu1 %1387  ;;  %v1304_v1 = vld [vmem:[%s8940_s6 + $0x330] sm:$0xff]  ;;  %v1305_v4 = vld [vmem:[%s8940_s6 + $0x338] sm:$0xff] }
 0x12d   : > { %v698_v10 = vpop.f32.mrf.mxu0  ;;  %1822 = vperm.xlu0 %6860, %v1300_v58   ;;  %v1308_v9 = vld [vmem:[%s8940_s6 + $0x350] sm:$0xff] }
 0x12e   : > { %v771_v12 = vpack.c.bf16 %v750_v8, %v749_v7  ;;  %v699_v17 = vadd.f32 %v7370_v30, %v698_v10  ;;  %v755_v31 = vmax.f32 %v707_v20, 0.0  ;;  %v1307_v8 = vld [vmem:[%s8940_s6 + $0x348] sm:$0xff]  ;;  %v1313_v20 = vld [vmem:[%s8940_s6 + $0x378] sm:$0xff] }
 0x12f   : > { %v6741_v15 = vpop.f32.mrf.mxu0 }
 0x130   : > { %v710_v18 = vadd.f32 %v6741_v15, %v7370_v30  ;;  %6774 = vmatprep.mubr.msk.bf16.mxu1 %vm816_vm0, %v771_v12  ;;  %v753_v28 = vmax.f32 %v699_v17, 0.0  ;;  %v7564_v3 = vpop.permute.xlu0 %1392  ;;  %v7569_v5 = vpop.permute.xlu1 %1397  ;;  %v1309_v12 = vld [vmem:[%s8940_s6 + $0x358] sm:$0xff]  ;;  %v1311_v15 = vld [vmem:[%s8940_s6 + $0x368] sm:$0xff]  ;;  %v1312_v17 = vld [vmem:[%s8940_s6 + $0x370] sm:$0xff] }
 0x131   : > { %v701_v21 = vpop.f32.mrf.mxu0  ;;  %6775 = vmatmul.mubr.msk.bf16.gmra.mxu1 %vm816_vm0, %v772_v14  ;;  %1832 = vperm.xlu0 %6860, %v1302_v62  }
 0x132   : > { %v702_v22 = vadd.f32 %v7370_v30, %v701_v21  ;;  %v756_v24 = vmax.f32 %v710_v18, 0.0  ;;  %v1314_v21 = vld [vmem:[%s8940_s6 + $0x380] sm:$0xff] }
 0x133   : > { %v6744_v25 = vpop.f32.mrf.mxu0 }
 0x134   : > { %v754_v29 = vmax.f32 %v702_v22, 0.0  ;;  %v774_v36 = vpack.c.bf16 %v756_v24, %v755_v31  ;;  %v723_v41 = vadd.f32 %v6744_v25, %v7370_v30  ;;  %v7574_v7 = vpop.permute.xlu0 %1402  ;;  %v7582_v10 = vpop.permute.xlu1 %1407  ;;  %v1316_v24 = vld [vmem:[%s8940_s6 + $0x390] sm:$0xff] }
 0x135   : > { %v714_v32 = vpop.f32.mrf.mxu0  ;;  %1842 = vperm.xlu0 %6860, %v1304_v1  }
 0x136   : > { %v773_v33 = vpack.c.bf16 %v754_v29, %v753_v28  ;;  %v715_v39 = vadd.f32 %v7370_v30, %v714_v32  ;;  %v759_v51 = vmax.f32 %v723_v41, 0.0  ;;  %v1318_v29 = vld [vmem:[%s8940_s6 + $0x3a0] sm:$0xff]  ;;  %v1319_v32 = vld [vmem:[%s8940_s6 + $0x3a8] sm:$0xff]  ;;  %v1324_v41 = vld [vmem:[%s8940_s6 + $0x3d0] sm:$0xff] }
 0x137   : > { %v6745_v37 = vpop.f32.mrf.mxu0 }
 0x138   : > { %v726_v40 = vadd.f32 %v6745_v37, %v7370_v30  ;;  %6778 = vmatprep.mubr.msk.bf16.mxu1 %vm816_vm0, %v773_v33  ;;  %v757_v48 = vmax.f32 %v715_v39, 0.0  ;;  %v7590_v14 = vpop.permute.xlu0 %1412  ;;  %v7595_v16 = vpop.permute.xlu1 %1417  ;;  %v1320_v33 = vld [vmem:[%s8940_s6 + $0x3b0] sm:$0xff]  ;;  %v1322_v37 = vld [vmem:[%s8940_s6 + $0x3c0] sm:$0xff]  ;;  %v1323_v39 = vld [vmem:[%s8940_s6 + $0x3c8] sm:$0xff] }
 0x139   : > { %v717_v42 = vpop.f32.mrf.mxu0  ;;  %6779 = vmatmul.mubr.msk.bf16.gmra.mxu1 %vm816_vm0, %v774_v36  ;;  %1852 = vperm.xlu0 %6860, %v1306_v6   ;;  %v1321_v36 = vld [vmem:[%s8940_s6 + $0x3b8] sm:$0xff] }
 0x13a   : > { %v718_v44 = vadd.f32 %v7370_v30, %v717_v42  ;;  %v760_v46 = vmax.f32 %v726_v40, 0.0  ;;  %v1297_v30 = vld [vmem:[%s8940_s6 + $0x2f8] sm:$0xff] }
 0x13b   : > { %1807 = vperm.xlu1 %6861, %v1297_v30   ;;  %v7678_v30 = vld [vmem:[%s8939_s5] sm:$0xff]  }
 0x13c   : > { %v758_v49 = vmax.f32 %v718_v44, 0.0  ;;  %v776_v53 = vpack.c.bf16 %v760_v46, %v759_v51  ;;  %v7600_v18 = vpop.permute.xlu0 %1422  ;;  %v7608_v22 = vpop.permute.xlu1 %1427  ;;  %v1325_v44 = vld [vmem:[%s8940_s6 + $0x3d8] sm:$0xff]  ;;  %6570 = vmatprep.mubr.bf16.mxu0 %v7678_v30 }
 0x13d   : > { %1862 = vperm.xlu0 %6860, %v1308_v9   ;;  %8984 = vst [vmem:[#allocation6_spill] sm:$0xff] %v7608_v22  ;;  %v1329_v51 = vld [vmem:[%s8940_s6 + $0x3f8] sm:$0xff] }
 0x13e   : > { %v775_v52 = vpack.c.bf16 %v758_v49, %v757_v48  ;;  %v1328_v48 = vld [vmem:[%s8940_s6 + $0x3f0] sm:$0xff] }
 0x13f   : > { %1817 = vperm.xlu1 %6861, %v1299_v57   ;;  %v7690_v57 = vld [vmem:[%s8938_s4] ss:$0 sm:$0xff] }
 0x140   : > { %6782 = vmatprep.mubr.msk.bf16.mxu1 %vm816_vm0, %v775_v52  ;;  %v7616_v25 = vpop.permute.xlu0 %1432  ;;  %v7621_v28 = vpop.permute.xlu1 %1437 }
 0x141   : > { %6783 = vmatmul.mubr.msk.bf16.gmra.mxu1 %vm816_vm0, %v776_v53  ;;  %1872 = vperm.xlu0 %6860, %v1310_v13   ;;  %8985 = vst [vmem:[#allocation7_spill] sm:$0xff] %v7616_v25  ;;  %8986 = vst [vmem:[#allocation8_spill] sm:$0xff] %v7621_v28  ;;  %v7683_v53 = vld [vmem:[%s8939_s5 + $0xf8] sm:$0xff]  }
 0x142   : > { %6632 = vmatprep.mubr.bf16.mxu1 %v7683_v53 }
 0x143   : > { %1827 = vperm.xlu1 %6861, %v1301_v61  }
 0x144   : > { %v7626_v31 = vpop.permute.xlu0 %1442  ;;  %v7634_v35 = vpop.permute.xlu1 %1447 }
 0x145   : > { %1882 = vperm.xlu0 %6860, %v1312_v17   ;;  %8987 = vst [vmem:[#allocation9_spill] sm:$0xff] %v7626_v31  ;;  %8988 = vst [vmem:[#allocation10_spill] sm:$0xff] %v7634_v35 }
 0x147   : > { %1837 = vperm.xlu1 %6861, %v1303_v0  }
 0x148   : > { %v7642_v38 = vpop.permute.xlu0 %1452  ;;  %v7647_v40 = vpop.permute.xlu1 %1457 }
 0x149   : > { %1892 = vperm.xlu0 %6860, %v1314_v21   ;;  %8989 = vst [vmem:[#allocation11_spill] sm:$0xff] %v7642_v38  ;;  %8990 = vst [vmem:[#allocation12_spill] sm:$0xff] %v7647_v40 }
 0x14b   : > { %1847 = vperm.xlu1 %6861, %v1305_v4  }
 0x14c   : > { %v7652_v42 = vpop.permute.xlu0 %1462  ;;  %v7660_v46 = vpop.permute.xlu1 %1467 }
 0x14d   : > { %1902 = vperm.xlu0 %6860, %v1316_v24   ;;  %8991 = vst [vmem:[#allocation13_spill] sm:$0xff] %v7652_v42  ;;  %8992 = vst [vmem:[#allocation14_spill] sm:$0xff] %v7660_v46 }
 0x14f   : > { %1857 = vperm.xlu1 %6861, %v1307_v8  }
 0x150   : > { %v7668_v49 = vpop.permute.xlu0 %1472  ;;  %v7673_v52 = vpop.permute.xlu1 %1477 }
 0x151   : > { %1912 = vperm.xlu0 %6860, %v1318_v29   ;;  %8993 = vst [vmem:[#allocation15_spill] sm:$0xff] %v7668_v49  ;;  %8994 = vst [vmem:[#allocation16_spill] sm:$0xff] %v7673_v52 }
 0x153   : > { %1867 = vperm.xlu1 %6861, %v1309_v12  }
 0x155   : > { %1922 = vperm.xlu0 %6860, %v1320_v33  }
 0x157   : > { %1877 = vperm.xlu1 %6861, %v1311_v15  }
 0x159   : > { %1932 = vperm.xlu0 %6860, %v1322_v37  }
 0x15b   : > { %1887 = vperm.xlu1 %6861, %v1313_v20  }
 0x15d   : > { %1942 = vperm.xlu0 %6860, %v1324_v41  }
 0x15f   : > { %1897 = vperm.xlu1 %6861, %v1315_v23  }
 0x161   : > { %1952 = vperm.xlu0 %6860, %v1326_v45  }
 0x163   : > { %1907 = vperm.xlu1 %6861, %v1317_v27  }
 0x165   : > { %1962 = vperm.xlu0 %6860, %v1328_v48  }
 0x167   : > { %1917 = vperm.xlu1 %6861, %v1319_v32  }
 0x16b   : > { %1927 = vperm.xlu1 %6861, %v1321_v36  }
 0x16f   : > { %1937 = vperm.xlu1 %6861, %v1323_v39  }
 0x173   : > { %1947 = vperm.xlu1 %6861, %v1325_v44  }
 0x177   : > { %1957 = vperm.xlu1 %6861, %v1327_v47  }
 0x17b   : > { %1967 = vperm.xlu1 %6861, %v1329_v51  }
 0x1c9   : > { %v6756_v55 = vpop.f32.mrf.mxu1 }
 0x1ca   : > { %v908_v61 = vadd.f32 %v6756_v55, %v7690_v57 }
 0x1cb   : > { %v7692_v58 = vpop.f32.mrf.mxu1 }
 0x1cc   : > { %v1028_v4 = vmax.f32 %v908_v61, 0.0 }
 0x1cd   : > { %v6757_v62 = vpop.f32.mrf.mxu1 }
 0x1ce   : > { %v911_v0 = vadd.f32 %v6757_v62, %v7690_v57 }
 0x1cf   : > { %v7696_v1 = vpop.f32.mrf.mxu1 }
 0x1d0   : > { %v1029_v6 = vmax.f32 %v911_v0, 0.0 }
 0x1d1   : > { %v6760_v8 = vpop.f32.mrf.mxu1 }
 0x1d2   : > { %v7698_v9 = vpack.c.bf16 %v1029_v6, %v1028_v4  ;;  %v924_v13 = vadd.f32 %v6760_v8, %v7690_v57 }
 0x1d3   : > { %v7700_v12 = vpop.f32.mrf.mxu1 }
 0x1d4   : > { %v1032_v21 = vmax.f32 %v924_v13, 0.0 }
 0x1d5   : > { %v6761_v15 = vpop.f32.mrf.mxu1 }
 0x1d6   : > { %v927_v17 = vadd.f32 %v6761_v15, %v7690_v57 }
 0x1d7   : > { %v7704_v20 = vpop.f32.mrf.mxu1 }
 0x1d8   : > { %v1033_v23 = vmax.f32 %v927_v17, 0.0 }
 0x1d9   : > { %v7706_v24 = vpop.f32.mrf.mxu1 }
 0x1da   : > { %v7708_v27 = vpack.c.bf16 %v1033_v23, %v1032_v21 }
 0x1db   : > { %v7710_v29 = vpop.f32.mrf.mxu1 }
 0x1dd   : > { %v6765_v32 = vpop.f32.mrf.mxu1 }
 0x1df   : > { %v7712_v33 = vpop.f32.mrf.mxu1 }
 0x1e1   : > { %v6768_v36 = vpop.f32.mrf.mxu1 }
 0x1e3   : > { %v947_v37 = vpop.f32.mrf.mxu1 }
 0x1e5   : > { %v6769_v39 = vpop.f32.mrf.mxu1 }
 0x1e7   : > { %v950_v41 = vpop.f32.mrf.mxu1 }
 0x1e9   : > { %v6772_v44 = vpop.f32.mrf.mxu1 }
 0x1ea   : > { %v972_v47 = vadd.f32 %v6772_v44, %v7690_v57 }
 0x1eb   : > { %v7714_v45 = vpop.f32.mrf.mxu1 }
 0x1ec   : > { %v1044_v61 = vmax.f32 %v972_v47, 0.0 }
 0x1ed   : > { %v6773_v48 = vpop.f32.mrf.mxu1 }
 0x1ee   : > { %v975_v51 = vadd.f32 %v6773_v48, %v7690_v57  ;;  %v959_v48 = vadd.f32 %v6769_v39, %v7690_v57 }
 0x1ef   : > { %v7718_v55 = vpop.f32.mrf.mxu1 }
 0x1f0   : > { %v1045_v62 = vmax.f32 %v975_v51, 0.0  ;;  %v956_v51 = vadd.f32 %v6768_v36, %v7690_v57  ;;  %v1041_v46 = vmax.f32 %v959_v48, 0.0 }
 0x1f1   : > { %v7720_v0 = vpop.f32.mrf.mxu1 }
 0x1f2   : > { %v7722_v4 = vpack.c.bf16 %v1045_v62, %v1044_v61  ;;  %v1040_v31 = vmax.f32 %v956_v51, 0.0 }
 0x1f3   : > { %v7724_v6 = vpop.f32.mrf.mxu1 }
 0x1f4   : > { %v1065_v22 = vpack.c.bf16 %v1041_v46, %v1040_v31  ;;  %v943_v31 = vadd.f32 %v6765_v32, %v7690_v57  ;;  %v935_v32 = vadd.f32 %v7690_v57, %v7712_v33 }
 0x1f5   : > { %v6777_v8 = vpop.f32.mrf.mxu1 }
 0x1f7   : > { %v7726_v13 = vpop.f32.mrf.mxu1 }
 0x1f8   : > { %v983_v33 = vadd.f32 %v7690_v57, %v7726_v13 }
 0x1f9   : > { %v6780_v15 = vpop.f32.mrf.mxu1 }
 0x1fa   : > { %v1004_v48 = vadd.f32 %v6780_v15, %v7690_v57 }
 0x1fb   : > { %v995_v17 = vpop.f32.mrf.mxu1 }
 0x1fd   : > { %v6781_v21 = vpop.f32.mrf.mxu1 }
 0x1fe   : > { %v1007_v36 = vadd.f32 %v6781_v21, %v7690_v57 }
 0x1ff   : > { %v998_v23 = vpop.f32.mrf.mxu1 }
 0x201   : > { %v6784_v44 = vpop.f32.mrf.mxu1 }
 0x202   : > { %v1020_v47 = vadd.f32 %v6784_v44, %v7690_v57  ;;  %v951_v44 = vadd.f32 %v7690_v57, %v950_v41  ;;  %v999_v41 = vadd.f32 %v7690_v57, %v998_v23 }
 0x203   : > { %v1011_v52 = vpop.f32.mrf.mxu1 }
 0x204   : > { %v1012_v61 = vadd.f32 %v7690_v57, %v1011_v52  ;;  %v1056_v40 = vmax.f32 %v1020_v47, 0.0  ;;  %v1053_v47 = vmax.f32 %v1007_v36, 0.0 }
 0x205   : > { %v6785_v49 = vpop.f32.mrf.mxu1 }
 0x206   : > { %v1023_v62 = vadd.f32 %v6785_v49, %v7690_v57  ;;  %v1054_v28 = vmax.f32 %v1012_v61, 0.0  ;;  %v948_v49 = vadd.f32 %v7690_v57, %v947_v37  ;;  %v1051_v37 = vmax.f32 %v999_v41, 0.0 }
 0x207   : > { %v1014_v42 = vpop.f32.mrf.mxu1  ;;  %v991_v61 = vadd.f32 %v6777_v8, %v7690_v57  ;;  %v1047_v8 = vmax.f32 %v983_v33, 0.0 }
 0x208   : > { %v1057_v38 = vmax.f32 %v1023_v62, 0.0  ;;  %v1015_v35 = vadd.f32 %v7690_v57, %v1014_v42  ;;  %v1039_v42 = vmax.f32 %v951_v44, 0.0  ;;  %v1035_v62 = vmax.f32 %v935_v32, 0.0  ;;  %v6905_v32 = vld [vmem:[%s8939_s5 + $0x130] sm:$0xff]  }
 0x20a   : > { %v1073_v25 = vpack.c.bf16 %v1057_v38, %v1056_v40  ;;  %v1055_v39 = vmax.f32 %v1015_v35, 0.0  ;;  %v1038_v38 = vmax.f32 %v948_v49, 0.0  ;;  %v1052_v35 = vmax.f32 %v1004_v48, 0.0 }
 0x20b   : > { %v919_v48 = vadd.f32 %v7690_v57, %v7704_v20  ;;  %v964_v20 = vadd.f32 %v7690_v57, %v7714_v45 }
 0x20c   : > { %6554 = vmatprep.subr.bf16.mxu0 %v1073_v25  ;;  %6786 = vmatprep.subr.bf16.mxu1 %v1073_v25  ;;  %v1072_v52 = vpack.c.bf16 %v1055_v39, %v1054_v28  ;;  %v1064_v40 = vpack.c.bf16 %v1039_v42, %v1038_v38  ;;  %v1071_v46 = vpack.c.bf16 %v1053_v47, %v1052_v35  ;;  %v1037_v28 = vmax.f32 %v943_v31, 0.0 }
 0x20d   : > { %6555 = vmatpush3.bf16.xpose.msra.mxu0 %v1065_v22  ;;  %6794 = vmatpush3.bf16.xpose.msra.mxu1 %v1065_v22  ;;  %v940_v25 = vadd.f32 %v7706_v24, %v7690_v57  ;;  %v996_v22 = vadd.f32 %v7690_v57, %v995_v17  ;;  %v932_v24 = vadd.f32 %v7690_v57, %v7710_v29  ;;  %v1049_v39 = vmax.f32 %v991_v61, 0.0  ;;  %v7818_v61 = vpop.permute.xlu0 %1482 }
 0x20e   : > { %6556 = vmatprep.subr.bf16.mxu0 %v1072_v52  ;;  %6787 = vmatprep.subr.bf16.mxu1 %v1072_v52  ;;  %v988_v17 = vadd.f32 %v7720_v0, %v7690_v57  ;;  %v980_v29 = vadd.f32 %v7690_v57, %v7724_v6  ;;  %v916_v47 = vadd.f32 %v7690_v57, %v7700_v12  ;;  %v1031_v13 = vmax.f32 %v919_v48, 0.0 }
 0x20f   : > { %v1036_v15 = vmax.f32 %v940_v25, 0.0  ;;  %v1050_v21 = vmax.f32 %v996_v22, 0.0  ;;  %v1034_v44 = vmax.f32 %v932_v24, 0.0  ;;  %v967_v35 = vadd.f32 %v7690_v57, %v7718_v55  ;;  %v6899_v25 = vld [vmem:[%s8939_s5 + $0x118] sm:$0xff]   ;;  %v6900_v22 = vld [vmem:[%s8939_s5 + $0x28] sm:$0xff]  }
 0x210   : > { %v1048_v36 = vmax.f32 %v988_v17, 0.0  ;;  %v1046_v0 = vmax.f32 %v980_v29, 0.0  ;;  %v1030_v38 = vmax.f32 %v916_v47, 0.0  ;;  %v1042_v31 = vmax.f32 %v964_v20, 0.0  ;;  %v6906_v17 = vld [vmem:[%s8939_s5 + $0x40] sm:$0xff]  }
 0x211   : > { %v1063_v51 = vpack.c.bf16 %v1037_v28, %v1036_v15  ;;  %v1070_v23 = vpack.c.bf16 %v1051_v37, %v1050_v21  ;;  %v1062_v52 = vpack.c.bf16 %v1035_v62, %v1034_v44  ;;  %v1043_v12 = vmax.f32 %v967_v35, 0.0  ;;  %v6901_v28 = vld [vmem:[%s8939_s5 + $0x120] sm:$0xff]   ;;  %v6902_v37 = vld [vmem:[%s8939_s5 + $0x30] sm:$0xff]   ;;  %v6903_v15 = vld [vmem:[%s8939_s5 + $0x128] sm:$0xff]   ;;  %v7810_v21 = vpop.permute.xlu1 %1487  ;;  %v7822_v24 = vpop.permute.xlu0 %1492 }
 0x212   : > { %v1069_v49 = vpack.c.bf16 %v1049_v39, %v1048_v36  ;;  %v1068_v42 = vpack.c.bf16 %v1047_v8, %v1046_v0  ;;  %v1060_v6 = vpack.c.bf16 %v1031_v13, %v1030_v38  ;;  %v6907_v62 = vld [vmem:[%s8939_s5 + $0x138] sm:$0xff]   ;;  %v6908_v36 = vld [vmem:[%s8939_s5 + $0x48] sm:$0xff]   ;;  %v6910_v8 = vld [vmem:[%s8939_s5 + $0x50] sm:$0xff]  }
 0x213   : > { %v6911_v0 = vld [vmem:[%s8939_s5 + $0x148] sm:$0xff]   ;;  %v6912_v13 = vld [vmem:[%s8939_s5 + $0x58] sm:$0xff]   ;;  %v6913_v38 = vld [vmem:[%s8939_s5 + $0x150] sm:$0xff]  }
 0x214   : > { %v6914_v20 = vld [vmem:[%s8939_s5 + $0x60] sm:$0xff]  }
 0x215   : > { %6557 = vmatpush3.bf16.xpose.msra.mxu0 %v1064_v40  ;;  %6795 = vmatpush3.bf16.xpose.msra.mxu1 %v1064_v40  ;;  %v1066_v40 = vpack.c.bf16 %v1043_v12, %v1042_v31  ;;  %v7832_v44 = vpop.permute.xlu0 %1502  ;;  %v6915_v12 = vld [vmem:[%s8939_s5 + $0x158] sm:$0xff]  }
 0x216   : > { %6558 = vmatprep.subr.bf16.mxu0 %v1071_v46  ;;  %6788 = vmatprep.subr.bf16.mxu1 %v1071_v46  ;;  %v900_v46 = vadd.f32 %v7690_v57, %v7692_v58  ;;  %v6895_v58 = vld [vmem:[%s8939_s5 + $0x108] sm:$0xff]   ;;  %8996 = vst [vmem:[#allocation18_spill] sm:$0xff] %v7832_v44  ;;  %v8060_v44 = vld [vmem:[%s8939_s5 + $0xd8] sm:$0xff]  }
 0x218   : > { %v1026_v55 = vmax.f32 %v900_v46, 0.0  ;;  %v6916_v46 = vld [vmem:[%s8939_s5 + $0x68] sm:$0xff]  }
 0x219   : > { %v7842_v33 = vpop.permute.xlu0 %1512 }
 0x21a   : > { %8998 = vst [vmem:[#allocation20_spill] sm:$0xff] %v7842_v33 }
 0x21d   : > { %6559 = vmatpush3.bf16.xpose.msra.mxu0 %v1063_v51  ;;  %6796 = vmatpush3.bf16.xpose.msra.mxu1 %v1063_v51  ;;  %v6904_v51 = vld [vmem:[%s8939_s5 + $0x38] sm:$0xff]   ;;  %v7852_v48 = vpop.permute.xlu0 %1522 }
 0x21e   : > { %6560 = vmatprep.subr.bf16.mxu0 %v1070_v23  ;;  %6789 = vmatprep.subr.bf16.mxu1 %v1070_v23  ;;  %v7820_v23 = vpop.permute.xlu1 %1497  ;;  %9000 = vst [vmem:[#allocation22_spill] sm:$0xff] %v7852_v48 }
 0x221   : > { %v7856_v47 = vpop.permute.xlu0 %1532 }
 0x222   : > { %v7830_v39 = vpop.permute.xlu1 %1507  ;;  %9002 = vst [vmem:[#allocation24_spill] sm:$0xff] %v7856_v47 }
 0x223   : > { %8995 = vst [vmem:[#allocation17_spill] sm:$0xff] %v7830_v39 }
 0x225   : > { %6561 = vmatpush3.bf16.xpose.msra.mxu0 %v1062_v52  ;;  %6797 = vmatpush3.bf16.xpose.msra.mxu1 %v1062_v52  ;;  %v6909_v52 = vld [vmem:[%s8939_s5 + $0x140] sm:$0xff]   ;;  %v7866_v35 = vpop.permute.xlu0 %1542 }
 0x226   : > { %6562 = vmatprep.subr.bf16.mxu0 %v1069_v49  ;;  %6790 = vmatprep.subr.bf16.mxu1 %v1069_v49  ;;  %v7840_v49 = vpop.permute.xlu1 %1517  ;;  %9004 = vst [vmem:[#allocation26_spill] sm:$0xff] %v7866_v35 }
 0x227   : > { %8997 = vst [vmem:[#allocation19_spill] sm:$0xff] %v7840_v49 }
 0x22a   : > { %v7844_v29 = vpop.permute.xlu1 %1527 }
 0x22b   : > { %8999 = vst [vmem:[#allocation21_spill] sm:$0xff] %v7844_v29 }
 0x22d   : > { %6563 = vmatpush3.bf16.xpose.msra.mxu0 %v7708_v27  ;;  %6798 = vmatpush3.bf16.xpose.msra.mxu1 %v7708_v27  ;;  %v903_v27 = vadd.f32 %v7690_v57, %v7696_v1  ;;  %v6893_v1 = vld [vmem:[%s8939_s5 + $0x100] sm:$0xff]   ;;  %v6894_v57 = vld [vmem:[%s8939_s5 + $0x10] sm:$0xff]  }
 0x22e   : > { %6564 = vmatprep.subr.bf16.mxu0 %v1068_v42  ;;  %6791 = vmatprep.subr.bf16.mxu1 %v1068_v42  ;;  %v7854_v42 = vpop.permute.xlu1 %1537 }
 0x22f   : > { %v1027_v45 = vmax.f32 %v903_v27, 0.0  ;;  %9001 = vst [vmem:[#allocation23_spill] sm:$0xff] %v7854_v42  ;;  %v7876_v27 = vpop.permute.xlu0 %1552 }
 0x230   : > { %9006 = vst [vmem:[#allocation28_spill] sm:$0xff] %v7876_v27 }
 0x231   : > { %v1058_v41 = vpack.c.bf16 %v1027_v45, %v1026_v55  ;;  %v6917_v45 = vld [vmem:[%s8939_s5 + $0x160] sm:$0xff]  }
 0x233   : > { %v7886_v55 = vpop.permute.xlu0 %1562 }
 0x234   : > { %9008 = vst [vmem:[#allocation30_spill] sm:$0xff] %v7886_v55 }
 0x235   : > { %6565 = vmatpush3.bf16.xpose.msra.mxu0 %v1060_v6  ;;  %6799 = vmatpush3.bf16.xpose.msra.mxu1 %v1060_v6  ;;  %v7864_v6 = vpop.permute.xlu1 %1547 }
 0x236   : > { %6566 = vmatprep.subr.bf16.mxu0 %v7722_v4  ;;  %6792 = vmatprep.subr.bf16.mxu1 %v7722_v4  ;;  %v6892_v4 = vld [vmem:[%s8939_s5 + $0x8] sm:$0xff]   ;;  %9003 = vst [vmem:[#allocation25_spill] sm:$0xff] %v7864_v6 }
 0x239   : > { %v7874_v31 = vpop.permute.xlu1 %1557 }
 0x23a   : > { %9005 = vst [vmem:[#allocation27_spill] sm:$0xff] %v7874_v31 }
 0x23d   : > { %6567 = vmatpush3.bf16.xpose.msra.mxu0 %v7698_v9  ;;  %6800 = vmatpush3.bf16.xpose.msra.mxu1 %v7698_v9  ;;  %v6898_v9 = vld [vmem:[%s8939_s5 + $0x20] sm:$0xff]  }
 0x23e   : > { %6568 = vmatprep.subr.bf16.mxu0 %v1066_v40  ;;  %6793 = vmatprep.subr.bf16.mxu1 %v1066_v40  ;;  %v7878_v40 = vpop.permute.xlu1 %1567 }
 0x23f   : > { %9007 = vst [vmem:[#allocation29_spill] sm:$0xff] %v7878_v40 }
 0x245   : > { %6569 = vmatpush3.bf16.xpose.msra.mxu0 %v1058_v41  ;;  %6801 = vmatpush3.bf16.xpose.msra.mxu1 %v1058_v41  ;;  %v7888_v41 = vpop.permute.xlu1 %1577 }
 0x246   : > { %9009 = vst [vmem:[#allocation31_spill] sm:$0xff] %v7888_v41 }
 0x24c   : > { %6571 = vmatmul.mubr.bf16.vlgmr.msra.gmra.mxu0 %v7678_v30  ;;  %6633 = vmatmul.mubr.bf16.vlgmr.msra.gmra.mxu1 %v7683_v53  ;;  %v6896_v30 = vld [vmem:[%s8939_s5 + $0x18] sm:$0xff]   ;;  %v6897_v53 = vld [vmem:[%s8939_s5 + $0x110] sm:$0xff]  }
 0x24d   : > { %6572 = vmatprep.mubr.bf16.mxu0 %v6892_v4  ;;  %6634 = vmatprep.mubr.bf16.mxu1 %v6893_v1 }
 0x254   : > { %6573 = vmatmul.mubr.bf16.gmra.mxu0 %v6892_v4  ;;  %6635 = vmatmul.mubr.bf16.gmra.mxu1 %v6893_v1  ;;  %v7890_v4 = vpop.permute.xlu0 %1572  ;;  %v6918_v1 = vld [vmem:[%s8939_s5 + $0x70] sm:$0xff]  }
 0x255   : > { %6574 = vmatprep.mubr.bf16.mxu0 %v6894_v57  ;;  %6636 = vmatprep.mubr.bf16.mxu1 %v6895_v58  ;;  %9010 = vst [vmem:[#allocation32_spill] sm:$0xff] %v7890_v4 }
 0x25c   : > { %6575 = vmatmul.mubr.bf16.gmra.mxu0 %v6894_v57  ;;  %6637 = vmatmul.mubr.bf16.gmra.mxu1 %v6895_v58  ;;  %v6919_v57 = vld [vmem:[%s8939_s5 + $0x168] sm:$0xff]   ;;  %v7898_v58 = vpop.permute.xlu1 %1587 }
 0x25d   : > { %6576 = vmatprep.mubr.bf16.mxu0 %v6896_v30  ;;  %6638 = vmatprep.mubr.bf16.mxu1 %v6897_v53  ;;  %9011 = vst [vmem:[#allocation33_spill] sm:$0xff] %v7898_v58 }
 0x264   : > { %6577 = vmatmul.mubr.bf16.gmra.mxu0 %v6896_v30  ;;  %6639 = vmatmul.mubr.bf16.gmra.mxu1 %v6897_v53  ;;  %v7900_v30 = vpop.permute.xlu0 %1582  ;;  %v6920_v53 = vld [vmem:[%s8939_s5 + $0x78] sm:$0xff]  }
 0x265   : > { %6578 = vmatprep.mubr.bf16.mxu0 %v6898_v9  ;;  %6640 = vmatprep.mubr.bf16.mxu1 %v6899_v25  ;;  %9012 = vst [vmem:[#allocation34_spill] sm:$0xff] %v7900_v30 }
 0x26c   : > { %6579 = vmatmul.mubr.bf16.gmra.mxu0 %v6898_v9  ;;  %6641 = vmatmul.mubr.bf16.gmra.mxu1 %v6899_v25  ;;  %v6921_v9 = vld [vmem:[%s8939_s5 + $0x170] sm:$0xff]   ;;  %v7908_v25 = vpop.permute.xlu1 %1597 }
 0x26d   : > { %6580 = vmatprep.mubr.bf16.mxu0 %v6900_v22  ;;  %6642 = vmatprep.mubr.bf16.mxu1 %v6901_v28  ;;  %9013 = vst [vmem:[#allocation35_spill] sm:$0xff] %v7908_v25  ;;  %v6940_v25 = vld [vmem:[%s8939_s5 + $0xc8] sm:$0xff]  }
 0x274   : > { %6581 = vmatmul.mubr.bf16.gmra.mxu0 %v6900_v22  ;;  %6643 = vmatmul.mubr.bf16.gmra.mxu1 %v6901_v28  ;;  %v7910_v22 = vpop.permute.xlu0 %1592  ;;  %v7912_v28 = vpop.permute.xlu1 %1607 }
 0x275   : > { %6582 = vmatprep.mubr.bf16.mxu0 %v6902_v37  ;;  %6644 = vmatprep.mubr.bf16.mxu1 %v6903_v15  ;;  %9014 = vst [vmem:[#allocation36_spill] sm:$0xff] %v7910_v22  ;;  %9015 = vst [vmem:[#allocation37_spill] sm:$0xff] %v7912_v28  ;;  %v6939_v28 = vld [vmem:[%s8939_s5 + $0x1b8] sm:$0xff]   ;;  %v6941_v22 = vld [vmem:[%s8939_s5 + $0x1c0] sm:$0xff]  }
 0x27c   : > { %6583 = vmatmul.mubr.bf16.gmra.mxu0 %v6902_v37  ;;  %6645 = vmatmul.mubr.bf16.gmra.mxu1 %v6903_v15  ;;  %v6922_v37 = vld [vmem:[%s8939_s5 + $0x80] sm:$0xff]   ;;  %v6923_v15 = vld [vmem:[%s8939_s5 + $0x178] sm:$0xff]  }
 0x27d   : > { %6584 = vmatprep.mubr.bf16.mxu0 %v6904_v51  ;;  %6646 = vmatprep.mubr.bf16.mxu1 %v6905_v32 }
 0x284   : > { %6585 = vmatmul.mubr.bf16.gmra.mxu0 %v6904_v51  ;;  %6647 = vmatmul.mubr.bf16.gmra.mxu1 %v6905_v32  ;;  %v7920_v51 = vpop.permute.xlu0 %1602  ;;  %v7922_v32 = vpop.permute.xlu1 %1617 }
 0x285   : > { %6586 = vmatprep.mubr.bf16.mxu0 %v6906_v17  ;;  %6648 = vmatprep.mubr.bf16.mxu1 %v6907_v62  ;;  %9016 = vst [vmem:[#allocation38_spill] sm:$0xff] %v7920_v51  ;;  %9017 = vst [vmem:[#allocation39_spill] sm:$0xff] %v7922_v32  ;;  %v6937_v32 = vld [vmem:[%s8939_s5 + $0x1b0] sm:$0xff]  }
 0x28c   : > { %6587 = vmatmul.mubr.bf16.gmra.mxu0 %v6906_v17  ;;  %6649 = vmatmul.mubr.bf16.gmra.mxu1 %v6907_v62  ;;  %v7924_v17 = vpop.permute.xlu0 %1612  ;;  %v6924_v62 = vld [vmem:[%s8939_s5 + $0x88] sm:$0xff]  }
 0x28d   : > { %6588 = vmatprep.mubr.bf16.mxu0 %v6908_v36  ;;  %6650 = vmatprep.mubr.bf16.mxu1 %v6909_v52  ;;  %9018 = vst [vmem:[#allocation40_spill] sm:$0xff] %v7924_v17 }
 0x294   : > { %6589 = vmatmul.mubr.bf16.gmra.mxu0 %v6908_v36  ;;  %6651 = vmatmul.mubr.bf16.gmra.mxu1 %v6909_v52  ;;  %v6925_v36 = vld [vmem:[%s8939_s5 + $0x180] sm:$0xff]   ;;  %v7932_v52 = vpop.permute.xlu1 %1627 }
 0x295   : > { %6590 = vmatprep.mubr.bf16.mxu0 %v6910_v8  ;;  %6652 = vmatprep.mubr.bf16.mxu1 %v6911_v0  ;;  %9019 = vst [vmem:[#allocation41_spill] sm:$0xff] %v7932_v52 }
 0x29c   : > { %6591 = vmatmul.mubr.bf16.gmra.mxu0 %v6910_v8  ;;  %6653 = vmatmul.mubr.bf16.gmra.mxu1 %v6911_v0  ;;  %v7934_v8 = vpop.permute.xlu0 %1622  ;;  %v6926_v0 = vld [vmem:[%s8939_s5 + $0x90] sm:$0xff]  }
 0x29d   : > { %6592 = vmatprep.mubr.bf16.mxu0 %v6912_v13  ;;  %6654 = vmatprep.mubr.bf16.mxu1 %v6913_v38  ;;  %9020 = vst [vmem:[#allocation42_spill] sm:$0xff] %v7934_v8  ;;  %v6936_v8 = vld [vmem:[%s8939_s5 + $0xb8] sm:$0xff]  }
 0x2a4   : > { %6593 = vmatmul.mubr.bf16.gmra.mxu0 %v6912_v13  ;;  %6655 = vmatmul.mubr.bf16.gmra.mxu1 %v6913_v38  ;;  %v6927_v13 = vld [vmem:[%s8939_s5 + $0x188] sm:$0xff]   ;;  %v7942_v38 = vpop.permute.xlu1 %1637 }
 0x2a5   : > { %6594 = vmatprep.mubr.bf16.mxu0 %v6914_v20  ;;  %6656 = vmatprep.mubr.bf16.mxu1 %v6915_v12  ;;  %9021 = vst [vmem:[#allocation43_spill] sm:$0xff] %v7942_v38  ;;  %v6934_v38 = vld [vmem:[%s8939_s5 + $0xb0] sm:$0xff]  }
 0x2ac   : > { %6595 = vmatmul.mubr.bf16.gmra.mxu0 %v6914_v20  ;;  %6657 = vmatmul.mubr.bf16.gmra.mxu1 %v6915_v12  ;;  %v7944_v20 = vpop.permute.xlu0 %1632  ;;  %v7946_v12 = vpop.permute.xlu1 %1647 }
 0x2ad   : > { %6596 = vmatprep.mubr.bf16.mxu0 %v6916_v46  ;;  %6658 = vmatprep.mubr.bf16.mxu1 %v6917_v45  ;;  %9022 = vst [vmem:[#allocation44_spill] sm:$0xff] %v7944_v20  ;;  %v6935_v20 = vld [vmem:[%s8939_s5 + $0x1a8] sm:$0xff]  }
 0x2b4   : > { %6597 = vmatmul.mubr.bf16.gmra.mxu0 %v6916_v46  ;;  %6659 = vmatmul.mubr.bf16.gmra.mxu1 %v6917_v45  ;;  %v6928_v46 = vld [vmem:[%s8939_s5 + $0x98] sm:$0xff]   ;;  %v6929_v45 = vld [vmem:[%s8939_s5 + $0x190] sm:$0xff]  }
 0x2b5   : > { %6598 = vmatprep.mubr.bf16.mxu0 %v6918_v1  ;;  %6660 = vmatprep.mubr.bf16.mxu1 %v6919_v57 }
 0x2bc   : > { %6599 = vmatmul.mubr.bf16.gmra.mxu0 %v6918_v1  ;;  %6661 = vmatmul.mubr.bf16.gmra.mxu1 %v6919_v57  ;;  %v7954_v1 = vpop.permute.xlu0 %1642  ;;  %v7956_v57 = vpop.permute.xlu1 %1657 }
 0x2bd   : > { %6600 = vmatprep.mubr.bf16.mxu0 %v6920_v53  ;;  %6662 = vmatprep.mubr.bf16.mxu1 %v6921_v9 }
 0x2c4   : > { %6601 = vmatmul.mubr.bf16.gmra.mxu0 %v6920_v53  ;;  %6663 = vmatmul.mubr.bf16.gmra.mxu1 %v6921_v9  ;;  %v7958_v53 = vpop.permute.xlu0 %1652  ;;  %v6930_v9 = vld [vmem:[%s8939_s5 + $0xa0] sm:$0xff]  }
 0x2c5   : > { %6602 = vmatprep.mubr.bf16.mxu0 %v6922_v37  ;;  %6664 = vmatprep.mubr.bf16.mxu1 %v6923_v15 }
 0x2cc   : > { %6603 = vmatmul.mubr.bf16.gmra.mxu0 %v6922_v37  ;;  %6665 = vmatmul.mubr.bf16.gmra.mxu1 %v6923_v15  ;;  %v6931_v37 = vld [vmem:[%s8939_s5 + $0x198] sm:$0xff]   ;;  %v7966_v15 = vpop.permute.xlu1 %1667 }
 0x2cd   : > { %6604 = vmatprep.mubr.bf16.mxu0 %v6924_v62  ;;  %6666 = vmatprep.mubr.bf16.mxu1 %v6925_v36 }
 0x2d4   : > { %6605 = vmatmul.mubr.bf16.gmra.mxu0 %v6924_v62  ;;  %6667 = vmatmul.mubr.bf16.gmra.mxu1 %v6925_v36  ;;  %v7968_v62 = vpop.permute.xlu0 %1662  ;;  %v6932_v36 = vld [vmem:[%s8939_s5 + $0xa8] sm:$0xff]  }
 0x2d5   : > { %6606 = vmatprep.mubr.bf16.mxu0 %v6926_v0  ;;  %6668 = vmatprep.mubr.bf16.mxu1 %v6927_v13 }
 0x2dc   : > { %6607 = vmatmul.mubr.bf16.gmra.mxu0 %v6926_v0  ;;  %6669 = vmatmul.mubr.bf16.gmra.mxu1 %v6927_v13  ;;  %v6933_v0 = vld [vmem:[%s8939_s5 + $0x1a0] sm:$0xff]   ;;  %v7976_v13 = vpop.permute.xlu1 %1677 }
 0x2dd   : > { %6608 = vmatprep.mubr.bf16.mxu0 %v6928_v46  ;;  %6670 = vmatprep.mubr.bf16.mxu1 %v6929_v45 }
 0x2e4   : > { %6609 = vmatmul.mubr.bf16.gmra.mxu0 %v6928_v46  ;;  %6671 = vmatmul.mubr.bf16.gmra.mxu1 %v6929_v45  ;;  %v7978_v46 = vpop.permute.xlu0 %1672  ;;  %v7980_v45 = vpop.permute.xlu1 %1687 }
 0x2e5   : > { %6610 = vmatprep.mubr.bf16.mxu0 %v6930_v9  ;;  %6672 = vmatprep.mubr.bf16.mxu1 %v6931_v37 }
 0x2e8   : > { %v7988_v52 = vpop.permute.xlu0 %1682 }
 0x2ec   : > { %6611 = vmatmul.mubr.bf16.gmra.mxu0 %v6930_v9  ;;  %6673 = vmatmul.mubr.bf16.gmra.mxu1 %v6931_v37  ;;  %v7990_v9 = vpop.permute.xlu1 %1697  ;;  %v7992_v37 = vpop.permute.xlu0 %1692 }
 0x2ed   : > { %6612 = vmatprep.mubr.bf16.mxu0 %v6932_v36  ;;  %6674 = vmatprep.mubr.bf16.mxu1 %v6933_v0 }
 0x2f0   : > { %v8000_v17 = vpop.permute.xlu1 %1707 }
 0x2f4   : > { %6613 = vmatmul.mubr.bf16.gmra.mxu0 %v6932_v36  ;;  %6675 = vmatmul.mubr.bf16.gmra.mxu1 %v6933_v0  ;;  %v8002_v36 = vpop.permute.xlu0 %1702  ;;  %v6938_v0 = vld [vmem:[%s8939_s5 + $0xc0] sm:$0xff]   ;;  %v8010_v51 = vpop.permute.xlu1 %1717 }
 0x2f5   : > { %6614 = vmatprep.mubr.bf16.mxu0 %v6934_v38  ;;  %6676 = vmatprep.mubr.bf16.mxu1 %v6935_v20 }
 0x2fc   : > { %6615 = vmatmul.mubr.bf16.gmra.mxu0 %v6934_v38  ;;  %6677 = vmatmul.mubr.bf16.gmra.mxu1 %v6935_v20  ;;  %v8012_v38 = vpop.permute.xlu0 %1712  ;;  %v8014_v20 = vpop.permute.xlu1 %1727 }
 0x2fd   : > { %6616 = vmatprep.mubr.bf16.mxu0 %v6936_v8  ;;  %6678 = vmatprep.mubr.bf16.mxu1 %v6937_v32 }
 0x300   : > { %v8022_v58 = vpop.permute.xlu0 %1722  ;;  %v8027_v55 = vpop.permute.xlu1 %1737 }
 0x304   : > { %6617 = vmatmul.mubr.bf16.gmra.mxu0 %v6936_v8  ;;  %6679 = vmatmul.mubr.bf16.gmra.mxu1 %v6937_v32  ;;  %v8045_v33 = vpop.permute.xlu1 %1747 }
 0x305   : > { %6618 = vmatprep.mubr.bf16.mxu0 %v6938_v0  ;;  %6680 = vmatprep.mubr.bf16.mxu1 %v6939_v28 }
 0x30c   : > { %v2388_v30 = vpop.f32.mrf.mxu0  ;;  %6619 = vmatmul.mubr.bf16.gmra.mxu0 %v6938_v0  ;;  %v2698_v32 = vpop.f32.mrf.mxu1  ;;  %6681 = vmatmul.mubr.bf16.gmra.mxu1 %v6939_v28 }
 0x30d   : > { %v2389_v8 = vadd.f32 %v2388_v30, %v7472_v2  ;;  %v2699_v41 = vadd.f32 %v2698_v32, %v7954_v1  ;;  %6620 = vmatprep.mubr.bf16.mxu0 %v6940_v25  ;;  %6682 = vmatprep.mubr.bf16.mxu1 %v6941_v22  ;;  %v8033_v28 = vpop.permute.xlu0 %1732 }
 0x30e   : > { %v2390_v4 = vpop.f32.mrf.mxu0  ;;  %v2700_v40 = vpop.f32.mrf.mxu1 }
 0x30f   : > { %v2391_v31 = vadd.f32 %v2390_v4, %v7472_v2  ;;  %v2701_v27 = vadd.f32 %v2700_v40, %v7954_v1  ;;  %v3027_v35 = vmax.f32 %v2389_v8, 0.0  ;;  %v3151_v30 = vmax.f32 %v2699_v41, 0.0  ;;  %v6942_v2 = vld [vmem:[%s8939_s5 + $0xd0] sm:$0xff]   ;;  %v6943_v40 = vld [vmem:[%s8939_s5 + $0x1c8] sm:$0xff]  }
 0x310   : > { %v2392_v0 = vpop.f32.mrf.mxu0  ;;  %v2702_v6 = vpop.f32.mrf.mxu1 }
 0x311   : > { %v3028_v42 = vmax.f32 %v2391_v31, 0.0  ;;  %v3152_v32 = vmax.f32 %v2701_v27, 0.0  ;;  %v2393_v47 = vadd.f32 %v2392_v0, %v7491_v19  ;;  %v2703_v29 = vadd.f32 %v2702_v6, %v7946_v12 }
 0x312   : > { %v2394_v48 = vpop.f32.mrf.mxu0  ;;  %v2704_v49 = vpop.f32.mrf.mxu1 }
 0x313   : > { %v6381_v4 = vpack.c.bf16 %v3028_v42, %v3027_v35  ;;  %v5470_v1 = vmax.f32 %v3027_v35, %v3028_v42  ;;  %v6443_v8 = vpack.c.bf16 %v3152_v32, %v3151_v30  ;;  %v5656_v41 = vmax.f32 %v3151_v30, %v3152_v32  ;;  %v8053_v30 = vpop.permute.xlu0 %1742 }
 0x314   : > { %v2395_v31 = vadd.f32 %v2394_v48, %v7491_v19  ;;  %v2705_v27 = vadd.f32 %v2704_v49, %v7946_v12  ;;  %v2398_v0 = vpop.f32.mrf.mxu0  ;;  %6621 = vmatmul.mubr.bf16.gmra.mxu0 %v6940_v25  ;;  %v2708_v6 = vpop.f32.mrf.mxu1  ;;  %6683 = vmatmul.mubr.bf16.gmra.mxu1 %v6941_v22  ;;  %v3029_v19 = vmax.f32 %v2393_v47, 0.0  ;;  %v3153_v49 = vmax.f32 %v2703_v29, 0.0 }
 0x315   : > { %4051 = vst [vmem:[%s8047_s20] sm:$0xff] %v6381_v4  ;;  %4113 = vst [vmem:[%s8047_s20 + $0x1f0] sm:$0xff] %v6443_v8  ;;  %v2399_v42 = vadd.f32 %v2398_v0, %v7480_v11  ;;  %v2709_v35 = vadd.f32 %v2708_v6, %v7958_v53  ;;  %5657 = vmax.xlane.f32.xlu1 %v5656_v41  ;;  %5471 = vmax.xlane.f32.xlu0 %v5470_v1 }
 0x316   : > { %v3030_v48 = vmax.f32 %v2395_v31, 0.0  ;;  %v3154_v25 = vmax.f32 %v2705_v27, 0.0  ;;  %v2400_v12 = vpop.f32.mrf.mxu0  ;;  %v2710_v22 = vpop.f32.mrf.mxu1  ;;  %6622 = vmatprep.mubr.bf16.mxu0 %v6942_v2  ;;  %6684 = vmatprep.mubr.bf16.mxu1 %v6943_v40 }
 0x317   : > { %v2401_v32 = vadd.f32 %v2400_v12, %v7480_v11  ;;  %v2711_v4 = vadd.f32 %v2710_v22, %v7958_v53  ;;  %v3031_v31 = vmax.f32 %v2399_v42, 0.0  ;;  %v3155_v27 = vmax.f32 %v2709_v35, 0.0  ;;  %v8065_v11 = vld [vmem:[%s8939_s5 + $0x1d0] sm:$0xff]  }
 0x318   : > { %v6382_v8 = vpack.c.bf16 %v3030_v48, %v3029_v19  ;;  %v6444_v0 = vpack.c.bf16 %v3154_v25, %v3153_v49  ;;  %v2402_v41 = vpop.f32.mrf.mxu0  ;;  %v2712_v1 = vpop.f32.mrf.mxu1  ;;  %v5473_v47 = vmax.f32 %v3029_v19, %v3030_v48  ;;  %v5659_v29 = vmax.f32 %v3153_v49, %v3154_v25 }
 0x319   : > { %v3032_v6 = vmax.f32 %v2401_v32, 0.0  ;;  %v3156_v39 = vmax.f32 %v2711_v4, 0.0  ;;  %v2403_v53 = vadd.f32 %v2402_v41, %v7499_v26  ;;  %v8071_v19 = vadd.f32 %v2712_v1, %v7956_v57  ;;  %v8073_v49 = vpop.permute.xlu1 %1757  ;;  %v8077_v41 = vpop.permute.xlu0 %1752 }
 0x31a   : > { %4052 = vst [vmem:[%s8047_s20 + $0x8] sm:$0xff] %v6382_v8  ;;  %4114 = vst [vmem:[%s8047_s20 + $0x1f8] sm:$0xff] %v6444_v0  ;;  %5474 = vmax.xlane.f32.xlu1 %v5473_v47  ;;  %5660 = vmax.xlane.f32.xlu0 %v5659_v29  ;;  %v2404_v42 = vpop.f32.mrf.mxu0  ;;  %v2714_v35 = vpop.f32.mrf.mxu1 }
 0x31b   : > { %v6383_v48 = vpack.c.bf16 %v3032_v6, %v3031_v31  ;;  %v5476_v25 = vmax.f32 %v3031_v31, %v3032_v6  ;;  %v6445_v12 = vpack.c.bf16 %v3156_v39, %v3155_v27  ;;  %v5662_v22 = vmax.f32 %v3155_v27, %v3156_v39 }
 0x31c   : > { %v2405_v32 = vadd.f32 %v2404_v42, %v7499_v26  ;;  %v2715_v4 = vadd.f32 %v2714_v35, %v7956_v57  ;;  %v2408_v8 = vpop.f32.mrf.mxu0  ;;  %6623 = vmatmul.mubr.bf16.gmra.mxu0 %v6942_v2  ;;  %v2718_v0 = vpop.f32.mrf.mxu1  ;;  %6685 = vmatmul.mubr.bf16.gmra.mxu1 %v6943_v40  ;;  %v3033_v39 = vmax.f32 %v2403_v53, 0.0  ;;  %v3157_v26 = vmax.f32 %v8071_v19, 0.0 }
 0x31d   : > { %4053 = vst [vmem:[%s8047_s20 + $0x10] sm:$0xff] %v6383_v48  ;;  %4115 = vst [vmem:[%s8047_s20 + $0x200] sm:$0xff] %v6445_v12  ;;  %v2409_v1 = vadd.f32 %v2408_v8, %v7504_v34  ;;  %v2719_v47 = vadd.f32 %v2718_v0, %v7968_v62  ;;  %6624 = vmatprep.mubr.bf16.mxu0 %v8060_v44  ;;  %6686 = vmatprep.mubr.bf16.mxu1 %v8065_v11  ;;  %v8088_v53 = vpop.permute.xlu1 %1767 }
 0x31e   : > { %v3034_v57 = vmax.f32 %v2405_v32, 0.0  ;;  %v3158_v29 = vmax.f32 %v2715_v4, 0.0  ;;  %5663 = vmax.xlane.f32.xlu1 %v5662_v22  ;;  %5477 = vmax.xlane.f32.xlu0 %v5476_v25  ;;  %v2410_v2 = vpop.f32.mrf.mxu0  ;;  %v2720_v40 = vpop.f32.mrf.mxu1  ;;  %v8093_v25 = vld [vmem:[%s8939_s5 + $0xe0] sm:$0xff]  }
 0x31f   : > { %v2411_v31 = vadd.f32 %v2410_v2, %v7504_v34  ;;  %v2721_v27 = vadd.f32 %v2720_v40, %v7968_v62  ;;  %v3035_v19 = vmax.f32 %v2409_v1, 0.0  ;;  %v3159_v32 = vmax.f32 %v2719_v47, 0.0  ;;  %v6947_v1 = vld [vmem:[%s8939_s5 + $0x1d8] sm:$0xff]   ;;  %v8104_v47 = vpop.permute.xlu0 %1762 }
 0x320   : > { %v6384_v6 = vpack.c.bf16 %v3034_v57, %v3033_v39  ;;  %v6446_v42 = vpack.c.bf16 %v3158_v29, %v3157_v26  ;;  %v2412_v35 = vpop.f32.mrf.mxu0  ;;  %v2722_v48 = vpop.f32.mrf.mxu1  ;;  %v5479_v12 = vmax.f32 %v3033_v39, %v3034_v57 }
 0x321   : > { %v3036_v4 = vmax.f32 %v2411_v31, 0.0  ;;  %v3160_v22 = vmax.f32 %v2721_v27, 0.0  ;;  %v2413_v34 = vadd.f32 %v2412_v35, %v7517_v43  ;;  %v8099_v62 = vadd.f32 %v2722_v48, %v7966_v15 }
 0x322   : > { %4054 = vst [vmem:[%s8047_s20 + $0x18] sm:$0xff] %v6384_v6  ;;  %4116 = vst [vmem:[%s8047_s20 + $0x208] sm:$0xff] %v6446_v42  ;;  %5480 = vmax.xlane.f32.xlu0 %v5479_v12  ;;  %v2414_v8 = vpop.f32.mrf.mxu0  ;;  %v2724_v0 = vpop.f32.mrf.mxu1  ;;  %v5665_v42 = vmax.f32 %v3157_v26, %v3158_v29 }
 0x323   : > { %v6385_v39 = vpack.c.bf16 %v3036_v4, %v3035_v19  ;;  %v5482_v57 = vmax.f32 %v3035_v19, %v3036_v4  ;;  %v6447_v2 = vpack.c.bf16 %v3160_v22, %v3159_v32  ;;  %v2415_v40 = vadd.f32 %v2414_v8, %v7517_v43 }
 0x324   : > { %v2725_v31 = vadd.f32 %v2724_v0, %v7966_v15  ;;  %v2418_v27 = vpop.f32.mrf.mxu0  ;;  %6625 = vmatmul.mubr.bf16.gmra.mxu0 %v8060_v44  ;;  %v2728_v6 = vpop.f32.mrf.mxu1  ;;  %6687 = vmatmul.mubr.bf16.gmra.mxu1 %v8065_v11  ;;  %v3037_v12 = vmax.f32 %v2413_v34, 0.0  ;;  %v3161_v43 = vmax.f32 %v8099_v62, 0.0  ;;  %v5668_v26 = vmax.f32 %v3159_v32, %v3160_v22  ;;  %v8125_v32 = vld [vmem:[%s8939_s5 + $0xe8] sm:$0xff]  }
 0x325   : > { %4055 = vst [vmem:[%s8047_s20 + $0x20] sm:$0xff] %v6385_v39  ;;  %4117 = vst [vmem:[%s8047_s20 + $0x210] sm:$0xff] %v6447_v2  ;;  %v2419_v35 = vadd.f32 %v2418_v27, %v7526_v50  ;;  %v2729_v48 = vadd.f32 %v2728_v6, %v7978_v46  ;;  %5483 = vmax.xlane.f32.xlu1 %v5482_v57  ;;  %6626 = vmatprep.mubr.bf16.mxu0 %v8093_v25  ;;  %v3038_v15 = vmax.f32 %v2415_v40, 0.0  ;;  %v8116_v11 = vpop.permute.xlu1 %1777  ;;  %v8120_v2 = vpop.permute.xlu0 %1772 }
 0x326   : > { %v3162_v19 = vmax.f32 %v2725_v31, 0.0  ;;  %5666 = vmax.xlane.f32.xlu0 %v5665_v42  ;;  %v2420_v44 = vpop.f32.mrf.mxu0  ;;  %v2730_v4 = vpop.f32.mrf.mxu1  ;;  %6688 = vmatprep.mubr.bf16.mxu1 %v6947_v1 }
 0x327   : > { %v2421_v29 = vadd.f32 %v2420_v44, %v7526_v50  ;;  %v2731_v8 = vadd.f32 %v2730_v4, %v7978_v46  ;;  %v6386_v0 = vpack.c.bf16 %v3038_v15, %v3037_v12  ;;  %v5485_v62 = vmax.f32 %v3037_v12, %v3038_v15 }
 0x328   : > { %v6448_v39 = vpack.c.bf16 %v3162_v19, %v3161_v43  ;;  %v2422_v34 = vpop.f32.mrf.mxu0  ;;  %v2732_v57 = vpop.f32.mrf.mxu1  ;;  %v3039_v40 = vmax.f32 %v2419_v35, 0.0  ;;  %v3163_v31 = vmax.f32 %v2729_v48, 0.0  ;;  %v6949_v35 = vld [vmem:[%s8939_s5 + $0x1e0] sm:$0xff]  }
 0x329   : > { %v3040_v27 = vmax.f32 %v2421_v29, 0.0  ;;  %v3164_v6 = vmax.f32 %v2731_v8, 0.0  ;;  %5669 = vmax.xlane.f32.xlu1 %v5668_v26  ;;  %4056 = vst [vmem:[%s8047_s20 + $0x28] sm:$0xff] %v6386_v0  ;;  %v2423_v50 = vadd.f32 %v2422_v34, %v7531_v54  ;;  %v8131_v46 = vadd.f32 %v2732_v57, %v7976_v13  ;;  %v8139_v0 = vpop.permute.xlu1 %1787 }
 0x32a   : > { %4118 = vst [vmem:[%s8047_s20 + $0x218] sm:$0xff] %v6448_v39  ;;  %5486 = vmax.xlane.f32.xlu0 %v5485_v62  ;;  %v2424_v22 = vpop.f32.mrf.mxu0  ;;  %v2734_v42 = vpop.f32.mrf.mxu1  ;;  %v5671_v8 = vmax.f32 %v3161_v43, %v3162_v19 }
 0x32b   : > { %v6387_v48 = vpack.c.bf16 %v3040_v27, %v3039_v40  ;;  %v5488_v12 = vmax.f32 %v3039_v40, %v3040_v27  ;;  %v6449_v15 = vpack.c.bf16 %v3164_v6, %v3163_v31  ;;  %v2425_v44 = vadd.f32 %v2424_v22, %v7531_v54  ;;  %v8147_v43 = vpop.permute.xlu0 %1782 }
 0x32c   : > { %v2735_v4 = vadd.f32 %v2734_v42, %v7976_v13  ;;  %v2428_v26 = vpop.f32.mrf.mxu0  ;;  %6627 = vmatmul.mubr.bf16.gmra.mxu0 %v8093_v25  ;;  %v2738_v29 = vpop.f32.mrf.mxu1  ;;  %6689 = vmatmul.mubr.bf16.gmra.mxu1 %v6947_v1  ;;  %v3041_v54 = vmax.f32 %v2423_v50, 0.0  ;;  %v3165_v13 = vmax.f32 %v8131_v46, 0.0  ;;  %v5674_v19 = vmax.f32 %v3163_v31, %v3164_v6 }
 0x32d   : > { %4057 = vst [vmem:[%s8047_s20 + $0x30] sm:$0xff] %v6387_v48  ;;  %4119 = vst [vmem:[%s8047_s20 + $0x220] sm:$0xff] %v6449_v15  ;;  %v2429_v39 = vadd.f32 %v2428_v26, %v7538_v56  ;;  %v2739_v34 = vadd.f32 %v2738_v29, %v7988_v52  ;;  %5489 = vmax.xlane.f32.xlu1 %v5488_v12  ;;  %6628 = vmatprep.mubr.bf16.mxu0 %v8125_v32  ;;  %v3042_v57 = vmax.f32 %v2425_v44, 0.0  ;;  %v8154_v26 = vld [vmem:[%s8939_s5 + $0xf0] sm:$0xff]   ;;  %v6951_v29 = vld [vmem:[%s8939_s5 + $0x1e8] sm:$0xff]  }
 0x32e   : > { %v3166_v62 = vmax.f32 %v2735_v4, 0.0  ;;  %5672 = vmax.xlane.f32.xlu0 %v5671_v8  ;;  %v2430_v25 = vpop.f32.mrf.mxu0  ;;  %v2740_v1 = vpop.f32.mrf.mxu1  ;;  %6690 = vmatprep.mubr.bf16.mxu1 %v6949_v35 }
 0x32f   : > { %v2431_v40 = vadd.f32 %v2430_v25, %v7538_v56  ;;  %v2741_v27 = vadd.f32 %v2740_v1, %v7988_v52  ;;  %v6388_v22 = vpack.c.bf16 %v3042_v57, %v3041_v54  ;;  %v5491_v42 = vmax.f32 %v3041_v54, %v3042_v57  ;;  %v8165_v8 = vpop.permute.xlu1 %1797 }
 0x330   : > { %v6450_v50 = vpack.c.bf16 %v3166_v62, %v3165_v13  ;;  %v2432_v48 = vpop.f32.mrf.mxu0  ;;  %v2742_v46 = vpop.f32.mrf.mxu1  ;;  %v3043_v12 = vmax.f32 %v2429_v39, 0.0  ;;  %v3167_v15 = vmax.f32 %v2739_v34, 0.0 }
 0x331   : > { %v3044_v44 = vmax.f32 %v2431_v40, 0.0  ;;  %v3168_v4 = vmax.f32 %v2741_v27, 0.0  ;;  %5675 = vmax.xlane.f32.xlu1 %v5674_v19  ;;  %4058 = vst [vmem:[%s8047_s20 + $0x38] sm:$0xff] %v6388_v22  ;;  %v2433_v56 = vadd.f32 %v2432_v48, %v7546_v59  ;;  %v8160_v52 = vadd.f32 %v2742_v46, %v7980_v45  ;;  %v8170_v27 = vpop.permute.xlu0 %1792 }
 0x332   : > { %4120 = vst [vmem:[%s8047_s20 + $0x228] sm:$0xff] %v6450_v50  ;;  %5492 = vmax.xlane.f32.xlu0 %v5491_v42  ;;  %v2434_v31 = vpop.f32.mrf.mxu0  ;;  %v2744_v6 = vpop.f32.mrf.mxu1  ;;  %v5677_v40 = vmax.f32 %v3165_v13, %v3166_v62 }
 0x333   : > { %v6389_v39 = vpack.c.bf16 %v3044_v44, %v3043_v12  ;;  %v5494_v34 = vmax.f32 %v3043_v12, %v3044_v44  ;;  %v6451_v54 = vpack.c.bf16 %v3168_v4, %v3167_v15  ;;  %v2435_v57 = vadd.f32 %v2434_v31, %v7546_v59 }
 0x334   : > { %v2745_v25 = vadd.f32 %v2744_v6, %v7980_v45  ;;  %v2438_v1 = vpop.f32.mrf.mxu0  ;;  %6629 = vmatmul.mubr.bf16.gmra.mxu0 %v8125_v32  ;;  %v2748_v19 = vpop.f32.mrf.mxu1  ;;  %6691 = vmatmul.mubr.bf16.gmra.mxu1 %v6949_v35  ;;  %v3045_v59 = vmax.f32 %v2433_v56, 0.0  ;;  %v3169_v45 = vmax.f32 %v8160_v52, 0.0  ;;  %v5680_v13 = vmax.f32 %v3167_v15, %v3168_v4  ;;  %v6952_v15 = vld [vmem:[%s8939_s5 + $0x1f0] sm:$0xff]  }
 0x335   : > { %4059 = vst [vmem:[%s8047_s20 + $0x40] sm:$0xff] %v6389_v39  ;;  %4121 = vst [vmem:[%s8047_s20 + $0x230] sm:$0xff] %v6451_v54  ;;  %v2439_v22 = vadd.f32 %v2438_v1, %v7548_v60  ;;  %v2749_v42 = vadd.f32 %v2748_v19, %v7992_v37  ;;  %5495 = vmax.xlane.f32.xlu1 %v5494_v34  ;;  %6630 = vmatprep.mubr.bf16.mxu0 %v8154_v26  ;;  %v3046_v50 = vmax.f32 %v2435_v57, 0.0  ;;  %v8180_v39 = vpop.permute.xlu1 %1807  ;;  %v8189_v1 = vpop.permute.xlu0 %1802 }
 0x336   : > { %v3170_v48 = vmax.f32 %v2745_v25, 0.0  ;;  %5678 = vmax.xlane.f32.xlu0 %v5677_v40  ;;  %v2440_v32 = vpop.f32.mrf.mxu0  ;;  %v2750_v35 = vpop.f32.mrf.mxu1  ;;  %6692 = vmatprep.mubr.bf16.mxu1 %v6951_v29 }
 0x337   : > { %v2441_v62 = vadd.f32 %v2440_v32, %v7548_v60  ;;  %v2751_v46 = vadd.f32 %v2750_v35, %v7992_v37  ;;  %v6390_v12 = vpack.c.bf16 %v3046_v50, %v3045_v59  ;;  %v5497_v44 = vmax.f32 %v3045_v59, %v3046_v50 }
 0x338   : > { %v6452_v31 = vpack.c.bf16 %v3170_v48, %v3169_v45  ;;  %v2442_v6 = vpop.f32.mrf.mxu0  ;;  %v2752_v56 = vpop.f32.mrf.mxu1  ;;  %v3047_v52 = vmax.f32 %v2439_v22, 0.0  ;;  %v3171_v34 = vmax.f32 %v2749_v42, 0.0  ;;  %v5683_v35 = vmax.f32 %v3169_v45, %v3170_v48 }
 0x339   : > { %v3048_v54 = vmax.f32 %v2441_v62, 0.0  ;;  %v3172_v57 = vmax.f32 %v2751_v46, 0.0  ;;  %5681 = vmax.xlane.f32.xlu1 %v5680_v13  ;;  %4060 = vst [vmem:[%s8047_s20 + $0x48] sm:$0xff] %v6390_v12  ;;  %v2443_v60 = vadd.f32 %v2442_v6, %v7556_v63  ;;  %v2753_v37 = vadd.f32 %v2752_v56, %v7990_v9  ;;  %v8198_v6 = vpop.permute.xlu1 %1817 }
 0x33a   : > { %4122 = vst [vmem:[%s8047_s20 + $0x238] sm:$0xff] %v6452_v31  ;;  %5498 = vmax.xlane.f32.xlu0 %v5497_v44  ;;  %v2444_v4 = vpop.f32.mrf.mxu0  ;;  %v2754_v25 = vpop.f32.mrf.mxu1 }
 0x33b   : > { %v6391_v19 = vpack.c.bf16 %v3048_v54, %v3047_v52  ;;  %v5500_v40 = vmax.f32 %v3047_v52, %v3048_v54  ;;  %v6453_v22 = vpack.c.bf16 %v3172_v57, %v3171_v34  ;;  %v2445_v42 = vadd.f32 %v2444_v4, %v7556_v63 }
 0x33c   : > { %v2755_v59 = vadd.f32 %v2754_v25, %v7990_v9  ;;  %v2448_v50 = vpop.f32.mrf.mxu0  ;;  %6631 = vmatmul.mubr.bf16.gmra.mxu0 %v8154_v26  ;;  %v2758_v32 = vpop.f32.mrf.mxu1  ;;  %6693 = vmatmul.mubr.bf16.gmra.mxu1 %v6951_v29  ;;  %v3049_v46 = vmax.f32 %v2443_v60, 0.0  ;;  %v3173_v12 = vmax.f32 %v2753_v37, 0.0  ;;  %v5686_v26 = vmax.f32 %v3171_v34, %v3172_v57  ;;  %v6953_v34 = vld [vmem:[%s8939_s5 + $0x1f8] sm:$0xff]  }
 0x33d   : > { %4061 = vst [vmem:[%s8047_s20 + $0x50] sm:$0xff] %v6391_v19  ;;  %4123 = vst [vmem:[%s8047_s20 + $0x240] sm:$0xff] %v6453_v22  ;;  %v2449_v13 = vadd.f32 %v2448_v50, %v7564_v3  ;;  %v2759_v62 = vadd.f32 %v2758_v32, %v8002_v36  ;;  %5501 = vmax.xlane.f32.xlu1 %v5500_v40  ;;  %6694 = vmatprep.mubr.bf16.mxu1 %v6952_v15  ;;  %v3050_v44 = vmax.f32 %v2445_v42, 0.0  ;;  %v8202_v37 = vpop.permute.xlu0 %1812 }
 0x33e   : > { %v3174_v63 = vmax.f32 %v2755_v59, 0.0  ;;  %5684 = vmax.xlane.f32.xlu0 %v5683_v35  ;;  %v2450_v9 = vpop.f32.mrf.mxu0  ;;  %v2760_v31 = vpop.f32.mrf.mxu1 }
 0x33f   : > { %v2451_v29 = vadd.f32 %v2450_v9, %v7564_v3  ;;  %v2761_v45 = vadd.f32 %v2760_v31, %v8002_v36  ;;  %v6392_v48 = vpack.c.bf16 %v3050_v44, %v3049_v46  ;;  %v5503_v56 = vmax.f32 %v3049_v46, %v3050_v44  ;;  %v8213_v44 = vpop.permute.xlu1 %1827 }
 0x340   : > { %v6454_v52 = vpack.c.bf16 %v3174_v63, %v3173_v12  ;;  %v2452_v54 = vpop.f32.mrf.mxu0  ;;  %v2762_v60 = vpop.f32.mrf.mxu1  ;;  %v3051_v4 = vmax.f32 %v2449_v13, 0.0  ;;  %v3175_v25 = vmax.f32 %v2759_v62, 0.0  ;;  %v5689_v32 = vmax.f32 %v3173_v12, %v3174_v63 }
 0x341   : > { %v3052_v19 = vmax.f32 %v2451_v29, 0.0  ;;  %v3176_v40 = vmax.f32 %v2761_v45, 0.0  ;;  %5687 = vmax.xlane.f32.xlu1 %v5686_v26  ;;  %4062 = vst [vmem:[%s8047_s20 + $0x58] sm:$0xff] %v6392_v48  ;;  %v2453_v3 = vadd.f32 %v2452_v54, %v7569_v5  ;;  %v2763_v36 = vadd.f32 %v2762_v60, %v8000_v17 }
 0x342   : > { %4124 = vst [vmem:[%s8047_s20 + $0x248] sm:$0xff] %v6454_v52  ;;  %5504 = vmax.xlane.f32.xlu0 %v5503_v56  ;;  %v2454_v57 = vpop.f32.mrf.mxu0  ;;  %v2764_v22 = vpop.f32.mrf.mxu1 }
 0x343   : > { %v6393_v42 = vpack.c.bf16 %v3052_v19, %v3051_v4  ;;  %v5506_v59 = vmax.f32 %v3051_v4, %v3052_v19  ;;  %v6455_v50 = vpack.c.bf16 %v3176_v40, %v3175_v25  ;;  %v2455_v35 = vadd.f32 %v2454_v57, %v7569_v5 }
 0x344   : > { %v2765_v13 = vadd.f32 %v2764_v22, %v8000_v17  ;;  %v2458_v62 = vpop.f32.mrf.mxu0  ;;  %v2768_v46 = vpop.f32.mrf.mxu1  ;;  %6695 = vmatmul.mubr.bf16.gmra.mxu1 %v6952_v15  ;;  %v3053_v26 = vmax.f32 %v2453_v3, 0.0  ;;  %v3177_v29 = vmax.f32 %v2763_v36, 0.0  ;;  %v5692_v45 = vmax.f32 %v3175_v25, %v3176_v40 }
 0x345   : > { %4063 = vst [vmem:[%s8047_s20 + $0x60] sm:$0xff] %v6393_v42  ;;  %4125 = vst [vmem:[%s8047_s20 + $0x250] sm:$0xff] %v6455_v50  ;;  %v2459_v9 = vadd.f32 %v2458_v62, %v7574_v7  ;;  %v2769_v31 = vadd.f32 %v2768_v46, %v8012_v38  ;;  %5507 = vmax.xlane.f32.xlu1 %v5506_v59  ;;  %6696 = vmatprep.mubr.bf16.mxu1 %v6953_v34  ;;  %v3054_v12 = vmax.f32 %v2455_v35, 0.0  ;;  %v8219_v15 = vpop.permute.xlu0 %1822  ;;  %v8227_v40 = vpop.permute.xlu1 %1837 }
 0x346   : > { %v3178_v63 = vmax.f32 %v2765_v13, 0.0  ;;  %5690 = vmax.xlane.f32.xlu0 %v5689_v32  ;;  %v2460_v5 = vpop.f32.mrf.mxu0  ;;  %v2770_v17 = vpop.f32.mrf.mxu1 }
 0x347   : > { %v2461_v48 = vadd.f32 %v2460_v5, %v7574_v7  ;;  %v2771_v56 = vadd.f32 %v2770_v17, %v8012_v38  ;;  %v6394_v52 = vpack.c.bf16 %v3054_v12, %v3053_v26  ;;  %v5509_v54 = vmax.f32 %v3053_v26, %v3054_v12 }
 0x348   : > { %v6456_v60 = vpack.c.bf16 %v3178_v63, %v3177_v29  ;;  %v2462_v4 = vpop.f32.mrf.mxu0  ;;  %v2772_v19 = vpop.f32.mrf.mxu1  ;;  %v3055_v3 = vmax.f32 %v2459_v9, 0.0  ;;  %v3179_v36 = vmax.f32 %v2769_v31, 0.0  ;;  %v5695_v35 = vmax.f32 %v3177_v29, %v3178_v63 }
 0x349   : > { %v3056_v57 = vmax.f32 %v2461_v48, 0.0  ;;  %v3180_v22 = vmax.f32 %v2771_v56, 0.0  ;;  %5693 = vmax.xlane.f32.xlu1 %v5692_v45  ;;  %4064 = vst [vmem:[%s8047_s20 + $0x68] sm:$0xff] %v6394_v52  ;;  %v2463_v42 = vadd.f32 %v2462_v4, %v7582_v10  ;;  %v2773_v25 = vadd.f32 %v2772_v19, %v8010_v51  ;;  %v8231_v31 = vpop.permute.xlu0 %1832  ;;  %v8239_v19 = vpop.permute.xlu1 %1847 }
 0x34a   : > { %4126 = vst [vmem:[%s8047_s20 + $0x258] sm:$0xff] %v6456_v60  ;;  %5510 = vmax.xlane.f32.xlu0 %v5509_v54  ;;  %v2464_v7 = vpop.f32.mrf.mxu0  ;;  %v2774_v38 = vpop.f32.mrf.mxu1 }
 0x34b   : > { %v6395_v59 = vpack.c.bf16 %v3056_v57, %v3055_v3  ;;  %v5512_v50 = vmax.f32 %v3055_v3, %v3056_v57  ;;  %v6457_v32 = vpack.c.bf16 %v3180_v22, %v3179_v36  ;;  %v2465_v13 = vadd.f32 %v2464_v7, %v7582_v10 }
 0x34c   : > { %v2775_v62 = vadd.f32 %v2774_v38, %v8010_v51  ;;  %v2468_v46 = vpop.f32.mrf.mxu0  ;;  %v2778_v9 = vpop.f32.mrf.mxu1  ;;  %6697 = vmatmul.mubr.bf16.gmra.mxu1 %v6953_v34  ;;  %v3057_v5 = vmax.f32 %v2463_v42, 0.0  ;;  %v3181_v17 = vmax.f32 %v2773_v25, 0.0  ;;  %v5698_v63 = vmax.f32 %v3179_v36, %v3180_v22 }
 0x34d   : > { %4065 = vst [vmem:[%s8047_s20 + $0x70] sm:$0xff] %v6395_v59  ;;  %4127 = vst [vmem:[%s8047_s20 + $0x260] sm:$0xff] %v6457_v32  ;;  %v2469_v26 = vadd.f32 %v2468_v46, %v7590_v14  ;;  %v2779_v12 = vadd.f32 %v2778_v9, %v8022_v58  ;;  %5513 = vmax.xlane.f32.xlu1 %v5512_v50  ;;  %v3058_v45 = vmax.f32 %v2465_v13, 0.0  ;;  %v8245_v7 = vpop.permute.xlu0 %1842 }
 0x34e   : > { %v3182_v29 = vmax.f32 %v2775_v62, 0.0  ;;  %5696 = vmax.xlane.f32.xlu0 %v5695_v35  ;;  %v2470_v10 = vpop.f32.mrf.mxu0  ;;  %v2780_v51 = vpop.f32.mrf.mxu1 }
 0x34f   : > { %v2471_v34 = vadd.f32 %v2470_v10, %v7590_v14  ;;  %v2781_v48 = vadd.f32 %v2780_v51, %v8022_v58  ;;  %v6396_v56 = vpack.c.bf16 %v3058_v45, %v3057_v5  ;;  %v5515_v52 = vmax.f32 %v3057_v5, %v3058_v45 }
 0x350   : > { %v6458_v54 = vpack.c.bf16 %v3182_v29, %v3181_v17  ;;  %v2472_v60 = vpop.f32.mrf.mxu0  ;;  %v2782_v4 = vpop.f32.mrf.mxu1  ;;  %v3059_v3 = vmax.f32 %v2469_v26, 0.0  ;;  %v3183_v57 = vmax.f32 %v2779_v12, 0.0  ;;  %v5701_v32 = vmax.f32 %v3181_v17, %v3182_v29 }
 0x351   : > { %v3060_v42 = vmax.f32 %v2471_v34, 0.0  ;;  %v3184_v25 = vmax.f32 %v2781_v48, 0.0  ;;  %5699 = vmax.xlane.f32.xlu1 %v5698_v63  ;;  %4066 = vst [vmem:[%s8047_s20 + $0x78] sm:$0xff] %v6396_v56  ;;  %v2473_v14 = vadd.f32 %v2472_v60, %v7595_v16  ;;  %v2783_v58 = vadd.f32 %v2782_v4, %v8014_v20  ;;  %v8257_v60 = vpop.permute.xlu0 %1852 }
 0x352   : > { %4128 = vst [vmem:[%s8047_s20 + $0x268] sm:$0xff] %v6458_v54  ;;  %5516 = vmax.xlane.f32.xlu0 %v5515_v52  ;;  %v2474_v36 = vpop.f32.mrf.mxu0  ;;  %v2784_v22 = vpop.f32.mrf.mxu1 }
 0x353   : > { %v6397_v38 = vpack.c.bf16 %v3060_v42, %v3059_v3  ;;  %v5518_v59 = vmax.f32 %v3059_v3, %v3060_v42  ;;  %v6459_v50 = vpack.c.bf16 %v3184_v25, %v3183_v57  ;;  %v2475_v35 = vadd.f32 %v2474_v36, %v7595_v16  ;;  %v8253_v16 = vpop.permute.xlu1 %1857 }
 0x354   : > { %v2785_v13 = vadd.f32 %v2784_v22, %v8014_v20  ;;  %v2478_v62 = vpop.f32.mrf.mxu0  ;;  %v2788_v46 = vpop.f32.mrf.mxu1  ;;  %v3061_v12 = vmax.f32 %v2473_v14, 0.0  ;;  %v3185_v5 = vmax.f32 %v2783_v58, 0.0  ;;  %v5704_v20 = vmax.f32 %v3183_v57, %v3184_v25  ;;  %v9023_v57 = vld [vmem:[#allocation6_spill] sm:$0xff] }
 0x355   : > { %4067 = vst [vmem:[%s8047_s20 + $0x80] sm:$0xff] %v6397_v38  ;;  %4129 = vst [vmem:[%s8047_s20 + $0x270] sm:$0xff] %v6459_v50  ;;  %v2479_v9 = vadd.f32 %v2478_v62, %v7600_v18  ;;  %v2789_v26 = vadd.f32 %v2788_v46, %v8033_v28  ;;  %5519 = vmax.xlane.f32.xlu1 %v5518_v59  ;;  %v3062_v45 = vmax.f32 %v2475_v35, 0.0  ;;  %v9024_v46 = vld [vmem:[#allocation7_spill] sm:$0xff] }
 0x356   : > { %v3186_v10 = vmax.f32 %v2785_v13, 0.0  ;;  %5702 = vmax.xlane.f32.xlu0 %v5701_v32  ;;  %v2480_v51 = vpop.f32.mrf.mxu0  ;;  %v2790_v17 = vpop.f32.mrf.mxu1 }
 0x357   : > { %v2481_v29 = vadd.f32 %v2480_v51, %v7600_v18  ;;  %v2791_v63 = vadd.f32 %v2790_v17, %v8033_v28  ;;  %v6398_v34 = vpack.c.bf16 %v3062_v45, %v3061_v12  ;;  %v5521_v48 = vmax.f32 %v3061_v12, %v3062_v45  ;;  %v8265_v62 = vpop.permute.xlu1 %1867 }
 0x358   : > { %v6460_v56 = vpack.c.bf16 %v3186_v10, %v3185_v5  ;;  %v2482_v52 = vpop.f32.mrf.mxu0  ;;  %v2792_v54 = vpop.f32.mrf.mxu1  ;;  %v3063_v4 = vmax.f32 %v2479_v9, 0.0  ;;  %v3187_v3 = vmax.f32 %v2789_v26, 0.0  ;;  %v5707_v59 = vmax.f32 %v3185_v5, %v3186_v10 }
 0x359   : > { %v3064_v42 = vmax.f32 %v2481_v29, 0.0  ;;  %v3188_v14 = vmax.f32 %v2791_v63, 0.0  ;;  %5705 = vmax.xlane.f32.xlu1 %v5704_v20  ;;  %4068 = vst [vmem:[%s8047_s20 + $0x88] sm:$0xff] %v6398_v34  ;;  %v2483_v18 = vadd.f32 %v2482_v52, %v9023_v57  ;;  %v2793_v28 = vadd.f32 %v2792_v54, %v8027_v55 }
 0x35a   : > { %4130 = vst [vmem:[%s8047_s20 + $0x278] sm:$0xff] %v6460_v56  ;;  %5522 = vmax.xlane.f32.xlu0 %v5521_v48  ;;  %v2484_v25 = vpop.f32.mrf.mxu0  ;;  %v2794_v58 = vpop.f32.mrf.mxu1 }
 0x35b   : > { %v6399_v36 = vpack.c.bf16 %v3064_v42, %v3063_v4  ;;  %v5524_v22 = vmax.f32 %v3063_v4, %v3064_v42  ;;  %v6461_v38 = vpack.c.bf16 %v3188_v14, %v3187_v3  ;;  %v2485_v50 = vadd.f32 %v2484_v25, %v9023_v57 }
 0x35c   : > { %v2795_v32 = vadd.f32 %v2794_v58, %v8027_v55  ;;  %v2488_v35 = vpop.f32.mrf.mxu0  ;;  %v2798_v13 = vpop.f32.mrf.mxu1  ;;  %v3065_v12 = vmax.f32 %v2483_v18, 0.0  ;;  %v3189_v45 = vmax.f32 %v2793_v28, 0.0  ;;  %v5710_v20 = vmax.f32 %v3187_v3, %v3188_v14  ;;  %v9025_v28 = vld [vmem:[#allocation8_spill] sm:$0xff] }
 0x35d   : > { %4069 = vst [vmem:[%s8047_s20 + $0x90] sm:$0xff] %v6399_v36  ;;  %4131 = vst [vmem:[%s8047_s20 + $0x280] sm:$0xff] %v6461_v38  ;;  %v2489_v9 = vadd.f32 %v2488_v35, %v9024_v46  ;;  %v2799_v26 = vadd.f32 %v2798_v13, %v8053_v30  ;;  %5525 = vmax.xlane.f32.xlu1 %v5524_v22  ;;  %v3066_v51 = vmax.f32 %v2485_v50, 0.0  ;;  %v8271_v55 = vpop.permute.xlu0 %1862  ;;  %v8279_v58 = vpop.permute.xlu1 %1877 }
 0x35e   : > { %v3190_v17 = vmax.f32 %v2795_v32, 0.0  ;;  %5708 = vmax.xlane.f32.xlu0 %v5707_v59  ;;  %v2490_v5 = vpop.f32.mrf.mxu0  ;;  %v2800_v10 = vpop.f32.mrf.mxu1 }
 0x35f   : > { %v2491_v29 = vadd.f32 %v2490_v5, %v9024_v46  ;;  %v2801_v63 = vadd.f32 %v2800_v10, %v8053_v30  ;;  %v6400_v34 = vpack.c.bf16 %v3066_v51, %v3065_v12  ;;  %v5527_v48 = vmax.f32 %v3065_v12, %v3066_v51 }
 0x360   : > { %v6462_v56 = vpack.c.bf16 %v3190_v17, %v3189_v45  ;;  %v2492_v52 = vpop.f32.mrf.mxu0  ;;  %v2802_v54 = vpop.f32.mrf.mxu1  ;;  %v3067_v4 = vmax.f32 %v2489_v9, 0.0  ;;  %v3191_v42 = vmax.f32 %v2799_v26, 0.0  ;;  %v5713_v59 = vmax.f32 %v3189_v45, %v3190_v17  ;;  %v9026_v9 = vld [vmem:[#allocation9_spill] sm:$0xff] }
 0x361   : > { %v3068_v57 = vmax.f32 %v2491_v29, 0.0  ;;  %v3192_v18 = vmax.f32 %v2801_v63, 0.0  ;;  %5711 = vmax.xlane.f32.xlu1 %v5710_v20  ;;  %4070 = vst [vmem:[%s8047_s20 + $0x98] sm:$0xff] %v6400_v34  ;;  %v2493_v25 = vadd.f32 %v2492_v52, %v9025_v28  ;;  %v2803_v3 = vadd.f32 %v2802_v54, %v8045_v33  ;;  %v8283_v46 = vpop.permute.xlu0 %1872 }
 0x362   : > { %4132 = vst [vmem:[%s8047_s20 + $0x288] sm:$0xff] %v6462_v56  ;;  %5528 = vmax.xlane.f32.xlu0 %v5527_v48  ;;  %v2494_v30 = vpop.f32.mrf.mxu0  ;;  %v2804_v14 = vpop.f32.mrf.mxu1 }
 0x363   : > { %v6401_v36 = vpack.c.bf16 %v3068_v57, %v3067_v4  ;;  %v5530_v22 = vmax.f32 %v3067_v4, %v3068_v57  ;;  %v6463_v38 = vpack.c.bf16 %v3192_v18, %v3191_v42  ;;  %v2495_v50 = vadd.f32 %v2494_v30, %v9025_v28  ;;  %v8291_v4 = vpop.permute.xlu1 %1887 }
 0x364   : > { %v2805_v32 = vadd.f32 %v2804_v14, %v8045_v33  ;;  %v2498_v35 = vpop.f32.mrf.mxu0  ;;  %v2808_v13 = vpop.f32.mrf.mxu1  ;;  %v3069_v51 = vmax.f32 %v2493_v25, 0.0  ;;  %v3193_v5 = vmax.f32 %v2803_v3, 0.0  ;;  %v5716_v33 = vmax.f32 %v3191_v42, %v3192_v18  ;;  %v9027_v42 = vld [vmem:[#allocation10_spill] sm:$0xff] }
 0x365   : > { %4071 = vst [vmem:[%s8047_s20 + $0xa0] sm:$0xff] %v6401_v36  ;;  %4133 = vst [vmem:[%s8047_s20 + $0x290] sm:$0xff] %v6463_v38  ;;  %v2499_v26 = vadd.f32 %v2498_v35, %v9026_v9  ;;  %v2809_v12 = vadd.f32 %v2808_v13, %v8077_v41  ;;  %5531 = vmax.xlane.f32.xlu1 %v5530_v22  ;;  %v3070_v10 = vmax.f32 %v2495_v50, 0.0  ;;  %v8297_v36 = vpop.permute.xlu0 %1882 }
 0x366   : > { %v3194_v20 = vmax.f32 %v2805_v32, 0.0  ;;  %5714 = vmax.xlane.f32.xlu0 %v5713_v59  ;;  %v2500_v45 = vpop.f32.mrf.mxu0  ;;  %v2810_v17 = vpop.f32.mrf.mxu1 }
 0x367   : > { %v2501_v29 = vadd.f32 %v2500_v45, %v9026_v9  ;;  %v2811_v63 = vadd.f32 %v2810_v17, %v8077_v41  ;;  %v6402_v34 = vpack.c.bf16 %v3070_v10, %v3069_v51  ;;  %v5533_v48 = vmax.f32 %v3069_v51, %v3070_v10 }
 0x368   : > { %v6464_v56 = vpack.c.bf16 %v3194_v20, %v3193_v5  ;;  %v2502_v52 = vpop.f32.mrf.mxu0  ;;  %v2812_v54 = vpop.f32.mrf.mxu1  ;;  %v3071_v57 = vmax.f32 %v2499_v26, 0.0  ;;  %v3195_v28 = vmax.f32 %v2809_v12, 0.0  ;;  %v5719_v50 = vmax.f32 %v3193_v5, %v3194_v20  ;;  %v9028_v26 = vld [vmem:[#allocation11_spill] sm:$0xff] }
 0x369   : > { %v3072_v25 = vmax.f32 %v2501_v29, 0.0  ;;  %v3196_v3 = vmax.f32 %v2811_v63, 0.0  ;;  %5717 = vmax.xlane.f32.xlu1 %v5716_v33  ;;  %4072 = vst [vmem:[%s8047_s20 + $0xa8] sm:$0xff] %v6402_v34  ;;  %v2503_v18 = vadd.f32 %v2502_v52, %v9027_v42  ;;  %v2813_v41 = vadd.f32 %v2812_v54, %v8073_v49  ;;  %v8305_v20 = vpop.permute.xlu1 %1897 }
 0x36a   : > { %4134 = vst [vmem:[%s8047_s20 + $0x298] sm:$0xff] %v6464_v56  ;;  %5534 = vmax.xlane.f32.xlu0 %v5533_v48  ;;  %v2504_v30 = vpop.f32.mrf.mxu0  ;;  %v2814_v14 = vpop.f32.mrf.mxu1 }
 0x36b   : > { %v6403_v22 = vpack.c.bf16 %v3072_v25, %v3071_v57  ;;  %v5536_v38 = vmax.f32 %v3071_v57, %v3072_v25  ;;  %v6465_v59 = vpack.c.bf16 %v3196_v3, %v3195_v28  ;;  %v2505_v32 = vadd.f32 %v2504_v30, %v9027_v42  ;;  %v8309_v25 = vpop.permute.xlu0 %1892 }
 0x36c   : > { %v2815_v35 = vadd.f32 %v2814_v14, %v8073_v49  ;;  %v2508_v13 = vpop.f32.mrf.mxu0  ;;  %v2818_v9 = vpop.f32.mrf.mxu1  ;;  %v3073_v10 = vmax.f32 %v2503_v18, 0.0  ;;  %v3197_v45 = vmax.f32 %v2813_v41, 0.0  ;;  %v5722_v49 = vmax.f32 %v3195_v28, %v3196_v3  ;;  %v9029_v28 = vld [vmem:[#allocation12_spill] sm:$0xff] }
 0x36d   : > { %4073 = vst [vmem:[%s8047_s20 + $0xb0] sm:$0xff] %v6403_v22  ;;  %4135 = vst [vmem:[%s8047_s20 + $0x2a0] sm:$0xff] %v6465_v59  ;;  %v2509_v12 = vadd.f32 %v2508_v13, %v9028_v26  ;;  %v2819_v51 = vadd.f32 %v2818_v9, %v8104_v47  ;;  %5537 = vmax.xlane.f32.xlu1 %v5536_v38  ;;  %v3074_v17 = vmax.f32 %v2505_v32, 0.0 }
 0x36e   : > { %v3198_v33 = vmax.f32 %v2815_v35, 0.0  ;;  %5720 = vmax.xlane.f32.xlu0 %v5719_v50  ;;  %v2510_v29 = vpop.f32.mrf.mxu0  ;;  %v2820_v5 = vpop.f32.mrf.mxu1 }
 0x36f   : > { %v2511_v63 = vadd.f32 %v2510_v29, %v9028_v26  ;;  %v2821_v34 = vadd.f32 %v2820_v5, %v8104_v47  ;;  %v6404_v48 = vpack.c.bf16 %v3074_v17, %v3073_v10  ;;  %v5539_v56 = vmax.f32 %v3073_v10, %v3074_v17 }
 0x370   : > { %v6466_v52 = vpack.c.bf16 %v3198_v33, %v3197_v45  ;;  %v2512_v54 = vpop.f32.mrf.mxu0  ;;  %v2822_v57 = vpop.f32.mrf.mxu1  ;;  %v3075_v42 = vmax.f32 %v2509_v12, 0.0  ;;  %v3199_v18 = vmax.f32 %v2819_v51, 0.0  ;;  %v5725_v32 = vmax.f32 %v3197_v45, %v3198_v33  ;;  %v9030_v51 = vld [vmem:[#allocation13_spill] sm:$0xff] }
 0x371   : > { %v3076_v41 = vmax.f32 %v2511_v63, 0.0  ;;  %v3200_v30 = vmax.f32 %v2821_v34, 0.0  ;;  %5723 = vmax.xlane.f32.xlu1 %v5722_v49  ;;  %4074 = vst [vmem:[%s8047_s20 + $0xb8] sm:$0xff] %v6404_v48  ;;  %v2513_v3 = vadd.f32 %v2512_v54, %v9029_v28  ;;  %v2823_v47 = vadd.f32 %v2822_v57, %v8088_v53  ;;  %v8317_v12 = vpop.permute.xlu1 %1907 }
 0x372   : > { %4136 = vst [vmem:[%s8047_s20 + $0x2a8] sm:$0xff] %v6466_v52  ;;  %5540 = vmax.xlane.f32.xlu0 %v5539_v56  ;;  %v2514_v14 = vpop.f32.mrf.mxu0  ;;  %v2824_v22 = vpop.f32.mrf.mxu1 }
 0x373   : > { %v6405_v38 = vpack.c.bf16 %v3076_v41, %v3075_v42  ;;  %v5542_v59 = vmax.f32 %v3075_v42, %v3076_v41  ;;  %v6467_v50 = vpack.c.bf16 %v3200_v30, %v3199_v18  ;;  %v2515_v35 = vadd.f32 %v2514_v14, %v9029_v28 }
 0x374   : > { %v2825_v13 = vadd.f32 %v2824_v22, %v8088_v53  ;;  %v2518_v9 = vpop.f32.mrf.mxu0  ;;  %v2828_v26 = vpop.f32.mrf.mxu1  ;;  %v3077_v29 = vmax.f32 %v2513_v3, 0.0  ;;  %v3201_v5 = vmax.f32 %v2823_v47, 0.0  ;;  %v5728_v34 = vmax.f32 %v3199_v18, %v3200_v30  ;;  %v9031_v22 = vld [vmem:[#allocation14_spill] sm:$0xff] }
 0x375   : > { %4075 = vst [vmem:[%s8047_s20 + $0xc0] sm:$0xff] %v6405_v38  ;;  %4137 = vst [vmem:[%s8047_s20 + $0x2b0] sm:$0xff] %v6467_v50  ;;  %v2519_v10 = vadd.f32 %v2518_v9, %v9030_v51  ;;  %v2829_v17 = vadd.f32 %v2828_v26, %v8120_v2  ;;  %5543 = vmax.xlane.f32.xlu1 %v5542_v59  ;;  %v3078_v49 = vmax.f32 %v2515_v35, 0.0  ;;  %v8323_v53 = vpop.permute.xlu0 %1902  ;;  %v8331_v59 = vpop.permute.xlu1 %1917 }
 0x376   : > { %v3202_v63 = vmax.f32 %v2825_v13, 0.0  ;;  %5726 = vmax.xlane.f32.xlu0 %v5725_v32  ;;  %v2520_v45 = vpop.f32.mrf.mxu0  ;;  %v2830_v33 = vpop.f32.mrf.mxu1 }
 0x377   : > { %v2521_v48 = vadd.f32 %v2520_v45, %v9030_v51  ;;  %v2831_v56 = vadd.f32 %v2830_v33, %v8120_v2  ;;  %v6406_v52 = vpack.c.bf16 %v3078_v49, %v3077_v29  ;;  %v5545_v54 = vmax.f32 %v3077_v29, %v3078_v49  ;;  %v9032_v29 = vld [vmem:[#allocation15_spill] sm:$0xff] }
 0x378   : > { %v6468_v57 = vpack.c.bf16 %v3202_v63, %v3201_v5  ;;  %v2522_v42 = vpop.f32.mrf.mxu0  ;;  %v2832_v41 = vpop.f32.mrf.mxu1  ;;  %v3079_v28 = vmax.f32 %v2519_v10, 0.0  ;;  %v3203_v3 = vmax.f32 %v2829_v17, 0.0  ;;  %v5731_v13 = vmax.f32 %v3201_v5, %v3202_v63 }
 0x379   : > { %v3080_v47 = vmax.f32 %v2521_v48, 0.0  ;;  %v3204_v14 = vmax.f32 %v2831_v56, 0.0  ;;  %5729 = vmax.xlane.f32.xlu1 %v5728_v34  ;;  %4076 = vst [vmem:[%s8047_s20 + $0xc8] sm:$0xff] %v6406_v52  ;;  %v2523_v38 = vadd.f32 %v2522_v42, %v9031_v22  ;;  %v2833_v18 = vadd.f32 %v2832_v41, %v8116_v11  ;;  %v8335_v17 = vpop.permute.xlu0 %1912 }
 0x37a   : > { %4138 = vst [vmem:[%s8047_s20 + $0x2b8] sm:$0xff] %v6468_v57  ;;  %5546 = vmax.xlane.f32.xlu0 %v5545_v54  ;;  %v2524_v2 = vpop.f32.mrf.mxu0  ;;  %v2834_v30 = vpop.f32.mrf.mxu1 }
 0x37b   : > { %v6407_v50 = vpack.c.bf16 %v3080_v47, %v3079_v28  ;;  %v5548_v32 = vmax.f32 %v3079_v28, %v3080_v47  ;;  %v6469_v35 = vpack.c.bf16 %v3204_v14, %v3203_v3  ;;  %v2525_v9 = vadd.f32 %v2524_v2, %v9031_v22  ;;  %v8343_v22 = vpop.permute.xlu1 %1927 }
 0x37c   : > { %v2835_v26 = vadd.f32 %v2834_v30, %v8116_v11  ;;  %v2528_v51 = vpop.f32.mrf.mxu0  ;;  %v2838_v10 = vpop.f32.mrf.mxu1  ;;  %v3081_v33 = vmax.f32 %v2523_v38, 0.0  ;;  %v3205_v34 = vmax.f32 %v2833_v18, 0.0  ;;  %v5734_v11 = vmax.f32 %v3203_v3, %v3204_v14  ;;  %v9033_v3 = vld [vmem:[#allocation16_spill] sm:$0xff] }
 0x37d   : > { %4077 = vst [vmem:[%s8047_s20 + $0xd0] sm:$0xff] %v6407_v50  ;;  %4139 = vst [vmem:[%s8047_s20 + $0x2c0] sm:$0xff] %v6469_v35  ;;  %v2529_v49 = vadd.f32 %v2528_v51, %v9032_v29  ;;  %v2839_v45 = vadd.f32 %v2838_v10, %v8147_v43  ;;  %5549 = vmax.xlane.f32.xlu1 %v5548_v32  ;;  %v3082_v48 = vmax.f32 %v2525_v9, 0.0  ;;  %v8349_v35 = vpop.permute.xlu0 %1922 }
 0x37e   : > { %v3206_v56 = vmax.f32 %v2835_v26, 0.0  ;;  %5732 = vmax.xlane.f32.xlu0 %v5731_v13  ;;  %v2530_v5 = vpop.f32.mrf.mxu0  ;;  %v2840_v63 = vpop.f32.mrf.mxu1 }
 0x37f   : > { %v2531_v52 = vadd.f32 %v2530_v5, %v9032_v29  ;;  %v2841_v54 = vadd.f32 %v2840_v63, %v8147_v43  ;;  %v6408_v57 = vpack.c.bf16 %v3082_v48, %v3081_v33  ;;  %v5551_v42 = vmax.f32 %v3081_v33, %v3082_v48 }
 0x380   : > { %v6470_v41 = vpack.c.bf16 %v3206_v56, %v3205_v34  ;;  %v2532_v28 = vpop.f32.mrf.mxu0  ;;  %v2842_v47 = vpop.f32.mrf.mxu1  ;;  %v3083_v38 = vmax.f32 %v2529_v49, 0.0  ;;  %v3207_v18 = vmax.f32 %v2839_v45, 0.0  ;;  %v5737_v51 = vmax.f32 %v3205_v34, %v3206_v56 }
 0x381   : > { %v3084_v2 = vmax.f32 %v2531_v52, 0.0  ;;  %v3208_v30 = vmax.f32 %v2841_v54, 0.0  ;;  %5735 = vmax.xlane.f32.xlu1 %v5734_v11  ;;  %4078 = vst [vmem:[%s8047_s20 + $0xd8] sm:$0xff] %v6408_v57  ;;  %v2533_v14 = vadd.f32 %v2532_v28, %v9033_v3  ;;  %v2843_v43 = vadd.f32 %v2842_v47, %v8139_v0  ;;  %v8357_v56 = vpop.permute.xlu1 %1937 }
 0x382   : > { %4140 = vst [vmem:[%s8047_s20 + $0x2c8] sm:$0xff] %v6470_v41  ;;  %5552 = vmax.xlane.f32.xlu0 %v5551_v42  ;;  %v2534_v50 = vpop.f32.mrf.mxu0  ;;  %v2844_v32 = vpop.f32.mrf.mxu1 }
 0x383   : > { %v6409_v13 = vpack.c.bf16 %v3084_v2, %v3083_v38  ;;  %v5554_v9 = vmax.f32 %v3083_v38, %v3084_v2  ;;  %v6471_v26 = vpack.c.bf16 %v3208_v30, %v3207_v18  ;;  %v2535_v10 = vadd.f32 %v2534_v50, %v9033_v3  ;;  %v8361_v3 = vpop.permute.xlu0 %1932 }
 0x384   : > { %v2845_v29 = vadd.f32 %v2844_v32, %v8139_v0  ;;  %v2538_v49 = vpop.f32.mrf.mxu0  ;;  %v2848_v45 = vpop.f32.mrf.mxu1  ;;  %v3085_v5 = vmax.f32 %v2533_v14, 0.0  ;;  %v3209_v63 = vmax.f32 %v2843_v43, 0.0  ;;  %v5740_v0 = vmax.f32 %v3207_v18, %v3208_v30 }
 0x385   : > { %4079 = vst [vmem:[%s8047_s20 + $0xe0] sm:$0xff] %v6409_v13  ;;  %4141 = vst [vmem:[%s8047_s20 + $0x2d0] sm:$0xff] %v6471_v26  ;;  %v2539_v33 = vadd.f32 %v2538_v49, %v7818_v61  ;;  %v2849_v48 = vadd.f32 %v2848_v45, %v8170_v27  ;;  %5555 = vmax.xlane.f32.xlu1 %v5554_v9  ;;  %v3086_v11 = vmax.f32 %v2535_v10, 0.0 }
 0x386   : > { %v3210_v52 = vmax.f32 %v2845_v29, 0.0  ;;  %5738 = vmax.xlane.f32.xlu0 %v5737_v51  ;;  %v2540_v54 = vpop.f32.mrf.mxu0  ;;  %v2850_v34 = vpop.f32.mrf.mxu1 }
 0x387   : > { %v2541_v57 = vadd.f32 %v2540_v54, %v7818_v61  ;;  %v2851_v42 = vadd.f32 %v2850_v34, %v8170_v27  ;;  %v6410_v41 = vpack.c.bf16 %v3086_v11, %v3085_v5  ;;  %v5557_v28 = vmax.f32 %v3085_v5, %v3086_v11 }
 0x388   : > { %v6472_v47 = vpack.c.bf16 %v3210_v52, %v3209_v63  ;;  %v2542_v38 = vpop.f32.mrf.mxu0  ;;  %v2852_v2 = vpop.f32.mrf.mxu1  ;;  %v3087_v14 = vmax.f32 %v2539_v33, 0.0  ;;  %v3211_v43 = vmax.f32 %v2849_v48, 0.0  ;;  %v5743_v51 = vmax.f32 %v3209_v63, %v3210_v52 }
 0x389   : > { %v3088_v50 = vmax.f32 %v2541_v57, 0.0  ;;  %v3212_v32 = vmax.f32 %v2851_v42, 0.0  ;;  %5741 = vmax.xlane.f32.xlu1 %v5740_v0  ;;  %4080 = vst [vmem:[%s8047_s20 + $0xe8] sm:$0xff] %v6410_v41  ;;  %v2543_v61 = vadd.f32 %v2542_v38, %v7810_v21  ;;  %v2853_v27 = vadd.f32 %v2852_v2, %v8165_v8  ;;  %v8369_v33 = vpop.permute.xlu1 %1947 }
 0x38a   : > { %4142 = vst [vmem:[%s8047_s20 + $0x2d8] sm:$0xff] %v6472_v47  ;;  %5558 = vmax.xlane.f32.xlu0 %v5557_v28  ;;  %v2544_v18 = vpop.f32.mrf.mxu0  ;;  %v2854_v30 = vpop.f32.mrf.mxu1 }
 0x38b   : > { %v6411_v13 = vpack.c.bf16 %v3088_v50, %v3087_v14  ;;  %v5560_v9 = vmax.f32 %v3087_v14, %v3088_v50  ;;  %v6473_v26 = vpack.c.bf16 %v3212_v32, %v3211_v43  ;;  %v2545_v10 = vadd.f32 %v2544_v18, %v7810_v21 }
 0x38c   : > { %v2855_v29 = vadd.f32 %v2854_v30, %v8165_v8  ;;  %v2548_v49 = vpop.f32.mrf.mxu0  ;;  %v2858_v45 = vpop.f32.mrf.mxu1  ;;  %v3089_v11 = vmax.f32 %v2543_v61, 0.0  ;;  %v3213_v54 = vmax.f32 %v2853_v27, 0.0  ;;  %v5746_v52 = vmax.f32 %v3211_v43, %v3212_v32 }
 0x38d   : > { %4081 = vst [vmem:[%s8047_s20 + $0xf0] sm:$0xff] %v6411_v13  ;;  %4143 = vst [vmem:[%s8047_s20 + $0x2e0] sm:$0xff] %v6473_v26  ;;  %v2549_v48 = vadd.f32 %v2548_v49, %v7822_v24  ;;  %v2859_v5 = vadd.f32 %v2858_v45, %v8189_v1  ;;  %5561 = vmax.xlane.f32.xlu1 %v5560_v9  ;;  %v3090_v34 = vmax.f32 %v2545_v10, 0.0  ;;  %v8375_v8 = vpop.permute.xlu0 %1942  ;;  %v8383_v32 = vpop.permute.xlu1 %1957 }
 0x38e   : > { %v3214_v0 = vmax.f32 %v2855_v29, 0.0  ;;  %5744 = vmax.xlane.f32.xlu0 %v5743_v51  ;;  %v2550_v63 = vpop.f32.mrf.mxu0  ;;  %v2860_v21 = vpop.f32.mrf.mxu1 }
 0x38f   : > { %v2551_v57 = vadd.f32 %v2550_v63, %v7822_v24  ;;  %v2861_v42 = vadd.f32 %v2860_v21, %v8189_v1  ;;  %v6412_v41 = vpack.c.bf16 %v3090_v34, %v3089_v11  ;;  %v5563_v28 = vmax.f32 %v3089_v11, %v3090_v34 }
 0x390   : > { %v6474_v47 = vpack.c.bf16 %v3214_v0, %v3213_v54  ;;  %v2552_v38 = vpop.f32.mrf.mxu0  ;;  %v2862_v2 = vpop.f32.mrf.mxu1  ;;  %v3091_v14 = vmax.f32 %v2549_v48, 0.0  ;;  %v3215_v50 = vmax.f32 %v2859_v5, 0.0  ;;  %v5749_v26 = vmax.f32 %v3213_v54, %v3214_v0  ;;  %v9034_v48 = vld [vmem:[#allocation18_spill] sm:$0xff] }
 0x391   : > { %v3092_v61 = vmax.f32 %v2551_v57, 0.0  ;;  %v3216_v27 = vmax.f32 %v2861_v42, 0.0  ;;  %5747 = vmax.xlane.f32.xlu1 %v5746_v52  ;;  %4082 = vst [vmem:[%s8047_s20 + $0xf8] sm:$0xff] %v6412_v41  ;;  %v2553_v18 = vadd.f32 %v2552_v38, %v7820_v23  ;;  %v2863_v24 = vadd.f32 %v2862_v2, %v8180_v39  ;;  %v8387_v45 = vpop.permute.xlu0 %1952  ;;  %v8395_v2 = vpop.permute.xlu1 %1967 }
 0x392   : > { %4144 = vst [vmem:[%s8047_s20 + $0x2e8] sm:$0xff] %v6474_v47  ;;  %5564 = vmax.xlane.f32.xlu0 %v5563_v28  ;;  %v2554_v1 = vpop.f32.mrf.mxu0  ;;  %v2864_v43 = vpop.f32.mrf.mxu1 }
 0x393   : > { %v6413_v30 = vpack.c.bf16 %v3092_v61, %v3091_v14  ;;  %v5566_v13 = vmax.f32 %v3091_v14, %v3092_v61  ;;  %v6475_v9 = vpack.c.bf16 %v3216_v27, %v3215_v50  ;;  %v2555_v51 = vadd.f32 %v2554_v1, %v7820_v23 }
 0x394   : > { %v2865_v10 = vadd.f32 %v2864_v43, %v8180_v39  ;;  %v2558_v29 = vpop.f32.mrf.mxu0  ;;  %v2868_v49 = vpop.f32.mrf.mxu1  ;;  %v3093_v34 = vmax.f32 %v2553_v18, 0.0  ;;  %v3217_v63 = vmax.f32 %v2863_v24, 0.0  ;;  %v5752_v39 = vmax.f32 %v3215_v50, %v3216_v27  ;;  %v9035_v50 = vld [vmem:[#allocation17_spill] sm:$0xff] }
 0x395   : > { %4083 = vst [vmem:[%s8047_s20 + $0x100] sm:$0xff] %v6413_v30  ;;  %4145 = vst [vmem:[%s8047_s20 + $0x2f0] sm:$0xff] %v6475_v9  ;;  %v2559_v5 = vadd.f32 %v2558_v29, %v9034_v48  ;;  %v2869_v11 = vadd.f32 %v2868_v49, %v8202_v37  ;;  %5567 = vmax.xlane.f32.xlu1 %v5566_v13  ;;  %v3094_v21 = vmax.f32 %v2555_v51, 0.0  ;;  %v8402_v30 = vpop.permute.xlu0 %1962 }
 0x396   : > { %v3218_v52 = vmax.f32 %v2865_v10, 0.0  ;;  %5750 = vmax.xlane.f32.xlu0 %v5749_v26  ;;  %v2560_v54 = vpop.f32.mrf.mxu0  ;;  %v2870_v23 = vpop.f32.mrf.mxu1 }
 0x397   : > { %v2561_v0 = vadd.f32 %v2560_v54, %v9034_v48  ;;  %v2871_v57 = vadd.f32 %v2870_v23, %v8202_v37  ;;  %v6414_v42 = vpack.c.bf16 %v3094_v21, %v3093_v34  ;;  %v5569_v41 = vmax.f32 %v3093_v34, %v3094_v21  ;;  %v9036_v23 = vld [vmem:[#allocation20_spill] sm:$0xff] }
 0x398   : > { %v6476_v28 = vpack.c.bf16 %v3218_v52, %v3217_v63  ;;  %v2562_v47 = vpop.f32.mrf.mxu0  ;;  %v2872_v38 = vpop.f32.mrf.mxu1  ;;  %v3095_v14 = vmax.f32 %v2559_v5, 0.0  ;;  %v3219_v61 = vmax.f32 %v2869_v11, 0.0  ;;  %v5755_v51 = vmax.f32 %v3217_v63, %v3218_v52 }
 0x399   : > { %v3096_v18 = vmax.f32 %v2561_v0, 0.0  ;;  %v3220_v24 = vmax.f32 %v2871_v57, 0.0  ;;  %5753 = vmax.xlane.f32.xlu1 %v5752_v39  ;;  %4084 = vst [vmem:[%s8047_s20 + $0x108] sm:$0xff] %v6414_v42  ;;  %v2563_v27 = vadd.f32 %v2562_v47, %v9035_v50  ;;  %v2873_v37 = vadd.f32 %v2872_v38, %v8198_v6 }
 0x39a   : > { %4146 = vst [vmem:[%s8047_s20 + $0x2f8] sm:$0xff] %v6476_v28  ;;  %5570 = vmax.xlane.f32.xlu0 %v5569_v41  ;;  %v2564_v1 = vpop.f32.mrf.mxu0  ;;  %v2874_v43 = vpop.f32.mrf.mxu1 }
 0x39b   : > { %v6415_v13 = vpack.c.bf16 %v3096_v18, %v3095_v14  ;;  %v5572_v9 = vmax.f32 %v3095_v14, %v3096_v18  ;;  %v6477_v26 = vpack.c.bf16 %v3220_v24, %v3219_v61  ;;  %v2565_v10 = vadd.f32 %v2564_v1, %v9035_v50 }
 0x39c   : > { %v2875_v29 = vadd.f32 %v2874_v43, %v8198_v6  ;;  %v2568_v49 = vpop.f32.mrf.mxu0  ;;  %v2878_v48 = vpop.f32.mrf.mxu1  ;;  %v3097_v11 = vmax.f32 %v2563_v27, 0.0  ;;  %v3221_v34 = vmax.f32 %v2873_v37, 0.0  ;;  %v5758_v54 = vmax.f32 %v3219_v61, %v3220_v24 }
 0x39d   : > { %4085 = vst [vmem:[%s8047_s20 + $0x110] sm:$0xff] %v6415_v13  ;;  %4147 = vst [vmem:[%s8047_s20 + $0x300] sm:$0xff] %v6477_v26  ;;  %v8414_v5 = vadd.f32 %v2878_v48, %v8219_v15  ;;  %5573 = vmax.xlane.f32.xlu1 %v5572_v9  ;;  %v3098_v63 = vmax.f32 %v2565_v10, 0.0  ;;  %v2569_v39 = vadd.f32 %v2568_v49, %v9036_v23 }
 0x39e   : > { %v3222_v6 = vmax.f32 %v2875_v29, 0.0  ;;  %5756 = vmax.xlane.f32.xlu0 %v5755_v51  ;;  %v2880_v21 = vpop.f32.mrf.mxu1  ;;  %v5658_v52 = vpop.xlane.xlu1 %5657 }
 0x39f   : > { %v2881_v0 = vadd.f32 %v2880_v21, %v8219_v15  ;;  %5917 = vst.msk [vmem:[%s8409_s11 + $0x1f0] sm:$0xff] %vm5854_vm1, %v5658_v52  ;;  %v2570_v57 = vpop.f32.mrf.mxu0  ;;  %v5472_v42 = vpop.xlane.xlu0 %5471  ;;  %v6416_v41 = vpack.c.bf16 %v3098_v63, %v3097_v11  ;;  %v5575_v28 = vmax.f32 %v3097_v11, %v3098_v63  ;;  %v3223_v14 = vmax.f32 %v8414_v5, 0.0  ;;  %v9037_v15 = vld [vmem:[#allocation19_spill] sm:$0xff] }
 0x3a0   : > { %v6478_v47 = vpack.c.bf16 %v3222_v6, %v3221_v34  ;;  %5855 = vst.msk [vmem:[%s8409_s11] sm:$0xff] %vm5854_vm1, %v5472_v42  ;;  %v2882_v38 = vpop.f32.mrf.mxu1  ;;  %v2571_v61 = vadd.f32 %v2570_v57, %v9036_v23  ;;  %v3099_v1 = vmax.f32 %v2569_v39, 0.0  ;;  %v5761_v51 = vmax.f32 %v3221_v34, %v3222_v6  ;;  %v9038_v23 = vld [vmem:[#allocation22_spill] sm:$0xff] }
 0x3a1   : > { %v3224_v18 = vmax.f32 %v2881_v0, 0.0  ;;  %v2572_v24 = vpop.f32.mrf.mxu0  ;;  %5759 = vmax.xlane.f32.xlu1 %v5758_v54  ;;  %4086 = vst [vmem:[%s8047_s20 + $0x118] sm:$0xff] %v6416_v41  ;;  %v2883_v27 = vadd.f32 %v2882_v38, %v8213_v44 }
 0x3a2   : > { %4148 = vst [vmem:[%s8047_s20 + $0x308] sm:$0xff] %v6478_v47  ;;  %v2573_v50 = vadd.f32 %v2572_v24, %v9037_v15  ;;  %5576 = vmax.xlane.f32.xlu0 %v5575_v28  ;;  %v2884_v37 = vpop.f32.mrf.mxu1  ;;  %v3100_v13 = vmax.f32 %v2571_v61, 0.0 }
 0x3a3   : > { %v6479_v43 = vpack.c.bf16 %v3224_v18, %v3223_v14  ;;  %v2574_v9 = vpop.f32.mrf.mxu0  ;;  %v5475_v26 = vpop.xlane.xlu1 %5474  ;;  %v2885_v29 = vadd.f32 %v2884_v37, %v8213_v44  ;;  %v3225_v6 = vmax.f32 %v2883_v27, 0.0  ;;  %v5764_v24 = vmax.f32 %v3223_v14, %v3224_v18 }
 0x3a4   : > { %v2575_v10 = vadd.f32 %v2574_v9, %v9037_v15  ;;  %5856 = vst.msk [vmem:[%s8409_s11 + $0x8] sm:$0xff] %vm5854_vm1, %v5475_v26  ;;  %v5661_v49 = vpop.xlane.xlu0 %5660  ;;  %v2888_v48 = vpop.f32.mrf.mxu1  ;;  %v6417_v5 = vpack.c.bf16 %v3100_v13, %v3099_v1  ;;  %v5578_v11 = vmax.f32 %v3099_v1, %v3100_v13  ;;  %v3101_v34 = vmax.f32 %v2573_v50, 0.0 }
 0x3a5   : > { %4149 = vst [vmem:[%s8047_s20 + $0x310] sm:$0xff] %v6479_v43  ;;  %5918 = vst.msk [vmem:[%s8409_s11 + $0x1f8] sm:$0xff] %vm5854_vm1, %v5661_v49  ;;  %v2578_v63 = vpop.f32.mrf.mxu0  ;;  %v8436_v21 = vadd.f32 %v2888_v48, %v8231_v31  ;;  %v3226_v54 = vmax.f32 %v2885_v29, 0.0 }
 0x3a6   : > { %v3102_v52 = vmax.f32 %v2575_v10, 0.0  ;;  %5762 = vmax.xlane.f32.xlu0 %v5761_v51  ;;  %v2890_v44 = vpop.f32.mrf.mxu1  ;;  %4087 = vst [vmem:[%s8047_s20 + $0x120] sm:$0xff] %v6417_v5  ;;  %v2579_v39 = vadd.f32 %v2578_v63, %v9038_v23  ;;  %5579 = vmax.xlane.f32.xlu1 %v5578_v11 }
 0x3a7   : > { %v2580_v0 = vpop.f32.mrf.mxu0  ;;  %v2891_v57 = vadd.f32 %v2890_v44, %v8231_v31  ;;  %v5664_v42 = vpop.xlane.xlu1 %5663  ;;  %v6480_v47 = vpack.c.bf16 %v3226_v54, %v3225_v6  ;;  %v3227_v15 = vmax.f32 %v8436_v21, 0.0  ;;  %v9039_v31 = vld [vmem:[#allocation21_spill] sm:$0xff]  ;;  %v5767_v51 = vmax.f32 %v3225_v6, %v3226_v54 }
 0x3a8   : > { %v6418_v41 = vpack.c.bf16 %v3102_v52, %v3101_v34  ;;  %v5581_v28 = vmax.f32 %v3101_v34, %v3102_v52  ;;  %5919 = vst.msk [vmem:[%s8409_s11 + $0x200] sm:$0xff] %vm5854_vm1, %v5664_v42  ;;  %v5478_v38 = vpop.xlane.xlu0 %5477  ;;  %v2892_v61 = vpop.f32.mrf.mxu1  ;;  %v2581_v50 = vadd.f32 %v2580_v0, %v9038_v23  ;;  %v3103_v9 = vmax.f32 %v2579_v39, 0.0  ;;  %v9040_v23 = vld [vmem:[#allocation24_spill] sm:$0xff] }
 0x3a9   : > { %v3228_v27 = vmax.f32 %v2891_v57, 0.0  ;;  %5857 = vst.msk [vmem:[%s8409_s11 + $0x10] sm:$0xff] %vm5854_vm1, %v5478_v38  ;;  %v2582_v37 = vpop.f32.mrf.mxu0  ;;  %4150 = vst [vmem:[%s8047_s20 + $0x318] sm:$0xff] %v6480_v47  ;;  %v2893_v43 = vadd.f32 %v2892_v61, %v8227_v40 }
 0x3aa   : > { %4088 = vst [vmem:[%s8047_s20 + $0x128] sm:$0xff] %v6418_v41  ;;  %v2583_v1 = vadd.f32 %v2582_v37, %v9039_v31  ;;  %5582 = vmax.xlane.f32.xlu0 %v5581_v28  ;;  %v2894_v13 = vpop.f32.mrf.mxu1  ;;  %v3104_v14 = vmax.f32 %v2581_v50, 0.0  ;;  %5765 = vmax.xlane.f32.xlu1 %v5764_v24 }
 0x3ab   : > { %v6481_v18 = vpack.c.bf16 %v3228_v27, %v3227_v15  ;;  %v2584_v26 = vpop.f32.mrf.mxu0  ;;  %v2895_v29 = vadd.f32 %v2894_v13, %v8227_v40  ;;  %v3229_v52 = vmax.f32 %v2893_v43, 0.0  ;;  %v5770_v61 = vmax.f32 %v3227_v15, %v3228_v27 }
 0x3ac   : > { %v2585_v10 = vadd.f32 %v2584_v26, %v9039_v31  ;;  %v5481_v49 = vpop.xlane.xlu0 %5480  ;;  %v2898_v48 = vpop.f32.mrf.mxu1  ;;  %v6419_v5 = vpack.c.bf16 %v3104_v14, %v3103_v9  ;;  %v5584_v11 = vmax.f32 %v3103_v9, %v3104_v14  ;;  %v3105_v34 = vmax.f32 %v2583_v1, 0.0 }
 0x3ad   : > { %4151 = vst [vmem:[%s8047_s20 + $0x320] sm:$0xff] %v6481_v18  ;;  %5858 = vst.msk [vmem:[%s8409_s11 + $0x18] sm:$0xff] %vm5854_vm1, %v5481_v49  ;;  %v2588_v63 = vpop.f32.mrf.mxu0  ;;  %v8457_v21 = vadd.f32 %v2898_v48, %v8245_v7  ;;  %v3230_v54 = vmax.f32 %v2895_v29, 0.0 }
 0x3ae   : > { %v3106_v6 = vmax.f32 %v2585_v10, 0.0  ;;  %5768 = vmax.xlane.f32.xlu0 %v5767_v51  ;;  %v2900_v44 = vpop.f32.mrf.mxu1  ;;  %v5484_v40 = vpop.xlane.xlu1 %5483  ;;  %4089 = vst [vmem:[%s8047_s20 + $0x130] sm:$0xff] %v6419_v5  ;;  %v2589_v39 = vadd.f32 %v2588_v63, %v9040_v23  ;;  %5585 = vmax.xlane.f32.xlu1 %v5584_v11 }
 0x3af   : > { %v2590_v0 = vpop.f32.mrf.mxu0  ;;  %v2901_v57 = vadd.f32 %v2900_v44, %v8245_v7  ;;  %5859 = vst.msk [vmem:[%s8409_s11 + $0x20] sm:$0xff] %vm5854_vm1, %v5484_v40  ;;  %v6482_v28 = vpack.c.bf16 %v3230_v54, %v3229_v52  ;;  %v3231_v24 = vmax.f32 %v8457_v21, 0.0  ;;  %v9041_v7 = vld [vmem:[#allocation23_spill] sm:$0xff]  ;;  %v5773_v26 = vmax.f32 %v3229_v52, %v3230_v54  ;;  %v9042_v44 = vld [vmem:[#allocation26_spill] sm:$0xff] }
 0x3b0   : > { %v6420_v42 = vpack.c.bf16 %v3106_v6, %v3105_v34  ;;  %v5587_v41 = vmax.f32 %v3105_v34, %v3106_v6  ;;  %v5667_v47 = vpop.xlane.xlu0 %5666  ;;  %v2902_v38 = vpop.f32.mrf.mxu1  ;;  %v2591_v50 = vadd.f32 %v2590_v0, %v9040_v23  ;;  %v3107_v27 = vmax.f32 %v2589_v39, 0.0 }
 0x3b1   : > { %v3232_v37 = vmax.f32 %v2901_v57, 0.0  ;;  %5920 = vst.msk [vmem:[%s8409_s11 + $0x208] sm:$0xff] %vm5854_vm1, %v5667_v47  ;;  %v2592_v31 = vpop.f32.mrf.mxu0  ;;  %4152 = vst [vmem:[%s8047_s20 + $0x328] sm:$0xff] %v6482_v28  ;;  %v2903_v43 = vadd.f32 %v2902_v38, %v8239_v19 }
 0x3b2   : > { %4090 = vst [vmem:[%s8047_s20 + $0x138] sm:$0xff] %v6420_v42  ;;  %v2593_v1 = vadd.f32 %v2592_v31, %v9041_v7  ;;  %5588 = vmax.xlane.f32.xlu0 %v5587_v41  ;;  %v2904_v13 = vpop.f32.mrf.mxu1  ;;  %v5670_v15 = vpop.xlane.xlu1 %5669  ;;  %v3108_v9 = vmax.f32 %v2591_v50, 0.0  ;;  %5771 = vmax.xlane.f32.xlu1 %v5770_v61 }
 0x3b3   : > { %v6483_v14 = vpack.c.bf16 %v3232_v37, %v3231_v24  ;;  %v2594_v18 = vpop.f32.mrf.mxu0  ;;  %5921 = vst.msk [vmem:[%s8409_s11 + $0x210] sm:$0xff] %vm5854_vm1, %v5670_v15  ;;  %v2905_v10 = vadd.f32 %v2904_v13, %v8239_v19  ;;  %v3233_v34 = vmax.f32 %v2903_v43, 0.0  ;;  %v5776_v47 = vmax.f32 %v3231_v24, %v3232_v37 }
 0x3b4   : > { %v2595_v51 = vadd.f32 %v2594_v18, %v9041_v7  ;;  %v5487_v29 = vpop.xlane.xlu0 %5486  ;;  %v2908_v49 = vpop.f32.mrf.mxu1  ;;  %v6421_v48 = vpack.c.bf16 %v3108_v9, %v3107_v27  ;;  %v5590_v5 = vmax.f32 %v3107_v27, %v3108_v9  ;;  %v3109_v21 = vmax.f32 %v2593_v1, 0.0 }
 0x3b5   : > { %4153 = vst [vmem:[%s8047_s20 + $0x330] sm:$0xff] %v6483_v14  ;;  %5860 = vst.msk [vmem:[%s8409_s11 + $0x28] sm:$0xff] %vm5854_vm1, %v5487_v29  ;;  %v2598_v11 = vpop.f32.mrf.mxu0  ;;  %v8480_v63 = vadd.f32 %v2908_v49, %v8257_v60  ;;  %v3234_v6 = vmax.f32 %v2905_v10, 0.0 }
 0x3b6   : > { %v3110_v52 = vmax.f32 %v2595_v51, 0.0  ;;  %5774 = vmax.xlane.f32.xlu0 %v5773_v26  ;;  %v2910_v54 = vpop.f32.mrf.mxu1  ;;  %v5490_v19 = vpop.xlane.xlu1 %5489  ;;  %4091 = vst [vmem:[%s8047_s20 + $0x140] sm:$0xff] %v6421_v48  ;;  %v2599_v40 = vadd.f32 %v2598_v11, %v9042_v44  ;;  %5591 = vmax.xlane.f32.xlu1 %v5590_v5 }
 0x3b7   : > { %v2600_v23 = vpop.f32.mrf.mxu0  ;;  %v2911_v39 = vadd.f32 %v2910_v54, %v8257_v60  ;;  %5861 = vst.msk [vmem:[%s8409_s11 + $0x30] sm:$0xff] %vm5854_vm1, %v5490_v19  ;;  %v6484_v42 = vpack.c.bf16 %v3234_v6, %v3233_v34  ;;  %v3235_v38 = vmax.f32 %v8480_v63, 0.0  ;;  %v9043_v60 = vld [vmem:[#allocation25_spill] sm:$0xff]  ;;  %v5779_v9 = vmax.f32 %v3233_v34, %v3234_v6 }
 0x3b8   : > { %v6422_v0 = vpack.c.bf16 %v3110_v52, %v3109_v21  ;;  %v5593_v57 = vmax.f32 %v3109_v21, %v3110_v52  ;;  %v5673_v41 = vpop.xlane.xlu0 %5672  ;;  %v2912_v28 = vpop.f32.mrf.mxu1  ;;  %v2601_v61 = vadd.f32 %v2600_v23, %v9042_v44  ;;  %v3111_v37 = vmax.f32 %v2599_v40, 0.0  ;;  %v9044_v52 = vld [vmem:[#allocation28_spill] sm:$0xff] }
 0x3b9   : > { %v3236_v50 = vmax.f32 %v2911_v39, 0.0  ;;  %5922 = vst.msk [vmem:[%s8409_s11 + $0x218] sm:$0xff] %vm5854_vm1, %v5673_v41  ;;  %v2602_v31 = vpop.f32.mrf.mxu0  ;;  %4154 = vst [vmem:[%s8047_s20 + $0x338] sm:$0xff] %v6484_v42  ;;  %v2913_v1 = vadd.f32 %v2912_v28, %v8253_v16 }
 0x3ba   : > { %4092 = vst [vmem:[%s8047_s20 + $0x148] sm:$0xff] %v6422_v0  ;;  %v2603_v7 = vadd.f32 %v2602_v31, %v9043_v60  ;;  %5594 = vmax.xlane.f32.xlu0 %v5593_v57  ;;  %v2914_v43 = vpop.f32.mrf.mxu1  ;;  %v5676_v24 = vpop.xlane.xlu1 %5675  ;;  %v3112_v13 = vmax.f32 %v2601_v61, 0.0  ;;  %5777 = vmax.xlane.f32.xlu1 %v5776_v47 }
 0x3bb   : > { %v6485_v15 = vpack.c.bf16 %v3236_v50, %v3235_v38  ;;  %v2604_v27 = vpop.f32.mrf.mxu0  ;;  %5923 = vst.msk [vmem:[%s8409_s11 + $0x220] sm:$0xff] %vm5854_vm1, %v5676_v24  ;;  %v2915_v18 = vadd.f32 %v2914_v43, %v8253_v16  ;;  %v3237_v11 = vmax.f32 %v2913_v1, 0.0  ;;  %v5782_v57 = vmax.f32 %v3235_v38, %v3236_v50 }
 0x3bc   : > { %v2605_v14 = vadd.f32 %v2604_v27, %v9043_v60  ;;  %v5493_v26 = vpop.xlane.xlu0 %5492  ;;  %v2918_v51 = vpop.f32.mrf.mxu1  ;;  %v6423_v10 = vpack.c.bf16 %v3112_v13, %v3111_v37  ;;  %v5596_v29 = vmax.f32 %v3111_v37, %v3112_v13  ;;  %v3113_v5 = vmax.f32 %v2603_v7, 0.0 }
 0x3bd   : > { %4155 = vst [vmem:[%s8047_s20 + $0x340] sm:$0xff] %v6485_v15  ;;  %5862 = vst.msk [vmem:[%s8409_s11 + $0x38] sm:$0xff] %vm5854_vm1, %v5493_v26  ;;  %v2608_v49 = vpop.f32.mrf.mxu0  ;;  %v8503_v48 = vadd.f32 %v2918_v51, %v8271_v55  ;;  %v3238_v21 = vmax.f32 %v2915_v18, 0.0 }
 0x3be   : > { %v3114_v63 = vmax.f32 %v2605_v14, 0.0  ;;  %5780 = vmax.xlane.f32.xlu0 %v5779_v9  ;;  %v2920_v34 = vpop.f32.mrf.mxu1  ;;  %v5496_v16 = vpop.xlane.xlu1 %5495  ;;  %4093 = vst [vmem:[%s8047_s20 + $0x150] sm:$0xff] %v6423_v10  ;;  %v2609_v6 = vadd.f32 %v2608_v49, %v9044_v52  ;;  %5597 = vmax.xlane.f32.xlu1 %v5596_v29 }
 0x3bf   : > { %v2610_v54 = vpop.f32.mrf.mxu0  ;;  %v2921_v19 = vadd.f32 %v2920_v34, %v8271_v55  ;;  %5863 = vst.msk [vmem:[%s8409_s11 + $0x40] sm:$0xff] %vm5854_vm1, %v5496_v16  ;;  %v6486_v23 = vpack.c.bf16 %v3238_v21, %v3237_v11  ;;  %v3239_v42 = vmax.f32 %v8503_v48, 0.0  ;;  %v9045_v55 = vld [vmem:[#allocation27_spill] sm:$0xff]  ;;  %v5785_v24 = vmax.f32 %v3237_v11, %v3238_v21 }
 0x3c0   : > { %v6424_v44 = vpack.c.bf16 %v3114_v63, %v3113_v5  ;;  %v5599_v40 = vmax.f32 %v3113_v5, %v3114_v63  ;;  %v5679_v39 = vpop.xlane.xlu0 %5678  ;;  %v2922_v0 = vpop.f32.mrf.mxu1  ;;  %v2611_v41 = vadd.f32 %v2610_v54, %v9044_v52  ;;  %v3115_v50 = vmax.f32 %v2609_v6, 0.0  ;;  %v9046_v5 = vld [vmem:[#allocation30_spill] sm:$0xff] }
 0x3c1   : > { %v3240_v28 = vmax.f32 %v2921_v19, 0.0  ;;  %5924 = vst.msk [vmem:[%s8409_s11 + $0x228] sm:$0xff] %vm5854_vm1, %v5679_v39  ;;  %v2612_v47 = vpop.f32.mrf.mxu0  ;;  %4156 = vst [vmem:[%s8047_s20 + $0x348] sm:$0xff] %v6486_v23  ;;  %v2923_v31 = vadd.f32 %v2922_v0, %v8265_v62 }
 0x3c2   : > { %4094 = vst [vmem:[%s8047_s20 + $0x158] sm:$0xff] %v6424_v44  ;;  %v2613_v61 = vadd.f32 %v2612_v47, %v9045_v55  ;;  %5600 = vmax.xlane.f32.xlu0 %v5599_v40  ;;  %v2924_v60 = vpop.f32.mrf.mxu1  ;;  %v5682_v38 = vpop.xlane.xlu1 %5681  ;;  %v3116_v7 = vmax.f32 %v2611_v41, 0.0  ;;  %5783 = vmax.xlane.f32.xlu1 %v5782_v57 }
 0x3c3   : > { %v6487_v1 = vpack.c.bf16 %v3240_v28, %v3239_v42  ;;  %v2614_v43 = vpop.f32.mrf.mxu0  ;;  %5925 = vst.msk [vmem:[%s8409_s11 + $0x230] sm:$0xff] %vm5854_vm1, %v5682_v38  ;;  %v2925_v13 = vadd.f32 %v2924_v60, %v8265_v62  ;;  %v3241_v10 = vmax.f32 %v2923_v31, 0.0  ;;  %v5788_v19 = vmax.f32 %v3239_v42, %v3240_v28 }
 0x3c4   : > { %v2615_v37 = vadd.f32 %v2614_v43, %v9045_v55  ;;  %v5499_v15 = vpop.xlane.xlu0 %5498  ;;  %v2928_v27 = vpop.f32.mrf.mxu1  ;;  %v6425_v9 = vpack.c.bf16 %v3116_v7, %v3115_v50  ;;  %v5602_v14 = vmax.f32 %v3115_v50, %v3116_v7  ;;  %v3117_v51 = vmax.f32 %v2613_v61, 0.0 }
 0x3c5   : > { %4157 = vst [vmem:[%s8047_s20 + $0x350] sm:$0xff] %v6487_v1  ;;  %5864 = vst.msk [vmem:[%s8409_s11 + $0x48] sm:$0xff] %vm5854_vm1, %v5499_v15  ;;  %v2618_v18 = vpop.f32.mrf.mxu0  ;;  %v8526_v26 = vadd.f32 %v2928_v27, %v8283_v46  ;;  %v3242_v49 = vmax.f32 %v2925_v13, 0.0 }
 0x3c6   : > { %v3118_v29 = vmax.f32 %v2615_v37, 0.0  ;;  %5786 = vmax.xlane.f32.xlu0 %v5785_v24  ;;  %v2930_v48 = vpop.f32.mrf.mxu1  ;;  %v5502_v62 = vpop.xlane.xlu1 %5501  ;;  %4095 = vst [vmem:[%s8047_s20 + $0x160] sm:$0xff] %v6425_v9  ;;  %v2619_v11 = vadd.f32 %v2618_v18, %v9046_v5  ;;  %5603 = vmax.xlane.f32.xlu1 %v5602_v14  ;;  %v9048_v18 = vld [vmem:[#allocation32_spill] sm:$0xff] }
 0x3c7   : > { %v2620_v63 = vpop.f32.mrf.mxu0  ;;  %v2931_v21 = vadd.f32 %v2930_v48, %v8283_v46  ;;  %5865 = vst.msk [vmem:[%s8409_s11 + $0x50] sm:$0xff] %vm5854_vm1, %v5502_v62  ;;  %v6488_v52 = vpack.c.bf16 %v3242_v49, %v3241_v10  ;;  %v3243_v44 = vmax.f32 %v8526_v26, 0.0  ;;  %v9047_v46 = vld [vmem:[#allocation29_spill] sm:$0xff]  ;;  %v5791_v31 = vmax.f32 %v3241_v10, %v3242_v49 }
 0x3c8   : > { %v6426_v34 = vpack.c.bf16 %v3118_v29, %v3117_v51  ;;  %v5605_v16 = vmax.f32 %v3117_v51, %v3118_v29  ;;  %v5685_v6 = vpop.xlane.xlu0 %5684  ;;  %v2932_v54 = vpop.f32.mrf.mxu1  ;;  %v2621_v40 = vadd.f32 %v2620_v63, %v9046_v5  ;;  %v3119_v28 = vmax.f32 %v2619_v11, 0.0 }
 0x3c9   : > { %v3244_v23 = vmax.f32 %v2931_v21, 0.0  ;;  %5926 = vst.msk [vmem:[%s8409_s11 + $0x238] sm:$0xff] %vm5854_vm1, %v5685_v6  ;;  %v2622_v39 = vpop.f32.mrf.mxu0  ;;  %4158 = vst [vmem:[%s8047_s20 + $0x358] sm:$0xff] %v6488_v52  ;;  %v2933_v57 = vadd.f32 %v2932_v54, %v8279_v58 }
 0x3ca   : > { %4096 = vst [vmem:[%s8047_s20 + $0x168] sm:$0xff] %v6426_v34  ;;  %v2623_v0 = vadd.f32 %v2622_v39, %v9047_v46  ;;  %5606 = vmax.xlane.f32.xlu0 %v5605_v16  ;;  %v2934_v41 = vpop.f32.mrf.mxu1  ;;  %v5688_v42 = vpop.xlane.xlu1 %5687  ;;  %v3120_v47 = vmax.f32 %v2621_v40, 0.0  ;;  %5789 = vmax.xlane.f32.xlu1 %v5788_v19 }
 0x3cb   : > { %v6489_v55 = vpack.c.bf16 %v3244_v23, %v3243_v44  ;;  %v2624_v61 = vpop.f32.mrf.mxu0  ;;  %5927 = vst.msk [vmem:[%s8409_s11 + $0x240] sm:$0xff] %vm5854_vm1, %v5688_v42  ;;  %v2935_v38 = vadd.f32 %v2934_v41, %v8279_v58  ;;  %v3245_v15 = vmax.f32 %v2933_v57, 0.0  ;;  %v5794_v11 = vmax.f32 %v3243_v44, %v3244_v23 }
 0x3cc   : > { %v2625_v60 = vadd.f32 %v2624_v61, %v9047_v46  ;;  %v5505_v50 = vpop.xlane.xlu0 %5504  ;;  %v2938_v7 = vpop.f32.mrf.mxu1  ;;  %v6427_v1 = vpack.c.bf16 %v3120_v47, %v3119_v28  ;;  %v5608_v43 = vmax.f32 %v3119_v28, %v3120_v47  ;;  %v3121_v13 = vmax.f32 %v2623_v0, 0.0 }
 0x3cd   : > { %4159 = vst [vmem:[%s8047_s20 + $0x360] sm:$0xff] %v6489_v55  ;;  %5866 = vst.msk [vmem:[%s8409_s11 + $0x58] sm:$0xff] %vm5854_vm1, %v5505_v50  ;;  %v2628_v24 = vpop.f32.mrf.mxu0  ;;  %v8549_v37 = vadd.f32 %v2938_v7, %v8297_v36  ;;  %v3246_v9 = vmax.f32 %v2935_v38, 0.0 }
 0x3ce   : > { %v3122_v27 = vmax.f32 %v2625_v60, 0.0  ;;  %5792 = vmax.xlane.f32.xlu0 %v5791_v31  ;;  %v2940_v14 = vpop.f32.mrf.mxu1  ;;  %v5508_v58 = vpop.xlane.xlu1 %5507  ;;  %4097 = vst [vmem:[%s8047_s20 + $0x170] sm:$0xff] %v6427_v1  ;;  %v2629_v26 = vadd.f32 %v2628_v24, %v9048_v18  ;;  %5609 = vmax.xlane.f32.xlu1 %v5608_v43  ;;  %v9050_v1 = vld [vmem:[#allocation34_spill] sm:$0xff] }
 0x3cf   : > { %v2630_v51 = vpop.f32.mrf.mxu0  ;;  %v2941_v10 = vadd.f32 %v2940_v14, %v8297_v36  ;;  %5867 = vst.msk [vmem:[%s8409_s11 + $0x60] sm:$0xff] %vm5854_vm1, %v5508_v58  ;;  %v6490_v48 = vpack.c.bf16 %v3246_v9, %v3245_v15  ;;  %v3247_v63 = vmax.f32 %v8549_v37, 0.0  ;;  %v9049_v36 = vld [vmem:[#allocation31_spill] sm:$0xff]  ;;  %v5797_v46 = vmax.f32 %v3245_v15, %v3246_v9 }
 0x3d0   : > { %v6428_v29 = vpack.c.bf16 %v3122_v27, %v3121_v13  ;;  %v5611_v49 = vmax.f32 %v3121_v13, %v3122_v27  ;;  %v5691_v62 = vpop.xlane.xlu0 %5690  ;;  %v2942_v5 = vpop.f32.mrf.mxu1  ;;  %v2631_v21 = vadd.f32 %v2630_v51, %v9048_v18  ;;  %v3123_v44 = vmax.f32 %v2629_v26, 0.0 }
 0x3d1   : > { %v3248_v34 = vmax.f32 %v2941_v10, 0.0  ;;  %5928 = vst.msk [vmem:[%s8409_s11 + $0x248] sm:$0xff] %vm5854_vm1, %v5691_v62  ;;  %v2632_v16 = vpop.f32.mrf.mxu0  ;;  %4160 = vst [vmem:[%s8047_s20 + $0x368] sm:$0xff] %v6490_v48  ;;  %v2943_v6 = vadd.f32 %v2942_v5, %v8291_v4 }
 0x3d2   : > { %4098 = vst [vmem:[%s8047_s20 + $0x178] sm:$0xff] %v6428_v29  ;;  %v2633_v52 = vadd.f32 %v2632_v16, %v9049_v36  ;;  %5612 = vmax.xlane.f32.xlu0 %v5611_v49  ;;  %v2944_v54 = vpop.f32.mrf.mxu1  ;;  %v5694_v19 = vpop.xlane.xlu1 %5693  ;;  %v3124_v40 = vmax.f32 %v2631_v21, 0.0  ;;  %5795 = vmax.xlane.f32.xlu1 %v5794_v11 }
 0x3d3   : > { %v6491_v23 = vpack.c.bf16 %v3248_v34, %v3247_v63  ;;  %v2634_v39 = vpop.f32.mrf.mxu0  ;;  %5929 = vst.msk [vmem:[%s8409_s11 + $0x250] sm:$0xff] %vm5854_vm1, %v5694_v19  ;;  %v2945_v57 = vadd.f32 %v2944_v54, %v8291_v4  ;;  %v3249_v60 = vmax.f32 %v2943_v6, 0.0  ;;  %v5800_v58 = vmax.f32 %v3247_v63, %v3248_v34 }
 0x3d4   : > { %v2635_v0 = vadd.f32 %v2634_v39, %v9049_v36  ;;  %v5511_v41 = vpop.xlane.xlu0 %5510  ;;  %v2948_v42 = vpop.f32.mrf.mxu1  ;;  %v6429_v28 = vpack.c.bf16 %v3124_v40, %v3123_v44  ;;  %v5614_v47 = vmax.f32 %v3123_v44, %v3124_v40  ;;  %v3125_v31 = vmax.f32 %v2633_v52, 0.0 }
 0x3d5   : > { %4161 = vst [vmem:[%s8047_s20 + $0x370] sm:$0xff] %v6491_v23  ;;  %5868 = vst.msk [vmem:[%s8409_s11 + $0x68] sm:$0xff] %vm5854_vm1, %v5511_v41  ;;  %v2638_v55 = vpop.f32.mrf.mxu0  ;;  %v8572_v61 = vadd.f32 %v2948_v42, %v8309_v25  ;;  %v3250_v50 = vmax.f32 %v2945_v57, 0.0  ;;  %v9052_v41 = vld [vmem:[#allocation36_spill] sm:$0xff] }
 0x3d6   : > { %v3126_v38 = vmax.f32 %v2635_v0, 0.0  ;;  %5798 = vmax.xlane.f32.xlu0 %v5797_v46  ;;  %v2950_v7 = vpop.f32.mrf.mxu1  ;;  %v5514_v4 = vpop.xlane.xlu1 %5513  ;;  %4099 = vst [vmem:[%s8047_s20 + $0x180] sm:$0xff] %v6429_v28  ;;  %v2639_v43 = vadd.f32 %v2638_v55, %v9050_v1  ;;  %5615 = vmax.xlane.f32.xlu1 %v5614_v47 }
 0x3d7   : > { %v2640_v24 = vpop.f32.mrf.mxu0  ;;  %v2951_v37 = vadd.f32 %v2950_v7, %v8309_v25  ;;  %5869 = vst.msk [vmem:[%s8409_s11 + $0x70] sm:$0xff] %vm5854_vm1, %v5514_v4  ;;  %v6492_v27 = vpack.c.bf16 %v3250_v50, %v3249_v60  ;;  %v3251_v18 = vmax.f32 %v8572_v61, 0.0  ;;  %v9051_v25 = vld [vmem:[#allocation33_spill] sm:$0xff]  ;;  %v5803_v34 = vmax.f32 %v3249_v60, %v3250_v50 }
 0x3d8   : > { %v6430_v13 = vpack.c.bf16 %v3126_v38, %v3125_v31  ;;  %v5617_v15 = vmax.f32 %v3125_v31, %v3126_v38  ;;  %v5697_v9 = vpop.xlane.xlu0 %5696  ;;  %v2952_v14 = vpop.f32.mrf.mxu1  ;;  %v2641_v26 = vadd.f32 %v2640_v24, %v9050_v1  ;;  %v3127_v5 = vmax.f32 %v2639_v43, 0.0 }
 0x3d9   : > { %v3252_v51 = vmax.f32 %v2951_v37, 0.0  ;;  %5930 = vst.msk [vmem:[%s8409_s11 + $0x258] sm:$0xff] %vm5854_vm1, %v5697_v9  ;;  %v2642_v10 = vpop.f32.mrf.mxu0  ;;  %4162 = vst [vmem:[%s8047_s20 + $0x378] sm:$0xff] %v6492_v27  ;;  %v2953_v49 = vadd.f32 %v2952_v14, %v8305_v20 }
 0x3da   : > { %4100 = vst [vmem:[%s8047_s20 + $0x188] sm:$0xff] %v6430_v13  ;;  %v2643_v29 = vadd.f32 %v2642_v10, %v9051_v25  ;;  %5618 = vmax.xlane.f32.xlu0 %v5617_v15  ;;  %v2954_v48 = vpop.f32.mrf.mxu1  ;;  %v5700_v62 = vpop.xlane.xlu1 %5699  ;;  %v3128_v11 = vmax.f32 %v2641_v26, 0.0  ;;  %5801 = vmax.xlane.f32.xlu1 %v5800_v58 }
 0x3db   : > { %v6493_v63 = vpack.c.bf16 %v3252_v51, %v3251_v18  ;;  %v2644_v21 = vpop.f32.mrf.mxu0  ;;  %5931 = vst.msk [vmem:[%s8409_s11 + $0x260] sm:$0xff] %vm5854_vm1, %v5700_v62  ;;  %v2955_v36 = vadd.f32 %v2954_v48, %v8305_v20  ;;  %v3253_v39 = vmax.f32 %v2953_v49, 0.0  ;;  %v5806_v50 = vmax.f32 %v3251_v18, %v3252_v51 }
 0x3dc   : > { %v2645_v16 = vadd.f32 %v2644_v21, %v9051_v25  ;;  %v5517_v52 = vpop.xlane.xlu0 %5516  ;;  %v2958_v6 = vpop.f32.mrf.mxu1  ;;  %v6431_v54 = vpack.c.bf16 %v3128_v11, %v3127_v5  ;;  %v5620_v19 = vmax.f32 %v3127_v5, %v3128_v11  ;;  %v3129_v23 = vmax.f32 %v2643_v29, 0.0 }
 0x3dd   : > { %4163 = vst [vmem:[%s8047_s20 + $0x380] sm:$0xff] %v6493_v63  ;;  %5870 = vst.msk [vmem:[%s8409_s11 + $0x78] sm:$0xff] %vm5854_vm1, %v5517_v52  ;;  %v2648_v44 = vpop.f32.mrf.mxu0  ;;  %v8595_v40 = vadd.f32 %v2958_v6, %v8323_v53  ;;  %v3254_v0 = vmax.f32 %v2955_v36, 0.0 }
 0x3de   : > { %v3130_v46 = vmax.f32 %v2645_v16, 0.0  ;;  %5804 = vmax.xlane.f32.xlu0 %v5803_v34  ;;  %v2960_v57 = vpop.f32.mrf.mxu1  ;;  %v5520_v20 = vpop.xlane.xlu1 %5519  ;;  %4101 = vst [vmem:[%s8047_s20 + $0x190] sm:$0xff] %v6431_v54  ;;  %v2649_v42 = vadd.f32 %v2648_v44, %v9052_v41  ;;  %5621 = vmax.xlane.f32.xlu1 %v5620_v19  ;;  %v9054_v16 = vld [vmem:[#allocation38_spill] sm:$0xff] }
 0x3df   : > { %v2650_v28 = vpop.f32.mrf.mxu0  ;;  %v2961_v47 = vadd.f32 %v2960_v57, %v8323_v53  ;;  %5871 = vst.msk [vmem:[%s8409_s11 + $0x80] sm:$0xff] %vm5854_vm1, %v5520_v20  ;;  %v6494_v31 = vpack.c.bf16 %v3254_v0, %v3253_v39  ;;  %v3255_v7 = vmax.f32 %v8595_v40, 0.0  ;;  %v9053_v53 = vld [vmem:[#allocation35_spill] sm:$0xff]  ;;  %v5809_v18 = vmax.f32 %v3253_v39, %v3254_v0 }
 0x3e0   : > { %v6432_v55 = vpack.c.bf16 %v3130_v46, %v3129_v23  ;;  %v5623_v61 = vmax.f32 %v3129_v23, %v3130_v46  ;;  %v5703_v60 = vpop.xlane.xlu0 %5702  ;;  %v2962_v38 = vpop.f32.mrf.mxu1  ;;  %v2651_v4 = vadd.f32 %v2650_v28, %v9052_v41  ;;  %v3131_v27 = vmax.f32 %v2649_v42, 0.0 }
 0x3e1   : > { %v3256_v1 = vmax.f32 %v2961_v47, 0.0  ;;  %5932 = vst.msk [vmem:[%s8409_s11 + $0x268] sm:$0xff] %vm5854_vm1, %v5703_v60  ;;  %v2652_v43 = vpop.f32.mrf.mxu0  ;;  %4164 = vst [vmem:[%s8047_s20 + $0x388] sm:$0xff] %v6494_v31  ;;  %v2963_v37 = vadd.f32 %v2962_v38, %v8317_v12 }
 0x3e2   : > { %4102 = vst [vmem:[%s8047_s20 + $0x198] sm:$0xff] %v6432_v55  ;;  %v2653_v24 = vadd.f32 %v2652_v43, %v9053_v53  ;;  %5624 = vmax.xlane.f32.xlu0 %v5623_v61  ;;  %v2964_v13 = vpop.f32.mrf.mxu1  ;;  %v5706_v15 = vpop.xlane.xlu1 %5705  ;;  %v3132_v9 = vmax.f32 %v2651_v4, 0.0  ;;  %5807 = vmax.xlane.f32.xlu1 %v5806_v50 }
 0x3e3   : > { %v6495_v14 = vpack.c.bf16 %v3256_v1, %v3255_v7  ;;  %v2654_v58 = vpop.f32.mrf.mxu0  ;;  %5933 = vst.msk [vmem:[%s8409_s11 + $0x270] sm:$0xff] %vm5854_vm1, %v5706_v15  ;;  %v2965_v51 = vadd.f32 %v2964_v13, %v8317_v12  ;;  %v3257_v11 = vmax.f32 %v2963_v37, 0.0  ;;  %v5812_v39 = vmax.f32 %v3255_v7, %v3256_v1 }
 0x3e4   : > { %v2655_v26 = vadd.f32 %v2654_v58, %v9053_v53  ;;  %v5523_v10 = vpop.xlane.xlu0 %5522  ;;  %v2968_v25 = vpop.f32.mrf.mxu1  ;;  %v6433_v29 = vpack.c.bf16 %v3132_v9, %v3131_v27  ;;  %v5626_v49 = vmax.f32 %v3131_v27, %v3132_v9  ;;  %v3133_v5 = vmax.f32 %v2653_v24, 0.0  ;;  %v9056_v58 = vld [vmem:[#allocation40_spill] sm:$0xff] }
 0x3e5   : > { %4165 = vst [vmem:[%s8047_s20 + $0x390] sm:$0xff] %v6495_v14  ;;  %5872 = vst.msk [vmem:[%s8409_s11 + $0x88] sm:$0xff] %vm5854_vm1, %v5523_v10  ;;  %v2658_v48 = vpop.f32.mrf.mxu0  ;;  %v8618_v62 = vadd.f32 %v2968_v25, %v8335_v17  ;;  %v3258_v21 = vmax.f32 %v2965_v51, 0.0 }
 0x3e6   : > { %v3134_v63 = vmax.f32 %v2655_v26, 0.0  ;;  %5810 = vmax.xlane.f32.xlu0 %v5809_v18  ;;  %v2970_v34 = vpop.f32.mrf.mxu1  ;;  %v5526_v12 = vpop.xlane.xlu1 %5525  ;;  %4103 = vst [vmem:[%s8047_s20 + $0x1a0] sm:$0xff] %v6433_v29  ;;  %v2659_v36 = vadd.f32 %v2658_v48, %v9054_v16  ;;  %5627 = vmax.xlane.f32.xlu1 %v5626_v49 }
 0x3e7   : > { %v2660_v52 = vpop.f32.mrf.mxu0  ;;  %v2971_v6 = vadd.f32 %v2970_v34, %v8335_v17  ;;  %5873 = vst.msk [vmem:[%s8409_s11 + $0x90] sm:$0xff] %vm5854_vm1, %v5526_v12  ;;  %v6496_v44 = vpack.c.bf16 %v3258_v21, %v3257_v11  ;;  %v3259_v46 = vmax.f32 %v8618_v62, 0.0  ;;  %v9055_v17 = vld [vmem:[#allocation37_spill] sm:$0xff]  ;;  %v5815_v38 = vmax.f32 %v3257_v11, %v3258_v21 }
 0x3e8   : > { %v6434_v54 = vpack.c.bf16 %v3134_v63, %v3133_v5  ;;  %v5629_v19 = vmax.f32 %v3133_v5, %v3134_v63  ;;  %v5709_v40 = vpop.xlane.xlu0 %5708  ;;  %v2972_v23 = vpop.f32.mrf.mxu1  ;;  %v2661_v0 = vadd.f32 %v2660_v52, %v9054_v16  ;;  %v3135_v55 = vmax.f32 %v2659_v36, 0.0 }
 0x3e9   : > { %v3260_v57 = vmax.f32 %v2971_v6, 0.0  ;;  %5934 = vst.msk [vmem:[%s8409_s11 + $0x278] sm:$0xff] %vm5854_vm1, %v5709_v40  ;;  %v2662_v20 = vpop.f32.mrf.mxu0  ;;  %4166 = vst [vmem:[%s8047_s20 + $0x398] sm:$0xff] %v6496_v44  ;;  %v2973_v42 = vadd.f32 %v2972_v23, %v8331_v59 }
 0x3ea   : > { %4104 = vst [vmem:[%s8047_s20 + $0x1a8] sm:$0xff] %v6434_v54  ;;  %v2663_v41 = vadd.f32 %v2662_v20, %v9055_v17  ;;  %5630 = vmax.xlane.f32.xlu0 %v5629_v19  ;;  %v2974_v28 = vpop.f32.mrf.mxu1  ;;  %v5712_v47 = vpop.xlane.xlu1 %5711  ;;  %v3136_v61 = vmax.f32 %v2661_v0, 0.0  ;;  %5813 = vmax.xlane.f32.xlu1 %v5812_v39 }
 0x3eb   : > { %v6497_v31 = vpack.c.bf16 %v3260_v57, %v3259_v46  ;;  %v2664_v60 = vpop.f32.mrf.mxu0  ;;  %5935 = vst.msk [vmem:[%s8409_s11 + $0x280] sm:$0xff] %vm5854_vm1, %v5712_v47  ;;  %v2975_v7 = vadd.f32 %v2974_v28, %v8331_v59  ;;  %v3261_v15 = vmax.f32 %v2973_v42, 0.0  ;;  %v5818_v62 = vmax.f32 %v3259_v46, %v3260_v57 }
 0x3ec   : > { %v2665_v50 = vadd.f32 %v2664_v60, %v9055_v17  ;;  %v5529_v4 = vpop.xlane.xlu0 %5528  ;;  %v2978_v1 = vpop.f32.mrf.mxu1  ;;  %v6435_v43 = vpack.c.bf16 %v3136_v61, %v3135_v55  ;;  %v5632_v53 = vmax.f32 %v3135_v55, %v3136_v61  ;;  %v3137_v13 = vmax.f32 %v2663_v41, 0.0  ;;  %v9058_v61 = vld [vmem:[#allocation42_spill] sm:$0xff] }
 0x3ed   : > { %4167 = vst [vmem:[%s8047_s20 + $0x3a0] sm:$0xff] %v6497_v31  ;;  %5874 = vst.msk [vmem:[%s8409_s11 + $0x98] sm:$0xff] %vm5854_vm1, %v5529_v4  ;;  %v2668_v24 = vpop.f32.mrf.mxu0  ;;  %v8641_v37 = vadd.f32 %v2978_v1, %v8349_v35  ;;  %v3262_v9 = vmax.f32 %v2975_v7, 0.0 }
 0x3ee   : > { %v3138_v27 = vmax.f32 %v2665_v50, 0.0  ;;  %5816 = vmax.xlane.f32.xlu0 %v5815_v38  ;;  %v2980_v14 = vpop.f32.mrf.mxu1  ;;  %v5532_v59 = vpop.xlane.xlu1 %5531  ;;  %4105 = vst [vmem:[%s8047_s20 + $0x1b0] sm:$0xff] %v6435_v43  ;;  %v2669_v18 = vadd.f32 %v2668_v24, %v9056_v58  ;;  %5633 = vmax.xlane.f32.xlu1 %v5632_v53 }
 0x3ef   : > { %v2670_v26 = vpop.f32.mrf.mxu0  ;;  %v2981_v51 = vadd.f32 %v2980_v14, %v8349_v35  ;;  %5875 = vst.msk [vmem:[%s8409_s11 + $0xa0] sm:$0xff] %vm5854_vm1, %v5532_v59  ;;  %v6498_v29 = vpack.c.bf16 %v3262_v9, %v3261_v15  ;;  %v3263_v5 = vmax.f32 %v8641_v37, 0.0  ;;  %v9057_v35 = vld [vmem:[#allocation39_spill] sm:$0xff]  ;;  %v5821_v44 = vmax.f32 %v3261_v15, %v3262_v9 }
 0x3f0   : > { %v6436_v10 = vpack.c.bf16 %v3138_v27, %v3137_v13  ;;  %v5635_v25 = vmax.f32 %v3137_v13, %v3138_v27  ;;  %v5715_v49 = vpop.xlane.xlu0 %5714  ;;  %v2982_v48 = vpop.f32.mrf.mxu1  ;;  %v2671_v11 = vadd.f32 %v2670_v26, %v9056_v58  ;;  %v3139_v52 = vmax.f32 %v2669_v18, 0.0 }
 0x3f1   : > { %v3264_v63 = vmax.f32 %v2981_v51, 0.0  ;;  %5936 = vst.msk [vmem:[%s8409_s11 + $0x288] sm:$0xff] %vm5854_vm1, %v5715_v49  ;;  %v2672_v21 = vpop.f32.mrf.mxu0  ;;  %4168 = vst [vmem:[%s8047_s20 + $0x3a8] sm:$0xff] %v6498_v29  ;;  %v2983_v12 = vadd.f32 %v2982_v48, %v8343_v22 }
 0x3f2   : > { %4106 = vst [vmem:[%s8047_s20 + $0x1b8] sm:$0xff] %v6436_v10  ;;  %v2673_v34 = vadd.f32 %v2672_v21, %v9057_v35  ;;  %5636 = vmax.xlane.f32.xlu0 %v5635_v25  ;;  %v2984_v16 = vpop.f32.mrf.mxu1  ;;  %v5718_v36 = vpop.xlane.xlu1 %5717  ;;  %v3140_v6 = vmax.f32 %v2671_v11, 0.0  ;;  %5819 = vmax.xlane.f32.xlu1 %v5818_v62 }
 0x3f3   : > { %v6499_v54 = vpack.c.bf16 %v3264_v63, %v3263_v5  ;;  %v2674_v19 = vpop.f32.mrf.mxu0  ;;  %5937 = vst.msk [vmem:[%s8409_s11 + $0x290] sm:$0xff] %vm5854_vm1, %v5718_v36  ;;  %v2985_v23 = vadd.f32 %v2984_v16, %v8343_v22  ;;  %v3265_v42 = vmax.f32 %v2983_v12, 0.0  ;;  %v5824_v53 = vmax.f32 %v3263_v5, %v3264_v63  ;;  %v9060_v36 = vld [vmem:[#allocation44_spill] sm:$0xff] }
 0x3f4   : > { %v2675_v40 = vadd.f32 %v2674_v19, %v9057_v35  ;;  %v5535_v39 = vpop.xlane.xlu0 %5534  ;;  %v2988_v46 = vpop.f32.mrf.mxu1  ;;  %v6437_v0 = vpack.c.bf16 %v3140_v6, %v3139_v52  ;;  %v5638_v57 = vmax.f32 %v3139_v52, %v3140_v6  ;;  %v3141_v41 = vmax.f32 %v2673_v34, 0.0 }
 0x3f5   : > { %4169 = vst [vmem:[%s8047_s20 + $0x3b0] sm:$0xff] %v6499_v54  ;;  %5876 = vst.msk [vmem:[%s8409_s11 + $0xa8] sm:$0xff] %vm5854_vm1, %v5535_v39  ;;  %v2678_v20 = vpop.f32.mrf.mxu0  ;;  %v8664_v17 = vadd.f32 %v2988_v46, %v8361_v3  ;;  %v3266_v47 = vmax.f32 %v2985_v23, 0.0 }
 0x3f6   : > { %v3142_v28 = vmax.f32 %v2675_v40, 0.0  ;;  %5822 = vmax.xlane.f32.xlu0 %v5821_v44  ;;  %v2990_v55 = vpop.f32.mrf.mxu1  ;;  %v5538_v22 = vpop.xlane.xlu1 %5537  ;;  %4107 = vst [vmem:[%s8047_s20 + $0x1c0] sm:$0xff] %v6437_v0  ;;  %v2679_v31 = vadd.f32 %v2678_v20, %v9058_v61  ;;  %5639 = vmax.xlane.f32.xlu1 %v5638_v57 }
 0x3f7   : > { %v2680_v60 = vpop.f32.mrf.mxu0  ;;  %v2991_v38 = vadd.f32 %v2990_v55, %v8361_v3  ;;  %5877 = vst.msk [vmem:[%s8409_s11 + $0xb0] sm:$0xff] %vm5854_vm1, %v5538_v22  ;;  %v6500_v4 = vpack.c.bf16 %v3266_v47, %v3265_v42  ;;  %v3267_v24 = vmax.f32 %v8664_v17, 0.0  ;;  %v9059_v3 = vld [vmem:[#allocation41_spill] sm:$0xff]  ;;  %v5827_v10 = vmax.f32 %v3265_v42, %v3266_v47 }
 0x3f8   : > { %v6438_v50 = vpack.c.bf16 %v3142_v28, %v3141_v41  ;;  %v5641_v7 = vmax.f32 %v3141_v41, %v3142_v28  ;;  %v5721_v1 = vpop.xlane.xlu0 %5720  ;;  %v2992_v43 = vpop.f32.mrf.mxu1  ;;  %v2681_v37 = vadd.f32 %v2680_v60, %v9058_v61  ;;  %v3143_v58 = vmax.f32 %v2679_v31, 0.0 }
 0x3f9   : > { %v3268_v13 = vmax.f32 %v2991_v38, 0.0  ;;  %5938 = vst.msk [vmem:[%s8409_s11 + $0x298] sm:$0xff] %vm5854_vm1, %v5721_v1  ;;  %v2682_v15 = vpop.f32.mrf.mxu0  ;;  %4170 = vst [vmem:[%s8047_s20 + $0x3b8] sm:$0xff] %v6500_v4  ;;  %v2993_v9 = vadd.f32 %v2992_v43, %v8357_v56 }
 0x3fa   : > { %4108 = vst [vmem:[%s8047_s20 + $0x1c8] sm:$0xff] %v6438_v50  ;;  %v2683_v27 = vadd.f32 %v2682_v15, %v9059_v3  ;;  %5642 = vmax.xlane.f32.xlu0 %v5641_v7  ;;  %v2994_v14 = vpop.f32.mrf.mxu1  ;;  %v5724_v59 = vpop.xlane.xlu1 %5723  ;;  %v3144_v18 = vmax.f32 %v2681_v37, 0.0  ;;  %5825 = vmax.xlane.f32.xlu1 %v5824_v53 }
 0x3fb   : > { %v6501_v26 = vpack.c.bf16 %v3268_v13, %v3267_v24  ;;  %v2684_v51 = vpop.f32.mrf.mxu0  ;;  %5939 = vst.msk [vmem:[%s8409_s11 + $0x2a0] sm:$0xff] %vm5854_vm1, %v5724_v59  ;;  %v2995_v29 = vadd.f32 %v2994_v14, %v8357_v56  ;;  %v3269_v35 = vmax.f32 %v2993_v9, 0.0  ;;  %v5830_v46 = vmax.f32 %v3267_v24, %v3268_v13 }
 0x3fc   : > { %v2685_v25 = vadd.f32 %v2684_v51, %v9059_v3  ;;  %v5541_v49 = vpop.xlane.xlu0 %5540  ;;  %v2998_v48 = vpop.f32.mrf.mxu1  ;;  %v6439_v62 = vpack.c.bf16 %v3144_v18, %v3143_v58  ;;  %v5644_v5 = vmax.f32 %v3143_v58, %v3144_v18  ;;  %v3145_v21 = vmax.f32 %v2683_v27, 0.0 }
 0x3fd   : > { %4171 = vst [vmem:[%s8047_s20 + $0x3c0] sm:$0xff] %v6501_v26  ;;  %5878 = vst.msk [vmem:[%s8409_s11 + $0xb8] sm:$0xff] %vm5854_vm1, %v5541_v49  ;;  %v2688_v11 = vpop.f32.mrf.mxu0  ;;  %v8687_v63 = vadd.f32 %v2998_v48, %v8375_v8  ;;  %v3270_v12 = vmax.f32 %v2995_v29, 0.0 }
 0x3fe   : > { %v3146_v34 = vmax.f32 %v2685_v25, 0.0  ;;  %5828 = vmax.xlane.f32.xlu0 %v5827_v10  ;;  %v3000_v16 = vpop.f32.mrf.mxu1  ;;  %v5544_v56 = vpop.xlane.xlu1 %5543  ;;  %4109 = vst [vmem:[%s8047_s20 + $0x1d0] sm:$0xff] %v6439_v62  ;;  %v2689_v52 = vadd.f32 %v2688_v11, %v9060_v36  ;;  %5645 = vmax.xlane.f32.xlu1 %v5644_v5 }
 0x3ff   : > { %v2690_v6 = vpop.f32.mrf.mxu0  ;;  %v3001_v54 = vadd.f32 %v3000_v16, %v8375_v8  ;;  %5879 = vst.msk [vmem:[%s8409_s11 + $0xc0] sm:$0xff] %vm5854_vm1, %v5544_v56  ;;  %v6502_v40 = vpack.c.bf16 %v3270_v12, %v3269_v35  ;;  %v3271_v0 = vmax.f32 %v8687_v63, 0.0  ;;  %v9061_v8 = vld [vmem:[#allocation43_spill] sm:$0xff]  ;;  %v5833_v60 = vmax.f32 %v3269_v35, %v3270_v12 }
 0x400   : > { %v6440_v19 = vpack.c.bf16 %v3146_v34, %v3145_v21  ;;  %v5647_v44 = vmax.f32 %v3145_v21, %v3146_v34  ;;  %v5727_v23 = vpop.xlane.xlu0 %5726  ;;  %v3002_v39 = vpop.f32.mrf.mxu1  ;;  %v2691_v57 = vadd.f32 %v2690_v6, %v9060_v36  ;;  %v3147_v55 = vmax.f32 %v2689_v52, 0.0 }
 0x401   : > { %v3272_v20 = vmax.f32 %v3001_v54, 0.0  ;;  %5940 = vst.msk [vmem:[%s8409_s11 + $0x2a8] sm:$0xff] %vm5854_vm1, %v5727_v23  ;;  %v2692_v17 = vpop.f32.mrf.mxu0  ;;  %4172 = vst [vmem:[%s8047_s20 + $0x3c8] sm:$0xff] %v6502_v40  ;;  %v3003_v42 = vadd.f32 %v3002_v39, %v8369_v33 }
 0x402   : > { %4110 = vst [vmem:[%s8047_s20 + $0x1d8] sm:$0xff] %v6440_v19  ;;  %v2693_v41 = vadd.f32 %v2692_v17, %v9061_v8  ;;  %5648 = vmax.xlane.f32.xlu0 %v5647_v44  ;;  %v3004_v28 = vpop.f32.mrf.mxu1  ;;  %v5730_v47 = vpop.xlane.xlu1 %5729  ;;  %v3148_v22 = vmax.f32 %v2691_v57, 0.0  ;;  %5831 = vmax.xlane.f32.xlu1 %v5830_v46 }
 0x403   : > { %v6503_v61 = vpack.c.bf16 %v3272_v20, %v3271_v0  ;;  %v2694_v31 = vpop.f32.mrf.mxu0  ;;  %5941 = vst.msk [vmem:[%s8409_s11 + $0x2b0] sm:$0xff] %vm5854_vm1, %v5730_v47  ;;  %v3005_v50 = vadd.f32 %v3004_v28, %v8369_v33  ;;  %v3273_v37 = vmax.f32 %v3003_v42, 0.0  ;;  %v5836_v26 = vmax.f32 %v3271_v0, %v3272_v20 }
 0x404   : > { %v2695_v38 = vadd.f32 %v2694_v31, %v9061_v8  ;;  %v5547_v7 = vpop.xlane.xlu0 %5546  ;;  %v3008_v4 = vpop.f32.mrf.mxu1  ;;  %v6441_v1 = vpack.c.bf16 %v3148_v22, %v3147_v55  ;;  %v5650_v43 = vmax.f32 %v3147_v55, %v3148_v22  ;;  %v3149_v24 = vmax.f32 %v2693_v41, 0.0 }
 0x405   : > { %4173 = vst [vmem:[%s8047_s20 + $0x3d0] sm:$0xff] %v6503_v61  ;;  %5880 = vst.msk [vmem:[%s8409_s11 + $0xc8] sm:$0xff] %vm5854_vm1, %v5547_v7  ;;  %v3009_v53 = vadd.f32 %v3008_v4, %v8387_v45  ;;  %v3274_v15 = vmax.f32 %v3005_v50, 0.0 }
 0x406   : > { %v3150_v13 = vmax.f32 %v2695_v38, 0.0  ;;  %5834 = vmax.xlane.f32.xlu0 %v5833_v60  ;;  %v3010_v3 = vpop.f32.mrf.mxu1  ;;  %v5550_v27 = vpop.xlane.xlu1 %5549  ;;  %4111 = vst [vmem:[%s8047_s20 + $0x1e0] sm:$0xff] %v6441_v1  ;;  %5651 = vmax.xlane.f32.xlu1 %v5650_v43 }
 0x407   : > { %v3011_v33 = vadd.f32 %v3010_v3, %v8387_v45  ;;  %5881 = vst.msk [vmem:[%s8409_s11 + $0xd0] sm:$0xff] %vm5854_vm1, %v5550_v27  ;;  %v6504_v59 = vpack.c.bf16 %v3274_v15, %v3273_v37  ;;  %v3275_v51 = vmax.f32 %v3009_v53, 0.0  ;;  %v5839_v5 = vmax.f32 %v3273_v37, %v3274_v15 }
 0x408   : > { %v6442_v9 = vpack.c.bf16 %v3150_v13, %v3149_v24  ;;  %v5653_v14 = vmax.f32 %v3149_v24, %v3150_v13  ;;  %v5733_v58 = vpop.xlane.xlu0 %5732  ;;  %v3012_v18 = vpop.f32.mrf.mxu1 }
 0x409   : > { %v3276_v10 = vmax.f32 %v3011_v33, 0.0  ;;  %5942 = vst.msk [vmem:[%s8409_s11 + $0x2b8] sm:$0xff] %vm5854_vm1, %v5733_v58  ;;  %v3013_v25 = vadd.f32 %v3012_v18, %v8383_v32  ;;  %4174 = vst [vmem:[%s8047_s20 + $0x3d8] sm:$0xff] %v6504_v59 }
 0x40a   : > { %4112 = vst [vmem:[%s8047_s20 + $0x1e8] sm:$0xff] %v6442_v9  ;;  %5654 = vmax.xlane.f32.xlu0 %v5653_v14  ;;  %v3014_v45 = vpop.f32.mrf.mxu1  ;;  %v5736_v29 = vpop.xlane.xlu1 %5735  ;;  %5837 = vmax.xlane.f32.xlu1 %v5836_v26 }
 0x40b   : > { %v6505_v49 = vpack.c.bf16 %v3276_v10, %v3275_v51  ;;  %v5842_v48 = vmax.f32 %v3275_v51, %v3276_v10  ;;  %v3015_v62 = vadd.f32 %v3014_v45, %v8383_v32  ;;  %5943 = vst.msk [vmem:[%s8409_s11 + $0x2c0] sm:$0xff] %vm5854_vm1, %v5736_v29  ;;  %v3277_v21 = vmax.f32 %v3013_v25, 0.0 }
 0x40c   : > { %v5553_v11 = vpop.xlane.xlu0 %5552  ;;  %v3018_v63 = vpop.f32.mrf.mxu1 }
 0x40d   : > { %4175 = vst [vmem:[%s8047_s20 + $0x3e0] sm:$0xff] %v6505_v49  ;;  %v3278_v35 = vmax.f32 %v3015_v62, 0.0  ;;  %5882 = vst.msk [vmem:[%s8409_s11 + $0xd8] sm:$0xff] %vm5854_vm1, %v5553_v11  ;;  %v3019_v34 = vadd.f32 %v3018_v63, %v8402_v30 }
 0x40e   : > { %5840 = vmax.xlane.f32.xlu0 %v5839_v5  ;;  %v3020_v12 = vpop.f32.mrf.mxu1  ;;  %v5556_v16 = vpop.xlane.xlu1 %5555  ;;  %5843 = vmax.xlane.f32.xlu1 %v5842_v48 }
 0x40f   : > { %v6506_v56 = vpack.c.bf16 %v3278_v35, %v3277_v21  ;;  %v5845_v32 = vmax.f32 %v3277_v21, %v3278_v35  ;;  %v3021_v36 = vadd.f32 %v3020_v12, %v8402_v30  ;;  %5883 = vst.msk [vmem:[%s8409_s11 + $0xe0] sm:$0xff] %vm5854_vm1, %v5556_v16  ;;  %v3279_v54 = vmax.f32 %v3019_v34, 0.0 }
 0x410   : > { %v5739_v52 = vpop.xlane.xlu0 %5738  ;;  %v3022_v6 = vpop.f32.mrf.mxu1 }
 0x411   : > { %4176 = vst [vmem:[%s8047_s20 + $0x3e8] sm:$0xff] %v6506_v56  ;;  %v3280_v19 = vmax.f32 %v3021_v36, 0.0  ;;  %5944 = vst.msk [vmem:[%s8409_s11 + $0x2c8] sm:$0xff] %vm5854_vm1, %v5739_v52  ;;  %v3023_v44 = vadd.f32 %v3022_v6, %v8395_v2 }
 0x412   : > { %5846 = vmax.xlane.f32.xlu0 %v5845_v32  ;;  %v3024_v40 = vpop.f32.mrf.mxu1  ;;  %v5742_v23 = vpop.xlane.xlu1 %5741 }
 0x413   : > { %v6507_v39 = vpack.c.bf16 %v3280_v19, %v3279_v54  ;;  %v5848_v30 = vmax.f32 %v3279_v54, %v3280_v19  ;;  %v3025_v46 = vadd.f32 %v3024_v40, %v8395_v2  ;;  %5945 = vst.msk [vmem:[%s8409_s11 + $0x2d0] sm:$0xff] %vm5854_vm1, %v5742_v23  ;;  %v3281_v57 = vmax.f32 %v3023_v44, 0.0 }
 0x414   : > { %v5559_v0 = vpop.xlane.xlu0 %5558 }
 0x415   : > { %4177 = vst [vmem:[%s8047_s20 + $0x3f0] sm:$0xff] %v6507_v39  ;;  %v3282_v20 = vmax.f32 %v3025_v46, 0.0  ;;  %5884 = vst.msk [vmem:[%s8409_s11 + $0xe8] sm:$0xff] %vm5854_vm1, %v5559_v0  ;;  %5849 = vmax.xlane.f32.xlu1 %v5848_v30 }
 0x416   : > { %v5562_v17 = vpop.xlane.xlu1 %5561 }
 0x417   : > { %v6508_v8 = vpack.c.bf16 %v3282_v20, %v3281_v57  ;;  %v5851_v41 = vmax.f32 %v3281_v57, %v3282_v20  ;;  %5885 = vst.msk [vmem:[%s8409_s11 + $0xf0] sm:$0xff] %vm5854_vm1, %v5562_v17 }
 0x418   : > { %v5745_v2 = vpop.xlane.xlu0 %5744 }
 0x419   : > { %4178 = vst [vmem:[%s8047_s20 + $0x3f8] sm:$0xff] %v6508_v8  ;;  %5946 = vst.msk [vmem:[%s8409_s11 + $0x2d8] sm:$0xff] %vm5854_vm1, %v5745_v2  ;;  %5852 = vmax.xlane.f32.xlu0 %v5851_v41  ;;  %s6958_s20 = sshll.u32 %s7033_s24, 4  ;;  %s6959_s20 = int_to_ptr.vmem [resolvable:$false] %s6958_s20 }
 0x41a   : > { %v5748_v42 = vpop.xlane.xlu1 %5747  ;;  %s6960_s21 = scalar_lea.vmem %s6959_s20, 32768  ;;  %p6961_p1 = scmp.lt.s32.totalorder %s8763_s22, %s6959_s20 }
 0x41b   : > { %5947 = vst.msk [vmem:[%s8409_s11 + $0x2e0] sm:$0xff] %vm5854_vm1, %v5748_v42  ;;  %p6962_p2 = scmp.lt.s32.totalorder %s6960_s21, %s6954_s30 }
 0x41c   : > { %v5565_v28 = vpop.xlane.xlu0 %5564 }
 0x41d   : > { %5886 = vst.msk [vmem:[%s8409_s11 + $0xf8] sm:$0xff] %vm5854_vm1, %v5565_v28  ;;  %p6963_p3 = por %p6962_p2, %p6961_p1 }
 0x41e   : > { %v5568_v47 = vpop.xlane.xlu1 %5567 }
 0x41f   : > { %5887 = vst.msk [vmem:[%s8409_s11 + $0x100] sm:$0xff] %vm5854_vm1, %v5568_v47  ;;  %p6964_p5 = pnand %p6963_p3, %p6957_p0 }
 0x420   : > { %v5751_v55 = vpop.xlane.xlu0 %5750 }
 0x421   : > { %5948 = vst.msk [vmem:[%s8409_s11 + $0x2e8] sm:$0xff] %vm5854_vm1, %v5751_v55 }
 0x422   : > { %v5754_v22 = vpop.xlane.xlu1 %5753 }
 0x423   : > { %5949 = vst.msk [vmem:[%s8409_s11 + $0x2f0] sm:$0xff] %vm5854_vm1, %v5754_v22 }
 0x424   : > { %v5571_v61 = vpop.xlane.xlu0 %5570 }
 0x425   : > { %5888 = vst.msk [vmem:[%s8409_s11 + $0x108] sm:$0xff] %vm5854_vm1, %v5571_v61 }
 0x426   : > { %v5574_v31 = vpop.xlane.xlu1 %5573 }
 0x427   : > { %5889 = vst.msk [vmem:[%s8409_s11 + $0x110] sm:$0xff] %vm5854_vm1, %v5574_v31 }
 0x428   : > { %6967 = shalt.err (!%p6964_p5)
}
 0x429   : > { %s6968_s26 = scalar_lea.hbm %s8758_s19, 16384  ;;  %s6972_s14 = scalar_lea.hbm %s8941_s7, 32768 }
 0x42a   : > { %p6969_p6 = scmp.ne.s32.totalorder %s8758_s19, %s6968_s26  ;;  %p6973_p10 = scmp.lt.s32.totalorder %s8758_s19, %s8941_s7 }
 0x42b   : > { %p6974_p11 = scmp.lt.s32.totalorder %s6972_s14, %s6968_s26 }
 0x42c   : > { %p6970_p7 = pnand %p6969_p6, %p7121_p4 }
 0x42d   : > { %p6975_p12 = por %p6974_p11, %p6973_p10 }
 0x42e   : > { %p6971_p9 = pneg %p6970_p7 }
 0x430   : > { %p6976_p13 = pnand %p6975_p12, %p6971_p9 }
 0x432   : > { %6979 = shalt.err (!%p6976_p13)
}
 0x433   : > { %s7034_s30 = smov 128   ;;  %s7035_s20 = smov 8   ;;  %v5757_v60 = vpop.xlane.xlu0 %5756  ;;  %v5760_v38 = vpop.xlane.xlu1 %5759 }
 0x434   : > { %6802 = dma.vmem_to_hbm [thread:$0]  (%p7121_p4), %s8763_s22, 16384, %s8758_s19, %s8769_s23, %s7034_s30, %s7034_s30, %s7035_s20  }
 0x435   : > { %5950 = vst.msk [vmem:[%s8409_s11 + $0x2f8] sm:$0xff] %vm5854_vm1, %v5757_v60  ;;  %5951 = vst.msk [vmem:[%s8409_s11 + $0x300] sm:$0xff] %vm5854_vm1, %v5760_v38 }
 0x437   : > { %v5577_v50 = vpop.xlane.xlu0 %5576  ;;  %v5580_v7 = vpop.xlane.xlu1 %5579 }
 0x438   : > { %5890 = vst.msk [vmem:[%s8409_s11 + $0x118] sm:$0xff] %vm5854_vm1, %v5577_v50  ;;  %5891 = vst.msk [vmem:[%s8409_s11 + $0x120] sm:$0xff] %vm5854_vm1, %v5580_v7 }
 0x43b   : > { %v5763_v4 = vpop.xlane.xlu0 %5762  ;;  %v5766_v1 = vpop.xlane.xlu1 %5765 }
 0x43c   : > { %5952 = vst.msk [vmem:[%s8409_s11 + $0x308] sm:$0xff] %vm5854_vm1, %v5763_v4  ;;  %5953 = vst.msk [vmem:[%s8409_s11 + $0x310] sm:$0xff] %vm5854_vm1, %v5766_v1 }
 0x43f   : > { %v5583_v43 = vpop.xlane.xlu0 %5582  ;;  %v5586_v53 = vpop.xlane.xlu1 %5585 }
 0x440   : > { %5892 = vst.msk [vmem:[%s8409_s11 + $0x128] sm:$0xff] %vm5854_vm1, %v5583_v43  ;;  %5893 = vst.msk [vmem:[%s8409_s11 + $0x130] sm:$0xff] %vm5854_vm1, %v5586_v53 }
 0x443   : > { %v5769_v24 = vpop.xlane.xlu0 %5768  ;;  %v5772_v37 = vpop.xlane.xlu1 %5771 }
 0x444   : > { %5954 = vst.msk [vmem:[%s8409_s11 + $0x318] sm:$0xff] %vm5854_vm1, %v5769_v24  ;;  %5955 = vst.msk [vmem:[%s8409_s11 + $0x320] sm:$0xff] %vm5854_vm1, %v5772_v37 }
 0x447   : > { %v5589_v13 = vpop.xlane.xlu0 %5588  ;;  %v5592_v15 = vpop.xlane.xlu1 %5591 }
 0x448   : > { %5894 = vst.msk [vmem:[%s8409_s11 + $0x138] sm:$0xff] %vm5854_vm1, %v5589_v13  ;;  %5895 = vst.msk [vmem:[%s8409_s11 + $0x140] sm:$0xff] %vm5854_vm1, %v5592_v15 }
 0x44b   : > { %v5775_v3 = vpop.xlane.xlu0 %5774  ;;  %v5778_v27 = vpop.xlane.xlu1 %5777 }
 0x44c   : > { %5956 = vst.msk [vmem:[%s8409_s11 + $0x328] sm:$0xff] %vm5854_vm1, %v5775_v3  ;;  %5957 = vst.msk [vmem:[%s8409_s11 + $0x330] sm:$0xff] %vm5854_vm1, %v5778_v27 }
 0x44f   : > { %v5595_v33 = vpop.xlane.xlu0 %5594  ;;  %v5598_v9 = vpop.xlane.xlu1 %5597 }
 0x450   : > { %5896 = vst.msk [vmem:[%s8409_s11 + $0x148] sm:$0xff] %vm5854_vm1, %v5595_v33  ;;  %5897 = vst.msk [vmem:[%s8409_s11 + $0x150] sm:$0xff] %vm5854_vm1, %v5598_v9 }
 0x453   : > { %v5781_v14 = vpop.xlane.xlu0 %5780  ;;  %v5784_v59 = vpop.xlane.xlu1 %5783 }
 0x454   : > { %5958 = vst.msk [vmem:[%s8409_s11 + $0x338] sm:$0xff] %vm5854_vm1, %v5781_v14  ;;  %5959 = vst.msk [vmem:[%s8409_s11 + $0x340] sm:$0xff] %vm5854_vm1, %v5784_v59 }
 0x457   : > { %v5601_v58 = vpop.xlane.xlu0 %5600  ;;  %v5604_v18 = vpop.xlane.xlu1 %5603 }
 0x458   : > { %5898 = vst.msk [vmem:[%s8409_s11 + $0x158] sm:$0xff] %vm5854_vm1, %v5601_v58  ;;  %5899 = vst.msk [vmem:[%s8409_s11 + $0x160] sm:$0xff] %vm5854_vm1, %v5604_v18 }
 0x45b   : > { %v5787_v26 = vpop.xlane.xlu0 %5786  ;;  %v5790_v51 = vpop.xlane.xlu1 %5789 }
 0x45c   : > { %5960 = vst.msk [vmem:[%s8409_s11 + $0x348] sm:$0xff] %vm5854_vm1, %v5787_v26  ;;  %5961 = vst.msk [vmem:[%s8409_s11 + $0x350] sm:$0xff] %vm5854_vm1, %v5790_v51 }
 0x45f   : > { %v5607_v10 = vpop.xlane.xlu0 %5606  ;;  %v5610_v25 = vpop.xlane.xlu1 %5609 }
 0x460   : > { %5900 = vst.msk [vmem:[%s8409_s11 + $0x168] sm:$0xff] %vm5854_vm1, %v5607_v10  ;;  %5901 = vst.msk [vmem:[%s8409_s11 + $0x170] sm:$0xff] %vm5854_vm1, %v5610_v25 }
 0x463   : > { %v5793_v45 = vpop.xlane.xlu0 %5792  ;;  %v5796_v29 = vpop.xlane.xlu1 %5795 }
 0x464   : > { %5962 = vst.msk [vmem:[%s8409_s11 + $0x358] sm:$0xff] %vm5854_vm1, %v5793_v45  ;;  %5963 = vst.msk [vmem:[%s8409_s11 + $0x360] sm:$0xff] %vm5854_vm1, %v5796_v29 }
 0x467   : > { %v5613_v49 = vpop.xlane.xlu0 %5612  ;;  %v5616_v48 = vpop.xlane.xlu1 %5615 }
 0x468   : > { %5902 = vst.msk [vmem:[%s8409_s11 + $0x178] sm:$0xff] %vm5854_vm1, %v5613_v49  ;;  %5903 = vst.msk [vmem:[%s8409_s11 + $0x180] sm:$0xff] %vm5854_vm1, %v5616_v48 }
 0x46b   : > { %v5799_v62 = vpop.xlane.xlu0 %5798  ;;  %v5802_v5 = vpop.xlane.xlu1 %5801 }
 0x46c   : > { %5964 = vst.msk [vmem:[%s8409_s11 + $0x368] sm:$0xff] %vm5854_vm1, %v5799_v62  ;;  %5965 = vst.msk [vmem:[%s8409_s11 + $0x370] sm:$0xff] %vm5854_vm1, %v5802_v5 }
 0x46f   : > { %v5619_v11 = vpop.xlane.xlu0 %5618  ;;  %v5622_v63 = vpop.xlane.xlu1 %5621 }
 0x470   : > { %5904 = vst.msk [vmem:[%s8409_s11 + $0x188] sm:$0xff] %vm5854_vm1, %v5619_v11  ;;  %5905 = vst.msk [vmem:[%s8409_s11 + $0x190] sm:$0xff] %vm5854_vm1, %v5622_v63 }
 0x473   : > { %v5805_v21 = vpop.xlane.xlu0 %5804  ;;  %v5808_v35 = vpop.xlane.xlu1 %5807 }
 0x474   : > { %5966 = vst.msk [vmem:[%s8409_s11 + $0x378] sm:$0xff] %vm5854_vm1, %v5805_v21  ;;  %5967 = vst.msk [vmem:[%s8409_s11 + $0x380] sm:$0xff] %vm5854_vm1, %v5808_v35 }
 0x477   : > { %v5625_v34 = vpop.xlane.xlu0 %5624  ;;  %v5628_v12 = vpop.xlane.xlu1 %5627 }
 0x478   : > { %5906 = vst.msk [vmem:[%s8409_s11 + $0x198] sm:$0xff] %vm5854_vm1, %v5625_v34  ;;  %5907 = vst.msk [vmem:[%s8409_s11 + $0x1a0] sm:$0xff] %vm5854_vm1, %v5628_v12 }
 0x47b   : > { %v5811_v16 = vpop.xlane.xlu0 %5810  ;;  %v5814_v56 = vpop.xlane.xlu1 %5813 }
 0x47c   : > { %5968 = vst.msk [vmem:[%s8409_s11 + $0x388] sm:$0xff] %vm5854_vm1, %v5811_v16  ;;  %5969 = vst.msk [vmem:[%s8409_s11 + $0x390] sm:$0xff] %vm5854_vm1, %v5814_v56 }
 0x47f   : > { %v5631_v32 = vpop.xlane.xlu0 %5630  ;;  %v5634_v36 = vpop.xlane.xlu1 %5633 }
 0x480   : > { %5908 = vst.msk [vmem:[%s8409_s11 + $0x1a8] sm:$0xff] %vm5854_vm1, %v5631_v32  ;;  %5909 = vst.msk [vmem:[%s8409_s11 + $0x1b0] sm:$0xff] %vm5854_vm1, %v5634_v36 }
 0x483   : > { %v5817_v52 = vpop.xlane.xlu0 %5816  ;;  %v5820_v6 = vpop.xlane.xlu1 %5819 }
 0x484   : > { %5970 = vst.msk [vmem:[%s8409_s11 + $0x398] sm:$0xff] %vm5854_vm1, %v5817_v52  ;;  %5971 = vst.msk [vmem:[%s8409_s11 + $0x3a0] sm:$0xff] %vm5854_vm1, %v5820_v6 }
 0x487   : > { %v5637_v54 = vpop.xlane.xlu0 %5636  ;;  %v5640_v19 = vpop.xlane.xlu1 %5639 }
 0x488   : > { %5910 = vst.msk [vmem:[%s8409_s11 + $0x1b8] sm:$0xff] %vm5854_vm1, %v5637_v54  ;;  %5911 = vst.msk [vmem:[%s8409_s11 + $0x1c0] sm:$0xff] %vm5854_vm1, %v5640_v19 }
 0x48b   : > { %v5823_v44 = vpop.xlane.xlu0 %5822  ;;  %v5826_v40 = vpop.xlane.xlu1 %5825 }
 0x48c   : > { %5972 = vst.msk [vmem:[%s8409_s11 + $0x3a8] sm:$0xff] %vm5854_vm1, %v5823_v44  ;;  %5973 = vst.msk [vmem:[%s8409_s11 + $0x3b0] sm:$0xff] %vm5854_vm1, %v5826_v40 }
 0x48f   : > { %v5643_v23 = vpop.xlane.xlu0 %5642  ;;  %v5646_v39 = vpop.xlane.xlu1 %5645 }
 0x490   : > { %5912 = vst.msk [vmem:[%s8409_s11 + $0x1c8] sm:$0xff] %vm5854_vm1, %v5643_v23  ;;  %5913 = vst.msk [vmem:[%s8409_s11 + $0x1d0] sm:$0xff] %vm5854_vm1, %v5646_v39 }
 0x493   : > { %v5829_v30 = vpop.xlane.xlu0 %5828  ;;  %v5832_v46 = vpop.xlane.xlu1 %5831 }
 0x494   : > { %5974 = vst.msk [vmem:[%s8409_s11 + $0x3b8] sm:$0xff] %vm5854_vm1, %v5829_v30  ;;  %5975 = vst.msk [vmem:[%s8409_s11 + $0x3c0] sm:$0xff] %vm5854_vm1, %v5832_v46 }
 0x497   : > { %v5649_v0 = vpop.xlane.xlu0 %5648  ;;  %v5652_v57 = vpop.xlane.xlu1 %5651 }
 0x498   : > { %5914 = vst.msk [vmem:[%s8409_s11 + $0x1d8] sm:$0xff] %vm5854_vm1, %v5649_v0  ;;  %5915 = vst.msk [vmem:[%s8409_s11 + $0x1e0] sm:$0xff] %vm5854_vm1, %v5652_v57 }
 0x49b   : > { %v5835_v20 = vpop.xlane.xlu0 %5834  ;;  %v5838_v17 = vpop.xlane.xlu1 %5837 }
 0x49c   : > { %5976 = vst.msk [vmem:[%s8409_s11 + $0x3c8] sm:$0xff] %vm5854_vm1, %v5835_v20  ;;  %5977 = vst.msk [vmem:[%s8409_s11 + $0x3d0] sm:$0xff] %vm5854_vm1, %v5838_v17 }
 0x49f   : > { %v5655_v8 = vpop.xlane.xlu0 %5654  ;;  %v5844_v41 = vpop.xlane.xlu1 %5843 }
 0x4a0   : > { %5916 = vst.msk [vmem:[%s8409_s11 + $0x1e8] sm:$0xff] %vm5854_vm1, %v5655_v8  ;;  %5979 = vst.msk [vmem:[%s8409_s11 + $0x3e0] sm:$0xff] %vm5854_vm1, %v5844_v41 }
 0x4a3   : > { %v5841_v2 = vpop.xlane.xlu0 %5840  ;;  %v5850_v28 = vpop.xlane.xlu1 %5849 }
 0x4a4   : > { %5978 = vst.msk [vmem:[%s8409_s11 + $0x3d8] sm:$0xff] %vm5854_vm1, %v5841_v2  ;;  %5981 = vst.msk [vmem:[%s8409_s11 + $0x3f0] sm:$0xff] %vm5854_vm1, %v5850_v28 }
 0x4a7   : > { %v5847_v42 = vpop.xlane.xlu0 %5846 }
 0x4a8   : > { %5980 = vst.msk [vmem:[%s8409_s11 + $0x3e8] sm:$0xff] %vm5854_vm1, %v5847_v42 }
 0x4ab   : > { %v5853_v47 = vpop.xlane.xlu0 %5852 }
 0x4ac   : > { %5982 = vst.msk [vmem:[%s8409_s11 + $0x3f8] sm:$0xff] %vm5854_vm1, %v5853_v47 }
 0x4ad PF: > { %p6808_p4 = scmp.ge.s32.totalorder %s7030_s10, 2  ;;  %s6022_s15 = sand.u32 1, %s7010_s27  }
 0x4ae   : > { %s6023_s19 = scalar_lea.sflag [#allocation4], %s6022_s15 }
 0x4af   : > { %p6805_p0 = pnand %p6808_p4, %p7128_p8 }
 0x4b1   : > { %p6806_p1 = pneg %p6805_p0 }
 0x4b3   : > { %7005 = dma.done.wait (%p6806_p1), %s6023_s19, 16384  }
 0x4b4   : > { %7007 = vsyncadd (%p6806_p1), %s6023_s19, 4294950912  ;;  %s22_s10 = sadd.s32 1, %s7030_s10   ;;  %s9062_s27 = smov %s7014_s28 }
 0x4b5   : > { %p19_p2 = scmp.ge.s32.totalorder %s22_s10, 4   ;;  %s9063_s28 = smov %s7018_s29 }
 0x4b6   : > { %s9064_s29 = smov %s7134_s18  ;;  %s9065_s30 = smov %s7026_s9 }
 0x4b7   : > { %s9066_s9 = smov %s9068_s13  ;;  %21 = sbr.rel (!%p19_p2) target bundleno = 4 (0x4), region = 110 }
 0x4bc   :  { %6036 = vsyncpa [#allocation4], 1 }
 0x4bd   :  { %6038 = vsyncpa [#allocation4 + $0x1], 1 }

</bundles_post_ra>
